<compile_context>
chip_gen: v6e
topology: v6e:2x2x1
jax: 0.10.0
libtpu: 0.0.40
codegen_flags: <defaults>
</compile_context>

<pallas_src>
import functools

import jax
import jax.numpy as jnp
from jax import lax
from jax.experimental import pallas as pl
from jax.experimental.pallas import tpu as pltpu

LRELU_SLOPE = 0.2
BN_EPS = 1e-5
# All block choices below stay well under this cap; raise it (v5e/v6e have
# 128 MiB physical VMEM) only together with larger tiles.
_VMEM_LIMIT = 32 * 1024 * 1024


def _pick_tile(dim, candidates):
    """Largest candidate that exactly divides `dim`.  Candidate lists below
    always end in a value that divides (1 for batch grouping, 128 for fc1's K),
    so we never silently fall back to a single un-pipelined whole-dim block."""
    for c in candidates:
        if dim % c == 0:
            return c
    return dim


# ----------------------------------------------------------------------------
# Kernel 1 (conv2 stage 1, im2col fused): the 4x4 stride-2 conv is expressed as
# a 2x2 stride-1 conv over the space-to-depth input z (256 channels).  Each
# grid step handles `nb` images; per image the kernel runs 4 shifted-window
# (orows,256)x(256,128) MXU matmuls directly on the z tile, adds the bias,
# writes the pre-BN activations in a "padded" per-image row layout
# (orows = Ho*Wp rows; the ow'=Wo column is garbage and is stripped later),
# and emits per-grid-step partial per-channel sum / sum-of-squares for
# BatchNorm2d.  Stats are per-tile outputs (no read-modify-write), so the grid
# axis is "parallel" (on v7x this shards across both TensorCores).
# ----------------------------------------------------------------------------
def _conv2_s2d_stats_kernel(z_ref, w_ref, b_ref, mask_ref,
                            y_ref, sum_ref, ssq_ref, *, nb, wp, orows):
    bias = b_ref[...]                      # (1, 128) f32
    mask = mask_ref[...]                   # (orows, 1) f32: 1 valid, 0 garbage
    s_acc = jnp.zeros((1, 128), jnp.float32)
    q_acc = jnp.zeros((1, 128), jnp.float32)
    for i in range(nb):                                   # static unroll
        acc = jnp.zeros((orows, 128), jnp.float32)
        for t, off in enumerate((0, 1, wp, wp + 1)):      # (a, b) window shift
            acc += jnp.dot(z_ref[i, pl.ds(off, orows), :], w_ref[t],
                           preferred_element_type=jnp.float32)
        y = acc + bias
        y_ref[i, :, :] = y.astype(y_ref.dtype)            # bf16 y2 (review)
        yv = y * mask                                     # zero garbage rows
        s_acc = s_acc + jnp.sum(yv, axis=0, keepdims=True)
        q_acc = q_acc + jnp.sum(yv * y, axis=0, keepdims=True)
    sum_ref[...] = s_acc
    ssq_ref[...] = q_acc


def conv2_s2d_bn_stats(zp, w2, b2, mask, *, ho, wp):
    n, zrows, _ = zp.shape
    orows = ho * wp
    nb = _pick_tile(n, (8, 4, 2, 1))
    n_tiles = n // nb
    kernel = functools.partial(_conv2_s2d_stats_kernel,
                               nb=nb, wp=wp, orows=orows)
    return pl.pallas_call(
        kernel,
        out_shape=(
            jax.ShapeDtypeStruct((n, orows, 128), jnp.bfloat16),
            jax.ShapeDtypeStruct((n_tiles, 128), jnp.float32),
            jax.ShapeDtypeStruct((n_tiles, 128), jnp.float32),
        ),
        grid_spec=pltpu.PrefetchScalarGridSpec(
            num_scalar_prefetch=0,
            grid=(n_tiles,),
            in_specs=[
                pl.BlockSpec((nb, zrows, 256), lambda m: (m, 0, 0)),
                pl.BlockSpec((4, 256, 128), lambda m: (0, 0, 0)),
                pl.BlockSpec((1, 128), lambda m: (0, 0)),
                pl.BlockSpec((orows, 1), lambda m: (0, 0)),
            ],
            out_specs=(
                pl.BlockSpec((nb, orows, 128), lambda m: (m, 0, 0)),
                pl.BlockSpec((1, 128), lambda m: (m, 0)),
                pl.BlockSpec((1, 128), lambda m: (m, 0)),
            ),
        ),
        compiler_params=pltpu.CompilerParams(
            dimension_semantics=("parallel",),
            vmem_limit_bytes=_VMEM_LIMIT),
    )(zp, w2, b2, mask)


# ----------------------------------------------------------------------------
# Kernel 2 (conv2 stage 2): apply the folded BatchNorm2d scale/shift +
# LeakyReLU, and strip the garbage ow'=Wo column of the padded layout so the
# output is NHWC (N, Ho, Wo, 128) and flattens to the fc1 layout with a plain
# (free) reshape.
# ----------------------------------------------------------------------------
def _bn2_lrelu_strip_kernel(y_ref, scale_ref, shift_ref, o_ref, *, wo):
    y = y_ref[:, :, pl.ds(0, wo), :].astype(jnp.float32)
    z = y * scale_ref[...] + shift_ref[...]
    o_ref[...] = jnp.where(z >= 0, z, LRELU_SLOPE * z).astype(o_ref.dtype)


def bn2_lrelu_apply(y_pad, scale, shift, *, ho, wp, wo):
    n = y_pad.shape[0]
    y4 = y_pad.reshape(n, ho, wp, 128)
    nb = _pick_tile(n, (8, 4, 2, 1))
    kernel = functools.partial(_bn2_lrelu_strip_kernel, wo=wo)
    return pl.pallas_call(
        kernel,
        out_shape=jax.ShapeDtypeStruct((n, ho, wo, 128), jnp.bfloat16),
        grid_spec=pltpu.PrefetchScalarGridSpec(
            num_scalar_prefetch=0,
            grid=(n // nb,),
            in_specs=[
                pl.BlockSpec((nb, ho, wp, 128), lambda m: (m, 0, 0, 0)),
                pl.BlockSpec((1, 128), lambda m: (0, 0)),
                pl.BlockSpec((1, 128), lambda m: (0, 0)),
            ],
            out_specs=pl.BlockSpec((nb, ho, wo, 128), lambda m: (m, 0, 0, 0)),
        ),
        compiler_params=pltpu.CompilerParams(
            dimension_semantics=("parallel",),
            vmem_limit_bytes=_VMEM_LIMIT),
    )(y4, scale, shift)


# ----------------------------------------------------------------------------
# Kernel 3 (fc head): out = sigmoid( leaky_relu(bn1d(A @ W3 + b3)) @ W4 + b4 ).
# M (= batch) is kept whole so BatchNorm1d sees exact full-batch statistics;
# K is tiled (tk=2048 -> 4 steps for S=32) so the bf16 fc1 weight streams with
# the default double-buffered pipeline.  fc2 + stable sigmoid run in the
# final-K epilogue (w4 is only (1024, 1) bf16), removing a whole pallas_call.
# ----------------------------------------------------------------------------
def _fc_head_kernel(a_ref, w3_ref, b3_ref, g3_ref, be3_ref, w4_ref, b4_ref,
                    o_ref, acc_ref):
    k = pl.program_id(0)

    @pl.when(k == 0)
    def _():
        acc_ref[...] = jnp.zeros_like(acc_ref)

    acc_ref[...] += jnp.dot(a_ref[...], w3_ref[...],
                            preferred_element_type=jnp.float32)

    @pl.when(k == pl.num_programs(0) - 1)
    def _():
        y = acc_ref[...] + b3_ref[...]
        mean = jnp.mean(y, axis=0, keepdims=True)
        var = jnp.mean(jnp.square(y - mean), axis=0, keepdims=True)  # biased
        h = (y - mean) * lax.rsqrt(var + BN_EPS)
        h = h * g3_ref[...] + be3_ref[...]
        h = jnp.where(h >= 0, h, LRELU_SLOPE * h)
        logits = jnp.dot(h.astype(jnp.bfloat16), w4_ref[...],
                         preferred_element_type=jnp.float32) + b4_ref[...]
        e = jnp.exp(-jnp.abs(logits))                 # numerically stable
        o_ref[...] = jnp.where(logits >= 0, 1.0 / (1.0 + e), e / (1.0 + e))


def fc_head(a, w3, b3, g3, be3, w4, b4):
    m, k_dim = a.shape
    nh = w3.shape[1]
    no = w4.shape[1]
    tk = _pick_tile(k_dim, (2048, 1024, 4096, 512, 256, 128))
    return pl.pallas_call(
        _fc_head_kernel,
        out_shape=jax.ShapeDtypeStruct((m, no), jnp.float32),
        grid_spec=pltpu.PrefetchScalarGridSpec(
            num_scalar_prefetch=0,
            grid=(k_dim // tk,),
            in_specs=[
                pl.BlockSpec((m, tk), lambda k: (0, k)),
                pl.BlockSpec((tk, nh), lambda k: (k, 0)),
                pl.BlockSpec((1, nh), lambda k: (0, 0)),
                pl.BlockSpec((1, nh), lambda k: (0, 0)),
                pl.BlockSpec((1, nh), lambda k: (0, 0)),
                pl.BlockSpec((nh, no), lambda k: (0, 0)),
                pl.BlockSpec((1, no), lambda k: (0, 0)),
            ],
            out_specs=pl.BlockSpec((m, no), lambda k: (0, 0)),
            scratch_shapes=[pltpu.VMEM((m, nh), jnp.float32)],
        ),
        compiler_params=pltpu.CompilerParams(
            dimension_semantics=("arbitrary",),
            vmem_limit_bytes=_VMEM_LIMIT),
    )(a, w3, b3, g3, be3, w4, b4)


# ----------------------------------------------------------------------------
# Full discriminator forward pass (takes PACKED params).
# ----------------------------------------------------------------------------
def discriminator_forward(x_nchw, packed, *, input_size=32):
    n = x_nchw.shape[0]
    s = input_size
    assert s % 4 == 0, "input_size must be divisible by 4 (matches fc sizing)"
    ho = wo = s // 4
    hp = wp = ho + 1

    # NCHW -> NHWC, bf16 for the MXU / HBM streaming.
    x = jnp.transpose(x_nchw, (0, 2, 3, 1)).astype(jnp.bfloat16)

    # --- conv1 + LeakyReLU: left to XLA per review (negligible FLOPs) ---------
    h1 = lax.conv_general_dilated(
        x, packed["w1"], window_strides=(2, 2), padding=((1, 1), (1, 1)),
        dimension_numbers=("NHWC", "HWIO", "NHWC"),
        preferred_element_type=jnp.float32)
    h1 = h1 + packed["b1"]
    h1 = jnp.where(h1 >= 0, h1, LRELU_SLOPE * h1).astype(jnp.bfloat16)

    # --- space-to-depth: one cheap XLA pass over h1 (NOT the 4x im2col) -------
    # z[n, i, j, (p*2+q)*64 + c] = h1_pad[n, 2i+p, 2j+q, c]; conv2 then becomes
    # a 2x2/stride-1 conv over z, i.e. 4 shifted matmuls done inside Kernel 1.
    h1p = jnp.pad(h1, ((0, 0), (1, 1), (1, 1), (0, 0)))
    z = h1p.reshape(n, hp, 2, wp, 2, 64).transpose(0, 1, 3, 2, 4, 5)
    z = z.reshape(n, hp * wp, 256)
    zrows = ((hp * wp + 1 + 7) // 8) * 8          # >= hp*wp + 1 (shift slack)
    z = jnp.pad(z, ((0, 0), (0, zrows - hp * wp), (0, 0)))

    orows = ho * wp
    mask = ((jnp.arange(orows) % wp) < wo).astype(jnp.float32)[:, None]

    # --- conv2 + BatchNorm2d + LeakyReLU (two-stage, batch-independent VMEM) --
    y2, s2, q2 = conv2_s2d_bn_stats(z, packed["w2"], packed["b2"], mask,
                                    ho=ho, wp=wp)
    cnt = n * ho * wo
    mean = jnp.sum(s2, axis=0, keepdims=True) / cnt
    var = jnp.maximum(jnp.sum(q2, axis=0, keepdims=True) / cnt - mean * mean,
                      0.0)                         # biased var (train mode)
    scale = packed["g2"] * lax.rsqrt(var + BN_EPS)
    shift = packed["be2"] - mean * scale
    h2 = bn2_lrelu_apply(y2, scale, shift, ho=ho, wp=wp, wo=wo)  # (N,Ho,Wo,128)

    # --- flatten: plain reshape (w3 rows pre-permuted to (H,W,C) order) -------
    flat = h2.reshape(n, ho * wo * 128)

    # --- fc1 + BatchNorm1d + LeakyReLU + fc2 + Sigmoid (single fused kernel) --
    return fc_head(flat, packed["w3"], packed["b3"], packed["g3"],
                   packed["be3"], packed["w4"], packed["b4"])


# ----------------------------------------------------------------------------
# Parameters: PyTorch-layout construction, then a ONE-TIME packing step
# (layout permutations + bf16 casts) used by the forward.
# ----------------------------------------------------------------------------
def make_params(key, *, input_dim=1, output_dim=1, input_size=32):
    k = jax.random.split(key, 4)
    feat = 128 * (input_size // 4) * (input_size // 4)
    return {
        "conv1_w": 0.02 * jax.random.normal(k[0], (64, input_dim, 4, 4), jnp.float32),
        "conv1_b": jnp.zeros((64,), jnp.float32),
        "conv2_w": 0.02 * jax.random.normal(k[1], (128, 64, 4, 4), jnp.float32),
        "conv2_b": jnp.zeros((128,), jnp.float32),
        "bn2_g": jnp.ones((128,), jnp.float32),
        "bn2_b": jnp.zeros((128,), jnp.float32),
        "fc1_w": 0.02 * jax.random.normal(k[2], (1024, feat), jnp.float32),
        "fc1_b": jnp.zeros((1024,), jnp.float32),
        "bn3_g": jnp.ones((1024,), jnp.float32),
        "bn3_b": jnp.zeros((1024,), jnp.float32),
        "fc2_w": 0.02 * jax.random.normal(k[3], (output_dim, 1024), jnp.float32),
        "fc2_b": jnp.zeros((output_dim,), jnp.float32),
    }


def pack_params(p, *, input_size=32):
    """One-time, outside the forward: weights -> kernel-ready layouts + bf16."""
    ho = wo = input_size // 4

    def row(v):
        return v.reshape(1, -1).astype(jnp.float32)

    # conv2 weight (co, c, kh, kw) -> 2x2-conv-over-z form (a*2+b, (p,q,c), co)
    w2 = p["conv2_w"].reshape(128, 64, 2, 2, 2, 2)        # (co, c, a, p, b, q)
    w2 = jnp.transpose(w2, (2, 4, 3, 5, 1, 0)).reshape(4, 256, 128)

    # fc1 weight rows permuted from PyTorch (C,H,W)-flatten to NHWC (H,W,C).
    w3 = p["fc1_w"].reshape(1024, 128, ho, wo)            # (n, c, h, w)
    w3 = jnp.transpose(w3, (2, 3, 1, 0)).reshape(128 * ho * wo, 1024)

    return {
        "w1": jnp.transpose(p["conv1_w"], (2, 3, 1, 0)).astype(jnp.bfloat16),  # HWIO
        "b1": p["conv1_b"].astype(jnp.float32),
        "w2": w2.astype(jnp.bfloat16),
        "b2": row(p["conv2_b"]),
        "g2": row(p["bn2_g"]),
        "be2": row(p["bn2_b"]),
        "w3": w3.astype(jnp.bfloat16),
        "b3": row(p["fc1_b"]),
        "g3": row(p["bn3_g"]),
        "be3": row(p["bn3_b"]),
        "w4": p["fc2_w"].T.astype(jnp.bfloat16),          # (1024, out)
        "b4": row(p["fc2_b"]),
    }


# ----------------------------------------------------------------------------
# Pure-JAX f32 reference of the PyTorch module (train-mode batch statistics).
# TODO(synk): BatchNorm running_mean/var momentum updates (module state) are
#             not reproduced; forward outputs match.
# ----------------------------------------------------------------------------
def reference_forward(x_nchw, p):
    h = lax.conv_general_dilated(x_nchw, p["conv1_w"], (2, 2), ((1, 1), (1, 1)),
                                 dimension_numbers=("NCHW", "OIHW", "NCHW"))
    h = h + p["conv1_b"].reshape(1, -1, 1, 1)
    h = jnp.where(h >= 0, h, LRELU_SLOPE * h)
    h = lax.conv_general_dilated(h, p["conv2_w"], (2, 2), ((1, 1), (1, 1)),
                                 dimension_numbers=("NCHW", "OIHW", "NCHW"))
    h = h + p["conv2_b"].reshape(1, -1, 1, 1)
    m = jnp.mean(h, axis=(0, 2, 3), keepdims=True)
    v = jnp.mean(jnp.square(h - m), axis=(0, 2, 3), keepdims=True)
    h = (h - m) * lax.rsqrt(v + BN_EPS)
    h = h * p["bn2_g"].reshape(1, -1, 1, 1) + p["bn2_b"].reshape(1, -1, 1, 1)
    h = jnp.where(h >= 0, h, LRELU_SLOPE * h)
    f = h.reshape(h.shape[0], -1)                          # (C,H,W) flatten
    y = f @ p["fc1_w"].T + p["fc1_b"]
    m = jnp.mean(y, axis=0, keepdims=True)
    v = jnp.mean(jnp.square(y - m), axis=0, keepdims=True)
    y = (y - m) * lax.rsqrt(v + BN_EPS) * p["bn3_g"] + p["bn3_b"]
    y = jnp.where(y >= 0, y, LRELU_SLOPE * y)
    o = y @ p["fc2_w"].T + p["fc2_b"]
    return jax.nn.sigmoid(o)


if __name__ == "__main__":
    key = jax.random.PRNGKey(0)
    pkey, xkey = jax.random.split(key)

    INPUT_DIM, OUTPUT_DIM, INPUT_SIZE, BATCH = 1, 1, 32, 4
    params = make_params(pkey, input_dim=INPUT_DIM, output_dim=OUTPUT_DIM,
                         input_size=INPUT_SIZE)
    packed = pack_params(params, input_size=INPUT_SIZE)   # one-time packing

    # NCHW input, like the PyTorch module expects.
    x = jax.random.normal(xkey, (BATCH, INPUT_DIM, INPUT_SIZE, INPUT_SIZE),
                          jnp.float32)

    fwd = jax.jit(functools.partial(discriminator_forward,
                                    input_size=INPUT_SIZE))
    out = jax.block_until_ready(fwd(x, packed))
    ref = jax.block_until_ready(jax.jit(reference_forward)(x, params))

    assert out.shape == (BATCH, OUTPUT_DIM)
    assert bool(jnp.all(jnp.isfinite(out)))
    assert bool(jnp.all((out >= 0.0) & (out <= 1.0)))
    err = float(jnp.max(jnp.abs(out - ref)))
    # bf16 activations/weights vs f32 reference: expect ~1e-3 level deviation.
    assert err < 3e-2, f"max abs error vs f32 reference: {err}"
    print("KERNEL_OK")
</pallas_src>

<mosaic_0001>
module attributes {stable_mosaic.version = 11 : i64} {
  func.func @_conv2_s2d_stats_kernel(%arg0: i32, %arg1: memref<4x88x256xbf16, #tpu.memory_space<vmem>>, %arg2: memref<4x256x128xbf16, #tpu.memory_space<vmem>>, %arg3: memref<1x128xf32, #tpu.memory_space<vmem>>, %arg4: memref<72x1xf32, #tpu.memory_space<vmem>>, %arg5: memref<4x72x128xbf16, #tpu.memory_space<vmem>>, %arg6: memref<1x128xf32, #tpu.memory_space<vmem>>, %arg7: memref<1x128xf32, #tpu.memory_space<vmem>>) attributes {dimension_semantics = [#tpu.dimension_semantics<parallel>], iteration_bounds = array<i64: 1>, scalar_prefetch = 0 : i64, scratch_operands = 0 : i64, tpu.core_type = #tpu.core_type<tc>, window_params = [{transform_indices = @transform_0, window_bounds = array<i64: 4, 88, 256>}, {pipeline_mode = #tpu.pipeline_mode<synchronous>, transform_indices = @transform_1, window_bounds = array<i64: 4, 256, 128>}, {pipeline_mode = #tpu.pipeline_mode<synchronous>, transform_indices = @transform_2, window_bounds = array<i64: 1, 128>}, {pipeline_mode = #tpu.pipeline_mode<synchronous>, transform_indices = @transform_3, window_bounds = array<i64: 72, 1>}, {transform_indices = @transform_4, window_bounds = array<i64: 4, 72, 128>}, {transform_indices = @transform_5, window_bounds = array<i64: 1, 128>}, {transform_indices = @transform_6, window_bounds = array<i64: 1, 128>}]} {
    %c0 = arith.constant 0 : index
    %c0_0 = arith.constant 0 : index
    %0 = vector.load %arg3[%c0, %c0_0] : memref<1x128xf32, #tpu.memory_space<vmem>>, vector<1x128xf32>
    %c0_1 = arith.constant 0 : index
    %c0_2 = arith.constant 0 : index
    %1 = vector.load %arg4[%c0_1, %c0_2] : memref<72x1xf32, #tpu.memory_space<vmem>>, vector<72x1xf32>
    %cst = arith.constant 0.000000e+00 : f32
    %2 = vector.broadcast %cst : f32 to vector<1x128xf32>
    %cst_3 = arith.constant 0.000000e+00 : f32
    %3 = vector.broadcast %cst_3 : f32 to vector<1x128xf32>
    %cst_4 = arith.constant 0.000000e+00 : f32
    %4 = vector.broadcast %cst_4 : f32 to vector<72x128xf32>
    %c0_5 = arith.constant 0 : index
    %c0_6 = arith.constant 0 : index
    %c0_7 = arith.constant 0 : index
    %5 = vector.load %arg1[%c0_5, %c0_6, %c0_7] : memref<4x88x256xbf16, #tpu.memory_space<vmem>>, vector<1x72x256xbf16>
    %6 = vector.shape_cast %5 : vector<1x72x256xbf16> to vector<72x256xbf16>
    %c0_8 = arith.constant 0 : index
    %c0_9 = arith.constant 0 : index
    %c0_10 = arith.constant 0 : index
    %7 = vector.load %arg2[%c0_8, %c0_9, %c0_10] : memref<4x256x128xbf16, #tpu.memory_space<vmem>>, vector<1x256x128xbf16>
    %8 = vector.shape_cast %7 : vector<1x256x128xbf16> to vector<256x128xbf16>
    %cst_11 = arith.constant dense<0.000000e+00> : vector<72x128xf32>
    %9 = tpu.matmul %6, %8, %cst_11 {dimension_numbers = #tpu.dot_dimension_numbers<[1], [0], [0], [1], [0, 0, 1, 1], [], []>} : vector<72x256xbf16>, vector<256x128xbf16>, vector<72x128xf32> -> vector<72x128xf32>
    %10 = arith.addf %4, %9 : vector<72x128xf32>
    %c0_12 = arith.constant 0 : index
    %c1 = arith.constant 1 : index
    %c0_13 = arith.constant 0 : index
    %11 = vector.load %arg1[%c0_12, %c1, %c0_13] : memref<4x88x256xbf16, #tpu.memory_space<vmem>>, vector<1x72x256xbf16>
    %12 = vector.shape_cast %11 : vector<1x72x256xbf16> to vector<72x256xbf16>
    %c1_14 = arith.constant 1 : index
    %c0_15 = arith.constant 0 : index
    %c0_16 = arith.constant 0 : index
    %13 = vector.load %arg2[%c1_14, %c0_15, %c0_16] : memref<4x256x128xbf16, #tpu.memory_space<vmem>>, vector<1x256x128xbf16>
    %14 = vector.shape_cast %13 : vector<1x256x128xbf16> to vector<256x128xbf16>
    %cst_17 = arith.constant dense<0.000000e+00> : vector<72x128xf32>
    %15 = tpu.matmul %12, %14, %cst_17 {dimension_numbers = #tpu.dot_dimension_numbers<[1], [0], [0], [1], [0, 0, 1, 1], [], []>} : vector<72x256xbf16>, vector<256x128xbf16>, vector<72x128xf32> -> vector<72x128xf32>
    %16 = arith.addf %10, %15 : vector<72x128xf32>
    %c0_18 = arith.constant 0 : index
    %c9 = arith.constant 9 : index
    %c0_19 = arith.constant 0 : index
    %17 = vector.load %arg1[%c0_18, %c9, %c0_19] : memref<4x88x256xbf16, #tpu.memory_space<vmem>>, vector<1x72x256xbf16>
    %18 = vector.shape_cast %17 : vector<1x72x256xbf16> to vector<72x256xbf16>
    %c2 = arith.constant 2 : index
    %c0_20 = arith.constant 0 : index
    %c0_21 = arith.constant 0 : index
    %19 = vector.load %arg2[%c2, %c0_20, %c0_21] : memref<4x256x128xbf16, #tpu.memory_space<vmem>>, vector<1x256x128xbf16>
    %20 = vector.shape_cast %19 : vector<1x256x128xbf16> to vector<256x128xbf16>
    %cst_22 = arith.constant dense<0.000000e+00> : vector<72x128xf32>
    %21 = tpu.matmul %18, %20, %cst_22 {dimension_numbers = #tpu.dot_dimension_numbers<[1], [0], [0], [1], [0, 0, 1, 1], [], []>} : vector<72x256xbf16>, vector<256x128xbf16>, vector<72x128xf32> -> vector<72x128xf32>
    %22 = arith.addf %16, %21 : vector<72x128xf32>
    %c0_23 = arith.constant 0 : index
    %c10 = arith.constant 10 : index
    %c0_24 = arith.constant 0 : index
    %23 = vector.load %arg1[%c0_23, %c10, %c0_24] : memref<4x88x256xbf16, #tpu.memory_space<vmem>>, vector<1x72x256xbf16>
    %24 = vector.shape_cast %23 : vector<1x72x256xbf16> to vector<72x256xbf16>
    %c3 = arith.constant 3 : index
    %c0_25 = arith.constant 0 : index
    %c0_26 = arith.constant 0 : index
    %25 = vector.load %arg2[%c3, %c0_25, %c0_26] : memref<4x256x128xbf16, #tpu.memory_space<vmem>>, vector<1x256x128xbf16>
    %26 = vector.shape_cast %25 : vector<1x256x128xbf16> to vector<256x128xbf16>
    %cst_27 = arith.constant dense<0.000000e+00> : vector<72x128xf32>
    %27 = tpu.matmul %24, %26, %cst_27 {dimension_numbers = #tpu.dot_dimension_numbers<[1], [0], [0], [1], [0, 0, 1, 1], [], []>} : vector<72x256xbf16>, vector<256x128xbf16>, vector<72x128xf32> -> vector<72x128xf32>
    %28 = arith.addf %22, %27 : vector<72x128xf32>
    %29 = vector.broadcast %0 : vector<1x128xf32> to vector<72x128xf32>
    %30 = arith.addf %28, %29 : vector<72x128xf32>
    %31 = arith.truncf %30 : vector<72x128xf32> to vector<72x128xbf16>
    %c0_28 = arith.constant 0 : index
    %c0_29 = arith.constant 0 : index
    %c0_30 = arith.constant 0 : index
    %32 = vector.load %arg5[%c0_28, %c0_29, %c0_30] : memref<4x72x128xbf16, #tpu.memory_space<vmem>>, vector<1x72x128xbf16>
    %33 = vector.shape_cast %32 : vector<1x72x128xbf16> to vector<72x128xbf16>
    %34 = vector.shape_cast %31 : vector<72x128xbf16> to vector<1x72x128xbf16>
    tpu.vector_store %arg5[%c0_28, %c0_29, %c0_30], %34 {strides = array<i32>} : memref<4x72x128xbf16, #tpu.memory_space<vmem>>, vector<1x72x128xbf16>,
    %35 = vector.broadcast %1 : vector<72x1xf32> to vector<72x128xf32>
    %36 = arith.mulf %30, %35 : vector<72x128xf32>
    %cst_31 = arith.constant dense<0.000000e+00> : vector<128xf32>
    %37 = vector.multi_reduction <add>, %36, %cst_31 [0] : vector<72x128xf32> to vector<128xf32>
    %38 = vector.shape_cast %37 : vector<128xf32> to vector<1x128xf32>
    %39 = arith.addf %2, %38 : vector<1x128xf32>
    %40 = arith.mulf %36, %30 : vector<72x128xf32>
    %cst_32 = arith.constant dense<0.000000e+00> : vector<128xf32>
    %41 = vector.multi_reduction <add>, %40, %cst_32 [0] : vector<72x128xf32> to vector<128xf32>
    %42 = vector.shape_cast %41 : vector<128xf32> to vector<1x128xf32>
    %43 = arith.addf %3, %42 : vector<1x128xf32>
    %cst_33 = arith.constant 0.000000e+00 : f32
    %44 = vector.broadcast %cst_33 : f32 to vector<72x128xf32>
    %c1_34 = arith.constant 1 : index
    %c0_35 = arith.constant 0 : index
    %c0_36 = arith.constant 0 : index
    %45 = vector.load %arg1[%c1_34, %c0_35, %c0_36] : memref<4x88x256xbf16, #tpu.memory_space<vmem>>, vector<1x72x256xbf16>
    %46 = vector.shape_cast %45 : vector<1x72x256xbf16> to vector<72x256xbf16>
    %c0_37 = arith.constant 0 : index
    %c0_38 = arith.constant 0 : index
    %c0_39 = arith.constant 0 : index
    %47 = vector.load %arg2[%c0_37, %c0_38, %c0_39] : memref<4x256x128xbf16, #tpu.memory_space<vmem>>, vector<1x256x128xbf16>
    %48 = vector.shape_cast %47 : vector<1x256x128xbf16> to vector<256x128xbf16>
    %cst_40 = arith.constant dense<0.000000e+00> : vector<72x128xf32>
    %49 = tpu.matmul %46, %48, %cst_40 {dimension_numbers = #tpu.dot_dimension_numbers<[1], [0], [0], [1], [0, 0, 1, 1], [], []>} : vector<72x256xbf16>, vector<256x128xbf16>, vector<72x128xf32> -> vector<72x128xf32>
    %50 = arith.addf %44, %49 : vector<72x128xf32>
    %c1_41 = arith.constant 1 : index
    %c1_42 = arith.constant 1 : index
    %c0_43 = arith.constant 0 : index
    %51 = vector.load %arg1[%c1_41, %c1_42, %c0_43] : memref<4x88x256xbf16, #tpu.memory_space<vmem>>, vector<1x72x256xbf16>
    %52 = vector.shape_cast %51 : vector<1x72x256xbf16> to vector<72x256xbf16>
    %c1_44 = arith.constant 1 : index
    %c0_45 = arith.constant 0 : index
    %c0_46 = arith.constant 0 : index
    %53 = vector.load %arg2[%c1_44, %c0_45, %c0_46] : memref<4x256x128xbf16, #tpu.memory_space<vmem>>, vector<1x256x128xbf16>
    %54 = vector.shape_cast %53 : vector<1x256x128xbf16> to vector<256x128xbf16>
    %cst_47 = arith.constant dense<0.000000e+00> : vector<72x128xf32>
    %55 = tpu.matmul %52, %54, %cst_47 {dimension_numbers = #tpu.dot_dimension_numbers<[1], [0], [0], [1], [0, 0, 1, 1], [], []>} : vector<72x256xbf16>, vector<256x128xbf16>, vector<72x128xf32> -> vector<72x128xf32>
    %56 = arith.addf %50, %55 : vector<72x128xf32>
    %c1_48 = arith.constant 1 : index
    %c9_49 = arith.constant 9 : index
    %c0_50 = arith.constant 0 : index
    %57 = vector.load %arg1[%c1_48, %c9_49, %c0_50] : memref<4x88x256xbf16, #tpu.memory_space<vmem>>, vector<1x72x256xbf16>
    %58 = vector.shape_cast %57 : vector<1x72x256xbf16> to vector<72x256xbf16>
    %c2_51 = arith.constant 2 : index
    %c0_52 = arith.constant 0 : index
    %c0_53 = arith.constant 0 : index
    %59 = vector.load %arg2[%c2_51, %c0_52, %c0_53] : memref<4x256x128xbf16, #tpu.memory_space<vmem>>, vector<1x256x128xbf16>
    %60 = vector.shape_cast %59 : vector<1x256x128xbf16> to vector<256x128xbf16>
    %cst_54 = arith.constant dense<0.000000e+00> : vector<72x128xf32>
    %61 = tpu.matmul %58, %60, %cst_54 {dimension_numbers = #tpu.dot_dimension_numbers<[1], [0], [0], [1], [0, 0, 1, 1], [], []>} : vector<72x256xbf16>, vector<256x128xbf16>, vector<72x128xf32> -> vector<72x128xf32>
    %62 = arith.addf %56, %61 : vector<72x128xf32>
    %c1_55 = arith.constant 1 : index
    %c10_56 = arith.constant 10 : index
    %c0_57 = arith.constant 0 : index
    %63 = vector.load %arg1[%c1_55, %c10_56, %c0_57] : memref<4x88x256xbf16, #tpu.memory_space<vmem>>, vector<1x72x256xbf16>
    %64 = vector.shape_cast %63 : vector<1x72x256xbf16> to vector<72x256xbf16>
    %c3_58 = arith.constant 3 : index
    %c0_59 = arith.constant 0 : index
    %c0_60 = arith.constant 0 : index
    %65 = vector.load %arg2[%c3_58, %c0_59, %c0_60] : memref<4x256x128xbf16, #tpu.memory_space<vmem>>, vector<1x256x128xbf16>
    %66 = vector.shape_cast %65 : vector<1x256x128xbf16> to vector<256x128xbf16>
    %cst_61 = arith.constant dense<0.000000e+00> : vector<72x128xf32>
    %67 = tpu.matmul %64, %66, %cst_61 {dimension_numbers = #tpu.dot_dimension_numbers<[1], [0], [0], [1], [0, 0, 1, 1], [], []>} : vector<72x256xbf16>, vector<256x128xbf16>, vector<72x128xf32> -> vector<72x128xf32>
    %68 = arith.addf %62, %67 : vector<72x128xf32>
    %69 = vector.broadcast %0 : vector<1x128xf32> to vector<72x128xf32>
    %70 = arith.addf %68, %69 : vector<72x128xf32>
    %71 = arith.truncf %70 : vector<72x128xf32> to vector<72x128xbf16>
    %c1_62 = arith.constant 1 : index
    %c0_63 = arith.constant 0 : index
    %c0_64 = arith.constant 0 : index
    %72 = vector.load %arg5[%c1_62, %c0_63, %c0_64] : memref<4x72x128xbf16, #tpu.memory_space<vmem>>, vector<1x72x128xbf16>
    %73 = vector.shape_cast %72 : vector<1x72x128xbf16> to vector<72x128xbf16>
    %74 = vector.shape_cast %71 : vector<72x128xbf16> to vector<1x72x128xbf16>
    tpu.vector_store %arg5[%c1_62, %c0_63, %c0_64], %74 {strides = array<i32>} : memref<4x72x128xbf16, #tpu.memory_space<vmem>>, vector<1x72x128xbf16>,
    %75 = vector.broadcast %1 : vector<72x1xf32> to vector<72x128xf32>
    %76 = arith.mulf %70, %75 : vector<72x128xf32>
    %cst_65 = arith.constant dense<0.000000e+00> : vector<128xf32>
    %77 = vector.multi_reduction <add>, %76, %cst_65 [0] : vector<72x128xf32> to vector<128xf32>
    %78 = vector.shape_cast %77 : vector<128xf32> to vector<1x128xf32>
    %79 = arith.addf %39, %78 : vector<1x128xf32>
    %80 = arith.mulf %76, %70 : vector<72x128xf32>
    %cst_66 = arith.constant dense<0.000000e+00> : vector<128xf32>
    %81 = vector.multi_reduction <add>, %80, %cst_66 [0] : vector<72x128xf32> to vector<128xf32>
    %82 = vector.shape_cast %81 : vector<128xf32> to vector<1x128xf32>
    %83 = arith.addf %43, %82 : vector<1x128xf32>
    %cst_67 = arith.constant 0.000000e+00 : f32
    %84 = vector.broadcast %cst_67 : f32 to vector<72x128xf32>
    %c2_68 = arith.constant 2 : index
    %c0_69 = arith.constant 0 : index
    %c0_70 = arith.constant 0 : index
    %85 = vector.load %arg1[%c2_68, %c0_69, %c0_70] : memref<4x88x256xbf16, #tpu.memory_space<vmem>>, vector<1x72x256xbf16>
    %86 = vector.shape_cast %85 : vector<1x72x256xbf16> to vector<72x256xbf16>
    %c0_71 = arith.constant 0 : index
    %c0_72 = arith.constant 0 : index
    %c0_73 = arith.constant 0 : index
    %87 = vector.load %arg2[%c0_71, %c0_72, %c0_73] : memref<4x256x128xbf16, #tpu.memory_space<vmem>>, vector<1x256x128xbf16>
    %88 = vector.shape_cast %87 : vector<1x256x128xbf16> to vector<256x128xbf16>
    %cst_74 = arith.constant dense<0.000000e+00> : vector<72x128xf32>
    %89 = tpu.matmul %86, %88, %cst_74 {dimension_numbers = #tpu.dot_dimension_numbers<[1], [0], [0], [1], [0, 0, 1, 1], [], []>} : vector<72x256xbf16>, vector<256x128xbf16>, vector<72x128xf32> -> vector<72x128xf32>
    %90 = arith.addf %84, %89 : vector<72x128xf32>
    %c2_75 = arith.constant 2 : index
    %c1_76 = arith.constant 1 : index
    %c0_77 = arith.constant 0 : index
    %91 = vector.load %arg1[%c2_75, %c1_76, %c0_77] : memref<4x88x256xbf16, #tpu.memory_space<vmem>>, vector<1x72x256xbf16>
    %92 = vector.shape_cast %91 : vector<1x72x256xbf16> to vector<72x256xbf16>
    %c1_78 = arith.constant 1 : index
    %c0_79 = arith.constant 0 : index
    %c0_80 = arith.constant 0 : index
    %93 = vector.load %arg2[%c1_78, %c0_79, %c0_80] : memref<4x256x128xbf16, #tpu.memory_space<vmem>>, vector<1x256x128xbf16>
    %94 = vector.shape_cast %93 : vector<1x256x128xbf16> to vector<256x128xbf16>
    %cst_81 = arith.constant dense<0.000000e+00> : vector<72x128xf32>
    %95 = tpu.matmul %92, %94, %cst_81 {dimension_numbers = #tpu.dot_dimension_numbers<[1], [0], [0], [1], [0, 0, 1, 1], [], []>} : vector<72x256xbf16>, vector<256x128xbf16>, vector<72x128xf32> -> vector<72x128xf32>
    %96 = arith.addf %90, %95 : vector<72x128xf32>
    %c2_82 = arith.constant 2 : index
    %c9_83 = arith.constant 9 : index
    %c0_84 = arith.constant 0 : index
    %97 = vector.load %arg1[%c2_82, %c9_83, %c0_84] : memref<4x88x256xbf16, #tpu.memory_space<vmem>>, vector<1x72x256xbf16>
    %98 = vector.shape_cast %97 : vector<1x72x256xbf16> to vector<72x256xbf16>
    %c2_85 = arith.constant 2 : index
    %c0_86 = arith.constant 0 : index
    %c0_87 = arith.constant 0 : index
    %99 = vector.load %arg2[%c2_85, %c0_86, %c0_87] : memref<4x256x128xbf16, #tpu.memory_space<vmem>>, vector<1x256x128xbf16>
    %100 = vector.shape_cast %99 : vector<1x256x128xbf16> to vector<256x128xbf16>
    %cst_88 = arith.constant dense<0.000000e+00> : vector<72x128xf32>
    %101 = tpu.matmul %98, %100, %cst_88 {dimension_numbers = #tpu.dot_dimension_numbers<[1], [0], [0], [1], [0, 0, 1, 1], [], []>} : vector<72x256xbf16>, vector<256x128xbf16>, vector<72x128xf32> -> vector<72x128xf32>
    %102 = arith.addf %96, %101 : vector<72x128xf32>
    %c2_89 = arith.constant 2 : index
    %c10_90 = arith.constant 10 : index
    %c0_91 = arith.constant 0 : index
    %103 = vector.load %arg1[%c2_89, %c10_90, %c0_91] : memref<4x88x256xbf16, #tpu.memory_space<vmem>>, vector<1x72x256xbf16>
    %104 = vector.shape_cast %103 : vector<1x72x256xbf16> to vector<72x256xbf16>
    %c3_92 = arith.constant 3 : index
    %c0_93 = arith.constant 0 : index
    %c0_94 = arith.constant 0 : index
    %105 = vector.load %arg2[%c3_92, %c0_93, %c0_94] : memref<4x256x128xbf16, #tpu.memory_space<vmem>>, vector<1x256x128xbf16>
    %106 = vector.shape_cast %105 : vector<1x256x128xbf16> to vector<256x128xbf16>
    %cst_95 = arith.constant dense<0.000000e+00> : vector<72x128xf32>
    %107 = tpu.matmul %104, %106, %cst_95 {dimension_numbers = #tpu.dot_dimension_numbers<[1], [0], [0], [1], [0, 0, 1, 1], [], []>} : vector<72x256xbf16>, vector<256x128xbf16>, vector<72x128xf32> -> vector<72x128xf32>
    %108 = arith.addf %102, %107 : vector<72x128xf32>
    %109 = vector.broadcast %0 : vector<1x128xf32> to vector<72x128xf32>
    %110 = arith.addf %108, %109 : vector<72x128xf32>
    %111 = arith.truncf %110 : vector<72x128xf32> to vector<72x128xbf16>
    %c2_96 = arith.constant 2 : index
    %c0_97 = arith.constant 0 : index
    %c0_98 = arith.constant 0 : index
    %112 = vector.load %arg5[%c2_96, %c0_97, %c0_98] : memref<4x72x128xbf16, #tpu.memory_space<vmem>>, vector<1x72x128xbf16>
    %113 = vector.shape_cast %112 : vector<1x72x128xbf16> to vector<72x128xbf16>
    %114 = vector.shape_cast %111 : vector<72x128xbf16> to vector<1x72x128xbf16>
    tpu.vector_store %arg5[%c2_96, %c0_97, %c0_98], %114 {strides = array<i32>} : memref<4x72x128xbf16, #tpu.memory_space<vmem>>, vector<1x72x128xbf16>,
    %115 = vector.broadcast %1 : vector<72x1xf32> to vector<72x128xf32>
    %116 = arith.mulf %110, %115 : vector<72x128xf32>
    %cst_99 = arith.constant dense<0.000000e+00> : vector<128xf32>
    %117 = vector.multi_reduction <add>, %116, %cst_99 [0] : vector<72x128xf32> to vector<128xf32>
    %118 = vector.shape_cast %117 : vector<128xf32> to vector<1x128xf32>
    %119 = arith.addf %79, %118 : vector<1x128xf32>
    %120 = arith.mulf %116, %110 : vector<72x128xf32>
    %cst_100 = arith.constant dense<0.000000e+00> : vector<128xf32>
    %121 = vector.multi_reduction <add>, %120, %cst_100 [0] : vector<72x128xf32> to vector<128xf32>
    %122 = vector.shape_cast %121 : vector<128xf32> to vector<1x128xf32>
    %123 = arith.addf %83, %122 : vector<1x128xf32>
    %cst_101 = arith.constant 0.000000e+00 : f32
    %124 = vector.broadcast %cst_101 : f32 to vector<72x128xf32>
    %c3_102 = arith.constant 3 : index
    %c0_103 = arith.constant 0 : index
    %c0_104 = arith.constant 0 : index
    %125 = vector.load %arg1[%c3_102, %c0_103, %c0_104] : memref<4x88x256xbf16, #tpu.memory_space<vmem>>, vector<1x72x256xbf16>
    %126 = vector.shape_cast %125 : vector<1x72x256xbf16> to vector<72x256xbf16>
    %c0_105 = arith.constant 0 : index
    %c0_106 = arith.constant 0 : index
    %c0_107 = arith.constant 0 : index
    %127 = vector.load %arg2[%c0_105, %c0_106, %c0_107] : memref<4x256x128xbf16, #tpu.memory_space<vmem>>, vector<1x256x128xbf16>
    %128 = vector.shape_cast %127 : vector<1x256x128xbf16> to vector<256x128xbf16>
    %cst_108 = arith.constant dense<0.000000e+00> : vector<72x128xf32>
    %129 = tpu.matmul %126, %128, %cst_108 {dimension_numbers = #tpu.dot_dimension_numbers<[1], [0], [0], [1], [0, 0, 1, 1], [], []>} : vector<72x256xbf16>, vector<256x128xbf16>, vector<72x128xf32> -> vector<72x128xf32>
    %130 = arith.addf %124, %129 : vector<72x128xf32>
    %c3_109 = arith.constant 3 : index
    %c1_110 = arith.constant 1 : index
    %c0_111 = arith.constant 0 : index
    %131 = vector.load %arg1[%c3_109, %c1_110, %c0_111] : memref<4x88x256xbf16, #tpu.memory_space<vmem>>, vector<1x72x256xbf16>
    %132 = vector.shape_cast %131 : vector<1x72x256xbf16> to vector<72x256xbf16>
    %c1_112 = arith.constant 1 : index
    %c0_113 = arith.constant 0 : index
    %c0_114 = arith.constant 0 : index
    %133 = vector.load %arg2[%c1_112, %c0_113, %c0_114] : memref<4x256x128xbf16, #tpu.memory_space<vmem>>, vector<1x256x128xbf16>
    %134 = vector.shape_cast %133 : vector<1x256x128xbf16> to vector<256x128xbf16>
    %cst_115 = arith.constant dense<0.000000e+00> : vector<72x128xf32>
    %135 = tpu.matmul %132, %134, %cst_115 {dimension_numbers = #tpu.dot_dimension_numbers<[1], [0], [0], [1], [0, 0, 1, 1], [], []>} : vector<72x256xbf16>, vector<256x128xbf16>, vector<72x128xf32> -> vector<72x128xf32>
    %136 = arith.addf %130, %135 : vector<72x128xf32>
    %c3_116 = arith.constant 3 : index
    %c9_117 = arith.constant 9 : index
    %c0_118 = arith.constant 0 : index
    %137 = vector.load %arg1[%c3_116, %c9_117, %c0_118] : memref<4x88x256xbf16, #tpu.memory_space<vmem>>, vector<1x72x256xbf16>
    %138 = vector.shape_cast %137 : vector<1x72x256xbf16> to vector<72x256xbf16>
    %c2_119 = arith.constant 2 : index
    %c0_120 = arith.constant 0 : index
    %c0_121 = arith.constant 0 : index
    %139 = vector.load %arg2[%c2_119, %c0_120, %c0_121] : memref<4x256x128xbf16, #tpu.memory_space<vmem>>, vector<1x256x128xbf16>
    %140 = vector.shape_cast %139 : vector<1x256x128xbf16> to vector<256x128xbf16>
    %cst_122 = arith.constant dense<0.000000e+00> : vector<72x128xf32>
    %141 = tpu.matmul %138, %140, %cst_122 {dimension_numbers = #tpu.dot_dimension_numbers<[1], [0], [0], [1], [0, 0, 1, 1], [], []>} : vector<72x256xbf16>, vector<256x128xbf16>, vector<72x128xf32> -> vector<72x128xf32>
    %142 = arith.addf %136, %141 : vector<72x128xf32>
    %c3_123 = arith.constant 3 : index
    %c10_124 = arith.constant 10 : index
    %c0_125 = arith.constant 0 : index
    %143 = vector.load %arg1[%c3_123, %c10_124, %c0_125] : memref<4x88x256xbf16, #tpu.memory_space<vmem>>, vector<1x72x256xbf16>
    %144 = vector.shape_cast %143 : vector<1x72x256xbf16> to vector<72x256xbf16>
    %c3_126 = arith.constant 3 : index
    %c0_127 = arith.constant 0 : index
    %c0_128 = arith.constant 0 : index
    %145 = vector.load %arg2[%c3_126, %c0_127, %c0_128] : memref<4x256x128xbf16, #tpu.memory_space<vmem>>, vector<1x256x128xbf16>
    %146 = vector.shape_cast %145 : vector<1x256x128xbf16> to vector<256x128xbf16>
    %cst_129 = arith.constant dense<0.000000e+00> : vector<72x128xf32>
    %147 = tpu.matmul %144, %146, %cst_129 {dimension_numbers = #tpu.dot_dimension_numbers<[1], [0], [0], [1], [0, 0, 1, 1], [], []>} : vector<72x256xbf16>, vector<256x128xbf16>, vector<72x128xf32> -> vector<72x128xf32>
    %148 = arith.addf %142, %147 : vector<72x128xf32>
    %149 = vector.broadcast %0 : vector<1x128xf32> to vector<72x128xf32>
    %150 = arith.addf %148, %149 : vector<72x128xf32>
    %151 = arith.truncf %150 : vector<72x128xf32> to vector<72x128xbf16>
    %c3_130 = arith.constant 3 : index
    %c0_131 = arith.constant 0 : index
    %c0_132 = arith.constant 0 : index
    %152 = vector.load %arg5[%c3_130, %c0_131, %c0_132] : memref<4x72x128xbf16, #tpu.memory_space<vmem>>, vector<1x72x128xbf16>
    %153 = vector.shape_cast %152 : vector<1x72x128xbf16> to vector<72x128xbf16>
    %154 = vector.shape_cast %151 : vector<72x128xbf16> to vector<1x72x128xbf16>
    tpu.vector_store %arg5[%c3_130, %c0_131, %c0_132], %154 {strides = array<i32>} : memref<4x72x128xbf16, #tpu.memory_space<vmem>>, vector<1x72x128xbf16>,
    %155 = vector.broadcast %1 : vector<72x1xf32> to vector<72x128xf32>
    %156 = arith.mulf %150, %155 : vector<72x128xf32>
    %cst_133 = arith.constant dense<0.000000e+00> : vector<128xf32>
    %157 = vector.multi_reduction <add>, %156, %cst_133 [0] : vector<72x128xf32> to vector<128xf32>
    %158 = vector.shape_cast %157 : vector<128xf32> to vector<1x128xf32>
    %159 = arith.addf %119, %158 : vector<1x128xf32>
    %160 = arith.mulf %156, %150 : vector<72x128xf32>
    %cst_134 = arith.constant dense<0.000000e+00> : vector<128xf32>
    %161 = vector.multi_reduction <add>, %160, %cst_134 [0] : vector<72x128xf32> to vector<128xf32>
    %162 = vector.shape_cast %161 : vector<128xf32> to vector<1x128xf32>
    %163 = arith.addf %123, %162 : vector<1x128xf32>
    %c0_135 = arith.constant 0 : index
    %c0_136 = arith.constant 0 : index
    %164 = vector.load %arg6[%c0_135, %c0_136] : memref<1x128xf32, #tpu.memory_space<vmem>>, vector<1x128xf32>
    tpu.vector_store %arg6[%c0_135, %c0_136], %159 {strides = array<i32>} : memref<1x128xf32, #tpu.memory_space<vmem>>, vector<1x128xf32>,
    %c0_137 = arith.constant 0 : index
    %c0_138 = arith.constant 0 : index
    %165 = vector.load %arg7[%c0_137, %c0_138] : memref<1x128xf32, #tpu.memory_space<vmem>>, vector<1x128xf32>
    tpu.vector_store %arg7[%c0_137, %c0_138], %163 {strides = array<i32>} : memref<1x128xf32, #tpu.memory_space<vmem>>, vector<1x128xf32>,
    return
  }
  func.func @transform_0(%arg0: i32) -> (i32, i32, i32) {
    %c0_i32 = arith.constant 0 : i32
    %c0_i32_0 = arith.constant 0 : i32
    %c0_i32_1 = arith.constant 0 : i32
    return %arg0, %c0_i32, %c0_i32_0 : i32, i32, i32
  }
  func.func @transform_1(%arg0: i32) -> (i32, i32, i32) {
    %c0_i32 = arith.constant 0 : i32
    %c0_i32_0 = arith.constant 0 : i32
    %c0_i32_1 = arith.constant 0 : i32
    %c0_i32_2 = arith.constant 0 : i32
    return %c0_i32, %c0_i32_0, %c0_i32_1 : i32, i32, i32
  }
  func.func @transform_2(%arg0: i32) -> (i32, i32) {
    %c0_i32 = arith.constant 0 : i32
    %c0_i32_0 = arith.constant 0 : i32
    %c0_i32_1 = arith.constant 0 : i32
    return %c0_i32, %c0_i32_0 : i32, i32
  }
  func.func @transform_3(%arg0: i32) -> (i32, i32) {
    %c0_i32 = arith.constant 0 : i32
    %c0_i32_0 = arith.constant 0 : i32
    %c0_i32_1 = arith.constant 0 : i32
    return %c0_i32, %c0_i32_0 : i32, i32
  }
  func.func @transform_4(%arg0: i32) -> (i32, i32, i32) {
    %c0_i32 = arith.constant 0 : i32
    %c0_i32_0 = arith.constant 0 : i32
    %c0_i32_1 = arith.constant 0 : i32
    return %arg0, %c0_i32, %c0_i32_0 : i32, i32, i32
  }
  func.func @transform_5(%arg0: i32) -> (i32, i32) {
    %c0_i32 = arith.constant 0 : i32
    %c0_i32_0 = arith.constant 0 : i32
    return %arg0, %c0_i32 : i32, i32
  }
  func.func @transform_6(%arg0: i32) -> (i32, i32) {
    %c0_i32 = arith.constant 0 : i32
    %c0_i32_0 = arith.constant 0 : i32
    return %arg0, %c0_i32 : i32, i32
  }
}

module attributes {stable_mosaic.version = 11 : i64} {
  func.func @_bn2_lrelu_strip_kernel(%arg0: i32, %arg1: memref<4x8x9x128xbf16, #tpu.memory_space<vmem>>, %arg2: memref<1x128xf32, #tpu.memory_space<vmem>>, %arg3: memref<1x128xf32, #tpu.memory_space<vmem>>, %arg4: memref<4x8x8x128xbf16, #tpu.memory_space<vmem>>) attributes {dimension_semantics = [#tpu.dimension_semantics<parallel>], iteration_bounds = array<i64: 1>, scalar_prefetch = 0 : i64, scratch_operands = 0 : i64, tpu.core_type = #tpu.core_type<tc>, window_params = [{transform_indices = @transform_0, window_bounds = array<i64: 4, 8, 9, 128>}, {pipeline_mode = #tpu.pipeline_mode<synchronous>, transform_indices = @transform_1, window_bounds = array<i64: 1, 128>}, {pipeline_mode = #tpu.pipeline_mode<synchronous>, transform_indices = @transform_2, window_bounds = array<i64: 1, 128>}, {transform_indices = @transform_3, window_bounds = array<i64: 4, 8, 8, 128>}]} {
    %c0 = arith.constant 0 : index
    %c0_0 = arith.constant 0 : index
    %c0_1 = arith.constant 0 : index
    %c0_2 = arith.constant 0 : index
    %0 = vector.load %arg1[%c0, %c0_0, %c0_1, %c0_2] : memref<4x8x9x128xbf16, #tpu.memory_space<vmem>>, vector<4x8x8x128xbf16>
    %1 = arith.extf %0 : vector<4x8x8x128xbf16> to vector<4x8x8x128xf32>
    %c0_3 = arith.constant 0 : index
    %c0_4 = arith.constant 0 : index
    %2 = vector.load %arg2[%c0_3, %c0_4] : memref<1x128xf32, #tpu.memory_space<vmem>>, vector<1x128xf32>
    %3 = vector.shape_cast %2 : vector<1x128xf32> to vector<1x1x1x128xf32>
    %4 = vector.broadcast %3 : vector<1x1x1x128xf32> to vector<4x8x8x128xf32>
    %5 = arith.mulf %1, %4 : vector<4x8x8x128xf32>
    %c0_5 = arith.constant 0 : index
    %c0_6 = arith.constant 0 : index
    %6 = vector.load %arg3[%c0_5, %c0_6] : memref<1x128xf32, #tpu.memory_space<vmem>>, vector<1x128xf32>
    %7 = vector.shape_cast %6 : vector<1x128xf32> to vector<1x1x1x128xf32>
    %8 = vector.broadcast %7 : vector<1x1x1x128xf32> to vector<4x8x8x128xf32>
    %9 = arith.addf %5, %8 : vector<4x8x8x128xf32>
    %cst = arith.constant 0.000000e+00 : f32
    %10 = vector.broadcast %cst : f32 to vector<4x8x8x128xf32>
    %11 = arith.cmpf oge, %9, %10 : vector<4x8x8x128xf32>
    %cst_7 = arith.constant 2.000000e-01 : f32
    %12 = vector.broadcast %cst_7 : f32 to vector<4x8x8x128xf32>
    %13 = arith.mulf %12, %9 : vector<4x8x8x128xf32>
    %14 = arith.select %11, %9, %13 : vector<4x8x8x128xi1>, vector<4x8x8x128xf32>
    %15 = arith.truncf %14 : vector<4x8x8x128xf32> to vector<4x8x8x128xbf16>
    %c0_8 = arith.constant 0 : index
    %c0_9 = arith.constant 0 : index
    %c0_10 = arith.constant 0 : index
    %c0_11 = arith.constant 0 : index
    %16 = vector.load %arg4[%c0_8, %c0_9, %c0_10, %c0_11] : memref<4x8x8x128xbf16, #tpu.memory_space<vmem>>, vector<4x8x8x128xbf16>
    tpu.vector_store %arg4[%c0_8, %c0_9, %c0_10, %c0_11], %15 {strides = array<i32>} : memref<4x8x8x128xbf16, #tpu.memory_space<vmem>>, vector<4x8x8x128xbf16>,
    return
  }
  func.func @transform_0(%arg0: i32) -> (i32, i32, i32, i32) {
    %c0_i32 = arith.constant 0 : i32
    %c0_i32_0 = arith.constant 0 : i32
    %c0_i32_1 = arith.constant 0 : i32
    %c0_i32_2 = arith.constant 0 : i32
    return %arg0, %c0_i32, %c0_i32_0, %c0_i32_1 : i32, i32, i32, i32
  }
  func.func @transform_1(%arg0: i32) -> (i32, i32) {
    %c0_i32 = arith.constant 0 : i32
    %c0_i32_0 = arith.constant 0 : i32
    %c0_i32_1 = arith.constant 0 : i32
    return %c0_i32, %c0_i32_0 : i32, i32
  }
  func.func @transform_2(%arg0: i32) -> (i32, i32) {
    %c0_i32 = arith.constant 0 : i32
    %c0_i32_0 = arith.constant 0 : i32
    %c0_i32_1 = arith.constant 0 : i32
    return %c0_i32, %c0_i32_0 : i32, i32
  }
  func.func @transform_3(%arg0: i32) -> (i32, i32, i32, i32) {
    %c0_i32 = arith.constant 0 : i32
    %c0_i32_0 = arith.constant 0 : i32
    %c0_i32_1 = arith.constant 0 : i32
    %c0_i32_2 = arith.constant 0 : i32
    return %arg0, %c0_i32, %c0_i32_0, %c0_i32_1 : i32, i32, i32, i32
  }
}

module attributes {stable_mosaic.version = 11 : i64} {
  func.func @_fc_head_kernel(%arg0: i32, %arg1: memref<4x2048xbf16, #tpu.memory_space<vmem>>, %arg2: memref<2048x1024xbf16, #tpu.memory_space<vmem>>, %arg3: memref<1x1024xf32, #tpu.memory_space<vmem>>, %arg4: memref<1x1024xf32, #tpu.memory_space<vmem>>, %arg5: memref<1x1024xf32, #tpu.memory_space<vmem>>, %arg6: memref<1024x1xbf16, #tpu.memory_space<vmem>>, %arg7: memref<1x1xf32, #tpu.memory_space<vmem>>, %arg8: memref<4x1xf32, #tpu.memory_space<vmem>>, %arg9: memref<4x1024xf32, #tpu.memory_space<vmem>>) attributes {dimension_semantics = [#tpu.dimension_semantics<arbitrary>], iteration_bounds = array<i64: 4>, scalar_prefetch = 0 : i64, scratch_operands = 1 : i64, tpu.core_type = #tpu.core_type<tc>, window_params = [{transform_indices = @transform_0, window_bounds = array<i64: 4, 2048>}, {transform_indices = @transform_1, window_bounds = array<i64: 2048, 1024>}, {pipeline_mode = #tpu.pipeline_mode<synchronous>, transform_indices = @transform_2, window_bounds = array<i64: 1, 1024>}, {pipeline_mode = #tpu.pipeline_mode<synchronous>, transform_indices = @transform_3, window_bounds = array<i64: 1, 1024>}, {pipeline_mode = #tpu.pipeline_mode<synchronous>, transform_indices = @transform_4, window_bounds = array<i64: 1, 1024>}, {pipeline_mode = #tpu.pipeline_mode<synchronous>, transform_indices = @transform_5, window_bounds = array<i64: 1024, 1>}, {pipeline_mode = #tpu.pipeline_mode<synchronous>, transform_indices = @transform_6, window_bounds = array<i64: 1, 1>}, {pipeline_mode = #tpu.pipeline_mode<synchronous>, transform_indices = @transform_7, window_bounds = array<i64: 4, 1>}]} {
    %c0_i32 = arith.constant 0 : i32
    %0 = arith.cmpi eq, %arg0, %c0_i32 : i32
    %1 = arith.extui %0 : i1 to i32
    %c0_i32_0 = arith.constant 0 : i32
    %2 = arith.cmpi ne, %1, %c0_i32_0 : i32
    scf.if %2 {
      %cst_9 = arith.constant 0.000000e+00 : f32
      %12 = vector.broadcast %cst_9 : f32 to vector<4x1024xf32>
      %c0_10 = arith.constant 0 : index
      %c0_11 = arith.constant 0 : index
      %13 = vector.load %arg9[%c0_10, %c0_11] : memref<4x1024xf32, #tpu.memory_space<vmem>>, vector<4x1024xf32>
      tpu.vector_store %arg9[%c0_10, %c0_11], %12 {strides = array<i32>} : memref<4x1024xf32, #tpu.memory_space<vmem>>, vector<4x1024xf32>,
    } else {
    }
    %c0 = arith.constant 0 : index
    %c0_1 = arith.constant 0 : index
    %3 = vector.load %arg9[%c0, %c0_1] : memref<4x1024xf32, #tpu.memory_space<vmem>>, vector<4x1024xf32>
    %c0_2 = arith.constant 0 : index
    %c0_3 = arith.constant 0 : index
    %4 = vector.load %arg1[%c0_2, %c0_3] : memref<4x2048xbf16, #tpu.memory_space<vmem>>, vector<4x2048xbf16>
    %c0_4 = arith.constant 0 : index
    %c0_5 = arith.constant 0 : index
    %5 = vector.load %arg2[%c0_4, %c0_5] : memref<2048x1024xbf16, #tpu.memory_space<vmem>>, vector<2048x1024xbf16>
    %cst = arith.constant dense<0.000000e+00> : vector<4x1024xf32>
    %6 = tpu.matmul %4, %5, %cst {dimension_numbers = #tpu.dot_dimension_numbers<[1], [0], [0], [1], [0, 0, 1, 1], [], []>} : vector<4x2048xbf16>, vector<2048x1024xbf16>, vector<4x1024xf32> -> vector<4x1024xf32>
    %7 = arith.addf %3, %6 : vector<4x1024xf32>
    %c0_6 = arith.constant 0 : index
    %c0_7 = arith.constant 0 : index
    %8 = vector.load %arg9[%c0_6, %c0_7] : memref<4x1024xf32, #tpu.memory_space<vmem>>, vector<4x1024xf32>
    tpu.vector_store %arg9[%c0_6, %c0_7], %7 {strides = array<i32>} : memref<4x1024xf32, #tpu.memory_space<vmem>>, vector<4x1024xf32>,
    %c3_i32 = arith.constant 3 : i32
    %9 = arith.cmpi eq, %arg0, %c3_i32 : i32
    %10 = arith.extui %9 : i1 to i32
    %c0_i32_8 = arith.constant 0 : i32
    %11 = arith.cmpi ne, %10, %c0_i32_8 : i32
    scf.if %11 {
      %c0_9 = arith.constant 0 : index
      %c0_10 = arith.constant 0 : index
      %12 = vector.load %arg9[%c0_9, %c0_10] : memref<4x1024xf32, #tpu.memory_space<vmem>>, vector<4x1024xf32>
      %c0_11 = arith.constant 0 : index
      %c0_12 = arith.constant 0 : index
      %13 = vector.load %arg3[%c0_11, %c0_12] : memref<1x1024xf32, #tpu.memory_space<vmem>>, vector<1x1024xf32>
      %14 = vector.broadcast %13 : vector<1x1024xf32> to vector<4x1024xf32>
      %15 = arith.addf %12, %14 : vector<4x1024xf32>
      %cst_13 = arith.constant dense<0.000000e+00> : vector<1024xf32>
      %16 = vector.multi_reduction <add>, %15, %cst_13 [0] : vector<4x1024xf32> to vector<1024xf32>
      %17 = vector.shape_cast %16 : vector<1024xf32> to vector<1x1024xf32>
      %cst_14 = arith.constant 4.000000e+00 : f32
      %18 = vector.broadcast %cst_14 : f32 to vector<1x1024xf32>
      %19 = arith.divf %17, %18 : vector<1x1024xf32>
      %20 = vector.broadcast %19 : vector<1x1024xf32> to vector<4x1024xf32>
      %21 = arith.subf %15, %20 : vector<4x1024xf32>
      %22 = arith.mulf %21, %21 : vector<4x1024xf32>
      %cst_15 = arith.constant dense<0.000000e+00> : vector<1024xf32>
      %23 = vector.multi_reduction <add>, %22, %cst_15 [0] : vector<4x1024xf32> to vector<1024xf32>
      %24 = vector.shape_cast %23 : vector<1024xf32> to vector<1x1024xf32>
      %cst_16 = arith.constant 4.000000e+00 : f32
      %25 = vector.broadcast %cst_16 : f32 to vector<1x1024xf32>
      %26 = arith.divf %24, %25 : vector<1x1024xf32>
      %27 = vector.broadcast %19 : vector<1x1024xf32> to vector<4x1024xf32>
      %28 = arith.subf %15, %27 : vector<4x1024xf32>
      %cst_17 = arith.constant 9.99999974E-6 : f32
      %29 = vector.broadcast %cst_17 : f32 to vector<1x1024xf32>
      %30 = arith.addf %26, %29 : vector<1x1024xf32>
      %31 = math.rsqrt %30 : vector<1x1024xf32>
      %32 = vector.broadcast %31 : vector<1x1024xf32> to vector<4x1024xf32>
      %33 = arith.mulf %28, %32 : vector<4x1024xf32>
      %c0_18 = arith.constant 0 : index
      %c0_19 = arith.constant 0 : index
      %34 = vector.load %arg4[%c0_18, %c0_19] : memref<1x1024xf32, #tpu.memory_space<vmem>>, vector<1x1024xf32>
      %35 = vector.broadcast %34 : vector<1x1024xf32> to vector<4x1024xf32>
      %36 = arith.mulf %33, %35 : vector<4x1024xf32>
      %c0_20 = arith.constant 0 : index
      %c0_21 = arith.constant 0 : index
      %37 = vector.load %arg5[%c0_20, %c0_21] : memref<1x1024xf32, #tpu.memory_space<vmem>>, vector<1x1024xf32>
      %38 = vector.broadcast %37 : vector<1x1024xf32> to vector<4x1024xf32>
      %39 = arith.addf %36, %38 : vector<4x1024xf32>
      %cst_22 = arith.constant 0.000000e+00 : f32
      %40 = vector.broadcast %cst_22 : f32 to vector<4x1024xf32>
      %41 = arith.cmpf oge, %39, %40 : vector<4x1024xf32>
      %cst_23 = arith.constant 2.000000e-01 : f32
      %42 = vector.broadcast %cst_23 : f32 to vector<4x1024xf32>
      %43 = arith.mulf %42, %39 : vector<4x1024xf32>
      %44 = arith.select %41, %39, %43 : vector<4x1024xi1>, vector<4x1024xf32>
      %45 = arith.truncf %44 : vector<4x1024xf32> to vector<4x1024xbf16>
      %c0_24 = arith.constant 0 : index
      %c0_25 = arith.constant 0 : index
      %46 = vector.load %arg6[%c0_24, %c0_25] : memref<1024x1xbf16, #tpu.memory_space<vmem>>, vector<1024x1xbf16>
      %cst_26 = arith.constant dense<0.000000e+00> : vector<4x1xf32>
      %47 = tpu.matmul %45, %46, %cst_26 {dimension_numbers = #tpu.dot_dimension_numbers<[1], [0], [0], [1], [0, 0, 1, 1], [], []>} : vector<4x1024xbf16>, vector<1024x1xbf16>, vector<4x1xf32> -> vector<4x1xf32>
      %c0_27 = arith.constant 0 : index
      %c0_28 = arith.constant 0 : index
      %48 = vector.load %arg7[%c0_27, %c0_28] : memref<1x1xf32, #tpu.memory_space<vmem>>, vector<1x1xf32>
      %49 = vector.broadcast %48 : vector<1x1xf32> to vector<4x1xf32>
      %50 = arith.addf %47, %49 : vector<4x1xf32>
      %51 = math.absf %50 : vector<4x1xf32>
      %cst_29 = arith.constant 0.000000e+00 : f32
      %52 = vector.broadcast %cst_29 : f32 to vector<4x1xf32>
      %53 = arith.subf %52, %51 : vector<4x1xf32>
      %54 = math.exp %53 : vector<4x1xf32>
      %cst_30 = arith.constant 0.000000e+00 : f32
      %55 = vector.broadcast %cst_30 : f32 to vector<4x1xf32>
      %56 = arith.cmpf oge, %50, %55 : vector<4x1xf32>
      %cst_31 = arith.constant 1.000000e+00 : f32
      %57 = vector.broadcast %cst_31 : f32 to vector<4x1xf32>
      %58 = arith.addf %57, %54 : vector<4x1xf32>
      %cst_32 = arith.constant 1.000000e+00 : f32
      %59 = vector.broadcast %cst_32 : f32 to vector<4x1xf32>
      %60 = arith.divf %59, %58 : vector<4x1xf32>
      %cst_33 = arith.constant 1.000000e+00 : f32
      %61 = vector.broadcast %cst_33 : f32 to vector<4x1xf32>
      %62 = arith.addf %61, %54 : vector<4x1xf32>
      %63 = arith.divf %54, %62 : vector<4x1xf32>
      %64 = arith.select %56, %60, %63 : vector<4x1xi1>, vector<4x1xf32>
      %c0_34 = arith.constant 0 : index
      %c0_35 = arith.constant 0 : index
      %65 = vector.load %arg8[%c0_34, %c0_35] : memref<4x1xf32, #tpu.memory_space<vmem>>, vector<4x1xf32>
      tpu.vector_store %arg8[%c0_34, %c0_35], %64 {strides = array<i32>} : memref<4x1xf32, #tpu.memory_space<vmem>>, vector<4x1xf32>,
    } else {
    }
    return
  }
  func.func @transform_0(%arg0: i32) -> (i32, i32) {
    %c0_i32 = arith.constant 0 : i32
    %c0_i32_0 = arith.constant 0 : i32
    return %c0_i32, %arg0 : i32, i32
  }
  func.func @transform_1(%arg0: i32) -> (i32, i32) {
    %c0_i32 = arith.constant 0 : i32
    %c0_i32_0 = arith.constant 0 : i32
    return %arg0, %c0_i32 : i32, i32
  }
  func.func @transform_2(%arg0: i32) -> (i32, i32) {
    %c0_i32 = arith.constant 0 : i32
    %c0_i32_0 = arith.constant 0 : i32
    %c0_i32_1 = arith.constant 0 : i32
    return %c0_i32, %c0_i32_0 : i32, i32
  }
  func.func @transform_3(%arg0: i32) -> (i32, i32) {
    %c0_i32 = arith.constant 0 : i32
    %c0_i32_0 = arith.constant 0 : i32
    %c0_i32_1 = arith.constant 0 : i32
    return %c0_i32, %c0_i32_0 : i32, i32
  }
  func.func @transform_4(%arg0: i32) -> (i32, i32) {
    %c0_i32 = arith.constant 0 : i32
    %c0_i32_0 = arith.constant 0 : i32
    %c0_i32_1 = arith.constant 0 : i32
    return %c0_i32, %c0_i32_0 : i32, i32
  }
  func.func @transform_5(%arg0: i32) -> (i32, i32) {
    %c0_i32 = arith.constant 0 : i32
    %c0_i32_0 = arith.constant 0 : i32
    %c0_i32_1 = arith.constant 0 : i32
    return %c0_i32, %c0_i32_0 : i32, i32
  }
  func.func @transform_6(%arg0: i32) -> (i32, i32) {
    %c0_i32 = arith.constant 0 : i32
    %c0_i32_0 = arith.constant 0 : i32
    %c0_i32_1 = arith.constant 0 : i32
    return %c0_i32, %c0_i32_0 : i32, i32
  }
  func.func @transform_7(%arg0: i32) -> (i32, i32) {
    %c0_i32 = arith.constant 0 : i32
    %c0_i32_0 = arith.constant 0 : i32
    %c0_i32_1 = arith.constant 0 : i32
    return %c0_i32, %c0_i32_0 : i32, i32
  }
}

</mosaic_0001>

<bundles_post_ra>
// kernel: discriminator_forward.4
= control target key start
LH: loop header
LB: loop body
LE: loop exit
PB: predicated region body
PF: predicated region fallthrough
CT: control target
= control target key end

     0   :  { %s608_s0 = inlined_call_operand.vmem [shape: bf16[4,8,9,128], index: 0, kind: input, shape index: {}]   ;;  %s609_s1 = inlined_call_operand.vmem [shape: f32[1,128], index: 1, kind: input, shape index: {}]   ;;  %s610_s2 = inlined_call_operand.vmem [shape: f32[1,128], index: 2, kind: input, shape index: {}]   ;;  %s611_s3 = inlined_call_operand.vmem [shape: bf16[4,8,8,128], index: 3, kind: output, shape index: {}]  }
   0x1   :  { %v14_v0 = vld [vmem:[%s608_s0] ss:$8 sps:$4 sm:$0xff]   ;;  %v16_v4 = vld [vmem:[%s608_s0 + $0x10] ss:$8 sps:$4 sm:$0xff]  }
   0x2   :  { %v443_v1 = vld [vmem:[%s609_s1] ss:$0 sm:$0xff]  ;;  %v46_v2 = vunpack.c.l.bf16 %v14_v0  ;;  %v47_v3 = vunpack.c.h.bf16 %v14_v0  ;;  %v20_v6 = vld [vmem:[%s608_s0 + $0x30] ss:$8 sps:$4 sm:$0xff]   ;;  %v48_v8 = vunpack.c.l.bf16 %v16_v4  ;;  %v49_v9 = vunpack.c.h.bf16 %v16_v4 }
   0x3   :  { %v18_v5 = vld [vmem:[%s608_s0 + $0x20] ss:$8 sps:$4 sm:$0xff]   ;;  %v52_v14 = vunpack.c.l.bf16 %v20_v6  ;;  %v53_v15 = vunpack.c.h.bf16 %v20_v6  ;;  %v24_v35 = vld [vmem:[%s608_s0 + $0x50] ss:$8 sps:$4 sm:$0xff]  }
   0x4   :  { %v457_v7 = vld [vmem:[%s610_s2] ss:$0 sm:$0xff]  ;;  %v50_v10 = vunpack.c.l.bf16 %v18_v5  ;;  %v51_v11 = vunpack.c.h.bf16 %v18_v5  ;;  %v85_v12 = vmul.f32 %v443_v1, %v46_v2  ;;  %v86_v13 = vmul.f32 %v443_v1, %v47_v3  ;;  %v28_v4 = vld [vmem:[%s608_s0 + $0x70] ss:$8 sps:$4 sm:$0xff]  }
   0x5   :  { %v87_v16 = vmul.f32 %v443_v1, %v48_v8  ;;  %v88_v17 = vmul.f32 %v443_v1, %v49_v9  ;;  %v91_v22 = vmul.f32 %v443_v1, %v52_v14  ;;  %v92_v23 = vmul.f32 %v443_v1, %v53_v15  ;;  %v22_v34 = vld [vmem:[%s608_s0 + $0x40] ss:$8 sps:$4 sm:$0xff]  }
   0x6   :  { %v89_v18 = vmul.f32 %v443_v1, %v50_v10  ;;  %v90_v19 = vmul.f32 %v443_v1, %v51_v11  ;;  %v124_v20 = vadd.f32 %v457_v7, %v85_v12  ;;  %v125_v21 = vadd.f32 %v457_v7, %v86_v13  ;;  %v26_v48 = vld [vmem:[%s608_s0 + $0x60] ss:$8 sps:$4 sm:$0xff]  }
   0x7   :  { %v126_v24 = vadd.f32 %v457_v7, %v87_v16  ;;  %v127_v25 = vadd.f32 %v457_v7, %v88_v17  ;;  %v130_v42 = vadd.f32 %v457_v7, %v91_v22  ;;  %v131_v43 = vadd.f32 %v457_v7, %v92_v23  ;;  %v30_v15 = vld [vmem:[%s608_s0 + $0x80] ss:$8 sps:$4 sm:$0xff]  }
   0x8   :  { %v128_v26 = vadd.f32 %v457_v7, %v89_v18  ;;  %v129_v27 = vadd.f32 %v457_v7, %v90_v19  ;;  %vm156_vm0 = vcmp.ge.f32.partialorder %v124_v20, 0.0  ;;  %vm157_vm1 = vcmp.ge.f32.partialorder %v125_v21, 0.0 }
   0x9   :  { %v188_v28 = vmul.f32 0.2, %v124_v20  ;;  %v189_v29 = vmul.f32 0.2, %v125_v21  ;;  %vm158_vm2 = vcmp.ge.f32.partialorder %v126_v24, 0.0  ;;  %vm159_vm3 = vcmp.ge.f32.partialorder %v127_v25, 0.0 }
   0xa   :  { %v190_v30 = vmul.f32 0.2, %v126_v24  ;;  %v191_v31 = vmul.f32 0.2, %v127_v25  ;;  %vm160_vm4 = vcmp.ge.f32.partialorder %v128_v26, 0.0  ;;  %vm161_vm5 = vcmp.ge.f32.partialorder %v129_v27, 0.0 }
   0xb   :  { %v220_v32 = vsel %vm156_vm0, %v124_v20, %v188_v28  ;;  %v221_v33 = vsel %vm157_vm1, %v125_v21, %v189_v29  ;;  %v192_v39 = vmul.f32 0.2, %v128_v26  ;;  %v193_v41 = vmul.f32 0.2, %v129_v27 }
   0xc   :  { %v325_v36 = vpack.c.bf16 %v221_v33, %v220_v32  ;;  %v222_v37 = vsel %vm158_vm2, %v126_v24, %v190_v30  ;;  %v223_v38 = vsel %vm159_vm3, %v127_v25, %v191_v31  ;;  %v54_v45 = vunpack.c.l.bf16 %v22_v34 }
   0xd   :  { %v330_v40 = vpack.c.bf16 %v223_v38, %v222_v37  ;;  %v224_v44 = vsel %vm160_vm4, %v128_v26, %v192_v39  ;;  %v55_v46 = vunpack.c.h.bf16 %v22_v34  ;;  %v56_v47 = vunpack.c.l.bf16 %v24_v35  ;;  %v32_v26 = vld [vmem:[%s608_s0 + $0x90] ss:$8 sps:$4 sm:$0xff]  }
   0xe   :  { %326 = vst [vmem:[%s611_s3] sm:$0xff] %v325_v36   ;;  %v225_v49 = vsel %vm161_vm5, %v129_v27, %v193_v41  ;;  %vm162_vm6 = vcmp.ge.f32.partialorder %v130_v42, 0.0  ;;  %vm163_vm7 = vcmp.ge.f32.partialorder %v131_v43, 0.0  ;;  %v194_v50 = vmul.f32 0.2, %v130_v42  ;;  %v34_v27 = vld [vmem:[%s608_s0 + $0xa0] ss:$8 sps:$4 sm:$0xff]  }
   0xf   :  { %402 = vst [vmem:[%s611_s3 + $0x8] sm:$0xff] %v330_v40   ;;  %v335_v51 = vpack.c.bf16 %v225_v49, %v224_v44  ;;  %v195_v52 = vmul.f32 0.2, %v131_v43  ;;  %v93_v53 = vmul.f32 %v443_v1, %v54_v45  ;;  %v94_v54 = vmul.f32 %v443_v1, %v55_v46 }
  0x10   :  { %v226_v55 = vsel %vm162_vm6, %v130_v42, %v194_v50  ;;  %v57_v56 = vunpack.c.h.bf16 %v24_v35  ;;  %v95_v57 = vmul.f32 %v443_v1, %v56_v47  ;;  %v58_v58 = vunpack.c.l.bf16 %v26_v48 }
  0x11   :  { %403 = vst [vmem:[%s611_s3 + $0x10] sm:$0xff] %v335_v51   ;;  %v227_v59 = vsel %vm163_vm7, %v131_v43, %v195_v52  ;;  %v132_v60 = vadd.f32 %v457_v7, %v93_v53  ;;  %v133_v61 = vadd.f32 %v457_v7, %v94_v54  ;;  %v59_v62 = vunpack.c.h.bf16 %v26_v48 }
  0x12   :  { %v340_v63 = vpack.c.bf16 %v227_v59, %v226_v55  ;;  %v96_v0 = vmul.f32 %v443_v1, %v57_v56  ;;  %v134_v2 = vadd.f32 %v457_v7, %v95_v57  ;;  %v97_v3 = vmul.f32 %v443_v1, %v58_v58  ;;  %v36_v55 = vld [vmem:[%s608_s0 + $0xb0] ss:$8 sps:$4 sm:$0xff]  }
  0x13   :  { %vm164_vm8 = vcmp.ge.f32.partialorder %v132_v60, 0.0  ;;  %vm165_vm9 = vcmp.ge.f32.partialorder %v133_v61, 0.0  ;;  %v196_v5 = vmul.f32 0.2, %v132_v60  ;;  %v197_v6 = vmul.f32 0.2, %v133_v61 }
  0x14   :  { %404 = vst [vmem:[%s611_s3 + $0x18] sm:$0xff] %v340_v63   ;;  %v135_v8 = vadd.f32 %v457_v7, %v96_v0  ;;  %vm166_vm10 = vcmp.ge.f32.partialorder %v134_v2, 0.0  ;;  %v198_v9 = vmul.f32 0.2, %v134_v2  ;;  %v98_v10 = vmul.f32 %v443_v1, %v59_v62 }
  0x15   :  { %v228_v11 = vsel %vm164_vm8, %v132_v60, %v196_v5  ;;  %v229_v12 = vsel %vm165_vm9, %v133_v61, %v197_v6  ;;  %v136_v13 = vadd.f32 %v457_v7, %v97_v3  ;;  %v60_v14 = vunpack.c.l.bf16 %v28_v4  ;;  %v38_v60 = vld [vmem:[%s608_s0 + $0xc0] ss:$8 sps:$4 sm:$0xff]  }
  0x16   :  { %v345_v16 = vpack.c.bf16 %v229_v12, %v228_v11  ;;  %vm167_vm11 = vcmp.ge.f32.partialorder %v135_v8, 0.0  ;;  %v199_v17 = vmul.f32 0.2, %v135_v8  ;;  %v230_v18 = vsel %vm166_vm10, %v134_v2, %v198_v9  ;;  %v40_v9 = vld [vmem:[%s608_s0 + $0xd0] ss:$8 sps:$4 sm:$0xff]  }
  0x17   :  { %v137_v19 = vadd.f32 %v457_v7, %v98_v10  ;;  %vm168_vm12 = vcmp.ge.f32.partialorder %v136_v13, 0.0  ;;  %v200_v20 = vmul.f32 0.2, %v136_v13  ;;  %v61_v21 = vunpack.c.h.bf16 %v28_v4 }
  0x18   :  { %405 = vst [vmem:[%s611_s3 + $0x20] sm:$0xff] %v345_v16   ;;  %v231_v22 = vsel %vm167_vm11, %v135_v8, %v199_v17  ;;  %v99_v23 = vmul.f32 %v443_v1, %v60_v14  ;;  %v62_v24 = vunpack.c.l.bf16 %v30_v15  ;;  %v63_v25 = vunpack.c.h.bf16 %v30_v15 }
  0x19   :  { %v350_v28 = vpack.c.bf16 %v231_v22, %v230_v18  ;;  %vm169_vm13 = vcmp.ge.f32.partialorder %v137_v19, 0.0  ;;  %v201_v29 = vmul.f32 0.2, %v137_v19  ;;  %v232_v30 = vsel %vm168_vm12, %v136_v13, %v200_v20 }
  0x1a   :  { %v100_v31 = vmul.f32 %v443_v1, %v61_v21  ;;  %v138_v32 = vadd.f32 %v457_v7, %v99_v23  ;;  %v101_v33 = vmul.f32 %v443_v1, %v62_v24  ;;  %v102_v34 = vmul.f32 %v443_v1, %v63_v25 }
  0x1b   :  { %406 = vst [vmem:[%s611_s3 + $0x28] sm:$0xff] %v350_v28   ;;  %v233_v35 = vsel %vm169_vm13, %v137_v19, %v201_v29  ;;  %v64_v36 = vunpack.c.l.bf16 %v32_v26  ;;  %v65_v37 = vunpack.c.h.bf16 %v32_v26  ;;  %v66_v38 = vunpack.c.l.bf16 %v34_v27  ;;  %v42_v28 = vld [vmem:[%s608_s0 + $0xe0] ss:$8 sps:$4 sm:$0xff]  }
  0x1c   :  { %v355_v39 = vpack.c.bf16 %v233_v35, %v232_v30  ;;  %v139_v40 = vadd.f32 %v457_v7, %v100_v31  ;;  %vm170_vm14 = vcmp.ge.f32.partialorder %v138_v32, 0.0  ;;  %v202_v41 = vmul.f32 0.2, %v138_v32 }
  0x1d   :  { %v140_v42 = vadd.f32 %v457_v7, %v101_v33  ;;  %v141_v43 = vadd.f32 %v457_v7, %v102_v34  ;;  %v103_v44 = vmul.f32 %v443_v1, %v64_v36  ;;  %v104_v45 = vmul.f32 %v443_v1, %v65_v37  ;;  %v44_v37 = vld [vmem:[%s608_s0 + $0xf0] ss:$8 sps:$4 sm:$0xff]  }
  0x1e   :  { %407 = vst [vmem:[%s611_s3 + $0x30] sm:$0xff] %v355_v39   ;;  %vm171_vm15 = vcmp.ge.f32.partialorder %v139_v40, 0.0  ;;  %v203_v46 = vmul.f32 0.2, %v139_v40  ;;  %v234_v47 = vsel %vm170_vm14, %v138_v32, %v202_v41  ;;  %v67_v48 = vunpack.c.h.bf16 %v34_v27 }
  0x1f   :  { %vm172_vm0 = vcmp.ge.f32.partialorder %v140_v42, 0.0  ;;  %vm173_vm1 = vcmp.ge.f32.partialorder %v141_v43, 0.0  ;;  %v204_v49 = vmul.f32 0.2, %v140_v42  ;;  %v205_v50 = vmul.f32 0.2, %v141_v43 }
  0x20   :  { %v235_v51 = vsel %vm171_vm15, %v139_v40, %v203_v46  ;;  %v142_v52 = vadd.f32 %v457_v7, %v103_v44  ;;  %v143_v53 = vadd.f32 %v457_v7, %v104_v45  ;;  %v105_v54 = vmul.f32 %v443_v1, %v66_v38 }
  0x21   :  { %v360_v56 = vpack.c.bf16 %v235_v51, %v234_v47  ;;  %v236_v57 = vsel %vm172_vm0, %v140_v42, %v204_v49  ;;  %v237_v58 = vsel %vm173_vm1, %v141_v43, %v205_v50  ;;  %v106_v59 = vmul.f32 %v443_v1, %v67_v48 }
  0x22   :  { %v365_v61 = vpack.c.bf16 %v237_v58, %v236_v57  ;;  %vm174_vm2 = vcmp.ge.f32.partialorder %v142_v52, 0.0  ;;  %vm175_vm3 = vcmp.ge.f32.partialorder %v143_v53, 0.0  ;;  %v206_v62 = vmul.f32 0.2, %v142_v52 }
  0x23   :  { %408 = vst [vmem:[%s611_s3 + $0x38] sm:$0xff] %v360_v56   ;;  %v207_v63 = vmul.f32 0.2, %v143_v53  ;;  %v144_v0 = vadd.f32 %v457_v7, %v105_v54  ;;  %v145_v2 = vadd.f32 %v457_v7, %v106_v59  ;;  %v68_v3 = vunpack.c.l.bf16 %v36_v55 }
  0x24   :  { %409 = vst [vmem:[%s611_s3 + $0x40] sm:$0xff] %v365_v61   ;;  %v238_v4 = vsel %vm174_vm2, %v142_v52, %v206_v62  ;;  %v69_v5 = vunpack.c.h.bf16 %v36_v55  ;;  %v70_v6 = vunpack.c.l.bf16 %v38_v60  ;;  %v71_v8 = vunpack.c.h.bf16 %v38_v60 }
  0x25   :  { %v239_v10 = vsel %vm175_vm3, %v143_v53, %v207_v63  ;;  %vm176_vm4 = vcmp.ge.f32.partialorder %v144_v0, 0.0  ;;  %vm177_vm5 = vcmp.ge.f32.partialorder %v145_v2, 0.0  ;;  %v208_v11 = vmul.f32 0.2, %v144_v0 }
  0x26   :  { %v370_v12 = vpack.c.bf16 %v239_v10, %v238_v4  ;;  %v209_v13 = vmul.f32 0.2, %v145_v2  ;;  %v107_v14 = vmul.f32 %v443_v1, %v68_v3  ;;  %v108_v15 = vmul.f32 %v443_v1, %v69_v5 }
  0x27   :  { %v240_v16 = vsel %vm176_vm4, %v144_v0, %v208_v11  ;;  %v109_v17 = vmul.f32 %v443_v1, %v70_v6  ;;  %v110_v18 = vmul.f32 %v443_v1, %v71_v8  ;;  %v72_v19 = vunpack.c.l.bf16 %v40_v9 }
  0x28   :  { %410 = vst [vmem:[%s611_s3 + $0x48] sm:$0xff] %v370_v12   ;;  %v241_v20 = vsel %vm177_vm5, %v145_v2, %v209_v13  ;;  %v146_v21 = vadd.f32 %v457_v7, %v107_v14  ;;  %v147_v22 = vadd.f32 %v457_v7, %v108_v15  ;;  %v73_v23 = vunpack.c.h.bf16 %v40_v9 }
  0x29   :  { %v375_v24 = vpack.c.bf16 %v241_v20, %v240_v16  ;;  %v148_v25 = vadd.f32 %v457_v7, %v109_v17  ;;  %v149_v26 = vadd.f32 %v457_v7, %v110_v18  ;;  %v111_v27 = vmul.f32 %v443_v1, %v72_v19 }
  0x2a   :  { %vm178_vm6 = vcmp.ge.f32.partialorder %v146_v21, 0.0  ;;  %vm179_vm7 = vcmp.ge.f32.partialorder %v147_v22, 0.0  ;;  %v210_v29 = vmul.f32 0.2, %v146_v21  ;;  %v211_v30 = vmul.f32 0.2, %v147_v22 }
  0x2b   :  { %411 = vst [vmem:[%s611_s3 + $0x50] sm:$0xff] %v375_v24   ;;  %vm180_vm8 = vcmp.ge.f32.partialorder %v148_v25, 0.0  ;;  %vm181_vm9 = vcmp.ge.f32.partialorder %v149_v26, 0.0  ;;  %v212_v31 = vmul.f32 0.2, %v148_v25  ;;  %v112_v35 = vmul.f32 %v443_v1, %v73_v23 }
  0x2c   :  { %v213_v32 = vmul.f32 0.2, %v149_v26  ;;  %v242_v33 = vsel %vm178_vm6, %v146_v21, %v210_v29  ;;  %v243_v34 = vsel %vm179_vm7, %v147_v22, %v211_v30  ;;  %v150_v36 = vadd.f32 %v457_v7, %v111_v27 }
  0x2d   :  { %v380_v38 = vpack.c.bf16 %v243_v34, %v242_v33  ;;  %v244_v39 = vsel %vm180_vm8, %v148_v25, %v212_v31  ;;  %v74_v41 = vunpack.c.l.bf16 %v42_v28  ;;  %v151_v43 = vadd.f32 %v457_v7, %v112_v35 }
  0x2e   :  { %v245_v40 = vsel %vm181_vm9, %v149_v26, %v213_v32  ;;  %vm182_vm10 = vcmp.ge.f32.partialorder %v150_v36, 0.0  ;;  %v214_v44 = vmul.f32 0.2, %v150_v36  ;;  %v75_v45 = vunpack.c.h.bf16 %v42_v28 }
  0x2f   :  { %v385_v42 = vpack.c.bf16 %v245_v40, %v244_v39  ;;  %412 = vst [vmem:[%s611_s3 + $0x58] sm:$0xff] %v380_v38   ;;  %v113_v46 = vmul.f32 %v443_v1, %v74_v41  ;;  %v76_v47 = vunpack.c.l.bf16 %v44_v37  ;;  %v77_v48 = vunpack.c.h.bf16 %v44_v37 }
  0x30   :  { %vm183_vm11 = vcmp.ge.f32.partialorder %v151_v43, 0.0  ;;  %v215_v49 = vmul.f32 0.2, %v151_v43  ;;  %v246_v50 = vsel %vm182_vm10, %v150_v36, %v214_v44  ;;  %v114_v51 = vmul.f32 %v443_v1, %v75_v45 }
  0x31   :  { %413 = vst [vmem:[%s611_s3 + $0x60] sm:$0xff] %v385_v42   ;;  %v152_v52 = vadd.f32 %v457_v7, %v113_v46  ;;  %v115_v53 = vmul.f32 %v443_v1, %v76_v47  ;;  %v116_v54 = vmul.f32 %v443_v1, %v77_v48 }
  0x32   :  { %v247_v55 = vsel %vm183_vm11, %v151_v43, %v215_v49  ;;  %v153_v57 = vadd.f32 %v457_v7, %v114_v51 }
  0x33   :  { %v390_v56 = vpack.c.bf16 %v247_v55, %v246_v50  ;;  %vm184_vm12 = vcmp.ge.f32.partialorder %v152_v52, 0.0  ;;  %v216_v58 = vmul.f32 0.2, %v152_v52  ;;  %v154_v59 = vadd.f32 %v457_v7, %v115_v53 }
  0x34   :  { %v155_v60 = vadd.f32 %v457_v7, %v116_v54  ;;  %vm185_vm13 = vcmp.ge.f32.partialorder %v153_v57, 0.0  ;;  %v217_v61 = vmul.f32 0.2, %v153_v57 }
  0x35   :  { %414 = vst [vmem:[%s611_s3 + $0x68] sm:$0xff] %v390_v56   ;;  %v248_v62 = vsel %vm184_vm12, %v152_v52, %v216_v58  ;;  %vm186_vm14 = vcmp.ge.f32.partialorder %v154_v59, 0.0  ;;  %v218_v1 = vmul.f32 0.2, %v154_v59 }
  0x36   :  { %vm187_vm15 = vcmp.ge.f32.partialorder %v155_v60, 0.0  ;;  %v219_v63 = vmul.f32 0.2, %v155_v60  ;;  %v249_v0 = vsel %vm185_vm13, %v153_v57, %v217_v61 }
  0x37   :  { %v395_v2 = vpack.c.bf16 %v249_v0, %v248_v62  ;;  %v250_v3 = vsel %vm186_vm14, %v154_v59, %v218_v1 }
  0x38   :  { %v251_v4 = vsel %vm187_vm15, %v155_v60, %v219_v63 }
  0x39   :  { %v400_v5 = vpack.c.bf16 %v251_v4, %v250_v3  ;;  %415 = vst [vmem:[%s611_s3 + $0x70] sm:$0xff] %v395_v2  }
  0x3b   :  { %416 = vst [vmem:[%s611_s3 + $0x78] sm:$0xff] %v400_v5  }

// kernel: discriminator_forward.3
= control target key start
LH: loop header
LB: loop body
LE: loop exit
PB: predicated region body
PF: predicated region fallthrough
CT: control target
= control target key end

     0   :  { %12 = vsyncpa [#allocation3], 0  ;;  %s8367_s0 = inlined_call_operand.vmem [shape: bf16[4,88,256], index: 0, kind: input, shape index: {}]   ;;  %s8368_s1 = inlined_call_operand.hbm [shape: bf16[4,256,128], index: 1, kind: input, shape index: {}]   ;;  %s8369_s2 = inlined_call_operand.hbm [shape: f32[1,128], index: 2, kind: input, shape index: {}]   ;;  %s8370_s3 = inlined_call_operand.vmem [shape: f32[72,1], index: 3, kind: input, shape index: {}]   ;;  %s8371_s4 = inlined_call_operand.vmem [shape: bf16[4,72,128], index: 4, kind: output, shape index: {0}]   ;;  %s8372_s5 = inlined_call_operand.vmem [shape: f32[1,128], index: 5, kind: output, shape index: {1}]   ;;  %s8373_s6 = inlined_call_operand.vmem [shape: f32[1,128], index: 6, kind: output, shape index: {2}]  }
   0x1   :  { %13 = vsyncpa [#allocation5], 0  ;;  %s6861_s21 = smov [#allocation2]  }
   0x2   :  { %s21_s22 = sshll.u32 %s6861_s21, 4  ;;  %s22_s22 = int_to_ptr.vmem [resolvable:$true] %s21_s22 }
   0x3   :  { %s6825_s23 = scalar_lea.vmem %s22_s22, 8192  ;;  %p6830_p1 = scmp.lt.s32.totalorder %s22_s22, %s22_s22 }
   0x4   :  { %p6826_p0 = scmp.ne.s32.totalorder %s22_s22, %s6825_s23  ;;  %p6831_p2 = scmp.lt.s32.totalorder %s6825_s23, %s6825_s23 }
   0x6   :  { %p6832_p3 = por %p6831_p2, %p6830_p1 }
   0x8   :  { %p6833_p4 = pnand %p6832_p3, %p6826_p0 }
   0xa   :  { %6836 = shalt.err (!%p6833_p4)
}
   0xb   :  { %s6862_s24 = smov 64   ;;  %s6863_s25 = smov 4  }
   0xc   :  { %27 = dma.hbm_to_vmem [thread:$0]  %s8368_s1, 8192, %s22_s22, [#allocation3], %s6862_s24, %s6862_s24, %s6863_s25  }
   0xd   :  { %s6864_s28 = smov [#allocation4]  }
   0xe   :  { %s34_s29 = sshll.u32 %s6864_s28, 4  ;;  %s35_s29 = int_to_ptr.vmem [resolvable:$true] %s34_s29 }
   0xf   :  { %s6845_s30 = scalar_lea.vmem %s35_s29, 16  ;;  %s6849_s7 = scalar_lea.vmem %s35_s29, 32 }
  0x10   :  { %p6846_p5 = scmp.ne.s32.totalorder %s35_s29, %s6845_s30  ;;  %p6850_p6 = scmp.lt.s32.totalorder %s35_s29, %s35_s29 }
  0x11   :  { %p6851_p7 = scmp.lt.s32.totalorder %s6849_s7, %s6845_s30 }
  0x13   :  { %p6852_p8 = por %p6851_p7, %p6850_p6 }
  0x15   :  { %p6853_p9 = pnand %p6852_p8, %p6846_p5 }
  0x17   :  { %6856 = shalt.err (!%p6853_p9)
}
  0x18   :  { %37 = dma.hbm_to_vmem [thread:$0]  %s8369_s2, 16, %s35_s29, [#allocation5]  }
  0x19   :  { %6857 = dma.done.wait [#allocation3], 8192  }
  0x1a   :  { %6858 = vsyncadd [#allocation3], 4294959104 }
  0x1b   :  { %6859 = dma.done.wait [#allocation5], 16  }
  0x1c   :  { %6860 = vsyncadd [#allocation5], 4294967280  ;;  %v6460_v0 = vld [vmem:[#allocation2 + $0xf8] sm:$0xff]   ;;  %v6464_v4 = vld [vmem:[#allocation2 + $0xf0] sm:$0xff]   ;;  %v6865_v29 = vmov 0   ;;  %vm996_vm1 = vcmask 1046528  }
  0x1d   :  { %v6461_v1 = vld [vmem:[#allocation2 + $0x78] sm:$0xff]   ;;  %5717 = vmatprep.subr.bf16.mxu0 %v6460_v0  ;;  %v6465_v5 = vld [vmem:[#allocation2 + $0x70] sm:$0xff]   ;;  %v6468_v8 = vld [vmem:[#allocation2 + $0xe8] sm:$0xff]   ;;  %6458 = vset.pattern.permute.xlu0 %v6865_v29  ;;  %vm172_vm0 = vsmask.f32 7424 }
  0x1e   :  { %v6462_v2 = vld [vmem:[#allocation2 + $0xb8] sm:$0xff]   ;;  %5763 = vmatprep.subr.bf16.mxu1 %v6461_v1  ;;  %v6466_v6 = vld [vmem:[#allocation2 + $0xb0] sm:$0xff]   ;;  %v6469_v9 = vld [vmem:[#allocation2 + $0x68] sm:$0xff]   ;;  %6459 = vset.pattern.permute.xlu1 %v6865_v29 }
  0x1f   :  { %v6463_v3 = vld [vmem:[#allocation2 + $0x38] sm:$0xff]   ;;  %5718 = vmatpush3.bf16.msra.mxu0 %v6462_v2  ;;  %v6467_v7 = vld [vmem:[#allocation2 + $0x30] sm:$0xff]   ;;  %v6470_v10 = vld [vmem:[#allocation2 + $0xa8] sm:$0xff]  }
  0x20   :  { %5764 = vmatpush3.bf16.msra.mxu1 %v6463_v3  ;;  %5719 = vmatprep.subr.bf16.mxu0 %v6464_v4  ;;  %v6471_v11 = vld [vmem:[#allocation2 + $0x28] sm:$0xff]   ;;  %v6472_v12 = vld [vmem:[#allocation2 + $0xe0] sm:$0xff]   ;;  %v6476_v16 = vld [vmem:[#allocation2 + $0xd8] sm:$0xff]  }
  0x21   :  { %5765 = vmatprep.subr.bf16.mxu1 %v6465_v5  ;;  %v6473_v13 = vld [vmem:[#allocation2 + $0x60] sm:$0xff]   ;;  %v6477_v17 = vld [vmem:[#allocation2 + $0x58] sm:$0xff]   ;;  %v6480_v20 = vld [vmem:[#allocation2 + $0xd0] sm:$0xff]  }
  0x22   :  { %v6474_v14 = vld [vmem:[#allocation2 + $0xa0] sm:$0xff]   ;;  %v6478_v18 = vld [vmem:[#allocation2 + $0x98] sm:$0xff]   ;;  %v6481_v21 = vld [vmem:[#allocation2 + $0x50] sm:$0xff]  }
  0x23   :  { %5720 = vmatpush3.bf16.msra.mxu0 %v6466_v6  ;;  %v6475_v15 = vld [vmem:[#allocation2 + $0x20] sm:$0xff]   ;;  %v6479_v19 = vld [vmem:[#allocation2 + $0x18] sm:$0xff]   ;;  %v6482_v22 = vld [vmem:[#allocation2 + $0x90] sm:$0xff]  }
  0x24   :  { %5766 = vmatpush3.bf16.msra.mxu1 %v6467_v7  ;;  %5721 = vmatprep.subr.bf16.mxu0 %v6468_v8  ;;  %v6483_v23 = vld [vmem:[#allocation2 + $0x10] sm:$0xff]   ;;  %v6484_v24 = vld [vmem:[#allocation2 + $0xc8] sm:$0xff]   ;;  %v6488_v28 = vld [vmem:[#allocation2 + $0xc0] sm:$0xff]  }
  0x25   :  { %5767 = vmatprep.subr.bf16.mxu1 %v6469_v9  ;;  %v6485_v25 = vld [vmem:[#allocation2 + $0x48] sm:$0xff]   ;;  %v6489_v30 = vld [vmem:[#allocation2 + $0x40] sm:$0xff]   ;;  %v6918_v35 = vld [vmem:[%s8367_s0 + $0x10] sm:$0xff] }
  0x26   :  { %v6486_v26 = vld [vmem:[#allocation2 + $0x88] sm:$0xff]   ;;  %v6490_v31 = vld [vmem:[#allocation2 + $0x80] sm:$0xff]   ;;  %v6923_v36 = vld [vmem:[%s8367_s0 + $0x18] sm:$0xff] }
  0x27   :  { %5722 = vmatpush3.bf16.msra.mxu0 %v6470_v10  ;;  %v6487_v27 = vld [vmem:[#allocation2 + $0x8] sm:$0xff]   ;;  %v6491_v32 = vld [vmem:[#allocation2] sm:$0xff]   ;;  %v5110_v39 = vcombine.high %v6918_v35, %v6923_v36  ;;  %v5109_v40 = vcombine.low %v6918_v35, %v6923_v36  ;;  %v6496_v41 = vld [vmem:[#allocation2 + $0x178] sm:$0xff]  }
  0x28   :  { %5768 = vmatpush3.bf16.msra.mxu1 %v6471_v11  ;;  %5723 = vmatprep.subr.bf16.mxu0 %v6472_v12  ;;  %v57_v33 = vld [vmem:[%s8367_s0] sm:$0xff]  ;;  %v6913_v34 = vld [vmem:[%s8367_s0 + $0x8] sm:$0xff]  ;;  %v6498_v46 = vld [vmem:[#allocation2 + $0x1f8] sm:$0xff]  }
  0x29   :  { %5769 = vmatprep.subr.bf16.mxu1 %v6473_v13  ;;  %v5108_v37 = vcombine.high %v57_v33, %v6913_v34  ;;  %v5107_v38 = vcombine.low %v57_v33, %v6913_v34  ;;  %v193_v47 = vshll.u32 %v5110_v39, 16  ;;  %v181_v48 = vshll.u32 %v5109_v40, 16  ;;  %v6497_v53 = vld [vmem:[#allocation2 + $0x138] sm:$0xff]   ;;  %v6500_v57 = vld [vmem:[#allocation2 + $0x170] sm:$0xff]   ;;  %v6934_v58 = vld [vmem:[%s8367_s0 + $0x20] sm:$0xff] }
  0x2a   :  { %v6499_v54 = vld [vmem:[#allocation2 + $0x1b8] sm:$0xff]   ;;  %v6939_v59 = vld [vmem:[%s8367_s0 + $0x28] sm:$0xff]  ;;  %v205_v60 = vshrl.u32 %v5110_v39, 16  ;;  %v197_v61 = vshrl.u32 %v5109_v40, 16  ;;  %v6503_v1 = vld [vmem:[#allocation2 + $0x1f0] sm:$0xff]   ;;  %v6965_v29 = vcombine.high %v6913_v34, %v6918_v35 }
  0x2b   :  { %5724 = vmatpush3.bf16.msra.mxu0 %v6474_v14  ;;  %v186_v42 = vshrl.u32 %v5108_v37, 16  ;;  %v188_v43 = vshll.u32 %v5108_v37, 16  ;;  %569 = vmatprep.mubr.bf16.mxu1 %v5108_v37  ;;  %v174_v44 = vshrl.u32 %v5107_v38, 16  ;;  %v176_v45 = vshll.u32 %v5107_v38, 16  ;;  %v6501_v3 = vld [vmem:[#allocation2 + $0x130] sm:$0xff]   ;;  %v6506_v9 = vld [vmem:[#allocation2 + $0x168] sm:$0xff]  }
  0x2c   :  { %5770 = vmatpush3.bf16.msra.mxu1 %v6475_v15  ;;  %5725 = vmatprep.subr.bf16.mxu0 %v6476_v16  ;;  %v195_v51 = vrot.slane %v193_v47, 1  ;;  %v183_v52 = vrot.slane %v181_v48, 1  ;;  %v5112_v0 = vcombine.high %v6934_v58, %v6939_v59  ;;  %v5111_v2 = vcombine.low %v6934_v58, %v6939_v59  ;;  %v6505_v4 = vld [vmem:[#allocation2 + $0x1b0] sm:$0xff]   ;;  %v6508_v12 = vld [vmem:[#allocation2 + $0x1e8] sm:$0xff]   ;;  %v6515_v33 = vld [vmem:[#allocation2 + $0x1a0] sm:$0xff]  }
  0x2d   :  { %5771 = vmatprep.subr.bf16.mxu1 %v6477_v17  ;;  %v190_v49 = vrot.slane %v188_v43, 1  ;;  %v178_v50 = vrot.slane %v176_v45, 1  ;;  %v6509_v15 = vld [vmem:[#allocation2 + $0x1a8] sm:$0xff]   ;;  %v6951_v16 = vld [vmem:[%s8367_s0 + $0x30] sm:$0xff]  ;;  %v6956_v17 = vld [vmem:[%s8367_s0 + $0x38] sm:$0xff]  ;;  %v705_v45 = vshrl.u32 %v6965_v29, 16 }
  0x2e   :  { %v207_v5 = vor.u32 %v205_v60, %v195_v51  ;;  %v209_v6 = vshll.u32 %v5112_v0, 16  ;;  %v201_v7 = vshll.u32 %v5111_v2, 16  ;;  %v199_v8 = vor.u32 %v197_v61, %v183_v52  ;;  %v6516_v37 = vld [vmem:[#allocation2 + $0x158] sm:$0xff]   ;;  %v6975_v43 = vld [vmem:[%s8367_s0 + $0x40] sm:$0xff]  ;;  %v6523_v60 = vld [vmem:[#allocation2 + $0x110] sm:$0xff]  }
  0x2f   :  { %5726 = vmatpush3.bf16.msra.mxu0 %v6478_v18  ;;  %v191_v55 = vor.u32 %v190_v49, %v186_v42  ;;  %v179_v56 = vor.u32 %v178_v50, %v174_v44  ;;  %v221_v13 = vshrl.u32 %v5112_v0, 16  ;;  %v6518_v42 = vld [vmem:[#allocation2 + $0x1d8] sm:$0xff]   ;;  %v98_v44 = vld [vmem:[%s8367_s0 + $0x48] sm:$0x11] }
  0x30   :  { %5772 = vmatpush3.bf16.msra.mxu1 %v6479_v19  ;;  %5727 = vmatprep.subr.bf16.mxu0 %v6480_v20  ;;  %v211_v10 = vrot.slane %v209_v6, 1  ;;  %v203_v11 = vrot.slane %v201_v7, 1  ;;  %v6507_v19 = vld [vmem:[#allocation2 + $0x128] sm:$0xff]   ;;  %v5114_v20 = vcombine.high %v6951_v16, %v6956_v17  ;;  %v5116_v48 = vcombine.high %v6975_v43, %v98_v44  ;;  %v6520_v49 = vld [vmem:[#allocation2 + $0x198] sm:$0xff]  }
  0x31   :  { %5773 = vmatprep.subr.bf16.mxu1 %v6481_v21  ;;  %v196_v62 = vsel %vm172_vm0, %v191_v55, %v195_v51  ;;  %v184_v63 = vsel %vm172_vm0, %v179_v56, %v183_v52  ;;  %v5113_v21 = vcombine.low %v6951_v16, %v6956_v17  ;;  %v6985_v50 = vcombine.low %v6975_v43, %v98_v44  ;;  %v6522_v52 = vld [vmem:[#allocation2 + $0x150] sm:$0xff]   ;;  %v6528_v7 = vld [vmem:[#allocation2 + $0x108] sm:$0xff]  }
  0x32   :  { %389 = vmatprep.mubr.bf16.mxu0 %v196_v62  ;;  %v212_v14 = vsel %vm172_vm0, %v207_v5, %v211_v10  ;;  %v204_v18 = vsel %vm172_vm0, %v199_v8, %v203_v11  ;;  %v241_v56 = vshll.u32 %v5116_v48, 16  ;;  %v248_v61 = vshrl.u32 %v5116_v48, 16  ;;  %v6526_v5 = vld [vmem:[#allocation2 + $0x148] sm:$0xff]  }
  0x33   :  { %5728 = vmatpush3.bf16.msra.mxu0 %v6482_v22  ;;  %v213_v22 = vshrl.u32 %v5111_v2, 16  ;;  %v229_v51 = vshrl.u32 %v5113_v21, 16 }
  0x34   :  { %5774 = vmatpush3.bf16.msra.mxu1 %v6483_v23  ;;  %5729 = vmatprep.subr.bf16.mxu0 %v6484_v24  ;;  %v6511_v23 = vld [vmem:[#allocation2 + $0x160] sm:$0xff]   ;;  %v223_v24 = vor.u32 %v221_v13, %v211_v10  ;;  %v243_v62 = vrot.slane %v241_v56, 1  ;;  %v5133_v13 = vcombine.low %v6975_v43, %v6975_v43  ;;  %v6546_v56 = vld [vmem:[#allocation2 + $0xf0] sm:$0xff]  }
  0x35   :  { %5775 = vmatprep.subr.bf16.mxu1 %v6485_v25  ;;  %v225_v25 = vshll.u32 %v5114_v20, 16 }
  0x36   :  { %v250_v10 = vor.u32 %v248_v61, %v243_v62 }
  0x37   :  { %5730 = vmatpush3.bf16.msra.mxu0 %v6486_v26  ;;  %v217_v26 = vshll.u32 %v5113_v21, 16 }
  0x38   :  { %5776 = vmatpush3.bf16.msra.mxu1 %v6487_v27  ;;  %5731 = vmatprep.subr.bf16.mxu0 %v6488_v28  ;;  %v6513_v27 = vld [vmem:[#allocation2 + $0x120] sm:$0xff]  }
  0x39   :  { %5777 = vmatprep.subr.bf16.mxu1 %v6489_v30  ;;  %v6514_v28 = vld [vmem:[#allocation2 + $0x1e0] sm:$0xff]   ;;  %v227_v30 = vrot.slane %v225_v25, 1  ;;  %v957_v25 = vld [vmem:[%s8367_s0 + $0x8] sm:$0xee] }
  0x3b   :  { %5732 = vmatpush3.bf16.msra.mxu0 %v6490_v31  ;;  %v215_v31 = vor.u32 %v213_v22, %v203_v11  ;;  %v6530_v11 = vld [vmem:[#allocation2 + $0x1c8] sm:$0xff]   ;;  %v7010_v22 = vcombine.high %v6939_v59, %v6951_v16 }
  0x3c   :  { %5778 = vmatpush3.bf16.msra.mxu1 %v6491_v32  ;;  %5809 = vmatprep.subr.bf16.mxu0 %v6496_v41  ;;  %v219_v32 = vrot.slane %v217_v26, 1  ;;  %v237_v41 = vshrl.u32 %v5114_v20, 16 }
  0x3d   :  { %5855 = vmatprep.subr.bf16.mxu1 %v6498_v46  ;;  %v707_v46 = vshll.u32 %v6965_v29, 16  ;;  %v1005_v29 = vrot.slane %v7010_v22, 1  ;;  %v740_v61 = vshrl.u32 %v7010_v22, 16 }
  0x3e   :  { %390 = vmatmul.mubr.bf16.vlgmr.msra.gmra.mxu0 %v184_v63  ;;  %v220_v47 = vsel %vm172_vm0, %v215_v31, %v219_v32  ;;  %v239_v55 = vor.u32 %v237_v41, %v227_v30  ;;  %v231_v63 = vor.u32 %v229_v51, %v219_v32  ;;  %v6542_v31 = vld [vmem:[#allocation2 + $0xf8] sm:$0xff]   ;;  %v728_v41 = vshll.u32 %v7010_v22, 16 }
  0x3f   :  { %570 = vmatmul.mubr.bf16.vlgmr.msra.gmra.mxu1 %v5107_v38  ;;  %5810 = vmatpush3.bf16.msra.mxu0 %v6497_v53  ;;  %v6969_v38 = vcombine.high %v6923_v36, %v6934_v58  ;;  %v5134_v53 = vcombine.high %v6975_v43, %v6975_v43  ;;  %v709_v6 = vrot.slane %v707_v46, 1  ;;  %v7029_v46 = vcombine.low %v6939_v59, %v6951_v16  ;;  %v6567_v22 = vld [vmem:[#allocation2 + $0x18] sm:$0xff]  }
  0x40   :  { %577 = vmatprep.mubr.bf16.mxu1 %v5110_v39  ;;  %5856 = vmatpush3.bf16.msra.mxu1 %v6499_v54  ;;  %v228_v39 = vsel %vm172_vm0, %v223_v24, %v227_v30 }
  0x41   :  { %5857 = vmatprep.subr.bf16.mxu1 %v6503_v1  ;;  %5811 = vmatprep.subr.bf16.mxu0 %v6500_v57  ;;  %v712_v54 = vshll.u32 %v6969_v38, 16  ;;  %v233_v57 = vshll.u32 %v6985_v50, 16  ;;  %v6524_v1 = vld [vmem:[#allocation2 + $0x1d0] sm:$0xff]   ;;  %v710_v24 = vor.u32 %v709_v6, %v705_v45  ;;  %v6545_v45 = vld [vmem:[#allocation2 + $0x38] sm:$0xff]   ;;  %v720_v16 = vshll.u32 %v7029_v46, 16 }
  0x42   :  { %397 = vmatprep.mubr.bf16.mxu0 %v212_v14  ;;  %v6531_v14 = vld [vmem:[#allocation2 + $0x188] sm:$0xff]  }
  0x43   :  { %5812 = vmatpush3.bf16.msra.mxu0 %v6501_v3  ;;  %v6993_v3 = vcombine.low %v6913_v34, %v6918_v35  ;;  %v714_v8 = vrot.slane %v712_v54, 1  ;;  %v1001_v34 = vrot.slane %v6969_v38, 1  ;;  %v1003_v54 = vrot.slane %v7029_v46, 1 }
  0x44   :  { %5858 = vmatpush3.bf16.msra.mxu1 %v6505_v4  ;;  %5813 = vmatprep.subr.bf16.mxu0 %v6506_v9  ;;  %v244_v4 = vsel %vm172_vm0, %v239_v55, %v243_v62  ;;  %v6551_v55 = vld [vmem:[#allocation2 + $0x30] sm:$0xff]  }
  0x45   :  { %5859 = vmatprep.subr.bf16.mxu1 %v6508_v12  ;;  %v6999_v12 = vcombine.low %v6923_v36, %v6934_v58  ;;  %v6534_v36 = vld [vmem:[#allocation2 + $0x1c0] sm:$0xff]  }
  0x46   :  { %398 = vmatmul.mubr.bf16.gmra.mxu0 %v204_v18  ;;  %v245_v18 = vshrl.u32 %v6985_v50, 16  ;;  %v6549_v50 = vld [vmem:[#allocation2 + $0x70] sm:$0xff]  }
  0x47   :  { %578 = vmatmul.mubr.bf16.gmra.mxu1 %v5109_v40  ;;  %5814 = vmatpush3.bf16.msra.mxu0 %v6507_v19  ;;  %v6517_v40 = vld [vmem:[#allocation2 + $0x118] sm:$0xff]   ;;  %v6532_v19 = vld [vmem:[#allocation2 + $0x140] sm:$0xff]   ;;  %v700_v58 = vshll.u32 %v6999_v12, 16  ;;  %v998_v30 = vrot.slane %v6999_v12, 1  ;;  %v716_v59 = vshrl.u32 %v6999_v12, 16  ;;  %v6553_v12 = vld [vmem:[#allocation2 + $0xa8] sm:$0xff]  }
  0x48   :  { %585 = vmatprep.mubr.bf16.mxu1 %v5112_v0  ;;  %5860 = vmatpush3.bf16.msra.mxu1 %v6509_v15  ;;  %v235_v0 = vrot.slane %v233_v57, 1  ;;  %v695_v15 = vshll.u32 %v6993_v3, 16 }
  0x49   :  { %5815 = vmatprep.subr.bf16.mxu0 %v6511_v23  ;;  %5861 = vmatprep.subr.bf16.mxu1 %v6514_v28  ;;  %v6535_v23 = vld [vmem:[#allocation2 + $0x180] sm:$0xff]   ;;  %v5178_v28 = vcombine.high %v957_v25, %v6918_v35  ;;  %v702_v48 = vrot.slane %v700_v58, 1 }
  0x4a   :  { %405 = vmatprep.mubr.bf16.mxu0 %v228_v39  ;;  %v236_v9 = vsel %vm172_vm0, %v231_v63, %v235_v0  ;;  %v697_v26 = vrot.slane %v695_v15, 1  ;;  %v247_v32 = vor.u32 %v245_v18, %v235_v0  ;;  %v6564_v18 = vld [vmem:[#allocation2 + $0x58] sm:$0xff]   ;;  %v6559_v58 = vld [vmem:[#allocation2 + $0xa0] sm:$0xff]  }
  0x4b   :  { %5816 = vmatpush3.bf16.msra.mxu0 %v6513_v27  ;;  %v5177_v27 = vcombine.low %v957_v25, %v6918_v35  ;;  %v1000_v39 = vrot.slane %v5178_v28, 1  ;;  %v718_v6 = vor.u32 %v716_v59, %v702_v48  ;;  %v6562_v28 = vld [vmem:[#allocation2 + $0xd8] sm:$0xff]  }
  0x4c   :  { %5862 = vmatpush3.bf16.msra.mxu1 %v6515_v33  ;;  %5817 = vmatprep.subr.bf16.mxu0 %v6516_v37  ;;  %v724_v33 = vshrl.u32 %v6969_v38, 16  ;;  %v1006_v38 = vsel %vm996_vm1, %v1001_v34, %v1005_v29 }
  0x4d   :  { %5863 = vmatprep.subr.bf16.mxu1 %v6518_v42  ;;  %v997_v37 = vrot.slane %v5177_v27, 1  ;;  %v715_v42 = vsel %vm172_vm0, %v710_v24, %v714_v8  ;;  %v1002_v35 = vsel %vm996_vm1, %v1000_v39, %v1001_v34  ;;  %v6572_v39 = vld [vmem:[#allocation2 + $0x10] sm:$0xff]  }
  0x4e   :  { %406 = vmatmul.mubr.bf16.gmra.mxu0 %v220_v47  ;;  %v726_v51 = vor.u32 %v724_v33, %v714_v8  ;;  %v6560_v8 = vld [vmem:[#allocation2 + $0x60] sm:$0xff]  }
  0x4f   :  { %586 = vmatmul.mubr.bf16.gmra.mxu1 %v5111_v2  ;;  %5818 = vmatpush3.bf16.msra.mxu0 %v6517_v40  ;;  %v6525_v2 = vld [vmem:[#allocation2 + $0x190] sm:$0xff]   ;;  %v6544_v40 = vld [vmem:[#allocation2 + $0x78] sm:$0xff]   ;;  %v999_v44 = vsel %vm996_vm1, %v997_v37, %v998_v30 }
  0x50   :  { %593 = vmatprep.mubr.bf16.mxu1 %v5114_v20  ;;  %5864 = vmatpush3.bf16.msra.mxu1 %v6520_v49  ;;  %v6533_v20 = vld [vmem:[#allocation2 + $0x100] sm:$0xff]   ;;  %v730_v49 = vrot.slane %v728_v41, 1  ;;  %v6563_v41 = vld [vmem:[#allocation2 + $0x98] sm:$0xff]  }
  0x51   :  { %5819 = vmatprep.subr.bf16.mxu0 %v6522_v52  ;;  %5865 = vmatprep.subr.bf16.mxu1 %v6524_v1  ;;  %v7033_v52 = vcombine.high %v6956_v17, %v6975_v43  ;;  %v1004_v1 = vsel %vm996_vm1, %v998_v30, %v1003_v54 }
  0x52   :  { %413 = vmatprep.mubr.bf16.mxu0 %v244_v4  ;;  %v731_v62 = vsel %vm172_vm0, %v726_v51, %v730_v49  ;;  %v6573_v51 = vld [vmem:[#allocation2 + $0xc8] sm:$0xff]  }
  0x53   :  { %5820 = vmatpush3.bf16.msra.mxu0 %v6523_v60  ;;  %v6554_v60 = vld [vmem:[#allocation2 + $0x68] sm:$0xff]   ;;  %v744_v63 = vshll.u32 %v7033_v52, 16  ;;  %v1009_v0 = vrot.slane %v7033_v52, 1 }
  0x54   :  { %5866 = vmatpush3.bf16.msra.mxu1 %v6525_v2  ;;  %5821 = vmatprep.subr.bf16.mxu0 %v6526_v5  ;;  %v6555_v2 = vld [vmem:[#allocation2 + $0x28] sm:$0xff]   ;;  %v7047_v5 = vcombine.low %v6956_v17, %v6975_v43  ;;  %v732_v17 = vshrl.u32 %v7029_v46, 16 }
  0x55   :  { %5867 = vmatprep.subr.bf16.mxu1 %v6530_v11  ;;  %v1010_v4 = vsel %vm996_vm1, %v1005_v29, %v1009_v0  ;;  %v746_v11 = vrot.slane %v744_v63, 1  ;;  %v6571_v29 = vld [vmem:[#allocation2 + $0x50] sm:$0xff]   ;;  %v6575_v46 = vld [vmem:[#allocation2 + $0x48] sm:$0xff]  }
  0x56   :  { %414 = vmatmul.mubr.bf16.gmra.mxu0 %v236_v9  ;;  %v6552_v9 = vld [vmem:[#allocation2 + $0xe8] sm:$0xff]   ;;  %v1007_v34 = vrot.slane %v7047_v5, 1  ;;  %v736_v43 = vshll.u32 %v7047_v5, 16  ;;  %v748_v37 = vshrl.u32 %v7047_v5, 16  ;;  %v6587_v5 = vld [vmem:[#allocation2 + $0x1f8] sm:$0xff]  }
  0x57   :  { %594 = vmatmul.mubr.bf16.gmra.mxu1 %v5113_v21  ;;  %v693_v21 = vshrl.u32 %v6993_v3, 16  ;;  %421 = vmatprep.mubr.bf16.mxu0 %v250_v10  ;;  %v6547_v3 = vld [vmem:[#allocation2 + $0xb0] sm:$0xff]   ;;  %v742_v10 = vor.u32 %v740_v61, %v730_v49 }
  0x58   :  { %601 = vmatprep.mubr.bf16.mxu1 %v5134_v53  ;;  %5868 = vmatpush3.bf16.msra.mxu1 %v6531_v14  ;;  %v6543_v53 = vld [vmem:[#allocation2 + $0xb8] sm:$0xff]   ;;  %v6557_v14 = vld [vmem:[#allocation2 + $0xe0] sm:$0xff]   ;;  %v7088_v61 = vld [vmem:[%s8367_s0 + $0x70] sm:$0xff] }
  0x59   :  { %5822 = vmatpush3.bf16.msra.mxu0 %v6528_v7  ;;  %5869 = vmatprep.subr.bf16.mxu1 %v6534_v36  ;;  %v698_v47 = vor.u32 %v697_v26, %v693_v21  ;;  %v722_v7 = vrot.slane %v720_v16, 1  ;;  %v6565_v21 = vld [vmem:[%s8367_s0 + $0x4c] ss:$8 sps:$4 sm:$0x1f]   ;;  %v1008_v36 = vsel %vm996_vm1, %v1003_v54, %v1007_v34  ;;  %v6577_v54 = vld [vmem:[#allocation2 + $0xc0] sm:$0xff]   ;;  %v5205_v16 = vld [vmem:[%s8367_s0 + $0x58] sm:$0xff] }
  0x5a   :  { %5823 = vmatprep.subr.bf16.mxu0 %v6532_v19  ;;  %v756_v19 = vshrl.u32 %v7033_v52, 16  ;;  %v760_v24 = vshll.u32 %v6565_v21, 16  ;;  %v1013_v25 = vrot.slane %v6565_v21, 1  ;;  %v7062_v26 = vld [vmem:[%s8367_s0 + $0x48] ss:$8 sps:$4 sm:$0x1f]  }
  0x5b   :  { %v703_v57 = vsel %vm172_vm0, %v698_v47, %v702_v48  ;;  %v723_v15 = vsel %vm172_vm0, %v718_v6, %v722_v7  ;;  %v734_v27 = vor.u32 %v732_v17, %v722_v7  ;;  %v1011_v33 = vrot.slane %v7062_v26, 1  ;;  %v6576_v47 = vld [vmem:[#allocation2 + $0x8] sm:$0xff]  }
  0x5c   :  { %5870 = vmatpush3.bf16.msra.mxu1 %v6535_v23  ;;  %v738_v23 = vrot.slane %v736_v43, 1  ;;  %v758_v30 = vor.u32 %v756_v19, %v746_v11  ;;  %v6574_v52 = vld [vmem:[#allocation2 + $0x88] sm:$0xff]   ;;  %v7100_v43 = vld [vmem:[%s8367_s0 + $0x78] sm:$0xff] }
  0x5d   :  { %5824 = vmatpush3.bf16.msra.mxu0 %v6533_v20  ;;  %5947 = vmatprep.subr.bf16.mxu1 %v6544_v40  ;;  %v747_v20 = vsel %vm172_vm0, %v742_v10, %v746_v11  ;;  %v6585_v10 = vld [vmem:[#allocation2 + $0x178] sm:$0xff]  }
  0x5e   :  { %5901 = vmatprep.subr.bf16.mxu0 %v6542_v31  ;;  %422 = vmatmul.mubr.bf16.gmra.mxu0 %v247_v32  ;;  %v762_v31 = vrot.slane %v760_v24, 1  ;;  %v1014_v32 = vsel %vm996_vm1, %v1009_v0, %v1013_v25  ;;  %v739_v40 = vsel %vm172_vm0, %v734_v27, %v738_v23  ;;  %v750_v48 = vor.u32 %v748_v37, %v738_v23  ;;  %v6594_v27 = vld [vmem:[#allocation2 + $0x1b0] sm:$0xff]  }
  0x5f   :  { %602 = vmatmul.mubr.bf16.gmra.mxu1 %v5133_v13  ;;  %908 = vmatprep.mubr.bf16.mxu0 %v715_v42  ;;  %v6561_v13 = vld [vmem:[#allocation2 + $0x20] sm:$0xff]   ;;  %v752_v42 = vshll.u32 %v7062_v26, 16 }
  0x60   :  { %1153 = vmatprep.mubr.bf16.mxu1 %v1002_v35  ;;  %v763_v35 = vsel %vm172_vm0, %v758_v30, %v762_v31  ;;  %v6597_v30 = vld [vmem:[#allocation2 + $0x1e8] sm:$0xff]  }
  0x61   :  { %v754_v49 = vrot.slane %v752_v42, 1 }
  0x66   :  { %909 = vmatmul.mubr.bf16.vlgmr.msra.gmra.mxu0 %v703_v57  ;;  %v7078_v57 = vld [vmem:[%s8367_s0 + $0x60] sm:$0xff] }
  0x67   :  { %1154 = vmatmul.mubr.bf16.vlgmr.msra.gmra.mxu1 %v999_v44  ;;  %5902 = vmatpush3.bf16.msra.mxu0 %v6543_v53  ;;  %v6569_v44 = vld [vmem:[#allocation2 + $0xd0] sm:$0xff]   ;;  %v6579_v53 = vld [vmem:[#allocation2 + $0x40] sm:$0xff]   ;;  %v5216_v63 = vcombine.high %v5205_v16, %v7078_v57 }
  0x68   :  { %5948 = vmatpush3.bf16.msra.mxu1 %v6545_v45  ;;  %1161 = vmatprep.mubr.bf16.mxu1 %v1006_v38  ;;  %v1012_v45 = vsel %vm996_vm1, %v1007_v34, %v1011_v33  ;;  %v6570_v38 = vld [vmem:[#allocation2 + $0x90] sm:$0xff]  }
  0x69   :  { %5949 = vmatprep.subr.bf16.mxu1 %v6549_v50  ;;  %916 = vmatprep.mubr.bf16.mxu0 %v731_v62  ;;  %v767_v50 = vshrl.u32 %v6565_v21, 16  ;;  %v5215_v62 = vcombine.low %v5205_v16, %v7078_v57  ;;  %v6588_v21 = vld [vmem:[#allocation2 + $0x1b8] sm:$0xff]  }
  0x6a   :  { %5903 = vmatprep.subr.bf16.mxu0 %v6546_v56  ;;  %v755_v56 = vsel %vm172_vm0, %v750_v48, %v754_v49  ;;  %v6595_v48 = vld [vmem:[#allocation2 + $0x168] sm:$0xff]  }
  0x6b   :  { %5904 = vmatpush3.bf16.msra.mxu0 %v6547_v3  ;;  %v769_v59 = vor.u32 %v767_v50, %v762_v31  ;;  %v1484_v3 = vshrl.u32 %v5216_v63, 16  ;;  %v7117_v31 = vld [vmem:[%s8367_s0 + $0x88] sm:$0xff] }
  0x6c   :  { %5950 = vmatpush3.bf16.msra.mxu1 %v6551_v55  ;;  %5905 = vmatprep.subr.bf16.mxu0 %v6552_v9  ;;  %v6580_v55 = vld [vmem:[#allocation2] sm:$0xff]  }
  0x6d   :  { %5951 = vmatprep.subr.bf16.mxu1 %v6554_v60  ;;  %v7083_v60 = vld [vmem:[%s8367_s0 + $0x68] sm:$0xff] }
  0x6e   :  { %917 = vmatmul.mubr.bf16.gmra.mxu0 %v723_v15  ;;  %v5218_v0 = vcombine.high %v7083_v60, %v7088_v61  ;;  %v5217_v6 = vcombine.low %v7083_v60, %v7088_v61  ;;  %v7105_v15 = vld [vmem:[%s8367_s0 + $0x80] sm:$0xff] }
  0x6f   :  { %1162 = vmatmul.mubr.bf16.gmra.mxu1 %v1004_v1  ;;  %5906 = vmatpush3.bf16.msra.mxu0 %v6553_v12  ;;  %v764_v1 = vshrl.u32 %v7062_v26, 16  ;;  %v5220_v19 = vcombine.high %v7100_v43, %v7105_v15  ;;  %v7112_v24 = vcombine.low %v7100_v43, %v7105_v15 }
  0x70   :  { %5952 = vmatpush3.bf16.msra.mxu1 %v6555_v2  ;;  %1169 = vmatprep.mubr.bf16.mxu1 %v1010_v4  ;;  %v6578_v2 = vld [vmem:[#allocation2 + $0x80] sm:$0xff]   ;;  %v1486_v4 = vshll.u32 %v5216_v63, 16  ;;  %v1491_v7 = vshll.u32 %v5218_v0, 16  ;;  %v1479_v17 = vshll.u32 %v5217_v6, 16 }
  0x71   :  { %5953 = vmatprep.subr.bf16.mxu1 %v6560_v8  ;;  %924 = vmatprep.mubr.bf16.mxu0 %v747_v20  ;;  %v1474_v8 = vshll.u32 %v5215_v62, 16  ;;  %v766_v12 = vor.u32 %v764_v1, %v754_v49  ;;  %v1503_v20 = vshrl.u32 %v5218_v0, 16  ;;  %v1499_v37 = vshll.u32 %v7112_v24, 16  ;;  %v6600_v1 = vld [vmem:[#allocation2 + $0x160] sm:$0xff]  }
  0x72   :  { %5907 = vmatprep.subr.bf16.mxu0 %v6557_v14  ;;  %v1488_v9 = vrot.slane %v1486_v4, 1  ;;  %v1493_v11 = vrot.slane %v1491_v7, 1  ;;  %v1481_v23 = vrot.slane %v1479_v17, 1  ;;  %v1519_v42 = vshrl.u32 %v5220_v19, 16  ;;  %v6609_v4 = vld [vmem:[#allocation2 + $0x198] sm:$0xff]  }
  0x73   :  { %5908 = vmatpush3.bf16.msra.mxu0 %v6559_v58  ;;  %v1476_v14 = vrot.slane %v1474_v8, 1  ;;  %v6592_v58 = vld [vmem:[#allocation2 + $0x1f0] sm:$0xff]   ;;  %v1511_v16 = vshrl.u32 %v7112_v24, 16  ;;  %v6605_v8 = vld [vmem:[#allocation2 + $0x158] sm:$0xff]  }
  0x74   :  { %5954 = vmatpush3.bf16.msra.mxu1 %v6561_v13  ;;  %5909 = vmatprep.subr.bf16.mxu0 %v6562_v28  ;;  %v1489_v34 = vor.u32 %v1488_v9, %v1484_v3  ;;  %v1472_v13 = vshrl.u32 %v5215_v62, 16  ;;  %v6586_v28 = vld [vmem:[#allocation2 + $0x138] sm:$0xff]  }
  0x75   :  { %5955 = vmatprep.subr.bf16.mxu1 %v6564_v18 }
  0x76   :  { %925 = vmatmul.mubr.bf16.gmra.mxu0 %v739_v40  ;;  %v1494_v18 = vsel %vm172_vm0, %v1489_v34, %v1493_v11  ;;  %v6589_v40 = vld [vmem:[#allocation2 + $0x170] sm:$0xff]  }
  0x77   :  { %1170 = vmatmul.mubr.bf16.gmra.mxu1 %v1008_v36  ;;  %5910 = vmatpush3.bf16.msra.mxu0 %v6563_v41  ;;  %v1507_v36 = vshll.u32 %v5220_v19, 16  ;;  %v6614_v34 = vld [vmem:[#allocation2 + $0x190] sm:$0xff]  }
  0x78   :  { %1177 = vmatprep.mubr.bf16.mxu1 %v1014_v32  ;;  %5956 = vmatpush3.bf16.msra.mxu1 %v6567_v22  ;;  %v1477_v22 = vor.u32 %v1476_v14, %v1472_v13  ;;  %v7122_v32 = vld [vmem:[%s8367_s0 + $0x90] sm:$0xff]  ;;  %v6606_v13 = vld [vmem:[#allocation2 + $0x118] sm:$0xff]  }
  0x79   :  { %5957 = vmatprep.subr.bf16.mxu1 %v6571_v29  ;;  %932 = vmatprep.mubr.bf16.mxu0 %v763_v35  ;;  %v1509_v26 = vrot.slane %v1507_v36, 1  ;;  %v1495_v29 = vshrl.u32 %v5217_v6, 16  ;;  %v6598_v35 = vld [vmem:[#allocation2 + $0x1a8] sm:$0xff]   ;;  %v7131_v50 = vcombine.low %v7117_v31, %v7122_v32  ;;  %v5270_v36 = vcombine.high %v7078_v57, %v7083_v60 }
  0x7a   :  { %5911 = vmatprep.subr.bf16.mxu0 %v6569_v44 }
  0x7b   :  { %5912 = vmatpush3.bf16.msra.mxu0 %v6570_v38  ;;  %v6590_v38 = vld [vmem:[#allocation2 + $0x130] sm:$0xff]   ;;  %v1527_v14 = vshrl.u32 %v7131_v50, 16 }
  0x7c   :  { %5958 = vmatpush3.bf16.msra.mxu1 %v6572_v39  ;;  %5913 = vmatprep.subr.bf16.mxu0 %v6573_v51  ;;  %v5222_v39 = vcombine.high %v7117_v31, %v7122_v32  ;;  %v1521_v51 = vor.u32 %v1519_v42, %v1509_v26 }
  0x7d   :  { %5959 = vmatprep.subr.bf16.mxu1 %v6575_v46  ;;  %v1497_v46 = vor.u32 %v1495_v29, %v1481_v23  ;;  %v2004_v29 = vshll.u32 %v5270_v36, 16 }
  0x7e   :  { %933 = vmatmul.mubr.bf16.gmra.mxu0 %v755_v56  ;;  %v1523_v44 = vshll.u32 %v5222_v39, 16  ;;  %v5214_v56 = vld [vmem:[%s8367_s0 + $0xa0] sm:$0x11] }
  0x7f   :  { %1178 = vmatmul.mubr.bf16.gmra.mxu1 %v1012_v45  ;;  %940 = vmatprep.mubr.bf16.mxu0 %v769_v59  ;;  %v6603_v45 = vld [vmem:[#allocation2 + $0x1e0] sm:$0xff]  }
  0x80   :  { %1185 = vmatprep.mubr.bf16.mxu1 %v1013_v25  ;;  %5960 = vmatpush3.bf16.msra.mxu1 %v6576_v47  ;;  %v1505_v25 = vor.u32 %v1503_v20, %v1493_v11  ;;  %v1501_v47 = vrot.slane %v1499_v37, 1  ;;  %v1525_v49 = vrot.slane %v1523_v44, 1  ;;  %v6613_v11 = vld [vmem:[#allocation2 + $0x1d0] sm:$0xff]   ;;  %v5295_v37 = vld [vmem:[%s8367_s0 + $0x60] sm:$0xee] }
  0x81   :  { %5961 = vmatprep.subr.bf16.mxu1 %v6579_v53  ;;  %5914 = vmatpush3.bf16.msra.mxu0 %v6574_v52  ;;  %v6596_v52 = vld [vmem:[#allocation2 + $0x128] sm:$0xff]   ;;  %v6604_v53 = vld [vmem:[#allocation2 + $0x1a0] sm:$0xff]   ;;  %v5297_v42 = vcombine.high %v5295_v37, %v7083_v60 }
  0x82   :  { %5915 = vmatprep.subr.bf16.mxu0 %v6577_v54  ;;  %v1510_v41 = vsel %vm172_vm0, %v1505_v25, %v1509_v26  ;;  %v6607_v54 = vld [vmem:[#allocation2 + $0x1d8] sm:$0xff]   ;;  %v1502_v59 = vsel %vm172_vm0, %v1497_v46, %v1501_v47  ;;  %v6621_v46 = vld [vmem:[#allocation2 + $0x140] sm:$0xff]  }
  0x84   :  { %5962 = vmatpush3.bf16.msra.mxu1 %v6580_v55  ;;  %v7136_v55 = vld [vmem:[%s8367_s0 + $0x98] sm:$0xff] }
  0x85   :  { %6039 = vmatprep.subr.bf16.mxu1 %v6587_v5  ;;  %5916 = vmatpush3.bf16.msra.mxu0 %v6578_v2  ;;  %v1535_v2 = vshrl.u32 %v5222_v39, 16  ;;  %v6602_v5 = vld [vmem:[#allocation2 + $0x120] sm:$0xff]  }
  0x86   :  { %5993 = vmatprep.subr.bf16.mxu0 %v6585_v10  ;;  %941 = vmatmul.mubr.bf16.gmra.mxu0 %v766_v12  ;;  %v7150_v10 = vcombine.low %v7136_v55, %v5214_v56 }
  0x87   :  { %1186 = vmatmul.mubr.bf16.gmra.mxu1 %v1011_v33  ;;  %1687 = vmatprep.mubr.bf16.mxu0 %v1494_v18  ;;  %v1482_v33 = vsel %vm172_vm0, %v1477_v22, %v1481_v23  ;;  %v1537_v12 = vor.u32 %v1535_v2, %v1525_v49  ;;  %v6620_v22 = vld [vmem:[#allocation2 + $0x188] sm:$0xff]   ;;  %v7163_v23 = vcombine.high %v7088_v61, %v7100_v43 }
  0x88   :  { %1867 = vmatprep.mubr.bf16.mxu1 %v5216_v63  ;;  %v7145_v63 = vcombine.high %v7136_v55, %v5214_v56  ;;  %v1531_v18 = vshll.u32 %v7150_v10, 16 }
  0x89   :  { %v2296_v44 = vrot.slane %v7163_v23, 1 }
  0x8a   :  { %v1539_v3 = vshll.u32 %v7145_v63, 16  ;;  %v1546_v25 = vshrl.u32 %v7145_v63, 16 }
  0x8c   :  { %v1541_v9 = vrot.slane %v1539_v3, 1 }
  0x8e   :  { %1688 = vmatmul.mubr.bf16.vlgmr.msra.gmra.mxu0 %v1482_v33  ;;  %v1542_v20 = vsel %vm172_vm0, %v1537_v12, %v1541_v9  ;;  %v2002_v33 = vshrl.u32 %v5270_v36, 16  ;;  %v6634_v12 = vld [vmem:[#allocation2 + $0x38] sm:$0xff]   ;;  %v7218_v36 = vcombine.high %v7122_v32, %v7136_v55 }
  0x8f   :  { %1868 = vmatmul.mubr.bf16.vlgmr.msra.gmra.mxu1 %v5215_v62  ;;  %5994 = vmatpush3.bf16.msra.mxu0 %v6586_v28  ;;  %v1515_v62 = vshll.u32 %v7131_v50, 16  ;;  %v6623_v28 = vld [vmem:[#allocation2 + $0x1c0] sm:$0xff]  }
  0x90   :  { %6040 = vmatpush3.bf16.msra.mxu1 %v6588_v21  ;;  %1875 = vmatprep.mubr.bf16.mxu1 %v5218_v0  ;;  %v1526_v0 = vsel %vm172_vm0, %v1521_v51, %v1525_v49  ;;  %v6611_v21 = vld [vmem:[#allocation2 + $0x150] sm:$0xff]   ;;  %v5241_v49 = vcombine.low %v7136_v55, %v7136_v55  ;;  %v6633_v51 = vld [vmem:[#allocation2 + $0x78] sm:$0xff]  }
  0x91   :  { %6041 = vmatprep.subr.bf16.mxu1 %v6592_v58  ;;  %1695 = vmatprep.mubr.bf16.mxu0 %v1510_v41  ;;  %v1517_v7 = vrot.slane %v1515_v62, 1  ;;  %v5242_v58 = vcombine.high %v7136_v55, %v7136_v55  ;;  %v2009_v41 = vshll.u32 %v7163_v23, 16 }
  0x92   :  { %5995 = vmatprep.subr.bf16.mxu0 %v6589_v40  ;;  %v6624_v40 = vld [vmem:[#allocation2 + $0x180] sm:$0xff]  }
  0x93   :  { %5996 = vmatpush3.bf16.msra.mxu0 %v6590_v38  ;;  %v1529_v26 = vor.u32 %v1527_v14, %v1517_v7  ;;  %v1548_v38 = vor.u32 %v1546_v25, %v1541_v9  ;;  %v2011_v62 = vrot.slane %v2009_v41, 1  ;;  %v53_v25 = vld [vmem:[%s8370_s3 + $0x28] sm:$0xff] }
  0x94   :  { %6042 = vmatpush3.bf16.msra.mxu1 %v6594_v27  ;;  %5997 = vmatprep.subr.bf16.mxu0 %v6595_v48  ;;  %v1533_v27 = vrot.slane %v1531_v18, 1  ;;  %v2295_v48 = vrot.slane %v5297_v42, 1  ;;  %v7211_v18 = vcombine.low %v7105_v15, %v7117_v31  ;;  %v7235_v42 = vcombine.low %v7122_v32, %v7136_v55  ;;  %v54_v32 = vld [vmem:[%s8370_s3 + $0x30] sm:$0xff] }
  0x95   :  { %6043 = vmatprep.subr.bf16.mxu1 %v6597_v30  ;;  %v6615_v30 = vld [vmem:[#allocation2 + $0x148] sm:$0xff]  }
  0x96   :  { %1696 = vmatmul.mubr.bf16.gmra.mxu0 %v1502_v59  ;;  %v2297_v56 = vsel %vm996_vm1, %v2295_v48, %v2296_v44  ;;  %v6622_v59 = vld [vmem:[#allocation2 + $0x100] sm:$0xff]   ;;  %v2302_v55 = vrot.slane %v7235_v42, 1 }
  0x97   :  { %1876 = vmatmul.mubr.bf16.gmra.mxu1 %v5217_v6  ;;  %5998 = vmatpush3.bf16.msra.mxu0 %v6596_v52  ;;  %v1513_v6 = vor.u32 %v1511_v16, %v1501_v47  ;;  %v5269_v47 = vcombine.low %v7078_v57, %v7083_v60  ;;  %v5296_v52 = vcombine.low %v5295_v37, %v7083_v60  ;;  %v49_v57 = vld [vmem:[%s8370_s3 + $0x8] sm:$0xff]  ;;  %v6636_v37 = vld [vmem:[#allocation2 + $0xb0] sm:$0xff]  }
  0x98   :  { %6044 = vmatpush3.bf16.msra.mxu1 %v6598_v35  ;;  %1883 = vmatprep.mubr.bf16.mxu1 %v5220_v19  ;;  %v6619_v19 = vld [vmem:[#allocation2 + $0x1c8] sm:$0xff]  }
  0x99   :  { %6045 = vmatprep.subr.bf16.mxu1 %v6603_v45  ;;  %1703 = vmatprep.mubr.bf16.mxu0 %v1526_v0  ;;  %v1518_v17 = vsel %vm172_vm0, %v1513_v6, %v1517_v7  ;;  %v6617_v35 = vld [vmem:[#allocation2 + $0x108] sm:$0xff]   ;;  %v1534_v45 = vsel %vm172_vm0, %v1529_v26, %v1533_v27  ;;  %v1992_v16 = vshll.u32 %v5269_v47, 16  ;;  %v1990_v63 = vshrl.u32 %v5269_v47, 16  ;;  %v6631_v0 = vld [vmem:[#allocation2 + $0xf8] sm:$0xff]  }
  0x9a   :  { %5999 = vmatprep.subr.bf16.mxu0 %v6600_v1  ;;  %v2292_v1 = vrot.slane %v5296_v52, 1  ;;  %v2021_v7 = vshrl.u32 %v7163_v23, 16  ;;  %v6640_v23 = vld [vmem:[#allocation2 + $0x30] sm:$0xff]   ;;  %v2033_v52 = vshll.u32 %v7235_v42, 16 }
  0x9b   :  { %6000 = vmatpush3.bf16.msra.mxu0 %v6602_v5  ;;  %v1994_v6 = vrot.slane %v1992_v16, 1  ;;  %v2053_v16 = vshrl.u32 %v7218_v36, 16 }
  0x9c   :  { %6046 = vmatpush3.bf16.msra.mxu1 %v6604_v53  ;;  %6001 = vmatprep.subr.bf16.mxu0 %v6605_v8  ;;  %v1543_v53 = vshrl.u32 %v7150_v10, 16  ;;  %v51_v10 = vld [vmem:[%s8370_s3 + $0x18] sm:$0xff] }
  0x9d   :  { %6047 = vmatprep.subr.bf16.mxu1 %v6607_v54  ;;  %v7185_v54 = vcombine.low %v7088_v61, %v7100_v43  ;;  %v7193_v61 = vcombine.high %v7105_v15, %v7117_v31  ;;  %v50_v43 = vld [vmem:[%s8370_s3 + $0x10] sm:$0xff]  ;;  %v1995_v14 = vor.u32 %v1994_v6, %v1990_v63  ;;  %v6643_v31 = vld [vmem:[#allocation2 + $0x68] sm:$0xff]   ;;  %v6651_v6 = vld [vmem:[#allocation2 + $0xd8] sm:$0xff]  }
  0x9e   :  { %1704 = vmatmul.mubr.bf16.gmra.mxu0 %v1518_v17  ;;  %v1545_v3 = vor.u32 %v1543_v53, %v1533_v27  ;;  %1275 = vperm.xlu1 %6459, %v50_v43   ;;  %v6635_v27 = vld [vmem:[#allocation2 + $0xf0] sm:$0xff]   ;;  %v6653_v53 = vld [vmem:[#allocation2 + $0x58] sm:$0xff]   ;;  %v2035_v43 = vrot.slane %v2033_v52, 1 }
  0x9f   :  { %1884 = vmatmul.mubr.bf16.gmra.mxu1 %v7112_v24  ;;  %v6612_v24 = vld [vmem:[#allocation2 + $0x110] sm:$0xff]   ;;  %6002 = vmatpush3.bf16.msra.mxu0 %v6606_v13  ;;  %v2293_v2 = vrot.slane %v7185_v54, 1  ;;  %v2300_v5 = vrot.slane %v7193_v61, 1  ;;  %v2025_v9 = vshll.u32 %v7193_v61, 16  ;;  %v2013_v15 = vshrl.u32 %v7185_v54, 16 }
  0xa0   :  { %1891 = vmatprep.mubr.bf16.mxu1 %v5222_v39  ;;  %6048 = vmatpush3.bf16.msra.mxu1 %v6609_v4  ;;  %v48_v39 = vld [vmem:[%s8370_s3] sm:$0xff]  ;;  %v1997_v4 = vshll.u32 %v7185_v54, 16  ;;  %v6638_v13 = vld [vmem:[#allocation2 + $0x70] sm:$0xff]  }
  0xa1   :  { %6049 = vmatprep.subr.bf16.mxu1 %v6613_v11  ;;  %1711 = vmatprep.mubr.bf16.mxu0 %v1542_v20  ;;  %v2294_v11 = vsel %vm996_vm1, %v2292_v1, %v2293_v2  ;;  %v2023_v20 = vor.u32 %v2021_v7, %v2011_v62 }
  0xa2   :  { %6003 = vmatprep.subr.bf16.mxu0 %v6611_v21  ;;  %1265 = vperm.xlu0 %6458, %v48_v39   ;;  %v1999_v17 = vrot.slane %v1997_v4, 1  ;;  %v2027_v21 = vrot.slane %v2025_v9, 1  ;;  %v7263_v4 = vld [vmem:[%s8367_s0 + $0xa0] ss:$8 sps:$4 sm:$0x1f]   ;;  %v6652_v9 = vld [vmem:[#allocation2 + $0x98] sm:$0xff]  }
  0xa3   :  { %6004 = vmatpush3.bf16.msra.mxu0 %v6612_v24  ;;  %1280 = vperm.xlu1 %6459, %v51_v10   ;;  %v2304_v24 = vrot.slane %v7218_v36, 1  ;;  %v2306_v10 = vrot.slane %v7263_v4, 1 }
  0xa4   :  { %6050 = vmatpush3.bf16.msra.mxu1 %v6614_v34  ;;  %6005 = vmatprep.subr.bf16.mxu0 %v6615_v30  ;;  %v2301_v34 = vsel %vm996_vm1, %v2296_v44, %v2300_v5  ;;  %v2000_v26 = vsel %vm172_vm0, %v1995_v14, %v1999_v17  ;;  %v2028_v30 = vsel %vm172_vm0, %v2023_v20, %v2027_v21  ;;  %v2049_v14 = vshll.u32 %v7263_v4, 16 }
  0xa5   :  { %6051 = vmatprep.subr.bf16.mxu1 %v6619_v19  ;;  %v52_v19 = vld [vmem:[%s8370_s3 + $0x20] sm:$0xff]  ;;  %v2305_v41 = vsel %vm996_vm1, %v2300_v5, %v2304_v24  ;;  %v2015_v44 = vor.u32 %v2013_v15, %v1999_v17  ;;  %v6658_v17 = vld [vmem:[#allocation2 + $0xd0] sm:$0xff]   ;;  %v2307_v20 = vsel %vm996_vm1, %v2302_v55, %v2306_v10 }
  0xa6   :  { %1712 = vmatmul.mubr.bf16.gmra.mxu0 %v1534_v45  ;;  %1270 = vperm.xlu0 %6458, %v49_v57   ;;  %v56_v5 = vld [vmem:[%s8370_s3 + $0x40] sm:$0xff] }
  0xa7   :  { %1892 = vmatmul.mubr.bf16.gmra.mxu1 %v7131_v50  ;;  %v2006_v50 = vrot.slane %v2004_v29, 1  ;;  %1719 = vmatprep.mubr.bf16.mxu0 %v1548_v38  ;;  %v2041_v29 = vshll.u32 %v7218_v36, 16  ;;  %v2029_v38 = vshrl.u32 %v7211_v18, 16  ;;  %v6668_v36 = vld [vmem:[#allocation2 + $0x40] sm:$0xff]  }
  0xa8   :  { %1899 = vmatprep.mubr.bf16.mxu1 %v5242_v58  ;;  %6052 = vmatpush3.bf16.msra.mxu1 %v6620_v22  ;;  %v6632_v58 = vld [vmem:[#allocation2 + $0xb8] sm:$0xff]   ;;  %v2298_v22 = vrot.slane %v7211_v18, 1  ;;  %v7286_v15 = vld [vmem:[%s8367_s0 + $0xc0] sm:$0xff] }
  0xa9   :  { %6053 = vmatprep.subr.bf16.mxu1 %v6623_v28  ;;  %6006 = vmatpush3.bf16.msra.mxu0 %v6617_v35  ;;  %v2007_v60 = vor.u32 %v2006_v50, %v2002_v33  ;;  %v2017_v28 = vshll.u32 %v7211_v18, 16  ;;  %v2037_v33 = vshrl.u32 %v7193_v61, 16  ;;  %v6649_v35 = vld [vmem:[#allocation2 + $0x60] sm:$0xff]   ;;  %v2043_v48 = vrot.slane %v2041_v29, 1  ;;  %v6656_v61 = vld [vmem:[#allocation2 + $0x18] sm:$0xff]  }
  0xaa   :  { %6007 = vmatprep.subr.bf16.mxu0 %v6621_v46  ;;  %1285 = vperm.xlu0 %6458, %v52_v19   ;;  %v2299_v39 = vsel %vm996_vm1, %v2293_v2, %v2298_v22  ;;  %v6641_v46 = vld [vmem:[#allocation2 + $0xe8] sm:$0xff]   ;;  %v6650_v50 = vld [vmem:[#allocation2 + $0x20] sm:$0xff]   ;;  %v2303_v63 = vsel %vm996_vm1, %v2298_v22, %v2302_v55  ;;  %v6660_v2 = vld [vmem:[#allocation2 + $0x50] sm:$0xff]  }
  0xab   :  { %v2012_v8 = vsel %vm172_vm0, %v2007_v60, %v2011_v62  ;;  %1290 = vperm.xlu1 %6459, %v53_v25   ;;  %v2019_v45 = vrot.slane %v2017_v28, 1  ;;  %v2039_v47 = vor.u32 %v2037_v33, %v2027_v21  ;;  %v55_v62 = vld [vmem:[%s8370_s3 + $0x38] sm:$0xff]  ;;  %v2055_v7 = vor.u32 %v2053_v16, %v2043_v48  ;;  %v6665_v19 = vld [vmem:[#allocation2 + $0x8] sm:$0xff]   ;;  %v6659_v21 = vld [vmem:[#allocation2 + $0x90] sm:$0xff]  }
  0xac   :  { %6054 = vmatpush3.bf16.msra.mxu1 %v6624_v40  ;;  %v6644_v40 = vld [vmem:[#allocation2 + $0x28] sm:$0xff]   ;;  %v5332_v22 = vld [vmem:[%s8367_s0 + $0xb0] sm:$0xff]  ;;  %v6676_v29 = vld [vmem:[#allocation2 + $0x1f8] sm:$0xff]  }
  0xad   :  { %6131 = vmatprep.subr.bf16.mxu1 %v6633_v51  ;;  %6008 = vmatpush3.bf16.msra.mxu0 %v6622_v59  ;;  %v6642_v51 = vld [vmem:[#allocation2 + $0xa8] sm:$0xff]   ;;  %v2044_v57 = vsel %vm172_vm0, %v2039_v47, %v2043_v48  ;;  %v6646_v59 = vld [vmem:[#allocation2 + $0xe0] sm:$0xff]   ;;  %v7308_v47 = vld [vmem:[%s8367_s0 + $0xd0] sm:$0xff] }
  0xae   :  { %6085 = vmatprep.subr.bf16.mxu0 %v6631_v0  ;;  %1720 = vmatmul.mubr.bf16.gmra.mxu0 %v1545_v3  ;;  %v6648_v0 = vld [vmem:[#allocation2 + $0xa0] sm:$0xff]   ;;  %v2031_v3 = vor.u32 %v2029_v38, %v2019_v45  ;;  %v7291_v25 = vld [vmem:[%s8367_s0 + $0xc8] sm:$0xff]  ;;  %v2061_v38 = vshrl.u32 %v7263_v4, 16  ;;  %v7313_v48 = vld [vmem:[%s8367_s0 + $0xd8] sm:$0xff] }
  0xaf   :  { %1900 = vmatmul.mubr.bf16.gmra.mxu1 %v5241_v49  ;;  %2205 = vmatprep.mubr.bf16.mxu0 %v2012_v8  ;;  %v7241_v49 = vld [vmem:[%s8367_s0 + $0xa4] ss:$8 sps:$4 sm:$0x1f]   ;;  %v5345_v28 = vcombine.high %v7286_v15, %v7291_v25  ;;  %v5347_v52 = vcombine.high %v7308_v47, %v7313_v48 }
  0xb0   :  { %2448 = vmatprep.mubr.bf16.mxu1 %v2297_v56  ;;  %v2308_v54 = vrot.slane %v7241_v49, 1  ;;  %1295 = vperm.xlu0 %6458, %v54_v32   ;;  %v2020_v56 = vsel %vm172_vm0, %v2015_v44, %v2019_v45  ;;  %v2057_v60 = vshll.u32 %v7241_v49, 16 }
  0xb1   :  { %1300 = vperm.xlu1 %6459, %v55_v62   ;;  %v2736_v45 = vshll.u32 %v5345_v28, 16  ;;  %v2752_v62 = vshll.u32 %v5347_v52, 16 }
  0xb2   :  { %v2309_v1 = vsel %vm996_vm1, %v2304_v24, %v2308_v54  ;;  %v2059_v8 = vrot.slane %v2057_v60, 1  ;;  %v2051_v24 = vrot.slane %v2049_v14, 1  ;;  %v2748_v60 = vshrl.u32 %v5345_v28, 16 }
  0xb3   :  { %v2754_v4 = vrot.slane %v2752_v62, 1  ;;  %v2764_v14 = vshrl.u32 %v5347_v52, 16 }
  0xb4   :  { %1305 = vperm.xlu0 %6458, %v56_v5   ;;  %v2060_v18 = vsel %vm172_vm0, %v2055_v7, %v2059_v8  ;;  %v6683_v5 = vld [vmem:[#allocation2 + $0x1b0] sm:$0xff]   ;;  %v6675_v7 = vld [vmem:[#allocation2 + $0x138] sm:$0xff]  }
  0xb6   :  { %2206 = vmatmul.mubr.bf16.vlgmr.msra.gmra.mxu0 %v2000_v26 }
  0xb7   :  { %2449 = vmatmul.mubr.bf16.vlgmr.msra.gmra.mxu1 %v2294_v11  ;;  %6086 = vmatpush3.bf16.msra.mxu0 %v6632_v58  ;;  %v6661_v11 = vld [vmem:[#allocation2 + $0x10] sm:$0xff]   ;;  %v2064_v58 = vshrl.u32 %v7241_v49, 16  ;;  %v6667_v49 = vld [vmem:[#allocation2 + $0x80] sm:$0xff]  }
  0xb8   :  { %6132 = vmatpush3.bf16.msra.mxu1 %v6634_v12  ;;  %2456 = vmatprep.mubr.bf16.mxu1 %v2301_v34  ;;  %v2045_v12 = vshrl.u32 %v7235_v42, 16  ;;  %v6664_v34 = vld [vmem:[#allocation2 + $0x48] sm:$0xff]   ;;  %v6666_v42 = vld [vmem:[#allocation2 + $0xc0] sm:$0xff]  }
  0xb9   :  { %6133 = vmatprep.subr.bf16.mxu1 %v6638_v13  ;;  %2213 = vmatprep.mubr.bf16.mxu0 %v2028_v30  ;;  %v2036_v13 = vsel %vm172_vm0, %v2031_v3, %v2035_v43  ;;  %v6669_v30 = vld [vmem:[#allocation2] sm:$0xff]  }
  0xba   :  { %6087 = vmatprep.subr.bf16.mxu0 %v6635_v27  ;;  %v6662_v27 = vld [vmem:[#allocation2 + $0xc8] sm:$0xff]  }
  0xbb   :  { %6088 = vmatpush3.bf16.msra.mxu0 %v6636_v37 }
  0xbc   :  { %6134 = vmatpush3.bf16.msra.mxu1 %v6640_v23  ;;  %6089 = vmatprep.subr.bf16.mxu0 %v6641_v46  ;;  %v7281_v23 = vld [vmem:[%s8367_s0 + $0xb8] sm:$0xff]  ;;  %v7303_v46 = vcombine.low %v7286_v15, %v7291_v25 }
  0xbd   :  { %6135 = vmatprep.subr.bf16.mxu1 %v6643_v31  ;;  %v2047_v31 = vor.u32 %v2045_v12, %v2035_v43  ;;  %v5343_v26 = vcombine.high %v5332_v22, %v7281_v23  ;;  %v7331_v43 = vcombine.low %v7308_v47, %v7313_v48 }
  0xbe   :  { %2214 = vmatmul.mubr.bf16.gmra.mxu0 %v2020_v56  ;;  %v2724_v56 = vshll.u32 %v7303_v46, 16 }
  0xbf   :  { %2457 = vmatmul.mubr.bf16.gmra.mxu1 %v2299_v39  ;;  %6090 = vmatpush3.bf16.msra.mxu0 %v6642_v51  ;;  %v2731_v33 = vshll.u32 %v5343_v26, 16  ;;  %v2052_v37 = vsel %vm172_vm0, %v2047_v31, %v2051_v24  ;;  %v2066_v39 = vor.u32 %v2064_v58, %v2059_v8  ;;  %v6674_v51 = vld [vmem:[#allocation2 + $0x178] sm:$0xff]   ;;  %v6678_v8 = vld [vmem:[#allocation2 + $0x170] sm:$0xff]   ;;  %v6684_v31 = vld [vmem:[#allocation2 + $0x168] sm:$0xff]  }
  0xc0   :  { %6136 = vmatpush3.bf16.msra.mxu1 %v6644_v40  ;;  %2464 = vmatprep.mubr.bf16.mxu1 %v2305_v41  ;;  %v6663_v40 = vld [vmem:[#allocation2 + $0x88] sm:$0xff]   ;;  %v5342_v41 = vcombine.low %v5332_v22, %v7281_v23 }
  0xc1   :  { %6137 = vmatprep.subr.bf16.mxu1 %v6649_v35  ;;  %2221 = vmatprep.mubr.bf16.mxu0 %v2044_v57  ;;  %v2729_v35 = vshrl.u32 %v5343_v26, 16  ;;  %v2733_v44 = vrot.slane %v2731_v33, 1  ;;  %v6689_v33 = vld [vmem:[#allocation2 + $0x160] sm:$0xff]  }
  0xc2   :  { %6091 = vmatprep.subr.bf16.mxu0 %v6646_v59  ;;  %v2719_v32 = vshll.u32 %v5342_v41, 16  ;;  %v6677_v59 = vld [vmem:[#allocation2 + $0x1b8] sm:$0xff]  }
  0xc3   :  { %6092 = vmatpush3.bf16.msra.mxu0 %v6648_v0  ;;  %v2734_v55 = vor.u32 %v2733_v44, %v2729_v35  ;;  %v7327_v0 = vld [vmem:[%s8367_s0 + $0xe8] sm:$0xff]  ;;  %v6698_v44 = vld [vmem:[#allocation2 + $0x198] sm:$0xff]  }
  0xc4   :  { %6138 = vmatpush3.bf16.msra.mxu1 %v6650_v50  ;;  %6093 = vmatprep.subr.bf16.mxu0 %v6651_v6  ;;  %v2738_v50 = vrot.slane %v2736_v45, 1  ;;  %v2721_v57 = vrot.slane %v2719_v32, 1  ;;  %v6691_v32 = vld [vmem:[#allocation2 + $0x120] sm:$0xff]  }
  0xc5   :  { %6139 = vmatprep.subr.bf16.mxu1 %v6653_v53  ;;  %v2063_v53 = vor.u32 %v2061_v38, %v2051_v24  ;;  %v2766_v24 = vor.u32 %v2764_v14, %v2754_v4  ;;  %v6702_v38 = vld [vmem:[#allocation2 + $0x1d0] sm:$0xff]   ;;  %v6722_v14 = vld [vmem:[#allocation2 + $0x78] sm:$0xff]  }
  0xc6   :  { %2222 = vmatmul.mubr.bf16.gmra.mxu0 %v2036_v13  ;;  %v2739_v16 = vsel %vm172_vm0, %v2734_v55, %v2738_v50  ;;  %v2750_v3 = vor.u32 %v2748_v60, %v2738_v50  ;;  %v6687_v13 = vld [vmem:[#allocation2 + $0x1a8] sm:$0xff]   ;;  %v6694_v55 = vld [vmem:[#allocation2 + $0x158] sm:$0xff]  }
  0xc7   :  { %2465 = vmatmul.mubr.bf16.gmra.mxu1 %v2303_v63  ;;  %6094 = vmatpush3.bf16.msra.mxu0 %v6652_v9  ;;  %v7322_v63 = vld [vmem:[%s8367_s0 + $0xe0] sm:$0xff]  ;;  %v2740_v9 = vshrl.u32 %v7303_v46, 16  ;;  %v5422_v60 = vld [vmem:[%s8367_s0 + $0xb8] sm:$0xee] }
  0xc8   :  { %2472 = vmatprep.mubr.bf16.mxu1 %v2309_v1  ;;  %6140 = vmatpush3.bf16.msra.mxu1 %v6656_v61  ;;  %v6681_v61 = vld [vmem:[#allocation2 + $0x1f0] sm:$0xff]   ;;  %v5349_v6 = vcombine.high %v7322_v63, %v7327_v0  ;;  %v7349_v22 = vcombine.low %v7322_v63, %v7327_v0 }
  0xc9   :  { %6141 = vmatprep.subr.bf16.mxu1 %v6660_v2  ;;  %2229 = vmatprep.mubr.bf16.mxu0 %v2060_v18  ;;  %v2726_v2 = vrot.slane %v2724_v56, 1  ;;  %v7342_v18 = vld [vmem:[%s8367_s0 + $0xf0] sm:$0xff] }
  0xca   :  { %6095 = vmatprep.subr.bf16.mxu0 %v6658_v17  ;;  %v2768_v17 = vshll.u32 %v5349_v6, 16  ;;  %v2772_v56 = vshrl.u32 %v7349_v22, 16 }
  0xcb   :  { %6096 = vmatpush3.bf16.msra.mxu0 %v6659_v21  ;;  %v6679_v21 = vld [vmem:[#allocation2 + $0x130] sm:$0xff]  }
  0xcc   :  { %6142 = vmatpush3.bf16.msra.mxu1 %v6661_v11  ;;  %6097 = vmatprep.subr.bf16.mxu0 %v6662_v27  ;;  %v6686_v11 = vld [vmem:[#allocation2 + $0x1e8] sm:$0xff]   ;;  %v6693_v27 = vld [vmem:[#allocation2 + $0x1a0] sm:$0xff]  }
  0xcd   :  { %6143 = vmatprep.subr.bf16.mxu1 %v6664_v34  ;;  %v2755_v34 = vsel %vm172_vm0, %v2750_v3, %v2754_v4  ;;  %v6712_v3 = vld [vmem:[#allocation2 + $0x1c0] sm:$0xff]  }
  0xce   :  { %2230 = vmatmul.mubr.bf16.gmra.mxu0 %v2052_v37  ;;  %v6696_v37 = vld [vmem:[#allocation2 + $0x1d8] sm:$0xff]  }
  0xcf   :  { %2473 = vmatmul.mubr.bf16.gmra.mxu1 %v2307_v20  ;;  %2237 = vmatprep.mubr.bf16.mxu0 %v2066_v39  ;;  %v6692_v20 = vld [vmem:[#allocation2 + $0x1e0] sm:$0xff]  }
  0xd0   :  { %2480 = vmatprep.mubr.bf16.mxu1 %v2308_v54  ;;  %6144 = vmatpush3.bf16.msra.mxu1 %v6665_v19  ;;  %v2717_v54 = vshrl.u32 %v5342_v41, 16  ;;  %v5341_v19 = vld [vmem:[%s8367_s0 + $0xf8] sm:$0x11] }
  0xd1   :  { %6145 = vmatprep.subr.bf16.mxu1 %v6668_v36  ;;  %6098 = vmatpush3.bf16.msra.mxu0 %v6663_v40  ;;  %v2742_v36 = vor.u32 %v2740_v9, %v2726_v2  ;;  %v2760_v40 = vshll.u32 %v7349_v22, 16  ;;  %v7361_v45 = vcombine.low %v7342_v18, %v5341_v19  ;;  %v7382_v9 = vcombine.high %v7291_v25, %v7308_v47 }
  0xd2   :  { %6099 = vmatprep.subr.bf16.mxu0 %v6666_v42  ;;  %v2722_v1 = vor.u32 %v2721_v57, %v2717_v54  ;;  %v6695_v54 = vld [vmem:[#allocation2 + $0x118] sm:$0xff]  }
  0xd3   :  { %v2776_v57 = vshll.u32 %v7361_v45, 16 }
  0xd4   :  { %6146 = vmatpush3.bf16.msra.mxu1 %v6669_v30  ;;  %v2727_v12 = vsel %vm172_vm0, %v2722_v1, %v2726_v2  ;;  %v6685_v30 = vld [vmem:[#allocation2 + $0x128] sm:$0xff]   ;;  %v5369_v1 = vcombine.high %v7342_v18, %v7342_v18 }
  0xd5   :  { %6223 = vmatprep.subr.bf16.mxu1 %v6676_v29  ;;  %6100 = vmatpush3.bf16.msra.mxu0 %v6667_v49  ;;  %v2756_v29 = vshrl.u32 %v7331_v43, 16  ;;  %v2762_v49 = vrot.slane %v2760_v40, 1  ;;  %v6709_v2 = vld [vmem:[#allocation2 + $0x188] sm:$0xff]  }
  0xd6   :  { %6177 = vmatprep.subr.bf16.mxu0 %v6674_v51  ;;  %2238 = vmatmul.mubr.bf16.gmra.mxu0 %v2063_v53  ;;  %v7366_v53 = vcombine.high %v7281_v23, %v7286_v15 }
  0xd7   :  { %2481 = vmatmul.mubr.bf16.gmra.mxu1 %v2306_v10  ;;  %2932 = vmatprep.mubr.bf16.mxu0 %v2739_v16  ;;  %v2744_v10 = vshll.u32 %v7331_v43, 16 }
  0xd8   :  { %3112 = vmatprep.mubr.bf16.mxu1 %v5343_v26  ;;  %v2770_v26 = vrot.slane %v2768_v17, 1  ;;  %v3249_v4 = vshll.u32 %v7366_v53, 16 }
  0xd9   :  { %v2746_v58 = vrot.slane %v2744_v10, 1  ;;  %v6704_v10 = vld [vmem:[#allocation2 + $0x148] sm:$0xff]  }
  0xda   :  { %v2771_v42 = vsel %vm172_vm0, %v2766_v24, %v2770_v26  ;;  %v5423_v24 = vcombine.low %v5422_v60, %v7286_v15 }
  0xdb   :  { %v2747_v39 = vsel %vm172_vm0, %v2742_v36, %v2746_v58  ;;  %v3251_v36 = vrot.slane %v3249_v4, 1  ;;  %v6729_v4 = vld [vmem:[#allocation2 + $0x30] sm:$0xff]  }
  0xde   :  { %2933 = vmatmul.mubr.bf16.vlgmr.msra.gmra.mxu0 %v2727_v12  ;;  %v3247_v12 = vshrl.u32 %v7366_v53, 16 }
  0xdf   :  { %3113 = vmatmul.mubr.bf16.vlgmr.msra.gmra.mxu1 %v5342_v41  ;;  %6178 = vmatpush3.bf16.msra.mxu0 %v6675_v7  ;;  %v2780_v41 = vshrl.u32 %v5349_v6, 16  ;;  %v2778_v7 = vrot.slane %v2776_v57, 1 }
  0xe0   :  { %6224 = vmatpush3.bf16.msra.mxu1 %v6677_v59  ;;  %3120 = vmatprep.mubr.bf16.mxu1 %v5345_v28  ;;  %v7353_v28 = vcombine.high %v7342_v18, %v5341_v19  ;;  %v6708_v59 = vld [vmem:[#allocation2 + $0x1c8] sm:$0xff]  }
  0xe1   :  { %6225 = vmatprep.subr.bf16.mxu1 %v6681_v61  ;;  %2940 = vmatprep.mubr.bf16.mxu0 %v2755_v34  ;;  %v2782_v50 = vor.u32 %v2780_v41, %v2770_v26  ;;  %v6700_v61 = vld [vmem:[#allocation2 + $0x150] sm:$0xff]   ;;  %v3541_v34 = vrot.slane %v7382_v9, 1  ;;  %v2788_v26 = vshrl.u32 %v7361_v45, 16  ;;  %v3537_v41 = vrot.slane %v5423_v24, 1 }
  0xe2   :  { %6179 = vmatprep.subr.bf16.mxu0 %v6678_v8  ;;  %v2784_v35 = vshll.u32 %v7353_v28, 16  ;;  %v2791_v8 = vshrl.u32 %v7353_v28, 16  ;;  %v6711_v28 = vld [vmem:[#allocation2 + $0x100] sm:$0xff]  }
  0xe3   :  { %6180 = vmatpush3.bf16.msra.mxu0 %v6679_v21  ;;  %v5396_v21 = vcombine.low %v7281_v23, %v7286_v15 }
  0xe4   :  { %6226 = vmatpush3.bf16.msra.mxu1 %v6683_v5  ;;  %6181 = vmatprep.subr.bf16.mxu0 %v6684_v31  ;;  %v2786_v51 = vrot.slane %v2784_v35, 1  ;;  %v5424_v5 = vcombine.high %v5422_v60, %v7286_v15  ;;  %v3254_v31 = vshll.u32 %v7382_v9, 16  ;;  %v2790_v35 = vor.u32 %v2788_v26, %v2778_v7 }
  0xe5   :  { %6227 = vmatprep.subr.bf16.mxu1 %v6686_v11  ;;  %v6713_v11 = vld [vmem:[#allocation2 + $0x180] sm:$0xff]  }
  0xe6   :  { %2941 = vmatmul.mubr.bf16.gmra.mxu0 %v2747_v39  ;;  %v2787_v62 = vsel %vm172_vm0, %v2782_v50, %v2786_v51  ;;  %v2793_v19 = vor.u32 %v2791_v8, %v2786_v51  ;;  %v3256_v15 = vrot.slane %v3254_v31, 1  ;;  %v7404_v39 = vcombine.high %v7313_v48, %v7322_v63  ;;  %v6723_v51 = vld [vmem:[#allocation2 + $0x38] sm:$0xff]  }
  0xe7   :  { %3121 = vmatmul.mubr.bf16.gmra.mxu1 %v7303_v46  ;;  %6182 = vmatpush3.bf16.msra.mxu0 %v6685_v30  ;;  %v2758_v46 = vor.u32 %v2756_v29, %v2746_v58  ;;  %v5368_v58 = vcombine.low %v7342_v18, %v7342_v18  ;;  %v7400_v30 = vcombine.low %v7291_v25, %v7308_v47 }
  0xe8   :  { %6228 = vmatpush3.bf16.msra.mxu1 %v6687_v13  ;;  %3128 = vmatprep.mubr.bf16.mxu1 %v5347_v52  ;;  %v6703_v52 = vld [vmem:[#allocation2 + $0x190] sm:$0xff]   ;;  %v3540_v13 = vrot.slane %v5424_v5, 1  ;;  %v3252_v29 = vor.u32 %v3251_v36, %v3247_v12  ;;  %v3545_v25 = vrot.slane %v7404_v39, 1  ;;  %v6738_v36 = vld [vmem:[#allocation2 + $0x60] sm:$0xff]  }
  0xe9   :  { %6229 = vmatprep.subr.bf16.mxu1 %v6692_v20  ;;  %2948 = vmatprep.mubr.bf16.mxu0 %v2771_v42  ;;  %v2763_v16 = vsel %vm172_vm0, %v2758_v46, %v2762_v49  ;;  %v6706_v20 = vld [vmem:[#allocation2 + $0x108] sm:$0xff]   ;;  %v3538_v42 = vrot.slane %v7400_v30, 1 }
  0xea   :  { %6183 = vmatprep.subr.bf16.mxu0 %v6689_v33  ;;  %v3237_v33 = vshll.u32 %v5396_v21, 16  ;;  %v3257_v46 = vsel %vm172_vm0, %v3252_v29, %v3256_v15  ;;  %v3546_v53 = vsel %vm996_vm1, %v3541_v34, %v3545_v25 }
  0xeb   :  { %6184 = vmatpush3.bf16.msra.mxu0 %v6691_v32  ;;  %v3270_v32 = vshll.u32 %v7404_v39, 16  ;;  %v3539_v50 = vsel %vm996_vm1, %v3537_v41, %v3538_v42  ;;  %v6739_v41 = vld [vmem:[#allocation2 + $0x20] sm:$0xff]  }
  0xec   :  { %6230 = vmatpush3.bf16.msra.mxu1 %v6693_v27  ;;  %6185 = vmatprep.subr.bf16.mxu0 %v6694_v55  ;;  %v3542_v27 = vsel %vm996_vm1, %v3540_v13, %v3541_v34  ;;  %v3239_v45 = vrot.slane %v3237_v33, 1  ;;  %v3282_v34 = vshrl.u32 %v7404_v39, 16 }
  0xed   :  { %6231 = vmatprep.subr.bf16.mxu1 %v6696_v37  ;;  %v6720_v37 = vld [vmem:[#allocation2 + $0xf8] sm:$0xff]  }
  0xee   :  { %2949 = vmatmul.mubr.bf16.gmra.mxu0 %v2763_v16  ;;  %v7426_v16 = vcombine.low %v7313_v48, %v7322_v63  ;;  %v6724_v48 = vld [vmem:[#allocation2 + $0xf0] sm:$0xff]   ;;  %v6732_v63 = vld [vmem:[#allocation2 + $0x68] sm:$0xff]  }
  0xef   :  { %3129 = vmatmul.mubr.bf16.gmra.mxu1 %v7331_v43  ;;  %v6701_v43 = vld [vmem:[#allocation2 + $0x110] sm:$0xff]   ;;  %6186 = vmatpush3.bf16.msra.mxu0 %v6695_v54 }
  0xf0   :  { %3136 = vmatprep.mubr.bf16.mxu1 %v5349_v6  ;;  %6232 = vmatpush3.bf16.msra.mxu1 %v6698_v44  ;;  %v2774_v6 = vor.u32 %v2772_v56, %v2762_v49  ;;  %v3235_v44 = vshrl.u32 %v5396_v21, 16  ;;  %v3266_v49 = vshrl.u32 %v7382_v9, 16  ;;  %v6727_v54 = vld [vmem:[#allocation2 + $0x70] sm:$0xff]   ;;  %v3258_v9 = vshrl.u32 %v7400_v30, 16 }
  0xf1   :  { %6233 = vmatprep.subr.bf16.mxu1 %v6702_v38  ;;  %2956 = vmatprep.mubr.bf16.mxu0 %v2787_v62  ;;  %v3242_v38 = vshll.u32 %v7400_v30, 16  ;;  %v6730_v30 = vld [vmem:[#allocation2 + $0xe8] sm:$0xff]  }
  0xf2   :  { %6187 = vmatprep.subr.bf16.mxu0 %v6700_v61  ;;  %v2779_v17 = vsel %vm172_vm0, %v2774_v6, %v2778_v7  ;;  %v3240_v57 = vor.u32 %v3239_v45, %v3235_v44  ;;  %v3268_v62 = vor.u32 %v3266_v49, %v3256_v15  ;;  %v3272_v61 = vrot.slane %v3270_v32, 1 }
  0xf3   :  { %6188 = vmatpush3.bf16.msra.mxu0 %v6701_v43  ;;  %v7432_v43 = vcombine.high %v7327_v0, %v7342_v18  ;;  %v3274_v45 = vshrl.u32 %v7426_v16, 16 }
  0xf4   :  { %6234 = vmatpush3.bf16.msra.mxu1 %v6703_v52  ;;  %6189 = vmatprep.subr.bf16.mxu0 %v6704_v10  ;;  %v3262_v10 = vshll.u32 %v7426_v16, 16  ;;  %v3273_v12 = vsel %vm172_vm0, %v3268_v62, %v3272_v61  ;;  %v3284_v33 = vor.u32 %v3282_v34, %v3272_v61  ;;  %v7498_v62 = vld [vmem:[%s8367_s0 + $0xf8] ss:$8 sps:$4 sm:$0x1f]   ;;  %v6749_v61 = vld [vmem:[#allocation2 + $0x50] sm:$0xff]   ;;  %v5459_v34 = vld [vmem:[%s8367_s0 + $0x108] sm:$0xff] }
  0xf5   :  { %6235 = vmatprep.subr.bf16.mxu1 %v6708_v59  ;;  %v3244_v59 = vrot.slane %v3242_v38, 1  ;;  %v3549_v6 = vrot.slane %v7432_v43, 1  ;;  %v3286_v13 = vshll.u32 %v7432_v43, 16  ;;  %v3298_v32 = vshrl.u32 %v7432_v43, 16 }
  0xf6   :  { %2957 = vmatmul.mubr.bf16.gmra.mxu0 %v2779_v17  ;;  %v3264_v26 = vrot.slane %v3262_v10, 1  ;;  %v6741_v10 = vld [vmem:[#allocation2 + $0x98] sm:$0xff]  }
  0xf7   :  { %3137 = vmatmul.mubr.bf16.gmra.mxu1 %v7349_v22  ;;  %v6710_v22 = vld [vmem:[#allocation2 + $0x140] sm:$0xff]   ;;  %2964 = vmatprep.mubr.bf16.mxu0 %v2793_v19  ;;  %v3245_v7 = vsel %vm172_vm0, %v3240_v57, %v3244_v59  ;;  %v6733_v19 = vld [vmem:[#allocation2 + $0x28] sm:$0xff]   ;;  %v3550_v21 = vsel %vm996_vm1, %v3545_v25, %v3549_v6  ;;  %v3260_v24 = vor.u32 %v3258_v9, %v3244_v59  ;;  %v3288_v29 = vrot.slane %v3286_v13, 1  ;;  %v7513_v13 = vld [vmem:[%s8367_s0 + $0x110] sm:$0xff] }
  0xf8   :  { %3144 = vmatprep.mubr.bf16.mxu1 %v5369_v1  ;;  %6236 = vmatpush3.bf16.msra.mxu1 %v6709_v2  ;;  %v6721_v1 = vld [vmem:[#allocation2 + $0xb8] sm:$0xff]   ;;  %v6737_v59 = vld [vmem:[#allocation2 + $0xa0] sm:$0xff]  }
  0xf9   :  { %6237 = vmatprep.subr.bf16.mxu1 %v6712_v3  ;;  %6190 = vmatpush3.bf16.msra.mxu0 %v6706_v20  ;;  %v3543_v3 = vrot.slane %v7426_v16, 1  ;;  %v3265_v44 = vsel %vm172_vm0, %v3260_v24, %v3264_v26  ;;  %v3289_v49 = vsel %vm172_vm0, %v3284_v33, %v3288_v29 }
  0xfa   :  { %6191 = vmatprep.subr.bf16.mxu0 %v6710_v22  ;;  %v6725_v22 = vld [vmem:[#allocation2 + $0xb0] sm:$0xff]  }
  0xfb   :  { %v3544_v17 = vsel %vm996_vm1, %v3538_v42, %v3543_v3 }
  0xfc   :  { %6238 = vmatpush3.bf16.msra.mxu1 %v6713_v11 }
  0xfd   :  { %6315 = vmatprep.subr.bf16.mxu1 %v6722_v14  ;;  %6192 = vmatpush3.bf16.msra.mxu0 %v6711_v28 }
  0xfe   :  { %6269 = vmatprep.subr.bf16.mxu0 %v6720_v37  ;;  %v7419_v52 = vpop.f32.mrf.mxu0  ;;  %2965 = vmatmul.mubr.bf16.gmra.mxu0 %v2790_v35  ;;  %v6731_v37 = vld [vmem:[#allocation2 + $0xa8] sm:$0xff]   ;;  %v6735_v35 = vld [vmem:[#allocation2 + $0xe0] sm:$0xff]  }
  0xff   :  { %v7396_v23 = vpop.f32.mrf.mxu1  ;;  %3145 = vmatmul.mubr.bf16.gmra.mxu1 %v5368_v58  ;;  %3450 = vmatprep.mubr.bf16.mxu0 %v3257_v46  ;;  %v7459_v58 = vld [vmem:[%s8367_s0 + $0xfc] ss:$8 sps:$4 sm:$0x1f]  }
 0x100   :  { %3693 = vmatprep.mubr.bf16.mxu1 %v3542_v27  ;;  %v7428_v60 = vpop.f32.mrf.mxu0  ;;  %v7465_v27 = vcombine.low %v7327_v0, %v7342_v18  ;;  %v6742_v0 = vld [vmem:[#allocation2 + $0x58] sm:$0xff]   ;;  %v3553_v18 = vrot.slane %v7459_v58, 1 }
 0x101   :  { %v7406_v40 = vpop.f32.mrf.mxu1 }
 0x102   :  { %v7437_v5 = vpop.f32.mrf.mxu0  ;;  %v3547_v39 = vrot.slane %v7465_v27, 1  ;;  %v3278_v38 = vshll.u32 %v7465_v27, 16  ;;  %v3554_v16 = vsel %vm996_vm1, %v3549_v6, %v3553_v18  ;;  %v6750_v6 = vld [vmem:[#allocation2 + $0x10] sm:$0xff]  }
 0x103   :  { %v7410_v47 = vpop.f32.mrf.mxu1 }
 0x104   :  { %v7445_v11 = vpop.f32.mrf.mxu0 }
 0x105   :  { %v7416_v55 = vpop.f32.mrf.mxu1 }
 0x106   :  { %v7453_v20 = vpop.f32.mrf.mxu0  ;;  %3451 = vmatmul.mubr.bf16.vlgmr.msra.gmra.mxu0 %v3245_v7 }
 0x107   :  { %v7422_v56 = vpop.f32.mrf.mxu1  ;;  %3694 = vmatmul.mubr.bf16.vlgmr.msra.gmra.mxu1 %v3539_v50  ;;  %6270 = vmatpush3.bf16.msra.mxu0 %v6721_v1  ;;  %v3302_v50 = vshll.u32 %v7459_v58, 16  ;;  %v3276_v1 = vor.u32 %v3274_v45, %v3264_v26  ;;  %v3294_v26 = vshll.u32 %v7498_v62, 16 }
 0x108   :  { %6316 = vmatpush3.bf16.msra.mxu1 %v6723_v51  ;;  %3701 = vmatprep.mubr.bf16.mxu1 %v3546_v53  ;;  %v7467_v28 = vpop.f32.mrf.mxu0  ;;  %v3548_v53 = vsel %vm996_vm1, %v3543_v3, %v3547_v39  ;;  %v3280_v3 = vrot.slane %v3278_v38, 1  ;;  %v6748_v38 = vld [vmem:[#allocation2 + $0x90] sm:$0xff]  }
 0x109   :  { %v7434_v2 = vpop.f32.mrf.mxu1  ;;  %6317 = vmatprep.subr.bf16.mxu1 %v6727_v54  ;;  %3458 = vmatprep.mubr.bf16.mxu0 %v3273_v12  ;;  %v6745_v54 = vld [vmem:[#allocation2 + $0x18] sm:$0xff]   ;;  %v3304_v7 = vrot.slane %v3302_v50, 1  ;;  %v3551_v12 = vrot.slane %v7498_v62, 1  ;;  %v3296_v50 = vrot.slane %v3294_v26, 1 }
 0x10a   :  { %6271 = vmatprep.subr.bf16.mxu0 %v6724_v48  ;;  %v7472_v42 = vpop.f32.mrf.mxu0 }
 0x10b   :  { %v7441_v8 = vpop.f32.mrf.mxu1  ;;  %6272 = vmatpush3.bf16.msra.mxu0 %v6725_v22  ;;  %v3281_v22 = vsel %vm172_vm0, %v3276_v1, %v3280_v3  ;;  %v6758_v1 = vld [vmem:[#allocation2] sm:$0xff]  }
 0x10c   :  { %6318 = vmatpush3.bf16.msra.mxu1 %v6729_v4  ;;  %v7480_v46 = vpop.f32.mrf.mxu0  ;;  %6273 = vmatprep.subr.bf16.mxu0 %v6730_v30  ;;  %v6740_v4 = vld [vmem:[#allocation2 + $0xd8] sm:$0xff]   ;;  %v6754_v30 = vld [vmem:[#allocation2 + $0x8] sm:$0xff]  }
 0x10d   :  { %v7450_v14 = vpop.f32.mrf.mxu1  ;;  %6319 = vmatprep.subr.bf16.mxu1 %v6732_v63  ;;  %v3300_v63 = vor.u32 %v3298_v32, %v3288_v29 }
 0x10e   :  { %v7490_v57 = vpop.f32.mrf.mxu0  ;;  %3459 = vmatmul.mubr.bf16.gmra.mxu0 %v3265_v44  ;;  %v3552_v44 = vsel %vm996_vm1, %v3547_v39, %v3551_v12 }
 0x10f   :  { %v7461_v31 = vpop.f32.mrf.mxu1  ;;  %3702 = vmatmul.mubr.bf16.gmra.mxu1 %v3544_v17  ;;  %6274 = vmatpush3.bf16.msra.mxu0 %v6731_v37  ;;  %v3305_v29 = vsel %vm172_vm0, %v3300_v63, %v3304_v7  ;;  %v7528_v37 = vld [vmem:[%s8367_s0 + $0x118] sm:$0xff] }
 0x110   :  { %6320 = vmatpush3.bf16.msra.mxu1 %v6733_v19  ;;  %3709 = vmatprep.mubr.bf16.mxu1 %v3550_v21  ;;  %v7502_v48 = vpop.f32.mrf.mxu0  ;;  %v3290_v19 = vshrl.u32 %v7465_v27, 16  ;;  %v6747_v21 = vld [vmem:[#allocation2 + $0xd0] sm:$0xff]   ;;  %v6751_v27 = vld [vmem:[#allocation2 + $0xc8] sm:$0xff]   ;;  %v6765_v63 = vld [vmem:[#allocation2 + $0x1f8] sm:$0xff]  }
 0x111   :  { %v7469_v15 = vpop.f32.mrf.mxu1  ;;  %6321 = vmatprep.subr.bf16.mxu1 %v6738_v36  ;;  %3466 = vmatprep.mubr.bf16.mxu0 %v3289_v49  ;;  %v6753_v36 = vld [vmem:[#allocation2 + $0x48] sm:$0xff]   ;;  %v6757_v49 = vld [vmem:[#allocation2 + $0x40] sm:$0xff]  }
 0x112   :  { %6275 = vmatprep.subr.bf16.mxu0 %v6735_v35  ;;  %v7515_v17 = vpop.f32.mrf.mxu0  ;;  %v7536_v35 = vcombine.high %v5459_v34, %v7513_v13  ;;  %v3292_v32 = vor.u32 %v3290_v19, %v3280_v3  ;;  %v6755_v19 = vld [vmem:[#allocation2 + $0xc0] sm:$0xff]  }
 0x113   :  { %v7476_v25 = vpop.f32.mrf.mxu1  ;;  %6276 = vmatpush3.bf16.msra.mxu0 %v6737_v59 }
 0x114   :  { %6322 = vmatpush3.bf16.msra.mxu1 %v6739_v41  ;;  %v7522_v33 = vpop.f32.mrf.mxu0  ;;  %6277 = vmatprep.subr.bf16.mxu0 %v6740_v4  ;;  %v7533_v41 = vld [vmem:[%s8367_s0 + $0x120] sm:$0xff] }
 0x115   :  { %v7485_v51 = vpop.f32.mrf.mxu1  ;;  %6323 = vmatprep.subr.bf16.mxu1 %v6742_v0  ;;  %v7554_v39 = vcombine.high %v7528_v37, %v7533_v41 }
 0x116   :  { %v7545_v45 = vpop.f32.mrf.mxu0  ;;  %3467 = vmatmul.mubr.bf16.gmra.mxu0 %v3281_v22 }
 0x117   :  { %v7500_v43 = vpop.f32.mrf.mxu1  ;;  %3710 = vmatmul.mubr.bf16.gmra.mxu1 %v3548_v53  ;;  %6278 = vmatpush3.bf16.msra.mxu0 %v6741_v10  ;;  %v3309_v53 = vshrl.u32 %v7459_v58, 16  ;;  %v3981_v26 = vshll.u32 %v7554_v39, 16 }
 0x118   :  { %3717 = vmatprep.mubr.bf16.mxu1 %v3554_v16  ;;  %6324 = vmatpush3.bf16.msra.mxu1 %v6745_v54  ;;  %v7548_v54 = vpop.f32.mrf.mxu0  ;;  %v3976_v16 = vshll.u32 %v7536_v35, 16 }
 0x119   :  { %v7504_v9 = vpop.f32.mrf.mxu1  ;;  %6325 = vmatprep.subr.bf16.mxu1 %v6749_v61  ;;  %3474 = vmatprep.mubr.bf16.mxu0 %v3305_v29  ;;  %v6752_v61 = vld [vmem:[#allocation2 + $0x88] sm:$0xff]   ;;  %v3311_v10 = vor.u32 %v3309_v53, %v3304_v7  ;;  %v7579_v7 = vld [vmem:[%s8367_s0 + $0x130] sm:$0xff]  ;;  %v5781_v53 = vadd.f32 %v7406_v40, %v7396_v23  ;;  %v5784_v23 = vadd.f32 %v7416_v55, %v7410_v47 }
 0x11a   :  { %6279 = vmatprep.subr.bf16.mxu0 %v6747_v21  ;;  %v7559_v3 = vpop.f32.mrf.mxu0  ;;  %v7565_v21 = vcombine.low %v5459_v34, %v7513_v13  ;;  %v3978_v22 = vrot.slane %v3976_v16, 1  ;;  %v5787_v40 = vadd.f32 %v7434_v2, %v7422_v56  ;;  %v5744_v55 = vadd.f32 %v7480_v46, %v7472_v42  ;;  %v7630_v42 = vld [vmem:[%s8367_s0 + $0x138] sm:$0xff] }
 0x11b   :  { %v7519_v24 = vpop.f32.mrf.mxu1  ;;  %6280 = vmatpush3.bf16.msra.mxu0 %v6748_v38  ;;  %v6756_v38 = vld [vmem:[#allocation2 + $0x80] sm:$0xff]   ;;  %v5790_v56 = vadd.f32 %v7450_v14, %v7441_v8  ;;  %v5747_v14 = vadd.f32 %v7502_v48, %v7490_v57  ;;  %v5793_v46 = vadd.f32 %v7469_v15, %v7461_v31  ;;  %v5796_v57 = vadd.f32 %v7485_v51, %v7476_v25  ;;  %v6770_v15 = vld [vmem:[#allocation2 + $0x1f0] sm:$0xff]  }
 0x11c   :  { %6326 = vmatpush3.bf16.msra.mxu1 %v6750_v6  ;;  %v3297_v6 = vsel %vm172_vm0, %v3292_v32, %v3296_v50  ;;  %6281 = vmatprep.subr.bf16.mxu0 %v6751_v27  ;;  %v3964_v32 = vshll.u32 %v7565_v21, 16  ;;  %v3962_v47 = vshrl.u32 %v7565_v21, 16 }
 0x11d   :  { %v7538_v0 = vpop.f32.mrf.mxu1  ;;  %6327 = vmatprep.subr.bf16.mxu1 %v6753_v36  ;;  %v7567_v36 = vpop.f32.mrf.mxu0 }
 0x11e   :  { %3475 = vmatmul.mubr.bf16.gmra.mxu0 %v3297_v6  ;;  %v3966_v2 = vrot.slane %v3964_v32, 1  ;;  %v7652_v32 = vadd.f32 %v5790_v56, %v5744_v55  ;;  %v5753_v55 = vadd.f32 %v7548_v54, %v7545_v45  ;;  %v7679_v56 = vadd.f32 %v7538_v0, %v7519_v24  ;;  %v7691_v54 = vpop.permute.xlu0 %1265  ;;  %v6776_v24 = vld [vmem:[#allocation2 + $0x1a8] sm:$0xff]  }
 0x11f   :  { %v7550_v59 = vpop.f32.mrf.mxu1  ;;  %3718 = vmatmul.mubr.bf16.gmra.mxu1 %v3552_v44  ;;  %v7581_v34 = vpop.f32.mrf.mxu0  ;;  %v3306_v44 = vshrl.u32 %v7498_v62, 16  ;;  %3482 = vmatprep.mubr.bf16.mxu0 %v3311_v10  ;;  %v5735_v10 = vadd.f32 %v7428_v60, %v7419_v52 }
 0x120   :  { %3725 = vmatprep.mubr.bf16.mxu1 %v3553_v18  ;;  %6328 = vmatpush3.bf16.msra.mxu1 %v6754_v30  ;;  %v3974_v18 = vshrl.u32 %v7536_v35, 16  ;;  %v7574_v30 = vld [vmem:[%s8367_s0 + $0x128] sm:$0xff] }
 0x121   :  { %v7561_v4 = vpop.f32.mrf.mxu1  ;;  %6329 = vmatprep.subr.bf16.mxu1 %v6757_v49  ;;  %6282 = vmatpush3.bf16.msra.mxu0 %v6752_v61  ;;  %v7586_v49 = vcombine.low %v7528_v37, %v7533_v41  ;;  %v7591_v27 = vpop.f32.mrf.mxu0  ;;  %v3983_v61 = vrot.slane %v3981_v26, 1  ;;  %v7599_v6 = vcombine.high %v7574_v30, %v7579_v7  ;;  %v7610_v62 = vcombine.low %v7574_v30, %v7579_v7  ;;  %v7640_v26 = vld [vmem:[%s8367_s0 + $0x140] sm:$0xff] }
 0x122   :  { %6283 = vmatprep.subr.bf16.mxu0 %v6755_v19  ;;  %v5741_v19 = vadd.f32 %v7467_v28, %v7453_v20  ;;  %v3308_v52 = vor.u32 %v3306_v44, %v3296_v50  ;;  %v6766_v20 = vld [vmem:[#allocation2 + $0x1b8] sm:$0xff]   ;;  %v3993_v28 = vshrl.u32 %v7554_v39, 16  ;;  %v572_v8 = vadd.f32 %v5781_v53, %v5735_v10 }
 0x123   :  { %v5806_v58 = vpop.f32.mrf.mxu1  ;;  %v3997_v50 = vshll.u32 %v7599_v6, 16  ;;  %v3967_v53 = vor.u32 %v3966_v2, %v3962_v47  ;;  %v7681_v2 = vld [vmem:[#allocation4] ss:$0 sm:$0xff]  ;;  %v4009_v0 = vshrl.u32 %v7599_v6, 16 }
 0x124   :  { %6330 = vmatpush3.bf16.msra.mxu1 %v6758_v1  ;;  %v3979_v1 = vor.u32 %v3978_v22, %v3974_v18  ;;  %v5760_v58 = vpop.f32.mrf.mxu0  ;;  %v3989_v22 = vshll.u32 %v7610_v62, 16  ;;  %v7644_v44 = vadd.f32 %v5787_v40, %v5741_v19  ;;  %v3995_v25 = vor.u32 %v3993_v28, %v3983_v61 }
 0x125   :  { %v5807_v29 = vpop.f32.mrf.mxu1  ;;  %6407 = vmatprep.subr.bf16.mxu1 %v6765_v63  ;;  %v6763_v63 = vld [vmem:[#allocation2 + $0x178] sm:$0xff]   ;;  %6284 = vmatpush3.bf16.msra.mxu0 %v6756_v38  ;;  %v5750_v38 = vadd.f32 %v7522_v33, %v7515_v17  ;;  %v3999_v51 = vrot.slane %v3997_v50, 1  ;;  %v3985_v17 = vshrl.u32 %v7586_v49, 16  ;;  %v7664_v33 = vcombine.high %v7630_v42, %v7640_v26 }
 0x126   :  { %v5761_v18 = vpop.f32.mrf.mxu0  ;;  %6361 = vmatprep.subr.bf16.mxu0 %v6763_v63  ;;  %3483 = vmatmul.mubr.bf16.gmra.mxu0 %v3308_v52  ;;  %v7656_v63 = vcombine.low %v7513_v13, %v7528_v37  ;;  %v7666_v40 = vadd.f32 %v5793_v46, %v5747_v14  ;;  %v6764_v58 = vld [vmem:[#allocation2 + $0x138] sm:$0xff]   ;;  %v7671_v52 = vrot.slane %v3989_v22, 1  ;;  %v6768_v22 = vld [vmem:[#allocation2 + $0x130] sm:$0xff]  }
 0x127   :  { %v7593_v16 = vpop.f32.mrf.mxu1  ;;  %3726 = vmatmul.mubr.bf16.gmra.mxu1 %v3551_v12  ;;  %v5738_v12 = vadd.f32 %v7445_v11, %v7437_v5  ;;  %v3984_v11 = vsel %vm172_vm0, %v3979_v1, %v3983_v61  ;;  %v6775_v61 = vld [vmem:[#allocation2 + $0x1e8] sm:$0xff]   ;;  %v7673_v47 = vadd.f32 %v5796_v57, %v5750_v38  ;;  %v4000_v50 = vsel %vm172_vm0, %v3995_v25, %v3999_v51  ;;  %v5468_v38 = vld [vmem:[%s8367_s0 + $0x150] sm:$0x11] }
 0x128   :  { %4357 = vmatprep.mubr.bf16.mxu1 %v7536_v35  ;;  %v3969_v35 = vshll.u32 %v7586_v49, 16  ;;  %v5825_v48 = vpop.f32.mrf.mxu0  ;;  %4177 = vmatprep.mubr.bf16.mxu0 %v3984_v11  ;;  %v4013_v46 = vshll.u32 %v7664_v33, 16  ;;  %v7712_v57 = vcombine.low %v7533_v41, %v7574_v30 }
 0x129   :  { %v5872_v60 = vpop.f32.mrf.mxu1  ;;  %v7642_v29 = vadd.f32 %v5784_v23, %v5738_v12  ;;  %v5799_v12 = vadd.f32 %v7504_v9, %v7500_v43 }
 0x12a   :  { %v3971_v1 = vrot.slane %v3969_v35, 1  ;;  %v5826_v10 = vpop.f32.mrf.mxu0  ;;  %v6767_v35 = vld [vmem:[#allocation2 + $0x170] sm:$0xff]   ;;  %v5873_v11 = vadd.f32 %v5872_v60, %v7593_v16  ;;  %v7705_v16 = vld [vmem:[%s8367_s0 + $0x148] sm:$0xff] }
 0x12b   :  { %v7622_v5 = vpop.f32.mrf.mxu1  ;;  %v5827_v19 = vadd.f32 %v5826_v10, %v5825_v48  ;;  %v7716_v48 = vcombine.high %v7533_v41, %v7574_v30 }
 0x12c   :  { %v5828_v43 = vpop.f32.mrf.mxu0  ;;  %v3972_v45 = vsel %vm172_vm0, %v3967_v53, %v3971_v1  ;;  %v3987_v14 = vor.u32 %v3985_v17, %v3971_v1  ;;  %v7722_v53 = vadd.f32 %v7567_v36, %v7559_v3  ;;  %v7726_v1 = vadd.f32 %v7561_v4, %v7550_v59  ;;  %v6773_v3 = vld [vmem:[#allocation2 + $0x168] sm:$0xff]  }
 0x12d   :  { %v7650_v31 = vpop.f32.mrf.mxu1  ;;  %v948_v18 = vadd.f32 %v5827_v19, %v572_v8  ;;  %v4001_v17 = vshrl.u32 %v7610_v62, 16  ;;  %v6781_v19 = vld [vmem:[#allocation2 + $0x1e0] sm:$0xff]   ;;  %v4011_v4 = vor.u32 %v4009_v0, %v3999_v51 }
 0x12e   :  { %4178 = vmatmul.mubr.bf16.vlgmr.msra.gmra.mxu0 %v3972_v45  ;;  %v6785_v45 = vld [vmem:[#allocation2 + $0x1d8] sm:$0xff]  }
 0x12f   :  { %v7658_v23 = vpop.f32.mrf.mxu1  ;;  %4358 = vmatmul.mubr.bf16.vlgmr.msra.gmra.mxu1 %v7565_v21  ;;  %v6772_v21 = vld [vmem:[#allocation2 + $0x1b0] sm:$0xff]   ;;  %v1193_v60 = vadd.f32 %v5873_v11, %v948_v18  ;;  %6362 = vmatpush3.bf16.msra.mxu0 %v6764_v58  ;;  %v7740_v18 = vpop.permute.xlu0 %1270  ;;  %v3992_v58 = vsel %vm172_vm0, %v3987_v14, %v7671_v52  ;;  %v4003_v11 = vor.u32 %v4001_v17, %v7671_v52  ;;  %v6774_v14 = vld [vmem:[#allocation2 + $0x128] sm:$0xff]  }
 0x130   :  { %6408 = vmatpush3.bf16.msra.mxu1 %v6766_v20  ;;  %4365 = vmatprep.mubr.bf16.mxu1 %v7554_v39  ;;  %v7687_v39 = vcombine.high %v7513_v13, %v7528_v37  ;;  %v5829_v20 = vpop.f32.mrf.mxu0  ;;  %v7700_v13 = vcombine.low %v7630_v42, %v7640_v26 }
 0x131   :  { %v7683_v9 = vpop.f32.mrf.mxu1  ;;  %6409 = vmatprep.subr.bf16.mxu1 %v6770_v15  ;;  %v5830_v8 = vadd.f32 %v5829_v20, %v5828_v43  ;;  %v7718_v15 = vadd.f32 %v5799_v12, %v5753_v55  ;;  %v1208_v41 = vadd.f32 %v7681_v2, %v1193_v60  ;;  %v5876_v12 = vadd.f32 %v7650_v31, %v7622_v5  ;;  %v6782_v5 = vld [vmem:[#allocation2 + $0x1a0] sm:$0xff]  }
 0x132   :  { %v5831_v10 = vpop.f32.mrf.mxu0  ;;  %4185 = vmatprep.mubr.bf16.mxu0 %v4000_v50  ;;  %6363 = vmatprep.subr.bf16.mxu0 %v6767_v35  ;;  %v7738_v55 = vcombine.high %v7705_v16, %v5468_v38  ;;  %v7745_v31 = vcombine.high %v7579_v7, %v7630_v42  ;;  %v5879_v50 = vadd.f32 %v7683_v9, %v7658_v23  ;;  %v7766_v23 = vpop.permute.xlu1 %1275 }
 0x133   :  { %v7694_v28 = vpop.f32.mrf.mxu1  ;;  %v949_v30 = vadd.f32 %v5830_v8, %v7642_v29  ;;  %6364 = vmatpush3.bf16.msra.mxu0 %v6768_v22  ;;  %v6778_v8 = vld [vmem:[#allocation2 + $0x160] sm:$0xff]  }
 0x134   :  { %6410 = vmatpush3.bf16.msra.mxu1 %v6772_v21  ;;  %v5832_v36 = vpop.f32.mrf.mxu0  ;;  %v4015_v21 = vrot.slane %v4013_v46, 1  ;;  %6365 = vmatprep.subr.bf16.mxu0 %v6773_v3  ;;  %v6787_v3 = vld [vmem:[#allocation2 + $0x198] sm:$0xff]  }
 0x135   :  { %v5881_v25 = vpop.f32.mrf.mxu1  ;;  %6411 = vmatprep.subr.bf16.mxu1 %v6775_v61  ;;  %v4005_v61 = vshll.u32 %v7700_v13, 16  ;;  %v1194_v29 = vadd.f32 %v5876_v12, %v949_v30  ;;  %v5833_v43 = vadd.f32 %v5832_v36, %v5831_v10  ;;  %v4025_v10 = vshrl.u32 %v7664_v33, 16 }
 0x136   :  { %v5834_v51 = vpop.f32.mrf.mxu0  ;;  %v4016_v60 = vsel %vm172_vm0, %v4011_v4, %v4015_v21  ;;  %v5882_v22 = vadd.f32 %v5881_v25, %v7694_v28  ;;  %4186 = vmatmul.mubr.bf16.gmra.mxu0 %v3992_v58  ;;  %v4017_v36 = vshrl.u32 %v7700_v13, 16  ;;  %v6780_v25 = vld [vmem:[#allocation2 + $0x120] sm:$0xff]  }
 0x137   :  { %v7733_v59 = vpop.f32.mrf.mxu1  ;;  %4366 = vmatmul.mubr.bf16.gmra.mxu1 %v7586_v49  ;;  %v1308_v49 = vmul.f32 %v7691_v54, %v1208_v41  ;;  %v1209_v0 = vadd.f32 %v7681_v2, %v1194_v29  ;;  %v950_v20 = vadd.f32 %v5833_v43, %v7644_v44  ;;  %6366 = vmatpush3.bf16.msra.mxu0 %v6774_v14 }
 0x138   :  { %6412 = vmatpush3.bf16.msra.mxu1 %v6776_v24  ;;  %4373 = vmatprep.mubr.bf16.mxu1 %v7599_v6  ;;  %v7752_v24 = vcombine.low %v7705_v16, %v5468_v38  ;;  %v5759_v6 = vadd.f32 %v7591_v27, %v7581_v34  ;;  %v5835_v46 = vpop.f32.mrf.mxu0  ;;  %v4007_v38 = vrot.slane %v4005_v61, 1  ;;  %v4029_v34 = vshll.u32 %v7738_v55, 16 }
 0x139   :  { %v5884_v35 = vpop.f32.mrf.mxu1  ;;  %6413 = vmatprep.subr.bf16.mxu1 %v6781_v19  ;;  %v5625_v27 = vpack.c.bf16 %v1209_v0, %v1208_v41  ;;  %v1195_v17 = vadd.f32 %v5879_v50, %v950_v20  ;;  %v5836_v44 = vadd.f32 %v5835_v46, %v5834_v51  ;;  %v1309_v19 = vmul.f32 %v7740_v18, %v1209_v0 }
 0x13a   :  { %v1332_v9 = vmul.f32 %v1308_v49, %v1208_v41  ;;  %v5837_v30 = vpop.f32.mrf.mxu0  ;;  %v4021_v4 = vshll.u32 %v7752_v24, 16  ;;  %v7780_v43 = vadd.f32 %v7679_v56, %v7722_v53  ;;  %4193 = vmatprep.mubr.bf16.mxu0 %v4016_v60  ;;  %6367 = vmatprep.subr.bf16.mxu0 %v6778_v8  ;;  %v4027_v20 = vor.u32 %v4025_v10, %v4015_v21  ;;  %v6792_v8 = vld [vmem:[#allocation2 + $0x190] sm:$0xff]  }
 0x13b   :  { %v7760_v52 = vpop.f32.mrf.mxu1  ;;  %5626 = vst [vmem:[%s8371_s4] sm:$0xff] %v5625_v27   ;;  %v1210_v61 = vadd.f32 %v7681_v2, %v1195_v17  ;;  %v951_v41 = vadd.f32 %v5836_v44, %v7652_v32  ;;  %v1317_v29 = vadd.f32 %v1309_v19, %v1308_v49  ;;  %v1333_v28 = vmul.f32 %v1309_v19, %v1209_v0  ;;  %v6791_v32 = vld [vmem:[#allocation2 + $0x1d0] sm:$0xff]  }
 0x13c   :  { %6414 = vmatpush3.bf16.msra.mxu1 %v6782_v5  ;;  %v7783_v5 = vadd.f32 %v7726_v1, %v5759_v6  ;;  %v5838_v51 = vpop.f32.mrf.mxu0  ;;  %v7787_v50 = vrot.slane %v4029_v34, 1  ;;  %v5885_v56 = vadd.f32 %v5884_v35, %v7733_v59  ;;  %v4008_v1 = vsel %vm172_vm0, %v4003_v11, %v4007_v38  ;;  %6368 = vmatpush3.bf16.msra.mxu0 %v6780_v25  ;;  %v6784_v59 = vld [vmem:[#allocation2 + $0x118] sm:$0xff]   ;;  %v7803_v35 = vld [vmem:[%s8367_s0 + $0x110] sm:$0xee] }
 0x13d   :  { %v7769_v12 = vpop.f32.mrf.mxu1  ;;  %6415 = vmatprep.subr.bf16.mxu1 %v6785_v45  ;;  %v6783_v45 = vld [vmem:[#allocation2 + $0x158] sm:$0xff]   ;;  %v1196_v49 = vadd.f32 %v5882_v22, %v951_v41  ;;  %v1341_v0 = vadd.f32 %v1333_v28, %v1332_v9  ;;  %v5839_v14 = vadd.f32 %v5838_v51, %v5837_v30  ;;  %v1310_v46 = vmul.f32 %v7766_v23, %v1210_v61  ;;  %v6789_v44 = vld [vmem:[#allocation2 + $0x150] sm:$0xff]   ;;  %v6797_v9 = vld [vmem:[#allocation2 + $0x1c8] sm:$0xff]   ;;  %v7813_v41 = vpop.permute.xlu0 %1285 }
 0x13e   :  { %v5840_v53 = vpop.f32.mrf.mxu0  ;;  %v4019_v21 = vor.u32 %v4017_v36, %v4007_v38  ;;  %v7794_v60 = vrot.slane %v4021_v4, 1  ;;  %6369 = vmatprep.subr.bf16.mxu0 %v6783_v45  ;;  %v4032_v38 = vsel %vm172_vm0, %v4027_v20, %v7787_v50  ;;  %v5496_v19 = vcombine.high %v7705_v16, %v7705_v16  ;;  %4194 = vmatmul.mubr.bf16.gmra.mxu0 %v4008_v1  ;;  %v6798_v51 = vld [vmem:[#allocation2 + $0x188] sm:$0xff]  }
 0x13f   :  { %v7785_v58 = vpop.f32.mrf.mxu1  ;;  %4374 = vmatmul.mubr.bf16.gmra.mxu1 %v7610_v62  ;;  %v1211_v10 = vadd.f32 %v7681_v2, %v1196_v49  ;;  %v952_v34 = vadd.f32 %v5839_v14, %v7666_v40  ;;  %v1318_v27 = vadd.f32 %v1317_v29, %v1310_v46  ;;  %v1334_v17 = vmul.f32 %v1310_v46, %v1210_v61  ;;  %v7798_v62 = vpop.permute.xlu1 %1280 }
 0x140   :  { %4381 = vmatprep.mubr.bf16.mxu1 %v7664_v33  ;;  %6416 = vmatpush3.bf16.msra.mxu1 %v6787_v3  ;;  %v5841_v33 = vpop.f32.mrf.mxu0  ;;  %v4036_v40 = vshrl.u32 %v7738_v55, 16  ;;  %v4494_v22 = vshll.u32 %v7687_v39, 16  ;;  %v4024_v55 = vsel %vm172_vm0, %v4019_v21, %v7794_v60  ;;  %v4482_v45 = vshll.u32 %v7656_v63, 16  ;;  %v6793_v21 = vld [vmem:[#allocation2 + $0x148] sm:$0xff]  }
 0x141   :  { %v5890_v6 = vpop.f32.mrf.mxu1  ;;  %6417 = vmatprep.subr.bf16.mxu1 %v6791_v32  ;;  %v5630_v30 = vpack.c.bf16 %v1211_v10, %v1210_v61  ;;  %v1197_v3 = vadd.f32 %v5885_v56, %v952_v34  ;;  %v1342_v36 = vadd.f32 %v1341_v0, %v1334_v17  ;;  %v5842_v4 = vadd.f32 %v5841_v33, %v5840_v53  ;;  %v6790_v0 = vld [vmem:[#allocation2 + $0x110] sm:$0xff]   ;;  %v6801_v34 = vld [vmem:[#allocation2 + $0x1c0] sm:$0xff]  }
 0x142   :  { %v1311_v29 = vmul.f32 %v7798_v62, %v1211_v10  ;;  %v5843_v28 = vpop.f32.mrf.mxu0  ;;  %v5551_v61 = vcombine.high %v7803_v35, %v7528_v37  ;;  %v5888_v49 = vadd.f32 %v7769_v12, %v7760_v52  ;;  %6370 = vmatpush3.bf16.msra.mxu0 %v6784_v59  ;;  %4201 = vmatprep.mubr.bf16.mxu0 %v4032_v38  ;;  %v4492_v14 = vshrl.u32 %v7687_v39, 16  ;;  %v6802_v38 = vld [vmem:[#allocation2 + $0x180] sm:$0xff]  }
 0x143   :  { %v7805_v11 = vpop.f32.mrf.mxu1  ;;  %5702 = vst [vmem:[%s8371_s4 + $0x8] sm:$0xff] %v5630_v30   ;;  %v1212_v20 = vadd.f32 %v7681_v2, %v1197_v3  ;;  %v953_v32 = vadd.f32 %v5842_v4, %v7673_v47  ;;  %6371 = vmatprep.subr.bf16.mxu0 %v6789_v44  ;;  %v4496_v47 = vrot.slane %v4494_v22, 1  ;;  %v4038_v39 = vor.u32 %v4036_v40, %v7787_v50  ;;  %v6795_v50 = vld [vmem:[#allocation2 + $0x108] sm:$0xff]  }
 0x144   :  { %6418 = vmatpush3.bf16.msra.mxu1 %v6792_v8  ;;  %v1319_v46 = vadd.f32 %v1318_v27, %v1311_v29  ;;  %v1335_v56 = vmul.f32 %v1311_v29, %v1211_v10  ;;  %v5844_v53 = vpop.f32.mrf.mxu0  ;;  %v4033_v8 = vshrl.u32 %v7752_v24, 16  ;;  %v5891_v10 = vadd.f32 %v5890_v6, %v7785_v58 }
 0x145   :  { %v7816_v25 = vpop.f32.mrf.mxu1  ;;  %6419 = vmatprep.subr.bf16.mxu1 %v6797_v9  ;;  %v1198_v17 = vadd.f32 %v5888_v49, %v953_v32  ;;  %v5845_v33 = vadd.f32 %v5844_v53, %v5843_v28  ;;  %v1312_v52 = vmul.f32 %v7813_v41, %v1212_v20  ;;  %v4785_v24 = vrot.slane %v5551_v61, 1  ;;  %v7847_v32 = vpop.permute.xlu0 %1295 }
 0x146   :  { %v1343_v12 = vadd.f32 %v1342_v36, %v1335_v56  ;;  %v5846_v27 = vpop.f32.mrf.mxu0  ;;  %v4786_v44 = vrot.slane %v7716_v48, 1  ;;  %6372 = vmatpush3.bf16.msra.mxu0 %v6790_v0  ;;  %v4035_v6 = vor.u32 %v4033_v8, %v7794_v60  ;;  %v6799_v36 = vld [vmem:[#allocation2 + $0x140] sm:$0xff]   ;;  %v4497_v4 = vor.u32 %v4496_v47, %v4492_v14 }
 0x147   :  { %v7831_v1 = vpop.f32.mrf.mxu1  ;;  %4382 = vmatmul.mubr.bf16.gmra.mxu1 %v7700_v13  ;;  %v1213_v9 = vadd.f32 %v7681_v2, %v1198_v17  ;;  %v954_v22 = vadd.f32 %v5845_v33, %v7718_v15  ;;  %v1320_v30 = vadd.f32 %v1319_v46, %v1312_v52  ;;  %v1336_v3 = vmul.f32 %v1312_v52, %v1212_v20  ;;  %v7841_v13 = vpop.permute.xlu1 %1290 }
 0x148   :  { %4389 = vmatprep.mubr.bf16.mxu1 %v5496_v19  ;;  %6420 = vmatpush3.bf16.msra.mxu1 %v6798_v51  ;;  %v5847_v40 = vpop.f32.mrf.mxu0  ;;  %v5495_v19 = vcombine.low %v7705_v16, %v7705_v16  ;;  %v4499_v29 = vshll.u32 %v7716_v48, 16  ;;  %v4480_v60 = vshrl.u32 %v7656_v63, 16  ;;  %v5550_v56 = vcombine.low %v7803_v35, %v7528_v37 }
 0x149   :  { %v5896_v59 = vpop.f32.mrf.mxu1  ;;  %6373 = vmatprep.subr.bf16.mxu0 %v6793_v21  ;;  %6421 = vmatprep.subr.bf16.mxu1 %v6801_v34  ;;  %v5635_v15 = vpack.c.bf16 %v1213_v9, %v1212_v20  ;;  %v1199_v28 = vadd.f32 %v5891_v10, %v954_v22  ;;  %v1344_v51 = vadd.f32 %v1343_v12, %v1336_v3  ;;  %v6800_v21 = vld [vmem:[#allocation2 + $0x100] sm:$0xff]   ;;  %v4484_v37 = vrot.slane %v4482_v45, 1 }
 0x14a   :  { %v5848_v61 = vadd.f32 %v5847_v40, %v5846_v27  ;;  %v1313_v49 = vmul.f32 %v7841_v13, %v1213_v9  ;;  %v5849_v0 = vpop.f32.mrf.mxu0  ;;  %4202 = vmatmul.mubr.bf16.gmra.mxu0 %v4024_v55  ;;  %v4787_v20 = vsel %vm996_vm1, %v4785_v24, %v4786_v44  ;;  %v5894_v55 = vadd.f32 %v7816_v25, %v7805_v11 }
 0x14b   :  { %v5898_v58 = vpop.f32.mrf.mxu1  ;;  %5703 = vst [vmem:[%s8371_s4 + $0x10] sm:$0xff] %v5635_v15   ;;  %v1214_v14 = vadd.f32 %v7681_v2, %v1199_v28  ;;  %4209 = vmatprep.mubr.bf16.mxu0 %v4038_v39  ;;  %6374 = vmatpush3.bf16.msra.mxu0 %v6795_v50  ;;  %v4501_v17 = vrot.slane %v4499_v29, 1  ;;  %v4487_v33 = vshll.u32 %v7712_v57, 16  ;;  %v7869_v11 = vpop.permute.xlu1 %1300  ;;  %v4783_v25 = vrot.slane %v7712_v57, 1 }
 0x14c   :  { %6422 = vmatpush3.bf16.msra.mxu1 %v6802_v38  ;;  %v955_v53 = vadd.f32 %v5848_v61, %v7780_v43  ;;  %v1321_v35 = vadd.f32 %v1320_v30, %v1313_v49  ;;  %v1337_v8 = vmul.f32 %v1313_v49, %v1213_v9  ;;  %v5850_v34 = vpop.f32.mrf.mxu0  ;;  %6375 = vmatprep.subr.bf16.mxu0 %v6799_v36  ;;  %v4782_v27 = vrot.slane %v5550_v56, 1  ;;  %v7884_v15 = vpop.permute.xlu0 %1305 }
 0x14d   :  { %v5899_v46 = vpop.f32.mrf.mxu1  ;;  %v5851_v43 = vadd.f32 %v5850_v34, %v5849_v0  ;;  %v1314_v12 = vmul.f32 %v7847_v32, %v1214_v14  ;;  %8379 = vst [vmem:[#allocation8_spill] sm:$0xff] %v7869_v11  ;;  %v5897_v45 = vadd.f32 %v5896_v59, %v7831_v1  ;;  %v4790_v38 = vrot.slane %v7745_v31, 1  ;;  %8380 = vst [vmem:[#allocation9_spill] sm:$0xff] %v7884_v15 }
 0x14e   :  { %v1200_v52 = vadd.f32 %v5894_v55, %v955_v53  ;;  %v1345_v63 = vadd.f32 %v1344_v51, %v1337_v8  ;;  %v5852_v39 = vpop.f32.mrf.mxu0  ;;  %v4502_v40 = vsel %vm172_vm0, %v4497_v4, %v4501_v17  ;;  %v4511_v1 = vshrl.u32 %v7716_v48, 16 }
 0x14f   :  { %v7865_v47 = vpop.f32.mrf.mxu1  ;;  %4390 = vmatmul.mubr.bf16.gmra.mxu1 %v5495_v19  ;;  %v956_v9 = vadd.f32 %v5851_v43, %v7783_v5  ;;  %v1338_v22 = vmul.f32 %v1314_v12, %v1214_v14  ;;  %v1322_v30 = vadd.f32 %v1321_v35, %v1314_v12  ;;  %6376 = vmatpush3.bf16.msra.mxu0 %v6800_v21  ;;  %v4515_v59 = vshll.u32 %v7745_v31, 16 }
 0x150   :  { %4938 = vmatprep.mubr.bf16.mxu1 %v4787_v20  ;;  %v1215_v24 = vadd.f32 %v7681_v2, %v1200_v52  ;;  %v5853_v3 = vpop.f32.mrf.mxu0  ;;  %v4485_v51 = vor.u32 %v4484_v37, %v4480_v60  ;;  %v4489_v61 = vrot.slane %v4487_v33, 1  ;;  %v4784_v4 = vsel %vm996_vm1, %v4782_v27, %v4783_v25 }
 0x151   :  { %v7873_v10 = vpop.f32.mrf.mxu1  ;;  %v1201_v19 = vadd.f32 %v5897_v45, %v956_v9  ;;  %v1346_v29 = vadd.f32 %v1345_v63, %v1338_v22  ;;  %v7895_v49 = vcombine.low %v7579_v7, %v7630_v42  ;;  %v4791_v60 = vsel %vm996_vm1, %v4786_v44, %v4790_v38 }
 0x152   :  { %v5640_v58 = vpack.c.bf16 %v1215_v24, %v1214_v14  ;;  %v1315_v36 = vmul.f32 %v7869_v11, %v1215_v24  ;;  %v7886_v5 = vpop.f32.mrf.mxu0  ;;  %4210 = vmatmul.mubr.bf16.gmra.mxu0 %v4035_v6  ;;  %v4513_v7 = vor.u32 %v4511_v1, %v4501_v17  ;;  %v4517_v42 = vrot.slane %v4515_v59, 1 }
 0x153   :  { %v7878_v50 = vpop.f32.mrf.mxu1  ;;  %v1216_v0 = vadd.f32 %v7681_v2, %v1201_v19  ;;  %4695 = vmatprep.mubr.bf16.mxu0 %v4502_v40  ;;  %v5530_v14 = vcombine.high %v7640_v26, %v7705_v16  ;;  %v4490_v48 = vsel %vm172_vm0, %v4485_v51, %v4489_v61  ;;  %v4503_v44 = vshrl.u32 %v7712_v57, 16  ;;  %v6813_v57 = vld [vmem:[%s8367_s0 + $0x154] ss:$8 sps:$4 sm:$0x1f]  }
 0x154   :  { %5704 = vst [vmem:[%s8371_s4 + $0x18] sm:$0xff] %v5640_v58   ;;  %v1323_v46 = vadd.f32 %v1322_v30, %v1315_v36  ;;  %v1339_v6 = vmul.f32 %v1315_v36, %v1215_v24  ;;  %v7906_v56 = vpop.f32.mrf.mxu0  ;;  %v4788_v8 = vrot.slane %v7895_v49, 1  ;;  %v4507_v33 = vshll.u32 %v7895_v49, 16 }
 0x155   :  { %v7888_v28 = vpop.f32.mrf.mxu1  ;;  %v5594_v53 = vpack.c.bf16 %v1216_v0, %v1216_v0  ;;  %v1316_v21 = vmul.f32 %v7884_v15, %v1216_v0  ;;  %v4794_v52 = vrot.slane %v5530_v14, 1  ;;  %v4518_v63 = vsel %vm172_vm0, %v4513_v7, %v4517_v42 }
 0x156   :  { %v1347_v55 = vadd.f32 %v1346_v29, %v1339_v6  ;;  %v7913_v37 = vpop.f32.mrf.mxu0  ;;  %v4527_v45 = vshrl.u32 %v7745_v31, 16  ;;  %v4531_v39 = vshll.u32 %v5530_v14, 16  ;;  %v4789_v22 = vsel %vm996_vm1, %v4783_v25, %v4788_v8 }
 0x157   :  { %v7908_v20 = vpop.f32.mrf.mxu1  ;;  %4939 = vmatmul.mubr.bf16.vlgmr.msra.gmra.mxu1 %v4784_v4  ;;  %1262 = vst [vmem:[%s8371_s4 + $0x20] sm:$0xf] %v5594_v53  ;;  %v7923_v34 = vadd.f32 %v1323_v46, %v1316_v21  ;;  %v1340_v17 = vmul.f32 %v1316_v21, %v1216_v0  ;;  %v4505_v30 = vor.u32 %v4503_v44, %v4489_v61  ;;  %v4509_v3 = vrot.slane %v4507_v33, 1  ;;  %v6815_v21 = vld [vmem:[%s8367_s0 + $0x150] ss:$8 sps:$4 sm:$0x1f]  }
 0x158   :  { %4946 = vmatprep.mubr.bf16.mxu1 %v4791_v60  ;;  %v7926_v43 = vpop.f32.mrf.mxu0  ;;  %v4795_v40 = vsel %vm996_vm1, %v4790_v38, %v4794_v52  ;;  %v5529_v1 = vcombine.low %v7640_v26, %v7705_v16  ;;  %v4529_v19 = vor.u32 %v4527_v45, %v4517_v42  ;;  %v4533_v36 = vrot.slane %v4531_v39, 1 }
 0x159   :  { %v7916_v35 = vpop.f32.mrf.mxu1  ;;  %v7932_v27 = vadd.f32 %v1347_v55, %v1340_v17  ;;  %v4510_v38 = vsel %vm172_vm0, %v4505_v30, %v4509_v3  ;;  %v4519_v26 = vshrl.u32 %v7895_v49, 16  ;;  %v4798_v51 = vrot.slane %v6813_v57, 1 }
 0x15a   :  { %v7934_v24 = vpop.f32.mrf.mxu0  ;;  %4696 = vmatmul.mubr.bf16.vlgmr.msra.gmra.mxu0 %v4490_v48  ;;  %v4792_v31 = vrot.slane %v5529_v1, 1  ;;  %v4523_v16 = vshll.u32 %v5529_v1, 16  ;;  %v4534_v0 = vsel %vm172_vm0, %v4529_v19, %v4533_v36  ;;  %v4543_v46 = vshrl.u32 %v5530_v14, 16 }
 0x15b   :  { %v7928_v12 = vpop.f32.mrf.mxu1  ;;  %8381 = vst [vmem:[#allocation10_spill] sm:$0xff] %v7932_v27  ;;  %4703 = vmatprep.mubr.bf16.mxu0 %v4518_v63  ;;  %v4547_v6 = vshll.u32 %v6813_v57, 16  ;;  %v4521_v53 = vor.u32 %v4519_v26, %v4509_v3  ;;  %v4799_v55 = vsel %vm996_vm1, %v4794_v52, %v4798_v51  ;;  %v4535_v52 = vshrl.u32 %v5529_v1, 16 }
 0x15c   :  { %v7946_v59 = vpop.f32.mrf.mxu0  ;;  %v4793_v42 = vsel %vm996_vm1, %v4788_v8, %v4792_v31  ;;  %v4525_v49 = vrot.slane %v4523_v16, 1  ;;  %v4545_v44 = vor.u32 %v4543_v46, %v4533_v36  ;;  %v4796_v8 = vrot.slane %v6815_v21, 1 }
 0x15d   :  { %v7936_v9 = vpop.f32.mrf.mxu1  ;;  %v4549_v17 = vrot.slane %v4547_v6, 1  ;;  %v4539_v39 = vshll.u32 %v6815_v21, 16  ;;  %v4554_v16 = vshrl.u32 %v6813_v57, 16 }
 0x15e   :  { %v7953_v25 = vpop.f32.mrf.mxu0  ;;  %v4526_v45 = vsel %vm172_vm0, %v4521_v53, %v4525_v49  ;;  %v4797_v36 = vsel %vm996_vm1, %v4792_v31, %v4796_v8 }
 0x15f   :  { %v7948_v58 = vpop.f32.mrf.mxu1  ;;  %4947 = vmatmul.mubr.bf16.gmra.mxu1 %v4789_v22  ;;  %v4550_v3 = vsel %vm172_vm0, %v4545_v44, %v4549_v17  ;;  %v4541_v26 = vrot.slane %v4539_v39, 1  ;;  %v4556_v53 = vor.u32 %v4554_v16, %v4549_v17  ;;  %v5919_v17 = vadd.f32 %v7906_v56, %v7886_v5 }
 0x160   :  { %4954 = vmatprep.mubr.bf16.mxu1 %v4795_v40  ;;  %v7959_v61 = vpop.f32.mrf.mxu0 }
 0x161   :  { %v7955_v29 = vpop.f32.mrf.mxu1 }
 0x162   :  { %v7964_v60 = vpop.f32.mrf.mxu0  ;;  %4704 = vmatmul.mubr.bf16.gmra.mxu0 %v4510_v38  ;;  %v4537_v38 = vor.u32 %v4535_v52, %v4525_v49  ;;  %v4551_v49 = vshrl.u32 %v6815_v21, 16 }
 0x163   :  { %v7961_v4 = vpop.f32.mrf.mxu1  ;;  %4711 = vmatprep.mubr.bf16.mxu0 %v4534_v0 }
 0x164   :  { %v7973_v48 = vpop.f32.mrf.mxu0 }
 0x165   :  { %v7966_v7 = vpop.f32.mrf.mxu1 }
 0x166   :  { %v7977_v33 = vpop.f32.mrf.mxu0 }
 0x167   :  { %v7975_v14 = vpop.f32.mrf.mxu1  ;;  %4955 = vmatmul.mubr.bf16.gmra.mxu1 %v4793_v42  ;;  %v4542_v42 = vsel %vm172_vm0, %v4537_v38, %v4541_v26  ;;  %v5965_v38 = vadd.f32 %v7873_v10, %v7865_v47  ;;  %v5925_v47 = vadd.f32 %v7946_v59, %v7934_v24  ;;  %v5971_v10 = vadd.f32 %v7916_v35, %v7908_v20 }
 0x168   :  { %4962 = vmatprep.mubr.bf16.mxu1 %v4799_v55  ;;  %v7982_v22 = vpop.f32.mrf.mxu0  ;;  %v5928_v20 = vadd.f32 %v7959_v61, %v7953_v25 }
 0x169   :  { %v7979_v63 = vpop.f32.mrf.mxu1 }
 0x16a   :  { %v7987_v40 = vpop.f32.mrf.mxu0  ;;  %4712 = vmatmul.mubr.bf16.gmra.mxu0 %v4526_v45 }
 0x16b   :  { %v7984_v30 = vpop.f32.mrf.mxu1  ;;  %4719 = vmatprep.mubr.bf16.mxu0 %v4550_v3  ;;  %v4553_v3 = vor.u32 %v4551_v49, %v4541_v26  ;;  %v5968_v26 = vadd.f32 %v7888_v28, %v7878_v50 }
 0x16c   :  { %v7992_v0 = vpop.f32.mrf.mxu0 }
 0x16d   :  { %v7989_v19 = vpop.f32.mrf.mxu1 }
 0x16e   :  { %v7996_v46 = vpop.f32.mrf.mxu0 }
 0x16f   :  { %v7994_v1 = vpop.f32.mrf.mxu1  ;;  %4963 = vmatmul.mubr.bf16.gmra.mxu1 %v4797_v36 }
 0x170   :  { %4970 = vmatprep.mubr.bf16.mxu1 %v4798_v51  ;;  %v8001_v55 = vpop.f32.mrf.mxu0 }
 0x171   :  { %v7998_v6 = vpop.f32.mrf.mxu1 }
 0x172   :  { %v8003_v44 = vpop.f32.mrf.mxu0  ;;  %4720 = vmatmul.mubr.bf16.gmra.mxu0 %v4542_v42 }
 0x173   :  { %v5990_v31 = vpop.f32.mrf.mxu1  ;;  %4727 = vmatprep.mubr.bf16.mxu0 %v4556_v53 }
 0x174   :  { %v8005_v45 = vpop.f32.mrf.mxu0  ;;  %v1870_v31 = vadd.f32 %v5965_v38, %v5919_v17 }
 0x175   :  { %v5991_v57 = vpop.f32.mrf.mxu1 }
 0x176   :  { %v5944_v39 = vpop.f32.mrf.mxu0 }
 0x177   :  { %v6055_v52 = vpop.f32.mrf.mxu1  ;;  %4971 = vmatmul.mubr.bf16.gmra.mxu1 %v4796_v8  ;;  %v5922_v8 = vadd.f32 %v7926_v43, %v7913_v37 }
 0x178   :  { %v5945_v51 = vpop.f32.mrf.mxu0 }
 0x179   :  { %v6056_v36 = vpop.f32.mrf.mxu1  ;;  %v1873_v17 = vadd.f32 %v5968_v26, %v5922_v8 }
 0x17a   :  { %v6009_v16 = vpop.f32.mrf.mxu0  ;;  %4728 = vmatmul.mubr.bf16.gmra.mxu0 %v4553_v3  ;;  %v6057_v5 = vadd.f32 %v6056_v36, %v6055_v52  ;;  %v5974_v52 = vadd.f32 %v7936_v9, %v7928_v12 }
 0x17b   :  { %v6058_v15 = vpop.f32.mrf.mxu1 }
 0x17c   :  { %v6010_v21 = vpop.f32.mrf.mxu0 }
 0x17d   :  { %v6059_v42 = vpop.f32.mrf.mxu1  ;;  %v6011_v57 = vadd.f32 %v6010_v21, %v6009_v16  ;;  %v1878_v21 = vadd.f32 %v5971_v10, %v5925_v47  ;;  %v5977_v47 = vadd.f32 %v7955_v29, %v7948_v58 }
 0x17e   :  { %v6012_v49 = vpop.f32.mrf.mxu0  ;;  %v6060_v16 = vadd.f32 %v6059_v42, %v6058_v15 }
 0x17f   :  { %v6061_v53 = vpop.f32.mrf.mxu1  ;;  %v2245_v51 = vadd.f32 %v6011_v57, %v1870_v31 }
 0x180   :  { %v6013_v56 = vpop.f32.mrf.mxu0 }
 0x181   :  { %v6062_v39 = vpop.f32.mrf.mxu1  ;;  %v2488_v38 = vadd.f32 %v6057_v5, %v2245_v51  ;;  %v6014_v27 = vadd.f32 %v6013_v56, %v6012_v49  ;;  %v1881_v49 = vadd.f32 %v5974_v52, %v5928_v20  ;;  %v5931_v5 = vadd.f32 %v7973_v48, %v7964_v60 }
 0x182   :  { %v6015_v37 = vpop.f32.mrf.mxu0  ;;  %v6063_v12 = vadd.f32 %v6062_v39, %v6061_v53 }
 0x183   :  { %v6064_v3 = vpop.f32.mrf.mxu1  ;;  %v2497_v50 = vadd.f32 %v7681_v2, %v2488_v38  ;;  %v2246_v28 = vadd.f32 %v6014_v27, %v1873_v17 }
 0x184   :  { %v6016_v36 = vpop.f32.mrf.mxu0 }
 0x185   :  { %v6065_v43 = vpop.f32.mrf.mxu1  ;;  %v5595_v35 = vpack.c.bf16 %v2497_v50, %v2497_v50  ;;  %v2489_v59 = vadd.f32 %v6060_v16, %v2246_v28  ;;  %v6017_v31 = vadd.f32 %v6016_v36, %v6015_v37  ;;  %v2553_v8 = vmul.f32 %v2497_v50, %v7691_v54 }
 0x186   :  { %v6018_v26 = vpop.f32.mrf.mxu0  ;;  %v6066_v56 = vadd.f32 %v6065_v43, %v6064_v3  ;;  %v5934_v16 = vadd.f32 %v7982_v22, %v7977_v33  ;;  %v1886_v3 = vadd.f32 %v5977_v47, %v5931_v5 }
 0x187   :  { %v6067_v24 = vpop.f32.mrf.mxu1  ;;  %5323 = vst [vmem:[%s8371_s4 + $0x24] sm:$0xf] %v5595_v35  ;;  %v2498_v15 = vadd.f32 %v7681_v2, %v2489_v59  ;;  %v2247_v27 = vadd.f32 %v6017_v31, %v1878_v21  ;;  %v2577_v10 = vmul.f32 %v2553_v8, %v2497_v50  ;;  %v5980_v21 = vadd.f32 %v7966_v7, %v7961_v4 }
 0x188   :  { %v6019_v9 = vpop.f32.mrf.mxu0  ;;  %v5937_v4 = vadd.f32 %v7992_v0, %v7987_v40  ;;  %v5983_v7 = vadd.f32 %v7979_v63, %v7975_v14  ;;  %v5986_v14 = vadd.f32 %v7989_v19, %v7984_v30 }
 0x189   :  { %v6068_v57 = vpop.f32.mrf.mxu1  ;;  %v2554_v25 = vmul.f32 %v2498_v15, %v7740_v18  ;;  %v2490_v61 = vadd.f32 %v6063_v12, %v2247_v27  ;;  %v6020_v51 = vadd.f32 %v6019_v9, %v6018_v26 }
 0x18a   :  { %v6021_v17 = vpop.f32.mrf.mxu0  ;;  %v6069_v31 = vadd.f32 %v6068_v57, %v6067_v24  ;;  %v1894_v40 = vadd.f32 %v5983_v7, %v5937_v4  ;;  %v5940_v57 = vadd.f32 %v8001_v55, %v7996_v46 }
 0x18b   :  { %v6070_v42 = vpop.f32.mrf.mxu1  ;;  %v2562_v37 = vadd.f32 %v2554_v25, %v2553_v8  ;;  %v2578_v28 = vmul.f32 %v2554_v25, %v2498_v15  ;;  %v2499_v53 = vadd.f32 %v7681_v2, %v2490_v61  ;;  %v2248_v39 = vadd.f32 %v6020_v51, %v1881_v49 }
 0x18c   :  { %v6022_v52 = vpop.f32.mrf.mxu0  ;;  %v1897_v55 = vadd.f32 %v5986_v14, %v5940_v57 }
 0x18d   :  { %v6071_v38 = vpop.f32.mrf.mxu1  ;;  %v2586_v48 = vadd.f32 %v2578_v28, %v2577_v10  ;;  %v5645_v36 = vpack.c.bf16 %v2499_v53, %v2498_v15  ;;  %v2555_v58 = vmul.f32 %v2499_v53, %v7766_v23  ;;  %v2491_v29 = vadd.f32 %v6066_v56, %v2248_v39 }
 0x18e   :  { %v6023_v43 = vadd.f32 %v6022_v52, %v6021_v17  ;;  %v6024_v50 = vpop.f32.mrf.mxu0  ;;  %v1889_v15 = vadd.f32 %v5980_v21, %v5934_v16  ;;  %v6072_v10 = vadd.f32 %v6071_v38, %v6070_v42 }
 0x18f   :  { %v6073_v60 = vpop.f32.mrf.mxu1  ;;  %5705 = vst [vmem:[%s8371_s4 + $0x28] sm:$0xff] %v5645_v36   ;;  %v2563_v35 = vadd.f32 %v2562_v37, %v2555_v58  ;;  %v2579_v33 = vmul.f32 %v2555_v58, %v2499_v53  ;;  %v2500_v22 = vadd.f32 %v7681_v2, %v2491_v29  ;;  %v5943_v29 = vadd.f32 %v8005_v45, %v8003_v44 }
 0x190   :  { %v2249_v59 = vadd.f32 %v6023_v43, %v1886_v3  ;;  %v6025_v8 = vpop.f32.mrf.mxu0 }
 0x191   :  { %v6074_v20 = vpop.f32.mrf.mxu1  ;;  %v2587_v27 = vadd.f32 %v2586_v48, %v2579_v33  ;;  %v2556_v12 = vmul.f32 %v2500_v22, %v7798_v62  ;;  %v6026_v9 = vadd.f32 %v6025_v8, %v6024_v50  ;;  %v8064_v33 = vld [vmem:[#allocation4] ss:$0 sm:$0xff] }
 0x192   :  { %v2492_v49 = vadd.f32 %v6069_v31, %v2249_v59  ;;  %v6027_v25 = vpop.f32.mrf.mxu0  ;;  %v6075_v21 = vadd.f32 %v6074_v20, %v6073_v60 }
 0x193   :  { %v6076_v26 = vpop.f32.mrf.mxu1  ;;  %v2564_v51 = vadd.f32 %v2563_v35, %v2556_v12  ;;  %v2580_v5 = vmul.f32 %v2556_v12, %v2500_v22  ;;  %v2250_v47 = vadd.f32 %v6026_v9, %v1889_v15 }
 0x194   :  { %v2501_v63 = vadd.f32 %v7681_v2, %v2492_v49  ;;  %v6028_v0 = vpop.f32.mrf.mxu0  ;;  %v1325_v49 = vrot.slane %v7923_v34, 4 }
 0x195   :  { %v6077_v61 = vpop.f32.mrf.mxu1  ;;  %v2588_v56 = vadd.f32 %v2587_v27, %v2580_v5  ;;  %v2493_v17 = vadd.f32 %v6072_v10, %v2250_v47  ;;  %v6029_v37 = vadd.f32 %v6028_v0, %v6027_v25 }
 0x196   :  { %v5650_v28 = vpack.c.bf16 %v2501_v63, %v2500_v22  ;;  %v2557_v53 = vmul.f32 %v2501_v63, %v7813_v41  ;;  %v6030_v39 = vpop.f32.mrf.mxu0  ;;  %v6078_v3 = vadd.f32 %v6077_v61, %v6076_v26 }
 0x197   :  { %v6079_v24 = vpop.f32.mrf.mxu1  ;;  %v2502_v42 = vadd.f32 %v7681_v2, %v2493_v17  ;;  %v2251_v38 = vadd.f32 %v6029_v37, %v1894_v40  ;;  %v5989_v2 = vadd.f32 %v7998_v6, %v7994_v1  ;;  %v8382_v40 = vld [vmem:[#allocation10_spill] sm:$0xff]  ;;  %v1326_v37 = vadd.f32 %v1325_v49, %v7923_v34 }
 0x198   :  { %5706 = vst [vmem:[%s8371_s4 + $0x30] sm:$0xff] %v5650_v28   ;;  %v2565_v30 = vadd.f32 %v2564_v51, %v2557_v53  ;;  %v2581_v19 = vmul.f32 %v2557_v53, %v2501_v63  ;;  %v6031_v52 = vpop.f32.mrf.mxu0  ;;  %v1349_v14 = vrot.slane %v8382_v40, 4 }
 0x199   :  { %v6080_v16 = vpop.f32.mrf.mxu1  ;;  %v2558_v48 = vmul.f32 %v2502_v42, %v7841_v13  ;;  %v2494_v36 = vadd.f32 %v6075_v21, %v2251_v38  ;;  %v6032_v58 = vadd.f32 %v6031_v52, %v6030_v39  ;;  %v1902_v1 = vadd.f32 %v5989_v2, %v5943_v29  ;;  %v8383_v38 = vld [vmem:[#allocation9_spill] sm:$0xff] }
 0x19a   :  { %v2589_v60 = vadd.f32 %v2588_v56, %v2581_v19  ;;  %v6033_v43 = vpop.f32.mrf.mxu0  ;;  %v6081_v61 = vadd.f32 %v6080_v16, %v6079_v24  ;;  %v1350_v16 = vadd.f32 %v1349_v14, %v8382_v40  ;;  %v1327_v52 = vrot.slane %v1326_v37, 2 }
 0x19b   :  { %v6082_v46 = vpop.f32.mrf.mxu1  ;;  %v2566_v20 = vadd.f32 %v2565_v30, %v2558_v48  ;;  %v2582_v35 = vmul.f32 %v2558_v48, %v2502_v42  ;;  %v2503_v22 = vadd.f32 %v8064_v33, %v2494_v36  ;;  %v2252_v4 = vadd.f32 %v6032_v58, %v1897_v55 }
 0x19c   :  { %v6034_v7 = vpop.f32.mrf.mxu0  ;;  %v1351_v36 = vrot.slane %v1350_v16, 2 }
 0x19d   :  { %v6083_v50 = vpop.f32.mrf.mxu1  ;;  %v2590_v31 = vadd.f32 %v2589_v60, %v2582_v35  ;;  %v5655_v8 = vpack.c.bf16 %v2503_v22, %v2502_v42  ;;  %v2559_v44 = vmul.f32 %v2503_v22, %v7847_v32  ;;  %v2495_v45 = vadd.f32 %v6078_v3, %v2252_v4 }
 0x19e   :  { %v6035_v6 = vadd.f32 %v6034_v7, %v6033_v43  ;;  %v6036_v26 = vpop.f32.mrf.mxu0  ;;  %v1328_v3 = vadd.f32 %v1327_v52, %v1326_v37 }
 0x19f   :  { %v8067_v59 = vpop.f32.mrf.mxu1  ;;  %5707 = vst [vmem:[%s8371_s4 + $0x38] sm:$0xff] %v5655_v8   ;;  %v2567_v27 = vadd.f32 %v2566_v20, %v2559_v44  ;;  %v2583_v12 = vmul.f32 %v2559_v44, %v2503_v22  ;;  %v2504_v9 = vadd.f32 %v8064_v33, %v2495_v45  ;;  %v1352_v22 = vadd.f32 %v1351_v36, %v1350_v16 }
 0x1a0   :  { %v2253_v25 = vadd.f32 %v6035_v6, %v1902_v1  ;;  %v6037_v51 = vpop.f32.mrf.mxu0  ;;  %v1329_v44 = vrot.slane %v1328_v3, 1 }
 0x1a1   :  { %v8070_v15 = vpop.f32.mrf.mxu1  ;;  %v2591_v47 = vadd.f32 %v2590_v31, %v2583_v12  ;;  %v2560_v10 = vmul.f32 %v2504_v9, %v7869_v11 }
 0x1a2   :  { %v2496_v63 = vadd.f32 %v6081_v61, %v2253_v25  ;;  %v8081_v0 = vpop.f32.mrf.mxu0  ;;  %v1330_v61 = vadd.f32 %v1329_v44, %v1328_v3 }
 0x1a3   :  { %v8077_v5 = vpop.f32.mrf.mxu1  ;;  %v2568_v56 = vadd.f32 %v2567_v27, %v2560_v10  ;;  %v2584_v17 = vmul.f32 %v2560_v10, %v2504_v9  ;;  %v1353_v27 = vrot.slane %v1352_v22, 1 }
 0x1a4   :  { %v2505_v28 = vadd.f32 %v8064_v33, %v2496_v63  ;;  %v8087_v24 = vpop.f32.mrf.mxu0 }
 0x1a5   :  { %v8083_v57 = vpop.f32.mrf.mxu1  ;;  %v2592_v39 = vadd.f32 %v2591_v47, %v2584_v17  ;;  %v1354_v14 = vadd.f32 %v1353_v27, %v1352_v22  ;;  %v6149_v27 = vadd.f32 %v8070_v15, %v8067_v59 }
 0x1a6   :  { %v5660_v42 = vpack.c.bf16 %v2505_v28, %v2504_v9  ;;  %v2561_v21 = vmul.f32 %v2505_v28, %v8383_v38  ;;  %v8093_v30 = vpop.f32.mrf.mxu0 }
 0x1a7   :  { %v8089_v53 = vpop.f32.mrf.mxu1 }
 0x1a8   :  { %5708 = vst [vmem:[%s8371_s4 + $0x40] sm:$0xff] %v5660_v42   ;;  %v2569_v34 = vadd.f32 %v2568_v56, %v2561_v21  ;;  %v2585_v46 = vmul.f32 %v2561_v21, %v2505_v28  ;;  %v8100_v55 = vpop.f32.mrf.mxu0 }
 0x1a9   :  { %v8095_v19 = vpop.f32.mrf.mxu1 }
 0x1aa   :  { %v2570_v58 = vrot.slane %v2569_v34, 4  ;;  %v2593_v29 = vadd.f32 %v2592_v39, %v2585_v46  ;;  %v8104_v2 = vpop.f32.mrf.mxu0 }
 0x1ab   :  { %v8102_v48 = vpop.f32.mrf.mxu1 }
 0x1ac   :  { %v2571_v43 = vadd.f32 %v2570_v58, %v2569_v34  ;;  %v2594_v50 = vrot.slane %v2593_v29, 4  ;;  %v8108_v20 = vpop.f32.mrf.mxu0 }
 0x1ad   :  { %v8106_v60 = vpop.f32.mrf.mxu1 }
 0x1ae   :  { %v2572_v4 = vrot.slane %v2571_v43, 2  ;;  %v2595_v7 = vadd.f32 %v2594_v50, %v2593_v29  ;;  %v8112_v31 = vpop.f32.mrf.mxu0 }
 0x1af   :  { %v8110_v35 = vpop.f32.mrf.mxu1 }
 0x1b0   :  { %v2573_v45 = vadd.f32 %v2572_v4, %v2571_v43  ;;  %v2596_v1 = vrot.slane %v2595_v7, 2  ;;  %v6111_v6 = vpop.f32.mrf.mxu0 }
 0x1b1   :  { %v8114_v8 = vpop.f32.mrf.mxu1 }
 0x1b2   :  { %v2574_v12 = vrot.slane %v2573_v45, 1  ;;  %v2597_v9 = vadd.f32 %v2596_v1, %v2595_v7  ;;  %v8118_v49 = vpop.f32.mrf.mxu0  ;;  %v6103_v1 = vadd.f32 %v8087_v24, %v8081_v0  ;;  %v6155_v0 = vadd.f32 %v8095_v19, %v8089_v53 }
 0x1b3   :  { %v8116_v26 = vpop.f32.mrf.mxu1 }
 0x1b4   :  { %v2575_v51 = vadd.f32 %v2574_v12, %v2573_v45  ;;  %v2598_v47 = vrot.slane %v2597_v9, 1  ;;  %v8122_v10 = vpop.f32.mrf.mxu0 }
 0x1b5   :  { %v8120_v25 = vpop.f32.mrf.mxu1 }
 0x1b6   :  { %v8126_v63 = vadd.f32 %v2575_v51, %v1330_v61  ;;  %v2599_v56 = vadd.f32 %v2598_v47, %v2597_v9  ;;  %v8128_v17 = vpop.f32.mrf.mxu0  ;;  %v3115_v47 = vadd.f32 %v6149_v27, %v6103_v1  ;;  %v6109_v1 = vadd.f32 %v8108_v20, %v8104_v2 }
 0x1b7   :  { %v8124_v40 = vpop.f32.mrf.mxu1 }
 0x1b8   :  { %8384 = vst [vmem:[#allocation10_spill] sm:$0xff] %v8126_v63  ;;  %v8132_v28 = vadd.f32 %v2599_v56, %v1354_v14  ;;  %v8134_v39 = vpop.f32.mrf.mxu0  ;;  %v6106_v14 = vadd.f32 %v8100_v55, %v8093_v30  ;;  %v6152_v56 = vadd.f32 %v8083_v57, %v8077_v5 }
 0x1b9   :  { %v8130_v37 = vpop.f32.mrf.mxu1 }
 0x1ba   :  { %8385 = vst [vmem:[#allocation11_spill] sm:$0xff] %v8132_v28  ;;  %v8138_v42 = vpop.f32.mrf.mxu0  ;;  %v3118_v24 = vadd.f32 %v6152_v56, %v6106_v14 }
 0x1bb   :  { %v8136_v16 = vpop.f32.mrf.mxu1 }
 0x1bc   :  { %v8142_v52 = vpop.f32.mrf.mxu0 }
 0x1bd   :  { %v8140_v21 = vpop.f32.mrf.mxu1 }
 0x1be   :  { %v8146_v46 = vpop.f32.mrf.mxu0 }
 0x1bf   :  { %v8144_v34 = vpop.f32.mrf.mxu1 }
 0x1c0   :  { %v8150_v58 = vpop.f32.mrf.mxu0 }
 0x1c1   :  { %v8148_v36 = vpop.f32.mrf.mxu1 }
 0x1c2   :  { %v8152_v3 = vpop.f32.mrf.mxu0 }
 0x1c3   :  { %v6174_v29 = vpop.f32.mrf.mxu1 }
 0x1c4   :  { %v8154_v50 = vpop.f32.mrf.mxu0 }
 0x1c5   :  { %v6175_v43 = vpop.f32.mrf.mxu1 }
 0x1c6   :  { %v6128_v4 = vpop.f32.mrf.mxu0 }
 0x1c7   :  { %v6239_v22 = vpop.f32.mrf.mxu1 }
 0x1c8   :  { %v6129_v44 = vpop.f32.mrf.mxu0 }
 0x1c9   :  { %v6240_v7 = vpop.f32.mrf.mxu1 }
 0x1ca   :  { %v6193_v12 = vpop.f32.mrf.mxu0  ;;  %v6241_v28 = vadd.f32 %v6240_v7, %v6239_v22  ;;  %v6158_v22 = vadd.f32 %v8106_v60, %v8102_v48  ;;  %v3123_v7 = vadd.f32 %v6155_v0, %v6109_v1  ;;  %v6161_v48 = vadd.f32 %v8114_v8, %v8110_v35 }
 0x1cb   :  { %v6242_v45 = vpop.f32.mrf.mxu1 }
 0x1cc   :  { %v6194_v61 = vpop.f32.mrf.mxu0 }
 0x1cd   :  { %v6243_v9 = vpop.f32.mrf.mxu1  ;;  %v6195_v29 = vadd.f32 %v6194_v61, %v6193_v12  ;;  %v6112_v61 = vadd.f32 %v6111_v6, %v8112_v31  ;;  %v6115_v31 = vadd.f32 %v8122_v10, %v8118_v49 }
 0x1ce   :  { %v6196_v43 = vpop.f32.mrf.mxu0  ;;  %v6244_v12 = vadd.f32 %v6243_v9, %v6242_v45 }
 0x1cf   :  { %v6245_v51 = vpop.f32.mrf.mxu1  ;;  %v3490_v44 = vadd.f32 %v6195_v29, %v3115_v47  ;;  %v3131_v8 = vadd.f32 %v6161_v48, %v6115_v31 }
 0x1d0   :  { %v6197_v59 = vpop.f32.mrf.mxu0 }
 0x1d1   :  { %v6246_v4 = vpop.f32.mrf.mxu1  ;;  %v3733_v27 = vadd.f32 %v6241_v28, %v3490_v44  ;;  %v6198_v63 = vadd.f32 %v6197_v59, %v6196_v43 }
 0x1d2   :  { %v6199_v30 = vpop.f32.mrf.mxu0  ;;  %v6247_v43 = vadd.f32 %v6246_v4, %v6245_v51 }
 0x1d3   :  { %v6248_v15 = vpop.f32.mrf.mxu1  ;;  %v3742_v5 = vadd.f32 %v8064_v33, %v3733_v27  ;;  %v3491_v57 = vadd.f32 %v6198_v63, %v3118_v24  ;;  %v3126_v63 = vadd.f32 %v6158_v22, %v6112_v61 }
 0x1d4   :  { %v6200_v53 = vpop.f32.mrf.mxu0 }
 0x1d5   :  { %v6249_v55 = vpop.f32.mrf.mxu1  ;;  %v3734_v47 = vadd.f32 %v6244_v12, %v3491_v57  ;;  %v6201_v14 = vadd.f32 %v6200_v53, %v6199_v30  ;;  %v3798_v2 = vmul.f32 %v3742_v5, %v7691_v54 }
 0x1d6   :  { %v6202_v20 = vpop.f32.mrf.mxu0  ;;  %v6250_v24 = vadd.f32 %v6249_v55, %v6248_v15  ;;  %v6118_v15 = vadd.f32 %v8134_v39, %v8128_v17  ;;  %v6164_v55 = vadd.f32 %v8120_v25, %v8116_v26 }
 0x1d7   :  { %v6251_v19 = vpop.f32.mrf.mxu1  ;;  %v3743_v56 = vadd.f32 %v8064_v33, %v3734_v47  ;;  %v3492_v29 = vadd.f32 %v6201_v14, %v3123_v7  ;;  %v3822_v59 = vmul.f32 %v3798_v2, %v3742_v5 }
 0x1d8   :  { %v6203_v60 = vpop.f32.mrf.mxu0 }
 0x1d9   :  { %v6252_v28 = vpop.f32.mrf.mxu1  ;;  %v5665_v45 = vpack.c.bf16 %v3743_v56, %v3742_v5  ;;  %v3799_v9 = vmul.f32 %v3743_v56, %v7740_v18  ;;  %v3735_v44 = vadd.f32 %v6247_v43, %v3492_v29  ;;  %v6204_v0 = vadd.f32 %v6203_v60, %v6202_v20 }
 0x1da   :  { %v6205_v1 = vpop.f32.mrf.mxu0  ;;  %v6253_v22 = vadd.f32 %v6252_v28, %v6251_v19  ;;  %v6167_v29 = vadd.f32 %v8130_v37, %v8124_v40  ;;  %v3134_v19 = vadd.f32 %v6164_v55, %v6118_v15  ;;  %v6124_v40 = vadd.f32 %v8150_v58, %v8146_v46 }
 0x1db   :  { %v6254_v6 = vpop.f32.mrf.mxu1  ;;  %5709 = vst [vmem:[%s8371_s4 + $0x48] sm:$0xff] %v5665_v45   ;;  %v3807_v51 = vadd.f32 %v3799_v9, %v3798_v2  ;;  %v3823_v49 = vmul.f32 %v3799_v9, %v3743_v56  ;;  %v3744_v10 = vadd.f32 %v8064_v33, %v3735_v44  ;;  %v3493_v35 = vadd.f32 %v6204_v0, %v3126_v63 }
 0x1dc   :  { %v6206_v4 = vpop.f32.mrf.mxu0  ;;  %v6121_v56 = vadd.f32 %v8142_v52, %v8138_v42  ;;  %v6170_v37 = vadd.f32 %v8140_v21, %v8136_v16  ;;  %v6173_v16 = vadd.f32 %v8148_v36, %v8144_v34 }
 0x1dd   :  { %v6255_v27 = vpop.f32.mrf.mxu1  ;;  %v3831_v57 = vadd.f32 %v3823_v49, %v3822_v59  ;;  %v3800_v12 = vmul.f32 %v3744_v10, %v7766_v23  ;;  %v3736_v61 = vadd.f32 %v6250_v24, %v3493_v35  ;;  %v6207_v5 = vadd.f32 %v6206_v4, %v6205_v1 }
 0x1de   :  { %v6208_v53 = vpop.f32.mrf.mxu0  ;;  %v6256_v9 = vadd.f32 %v6255_v27, %v6254_v6  ;;  %v3139_v59 = vadd.f32 %v6167_v29, %v6121_v56  ;;  %v3142_v46 = vadd.f32 %v6170_v37, %v6124_v40  ;;  %v6127_v27 = vadd.f32 %v8154_v50, %v8152_v3 }
 0x1df   :  { %v6257_v30 = vpop.f32.mrf.mxu1  ;;  %v3808_v47 = vadd.f32 %v3807_v51, %v3800_v12  ;;  %v3824_v14 = vmul.f32 %v3800_v12, %v3744_v10  ;;  %v3745_v2 = vadd.f32 %v8064_v33, %v3736_v61  ;;  %v3494_v20 = vadd.f32 %v6207_v5, %v3131_v8 }
 0x1e0   :  { %v6209_v43 = vpop.f32.mrf.mxu0  ;;  %v3147_v50 = vadd.f32 %v6173_v16, %v6127_v27 }
 0x1e1   :  { %v6258_v7 = vpop.f32.mrf.mxu1  ;;  %v3832_v17 = vadd.f32 %v3831_v57, %v3824_v14  ;;  %v5670_v39 = vpack.c.bf16 %v3745_v2, %v3744_v10  ;;  %v3801_v26 = vmul.f32 %v3745_v2, %v7798_v62  ;;  %v3737_v25 = vadd.f32 %v6253_v22, %v3494_v20 }
 0x1e2   :  { %v6210_v28 = vadd.f32 %v6209_v43, %v6208_v53  ;;  %v6211_v31 = vpop.f32.mrf.mxu0  ;;  %v6259_v12 = vadd.f32 %v6258_v7, %v6257_v30 }
 0x1e3   :  { %v6260_v63 = vpop.f32.mrf.mxu1  ;;  %5710 = vst [vmem:[%s8371_s4 + $0x50] sm:$0xff] %v5670_v39   ;;  %v3809_v60 = vadd.f32 %v3808_v47, %v3801_v26  ;;  %v3825_v42 = vmul.f32 %v3801_v26, %v3745_v2  ;;  %v3746_v52 = vadd.f32 %v8064_v33, %v3737_v25 }
 0x1e4   :  { %v3495_v45 = vadd.f32 %v6210_v28, %v3134_v19  ;;  %v6212_v44 = vpop.f32.mrf.mxu0 }
 0x1e5   :  { %v6261_v48 = vpop.f32.mrf.mxu1  ;;  %v3833_v24 = vadd.f32 %v3832_v17, %v3825_v42  ;;  %v3802_v1 = vmul.f32 %v3746_v52, %v7813_v41  ;;  %v6213_v51 = vadd.f32 %v6212_v44, %v6211_v31 }
 0x1e6   :  { %v3738_v49 = vadd.f32 %v6256_v9, %v3495_v45  ;;  %v6214_v10 = vpop.f32.mrf.mxu0  ;;  %v6262_v14 = vadd.f32 %v6261_v48, %v6260_v63 }
 0x1e7   :  { %v6263_v0 = vpop.f32.mrf.mxu1  ;;  %v3810_v8 = vadd.f32 %v3809_v60, %v3802_v1  ;;  %v3826_v4 = vmul.f32 %v3802_v1, %v3746_v52  ;;  %v3496_v57 = vadd.f32 %v6213_v51, %v3139_v59 }
 0x1e8   :  { %v3747_v21 = vadd.f32 %v8064_v33, %v3738_v49  ;;  %v6215_v58 = vpop.f32.mrf.mxu0 }
 0x1e9   :  { %v6264_v35 = vpop.f32.mrf.mxu1  ;;  %v3834_v61 = vadd.f32 %v3833_v24, %v3826_v4  ;;  %v3739_v5 = vadd.f32 %v6259_v12, %v3496_v57  ;;  %v6216_v15 = vadd.f32 %v6215_v58, %v6214_v10 }
 0x1ea   :  { %v5675_v55 = vpack.c.bf16 %v3747_v21, %v3746_v52  ;;  %v3803_v22 = vmul.f32 %v3747_v21, %v7841_v13  ;;  %v6217_v53 = vpop.f32.mrf.mxu0  ;;  %v6265_v17 = vadd.f32 %v6264_v35, %v6263_v0 }
 0x1eb   :  { %v6266_v6 = vpop.f32.mrf.mxu1  ;;  %v3748_v30 = vadd.f32 %v8064_v33, %v3739_v5  ;;  %v3497_v7 = vadd.f32 %v6216_v15, %v3142_v46 }
 0x1ec   :  { %5711 = vst [vmem:[%s8371_s4 + $0x58] sm:$0xff] %v5675_v55   ;;  %v3811_v34 = vadd.f32 %v3810_v8, %v3803_v22  ;;  %v3827_v36 = vmul.f32 %v3803_v22, %v3747_v21  ;;  %v6218_v2 = vpop.f32.mrf.mxu0 }
 0x1ed   :  { %v6267_v47 = vpop.f32.mrf.mxu1  ;;  %v3804_v20 = vmul.f32 %v3748_v30, %v7847_v32  ;;  %v3740_v56 = vadd.f32 %v6262_v14, %v3497_v7  ;;  %v6219_v29 = vadd.f32 %v6218_v2, %v6217_v53 }
 0x1ee   :  { %v3835_v43 = vadd.f32 %v3834_v61, %v3827_v36  ;;  %v6220_v39 = vpop.f32.mrf.mxu0 }
 0x1ef   :  { %v8213_v3 = vpop.f32.mrf.mxu1  ;;  %v3812_v63 = vadd.f32 %v3811_v34, %v3804_v20  ;;  %v3828_v25 = vmul.f32 %v3804_v20, %v3748_v30  ;;  %v3749_v19 = vadd.f32 %v8064_v33, %v3740_v56  ;;  %v3498_v28 = vadd.f32 %v6219_v29, %v3147_v50 }
 0x1f0   :  { %v6221_v31 = vpop.f32.mrf.mxu0 }
 0x1f1   :  { %v8216_v26 = vpop.f32.mrf.mxu1  ;;  %v3836_v60 = vadd.f32 %v3835_v43, %v3828_v25  ;;  %v5680_v42 = vpack.c.bf16 %v3749_v19, %v3748_v30  ;;  %v3805_v52 = vmul.f32 %v3749_v19, %v7869_v11  ;;  %v3741_v40 = vadd.f32 %v6265_v17, %v3498_v28  ;;  %v8386_v43 = vld [vmem:[#allocation10_spill] sm:$0xff] }
 0x1f2   :  { %v8222_v37 = vpop.f32.mrf.mxu0 }
 0x1f3   :  { %v8219_v48 = vpop.f32.mrf.mxu1  ;;  %5712 = vst [vmem:[%s8371_s4 + $0x60] sm:$0xff] %v5680_v42   ;;  %v3813_v9 = vadd.f32 %v3812_v63, %v3805_v52  ;;  %v3829_v44 = vmul.f32 %v3805_v52, %v3749_v19  ;;  %v3750_v0 = vadd.f32 %v8064_v33, %v3741_v40  ;;  %v8388_v19 = vld [vmem:[#allocation11_spill] sm:$0xff] }
 0x1f4   :  { %v6286_v59 = vpop.f32.mrf.mxu0 }
 0x1f5   :  { %v8224_v45 = vpop.f32.mrf.mxu1  ;;  %v3837_v1 = vadd.f32 %v3836_v60, %v3829_v44  ;;  %v5612_v51 = vpack.c.bf16 %v3750_v0, %v3750_v0  ;;  %v3806_v49 = vmul.f32 %v3750_v0, %v8383_v38 }
 0x1f6   :  { %v6288_v10 = vpop.f32.mrf.mxu0 }
 0x1f7   :  { %v8230_v24 = vpop.f32.mrf.mxu1  ;;  %5458 = vst [vmem:[%s8371_s4 + $0x68] sm:$0xf] %v5612_v51  ;;  %v3814_v8 = vadd.f32 %v3813_v9, %v3806_v49  ;;  %v3830_v4 = vmul.f32 %v3806_v49, %v3750_v0 }
 0x1f8   :  { %v6289_v57 = vpop.f32.mrf.mxu0 }
 0x1f9   :  { %v8233_v35 = vpop.f32.mrf.mxu1  ;;  %v3815_v46 = vrot.slane %v3814_v8, 4  ;;  %v3838_v16 = vadd.f32 %v3837_v1, %v3830_v4 }
 0x1fa   :  { %v6291_v21 = vpop.f32.mrf.mxu0 }
 0x1fb   :  { %v8238_v12 = vpop.f32.mrf.mxu1  ;;  %v3816_v6 = vadd.f32 %v3815_v46, %v3814_v8  ;;  %v3839_v27 = vrot.slane %v3838_v16, 4 }
 0x1fc   :  { %v6292_v61 = vpop.f32.mrf.mxu0 }
 0x1fd   :  { %v8240_v58 = vpop.f32.mrf.mxu1  ;;  %v3817_v5 = vrot.slane %v3816_v6, 2  ;;  %v3840_v15 = vadd.f32 %v3839_v27, %v3838_v16 }
 0x1fe   :  { %v8244_v22 = vpop.f32.mrf.mxu0 }
 0x1ff   :  { %v8242_v55 = vpop.f32.mrf.mxu1  ;;  %v3818_v53 = vadd.f32 %v3817_v5, %v3816_v6  ;;  %v3841_v47 = vrot.slane %v3840_v15, 2 }
 0x200   :  { %v6295_v7 = vpop.f32.mrf.mxu0 }
 0x201   :  { %v8246_v30 = vpop.f32.mrf.mxu1  ;;  %v3819_v14 = vrot.slane %v3818_v53, 1  ;;  %v3842_v34 = vadd.f32 %v3841_v47, %v3840_v15  ;;  %v6287_v15 = vadd.f32 %v6286_v59, %v8222_v37  ;;  %v6339_v37 = vadd.f32 %v8233_v35, %v8230_v24 }
 0x202   :  { %v8250_v2 = vpop.f32.mrf.mxu0 }
 0x203   :  { %v8248_v36 = vpop.f32.mrf.mxu1  ;;  %v3820_v50 = vadd.f32 %v3819_v14, %v3818_v53  ;;  %v3843_v20 = vrot.slane %v3842_v34, 1  ;;  %v6333_v53 = vadd.f32 %v8216_v26, %v8213_v3 }
 0x204   :  { %v8254_v29 = vpop.f32.mrf.mxu0 }
 0x205   :  { %v8252_v56 = vpop.f32.mrf.mxu1  ;;  %v8257_v17 = vadd.f32 %v3820_v50, %v8386_v43  ;;  %v3844_v39 = vadd.f32 %v3843_v20, %v3842_v34  ;;  %v4360_v20 = vadd.f32 %v6333_v53, %v6287_v15  ;;  %v6290_v43 = vadd.f32 %v6289_v57, %v6288_v10 }
 0x206   :  { %v8261_v25 = vpop.f32.mrf.mxu0 }
 0x207   :  { %8387 = vst [vmem:[#allocation10_spill] sm:$0xff] %v8257_v17  ;;  %v8259_v63 = vpop.f32.mrf.mxu1  ;;  %v8264_v28 = vadd.f32 %v3844_v39, %v8388_v19  ;;  %v6336_v39 = vadd.f32 %v8224_v45, %v8219_v48  ;;  %v6293_v17 = vadd.f32 %v6292_v61, %v6291_v21  ;;  %v6296_v21 = vadd.f32 %v6295_v7, %v8244_v22 }
 0x208   :  { %v8268_v60 = vpop.f32.mrf.mxu0  ;;  %v6299_v7 = vadd.f32 %v8254_v29, %v8250_v2 }
 0x209   :  { %8389 = vst [vmem:[#allocation11_spill] sm:$0xff] %v8264_v28  ;;  %v8266_v31 = vpop.f32.mrf.mxu1  ;;  %v4363_v26 = vadd.f32 %v6336_v39, %v6290_v43  ;;  %v4368_v57 = vadd.f32 %v6339_v37, %v6293_v17  ;;  %v6348_v37 = vadd.f32 %v8252_v56, %v8248_v36 }
 0x20a   :  { %v8272_v52 = vpop.f32.mrf.mxu0 }
 0x20b   :  { %v8270_v42 = vpop.f32.mrf.mxu1 }
 0x20c   :  { %v8276_v9 = vpop.f32.mrf.mxu0 }
 0x20d   :  { %v8274_v40 = vpop.f32.mrf.mxu1 }
 0x20e   :  { %v8280_v0 = vpop.f32.mrf.mxu0 }
 0x20f   :  { %v8278_v44 = vpop.f32.mrf.mxu1 }
 0x210   :  { %v8284_v51 = vpop.f32.mrf.mxu0 }
 0x211   :  { %v8282_v1 = vpop.f32.mrf.mxu1 }
 0x212   :  { %v8286_v8 = vpop.f32.mrf.mxu0 }
 0x213   :  { %v6358_v49 = vpop.f32.mrf.mxu1 }
 0x214   :  { %v8288_v46 = vpop.f32.mrf.mxu0 }
 0x215   :  { %v6359_v4 = vpop.f32.mrf.mxu1 }
 0x216   :  { %v6312_v6 = vpop.f32.mrf.mxu0 }
 0x217   :  { %v6423_v16 = vpop.f32.mrf.mxu1 }
 0x218   :  { %v6313_v5 = vpop.f32.mrf.mxu0 }
 0x219   :  { %v6424_v27 = vpop.f32.mrf.mxu1 }
 0x21a   :  { %v6377_v14 = vpop.f32.mrf.mxu0  ;;  %v6425_v28 = vadd.f32 %v6424_v27, %v6423_v16  ;;  %v6342_v16 = vadd.f32 %v8240_v58, %v8238_v12 }
 0x21b   :  { %v6426_v47 = vpop.f32.mrf.mxu1 }
 0x21c   :  { %v6378_v50 = vpop.f32.mrf.mxu0  ;;  %v4371_v12 = vadd.f32 %v6342_v16, %v6296_v21 }
 0x21d   :  { %v6427_v34 = vpop.f32.mrf.mxu1  ;;  %v6379_v19 = vadd.f32 %v6378_v50, %v6377_v14 }
 0x21e   :  { %v6380_v4 = vpop.f32.mrf.mxu0  ;;  %v6428_v35 = vadd.f32 %v6427_v34, %v6426_v47  ;;  %v6345_v47 = vadd.f32 %v8246_v30, %v8242_v55 }
 0x21f   :  { %v6429_v49 = vpop.f32.mrf.mxu1  ;;  %v4735_v6 = vadd.f32 %v6379_v19, %v4360_v20 }
 0x220   :  { %v6381_v3 = vpop.f32.mrf.mxu0  ;;  %v4376_v29 = vadd.f32 %v6345_v47, %v6299_v7  ;;  %v6311_v47 = vadd.f32 %v8288_v46, %v8286_v8 }
 0x221   :  { %v6430_v5 = vpop.f32.mrf.mxu1  ;;  %v4978_v59 = vadd.f32 %v6425_v28, %v4735_v6  ;;  %v6382_v38 = vadd.f32 %v6381_v3, %v6380_v4 }
 0x222   :  { %v6383_v15 = vpop.f32.mrf.mxu0  ;;  %v6431_v17 = vadd.f32 %v6430_v5, %v6429_v49  ;;  %v6302_v5 = vadd.f32 %v8268_v60, %v8261_v25  ;;  %v6305_v25 = vadd.f32 %v8276_v9, %v8272_v52  ;;  %v6354_v52 = vadd.f32 %v8274_v40, %v8270_v42 }
 0x223   :  { %v6432_v11 = vpop.f32.mrf.mxu1  ;;  %v8298_v10 = vadd.f32 %v8064_v33, %v4978_v59  ;;  %v4736_v48 = vadd.f32 %v6382_v38, %v4363_v26 }
 0x224   :  { %v6384_v27 = vpop.f32.mrf.mxu0 }
 0x225   :  { %v6433_v45 = vpop.f32.mrf.mxu1  ;;  %v5613_v24 = vpack.c.bf16 %v8298_v10, %v8298_v10  ;;  %v6385_v61 = vadd.f32 %v6384_v27, %v6383_v15  ;;  %v4979_v38 = vadd.f32 %v6428_v35, %v4736_v48  ;;  %v4379_v27 = vadd.f32 %v6348_v37, %v6302_v5 }
 0x226   :  { %v6386_v53 = vpop.f32.mrf.mxu0  ;;  %v6434_v26 = vadd.f32 %v6433_v45, %v6432_v11  ;;  %v6351_v11 = vadd.f32 %v8266_v31, %v8259_v63  ;;  %v5043_v63 = vmul.f32 %v8298_v10, %v7691_v54  ;;  %v6357_v54 = vadd.f32 %v8282_v1, %v8278_v44 }
 0x227   :  { %v6435_v28 = vpop.f32.mrf.mxu1  ;;  %5577 = vst [vmem:[%s8371_s4 + $0x6c] sm:$0xf] %v5613_v24  ;;  %v4737_v14 = vadd.f32 %v6385_v61, %v4368_v57  ;;  %v4988_v39 = vadd.f32 %v8064_v33, %v4979_v38 }
 0x228   :  { %v6387_v20 = vpop.f32.mrf.mxu0  ;;  %v4392_v8 = vadd.f32 %v6357_v54, %v6311_v47 }
 0x229   :  { %v6436_v50 = vpop.f32.mrf.mxu1  ;;  %v4980_v58 = vadd.f32 %v6431_v17, %v4737_v14  ;;  %v6388_v43 = vadd.f32 %v6387_v20, %v6386_v53  ;;  %v5044_v60 = vmul.f32 %v4988_v39, %v7740_v18  ;;  %v4384_v18 = vadd.f32 %v6351_v11, %v6305_v25 }
 0x22a   :  { %v6389_v34 = vpop.f32.mrf.mxu0  ;;  %v6437_v57 = vadd.f32 %v6436_v50, %v6435_v28  ;;  %v6308_v28 = vadd.f32 %v8284_v51, %v8280_v0 }
 0x22b   :  { %v6438_v22 = vpop.f32.mrf.mxu1  ;;  %v4989_v19 = vadd.f32 %v8064_v33, %v4980_v58  ;;  %v4738_v4 = vadd.f32 %v6388_v43, %v4371_v12  ;;  %v5068_v20 = vmul.f32 %v5044_v60, %v4988_v39 }
 0x22c   :  { %v6390_v49 = vpop.f32.mrf.mxu0  ;;  %v4387_v40 = vadd.f32 %v6354_v52, %v6308_v28 }
 0x22d   :  { %v6439_v6 = vpop.f32.mrf.mxu1  ;;  %v5685_v3 = vpack.c.bf16 %v4989_v19, %v4988_v39  ;;  %v6391_v59 = vadd.f32 %v6390_v49, %v6389_v34  ;;  %v4981_v30 = vadd.f32 %v6434_v26, %v4738_v4  ;;  %v5045_v38 = vmul.f32 %v4989_v19, %v7766_v23 }
 0x22e   :  { %v6392_v55 = vpop.f32.mrf.mxu0  ;;  %v6440_v61 = vadd.f32 %v6439_v6, %v6438_v22  ;;  %v5067_v22 = vmul.f32 %v5043_v63, %v8298_v10  ;;  %v5052_v6 = vadd.f32 %v5044_v60, %v5043_v63  ;;  %v8390_v60 = vld [vmem:[#allocation8_spill] sm:$0xff] }
 0x22f   :  { %v6441_v2 = vpop.f32.mrf.mxu1  ;;  %5713 = vst [vmem:[%s8371_s4 + $0x70] sm:$0xff] %v5685_v3   ;;  %v4739_v48 = vadd.f32 %v6391_v59, %v4376_v29  ;;  %v4990_v24 = vadd.f32 %v8064_v33, %v4981_v30 }
 0x230   :  { %v6393_v16 = vpop.f32.mrf.mxu0  ;;  %v5076_v49 = vadd.f32 %v5068_v20, %v5067_v22 }
 0x231   :  { %v6442_v15 = vpop.f32.mrf.mxu1  ;;  %v6394_v36 = vadd.f32 %v6393_v16, %v6392_v55  ;;  %v4982_v45 = vadd.f32 %v6437_v57, %v4739_v48  ;;  %v5046_v0 = vmul.f32 %v4990_v24, %v7798_v62  ;;  %v5069_v62 = vmul.f32 %v5045_v38, %v4989_v19 }
 0x232   :  { %v6395_v21 = vpop.f32.mrf.mxu0  ;;  %v6443_v43 = vadd.f32 %v6442_v15, %v6441_v2  ;;  %v5053_v2 = vadd.f32 %v5052_v6, %v5045_v38 }
 0x233   :  { %v6444_v56 = vpop.f32.mrf.mxu1  ;;  %v4740_v35 = vadd.f32 %v6394_v36, %v4379_v27  ;;  %v4991_v31 = vadd.f32 %v8064_v33, %v4982_v45  ;;  %v5070_v10 = vmul.f32 %v5046_v0, %v4990_v24  ;;  %v5077_v46 = vadd.f32 %v5076_v49, %v5069_v62 }
 0x234   :  { %v6396_v9 = vpop.f32.mrf.mxu0  ;;  %v5054_v30 = vadd.f32 %v5053_v2, %v5046_v0 }
 0x235   :  { %v6445_v53 = vpop.f32.mrf.mxu1  ;;  %v4983_v14 = vadd.f32 %v6440_v61, %v4740_v35  ;;  %v6397_v17 = vadd.f32 %v6396_v9, %v6395_v21  ;;  %v5690_v12 = vpack.c.bf16 %v4991_v31, %v4990_v24  ;;  %v5047_v44 = vmul.f32 %v4991_v31, %v7813_v41 }
 0x236   :  { %v6398_v58 = vpop.f32.mrf.mxu0  ;;  %v6446_v3 = vadd.f32 %v6445_v53, %v6444_v56  ;;  %v5078_v16 = vadd.f32 %v5077_v46, %v5070_v10 }
 0x237   :  { %v6447_v50 = vpop.f32.mrf.mxu1  ;;  %v4741_v51 = vadd.f32 %v6397_v17, %v4384_v18  ;;  %5714 = vst [vmem:[%s8371_s4 + $0x78] sm:$0xff] %v5690_v12   ;;  %v4992_v23 = vadd.f32 %v8064_v33, %v4983_v14  ;;  %v5071_v15 = vmul.f32 %v5047_v44, %v4991_v31  ;;  %v5055_v25 = vadd.f32 %v5054_v30, %v5047_v44  ;;  %v8391_v18 = vld [vmem:[#allocation9_spill] sm:$0xff] }
 0x238   :  { %v6399_v7 = vpop.f32.mrf.mxu0 }
 0x239   :  { %v6448_v42 = vpop.f32.mrf.mxu1  ;;  %v4984_v34 = vadd.f32 %v6443_v43, %v4741_v51  ;;  %v6400_v39 = vadd.f32 %v6399_v7, %v6398_v58  ;;  %v5048_v29 = vmul.f32 %v4992_v23, %v7841_v13  ;;  %v5079_v21 = vadd.f32 %v5078_v16, %v5071_v15  ;;  %v8392_v7 = vld [vmem:[#allocation10_spill] sm:$0xff] }
 0x23a   :  { %v6401_v1 = vpop.f32.mrf.mxu0  ;;  %v6449_v36 = vadd.f32 %v6448_v42, %v6447_v50 }
 0x23b   :  { %v6450_v4 = vpop.f32.mrf.mxu1  ;;  %v4993_v5 = vadd.f32 %v8064_v33, %v4984_v34  ;;  %v4742_v37 = vadd.f32 %v6400_v39, %v4387_v40  ;;  %v5072_v13 = vmul.f32 %v5048_v29, %v4992_v23  ;;  %v5056_v24 = vadd.f32 %v5055_v25, %v5048_v29  ;;  %v8393_v34 = vld [vmem:[#allocation11_spill] sm:$0xff] }
 0x23c   :  { %v6402_v59 = vpop.f32.mrf.mxu0 }
 0x23d   :  { %v6451_v26 = vpop.f32.mrf.mxu1  ;;  %v5695_v19 = vpack.c.bf16 %v4993_v5, %v4992_v23  ;;  %v4985_v55 = vadd.f32 %v6446_v3, %v4742_v37  ;;  %v5049_v48 = vmul.f32 %v4993_v5, %v7847_v32  ;;  %v6403_v41 = vadd.f32 %v6402_v59, %v6401_v1 }
 0x23e   :  { %v6404_v57 = vpop.f32.mrf.mxu0  ;;  %v5080_v61 = vadd.f32 %v5079_v21, %v5072_v13 }
 0x23f   :  { %5715 = vst [vmem:[%s8371_s4 + $0x80] sm:$0xff] %v5695_v19   ;;  %v4994_v27 = vadd.f32 %v8064_v33, %v4985_v55  ;;  %v4743_v11 = vadd.f32 %v6403_v41, %v4392_v8  ;;  %v5073_v35 = vmul.f32 %v5049_v48, %v4993_v5  ;;  %v5057_v53 = vadd.f32 %v5056_v24, %v5049_v48 }
 0x240   :  { %v6405_v56 = vpop.f32.mrf.mxu0 }
 0x241   :  { %v5050_v45 = vmul.f32 %v4994_v27, %v8390_v60  ;;  %v4986_v32 = vadd.f32 %v6449_v36, %v4743_v11  ;;  %v5081_v63 = vadd.f32 %v5080_v61, %v5073_v35 }
 0x243   :  { %v5074_v28 = vmul.f32 %v5050_v45, %v4994_v27  ;;  %v4995_v52 = vadd.f32 %v8064_v33, %v4986_v32  ;;  %v5058_v31 = vadd.f32 %v5057_v53, %v5050_v45 }
 0x245   :  { %v5700_v9 = vpack.c.bf16 %v4995_v52, %v4994_v27  ;;  %v5051_v38 = vmul.f32 %v4995_v52, %v8391_v18  ;;  %v5082_v14 = vadd.f32 %v5081_v63, %v5074_v28 }
 0x247   :  { %5716 = vst [vmem:[%s8371_s4 + $0x88] sm:$0xff] %v5700_v9   ;;  %v5059_v17 = vadd.f32 %v5058_v31, %v5051_v38  ;;  %v5075_v50 = vmul.f32 %v5051_v38, %v4995_v52 }
 0x249   :  { %v5060_v20 = vrot.slane %v5059_v17, 4  ;;  %v5083_v12 = vadd.f32 %v5082_v14, %v5075_v50 }
 0x24b   :  { %v5061_v58 = vadd.f32 %v5060_v20, %v5059_v17  ;;  %v5084_v0 = vrot.slane %v5083_v12, 4 }
 0x24d   :  { %v5062_v51 = vrot.slane %v5061_v58, 2  ;;  %v5085_v43 = vadd.f32 %v5084_v0, %v5083_v12 }
 0x24f   :  { %v5063_v42 = vadd.f32 %v5062_v51, %v5061_v58  ;;  %v5086_v33 = vrot.slane %v5085_v43, 2 }
 0x251   :  { %v5064_v40 = vrot.slane %v5063_v42, 1  ;;  %v5087_v54 = vadd.f32 %v5086_v33, %v5085_v43 }
 0x253   :  { %v5065_v22 = vadd.f32 %v5064_v40, %v5063_v42  ;;  %v5088_v23 = vrot.slane %v5087_v54, 1 }
 0x255   :  { %v5066_v47 = vadd.f32 %v5065_v22, %v8392_v7  ;;  %v5089_v62 = vadd.f32 %v5088_v23, %v5087_v54 }
 0x257   :  { %v5090_v39 = vadd.f32 %v5089_v62, %v8393_v34  ;;  %5091 = vst [vmem:[%s8372_s5] sm:$0x1] %v5066_v47 }
 0x259   :  { %5092 = vst [vmem:[%s8373_s6] sm:$0x1] %v5090_v39 }
 0x25a   :  { %5105 = vsyncpa [#allocation3], 1 }
 0x25b   :  { %5106 = vsyncpa [#allocation5], 1 }

// kernel: discriminator_forward.5
= control target key start
LH: loop header
LB: loop body
LE: loop exit
PB: predicated region body
PF: predicated region fallthrough
CT: control target
= control target key end

     0   :  { %s12370_s0 = inlined_call_operand.vmem [shape: bf16[4,8192], index: 0, kind: input, shape index: {}]   ;;  %s12371_s1 = inlined_call_operand.hbm [shape: bf16[8192,1024], index: 1, kind: input, shape index: {}]   ;;  %s12372_s2 = inlined_call_operand.hbm [shape: f32[1,1024], index: 2, kind: input, shape index: {}]   ;;  %s12373_s3 = inlined_call_operand.hbm [shape: f32[1,1024], index: 3, kind: input, shape index: {}]   ;;  %s12374_s4 = inlined_call_operand.hbm [shape: f32[1,1024], index: 4, kind: input, shape index: {}]   ;;  %s12375_s5 = inlined_call_operand.vmem [shape: bf16[1024,1], index: 5, kind: input, shape index: {}]   ;;  %s12376_s6 = inlined_call_operand.<no memory space> [shape: f32[1,1], index: 6, kind: input, shape index: {}]   ;;  %s12377_s7 = inlined_call_operand.vmem [shape: f32[4,1], index: 7, kind: output, shape index: {}]  }
   0x1   :  { %v12_v0 = vstv %s12376_s6 }
   0x2   :  { %13 = vst [vmem:[#allocation3] sm:$0x1] %v12_v0 }
   0x3   :  { %14 = vsyncpa [#allocation5], 0 }
   0x4   :  { %16 = vsyncpa [#allocation5 + $0x1], 0 }
   0x5   :  { %17 = vsyncpa [#allocation7], 0 }
   0x6   :  { %18 = vsyncpa [#allocation10], 0  ;;  %s10659_s26 = smov 0   ;;  %s10661_s27 = smov 0  }
   0x7   :  { %s10663_s28 = smov 0   ;;  %s10665_s29 = smov 0  }
   0x8 LB: > { %s10678_s6 = sadd.s32 4294967295, %s10606_s29   ;;  %p70_p0 = scmp.ne.s32.totalorder %s10598_s27, %s10594_s26  ;;  %s10606_s29 = sphi %s10665_s29, %s12395_s29   ;;  %s10602_s28 = sphi %s10663_s28, %s12394_s28   ;;  %s10598_s27 = sphi %s10661_s27, %s12393_s27   ;;  %s10594_s26 = sphi %s10659_s26, %s12392_s26  }
   0x9   : > { %p12378_p1 = scmp.eq.s32.totalorder %s10678_s6, 0  ;;  %p9097_p2 = scmp.ge.s32.totalorder %s10606_s29, 1 }
   0xa   : > { %p207_p3 = scmp.lt.s32.totalorder %s10606_s29, 5  ;;  %s10608_s9 = smov [#allocation6]  }
   0xb   : > { %p10687_p5 = por %p12378_p1, %p70_p0  ;;  %s220_s10 = sshll.u32 %s10608_s9, 4  ;;  %s221_s10 = int_to_ptr.vmem [resolvable:$true] %s220_s10 }
   0xc   : > { %p10691_p6 = pnand %p9097_p2, %p207_p3  ;;  %s10609_s11 = smov [#allocation8]  }
   0xd   : > { %s12381_s30 = scalar_select %p10687_p5, 1, 0 }
   0xe   : > { %s12382_s8 = scalar_select %p10691_p6, 1, 0 }
   0xf   : > { %p10310_p7 = pneg %p10691_p6  ;;  %s231_s12 = sshll.u32 %s10609_s11, 4  ;;  %s232_s12 = int_to_ptr.vmem [resolvable:$true] %s231_s12 }
  0x10   : > { %s10610_s14 = smov [#allocation9]   ;;  %s10469_s16 = scalar_lea.vmem %s221_s10, 128 }
  0x11   : > { %p10699_p8 = pnand %p10310_p7, %p12378_p1  ;;  %s242_s15 = sshll.u32 %s10610_s14, 4  ;;  %s10703_s15 = int_to_ptr.vmem [resolvable:$true] %s242_s15 }
  0x12   : > { %p10470_p10 = scmp.ne.s32.totalorder %s221_s10, %s10469_s16  ;;  %p10477_p13 = scmp.lt.s32.totalorder %s221_s10, %s221_s10 }
  0x13   : > { %p10460_p9 = pneg %p10699_p8  ;;  %p10478_p0 = scmp.lt.s32.totalorder %s10469_s16, %s10469_s16 }
  0x15   : > { %p10472_p11 = pnand %p10470_p10, %p10460_p9  ;;  %p10479_p2 = por %p10478_p0, %p10477_p13 }
  0x17   : > { %p10473_p12 = pneg %p10472_p11 }
  0x19   : > { %p10480_p3 = pnand %p10479_p2, %p10473_p12 }
  0x1b   : > { %10483 = shalt.err (!%p10480_p3)
}
  0x1c   : > { %10313 = dma.hbm_to_vmem [thread:$0]  (!%p10699_p8), %s12372_s2, 128, %s221_s10, [#allocation7]  }
  0x1d   : > { %s10495_s19 = scalar_lea.vmem %s232_s12, 128  ;;  %p10503_p10 = scmp.lt.s32.totalorder %s232_s12, %s232_s12 }
  0x1e   : > { %p10496_p7 = scmp.ne.s32.totalorder %s232_s12, %s10495_s19  ;;  %p10504_p11 = scmp.lt.s32.totalorder %s10495_s19, %s10495_s19 }
  0x20   : > { %p10498_p4 = pnand %p10496_p7, %p10460_p9  ;;  %p10505_p5 = por %p10504_p11, %p10503_p10 }
  0x22   : > { %p10499_p1 = pneg %p10498_p4 }
  0x24   : > { %p10506_p6 = pnand %p10505_p5, %p10499_p1 }
  0x26   : > { %10509 = shalt.err (!%p10506_p6)
}
  0x27   : > { %10316 = dma.hbm_to_vmem [thread:$0]  (!%p10699_p8), %s12373_s3, 128, %s232_s12, [#allocation7]  }
  0x28   : > { %s10521_s22 = scalar_lea.vmem %s10703_s15, 128  ;;  %p10529_p0 = scmp.lt.s32.totalorder %s10703_s15, %s10703_s15 }
  0x29   : > { %p10522_p12 = scmp.ne.s32.totalorder %s10703_s15, %s10521_s22  ;;  %p10530_p1 = scmp.lt.s32.totalorder %s10521_s22, %s10521_s22 }
  0x2b   : > { %p10524_p4 = pnand %p10522_p12, %p10460_p9  ;;  %p10531_p5 = por %p10530_p1, %p10529_p0 }
  0x2d   : > { %p10525_p13 = pneg %p10524_p4 }
  0x2f   : > { %p10532_p6 = pnand %p10531_p5, %p10525_p13 }
  0x31   : > { %10535 = shalt.err (!%p10532_p6)
}
  0x32   : > { %10319 = dma.hbm_to_vmem [thread:$0]  (!%p10699_p8), %s12374_s4, 128, %s10703_s15, [#allocation10]  }
  0x33   : > { %s10737_s25 = sadd.s32 1, %s10606_s29   ;;  %s57_s9 = sadd.s32 1, %s10602_s28 }
  0x34   : > { %s54_s26 = ssub.s32 %s10606_s29, %s10737_s25  ;;  %p64_p2 = scmp.ne.s32.totalorder %s10602_s28, %s10598_s27 }
  0x35   : > { %p55_p9 = scmp.eq.s32.totalorder %s54_s26, 0  ;;  %p65_p3 = scmp.eq.s32.totalorder %s10606_s29, 0 }
  0x36   : > { %p10327_p7 = scmp.lt.s32.totalorder %s10606_s29, 4  ;;  %s268_s11 = sand.u32 1, %s10602_s28  }
  0x37   : > { %s10747_s10 = scalar_select %p55_p9, %s10602_s28, %s57_s9  }
  0x38   : > { %p66_p10 = por %p65_p3, %p64_p2  ;;  %s9102_s12 = sshll.u32 %s268_s11, 13 }
  0x39   : > { %s10207_s13 = sshll.u32 %s10606_s29, 17  ;;  %s272_s15 = scalar_lea.vmem [#allocation4], %s9102_s12 }
  0x3a   : > { %s10754_s17 = scalar_lea.hbm %s12371_s1, %s10207_s13  ;;  %s280_s18 = sshll.u32 %s272_s15, 4  ;;  %s10756_s18 = int_to_ptr.vmem [resolvable:$true] %s280_s18 }
  0x3b   : > { %p10758_p8 = pnand %p10327_p7, %p66_p10  ;;  %s10762_s20 = scalar_lea.sflag [#allocation5], %s268_s11 }
  0x3c   : > { %s10536_s29 = scalar_lea.hbm %s10754_s17, 131072  ;;  %s10541_s23 = scalar_lea.hbm %s12371_s1, 524288 }
  0x3d   : > { %p10537_p11 = scmp.ne.s32.totalorder %s10754_s17, %s10536_s29  ;;  %p10538_p12 = pneg %p10758_p8 }
  0x3e   : > { %p10542_p0 = scmp.lt.s32.totalorder %s10754_s17, %s12371_s1  ;;  %p10543_p1 = scmp.lt.s32.totalorder %s10541_s23, %s10536_s29 }
  0x3f   : > { %p10539_p4 = pnand %p10538_p12, %p10537_p11 }
  0x40   : > { %p10544_p5 = por %p10543_p1, %p10542_p0 }
  0x41   : > { %p10540_p13 = pneg %p10539_p4 }
  0x43   : > { %p10545_p6 = pnand %p10544_p5, %p10540_p13 }
  0x45   : > { %10548 = shalt.err (!%p10545_p6)
}
  0x46   : > { %s10549_s9 = scalar_lea.vmem %s10756_s18, 131072  ;;  %s10611_s11 = smov [#allocation4]  }
  0x47   : > { %p10550_p9 = scmp.ne.s32.totalorder %s10756_s18, %s10549_s9  ;;  %s10554_s12 = sshll.u32 %s10611_s11, 4  ;;  %s10555_s12 = int_to_ptr.vmem [resolvable:$false] %s10554_s12 }
  0x48   : > { %s10556_s13 = scalar_lea.vmem %s10555_s12, 262144  ;;  %p10557_p7 = scmp.lt.s32.totalorder %s10756_s18, %s10555_s12 }
  0x49   : > { %p10552_p2 = pnand %p10550_p9, %p10538_p12  ;;  %p10558_p10 = scmp.lt.s32.totalorder %s10556_s13, %s10549_s9 }
  0x4b   : > { %p10553_p3 = pneg %p10552_p2  ;;  %p10559_p11 = por %p10558_p10, %p10557_p7 }
  0x4d   : > { %p10560_p4 = pnand %p10559_p11, %p10553_p3 }
  0x4f   : > { %10563 = shalt.err (!%p10560_p4)
}
  0x50   : > { %s10612_s14 = smov 512   ;;  %s10613_s16 = smov 32  }
  0x51   : > { %10323 = dma.hbm_to_vmem [thread:$0]  (!%p10758_p8), %s10754_s17, 131072, %s10756_s18, %s10762_s20, %s10612_s14, %s10612_s14, %s10613_s16  }
  0x52   : > { %p12385_p12 = scmp.ne.s32.totalorder %s12382_s8, 0 }
  0x53   : > { %s294_s15 = sand.u32 (!%p12385_p12), 1, %s10598_s27   ;;  %p12386_p13 = scmp.ne.s32.totalorder (!%p12385_p12), %s12381_s30, 0 }
  0x54   : > { %292 = sbr.rel (%p12385_p12) target bundleno = 1704 (0x6a8), region = 48  ;;  %s9107_s29 = sshll.u32 (!%p12385_p12), %s294_s15, 13 }
  0x55   : > { %s295_s21 = scalar_lea.sflag (!%p12385_p12), [#allocation5], %s294_s15  ;;  %s10786_s22 = scalar_lea.vmem (!%p12385_p12), [#allocation4], %s9107_s29 }
  0x59   : > { %10581 = dma.done.wait (%p12386_p13), %s295_s21, 131072  }
  0x5a   : > { %10583 = vsyncadd (%p12386_p13), %s295_s21, 4294836224  ;;  %p12387_p0 = scmp.eq.s32.totalorder %s10678_s6, 0 }
  0x5c   : > { %10585 = dma.done.wait (%p12387_p0), [#allocation7], 256   ;;  %p12388_p8 = pmov %p12387_p0 }
  0x5d   : > { %p12389_p1 = pmov %p12387_p0 }
  0x5e   : > { %10587 = vsyncadd (%p12388_p8), [#allocation7], 4294967040 }
  0x5f   : > { %10589 = dma.done.wait (%p12389_p1), [#allocation10], 128   ;;  %p12390_p5 = pmov %p12387_p0 }
  0x60   : > { %s9111_s8 = sshll.u32 %s10678_s6, 4  ;;  %p12391_p9 = scmp.ne.s32.totalorder %s10678_s6, 0 }
  0x61   : > { %10591 = vsyncadd (%p12390_p5), [#allocation10], 4294967168  ;;  %p342_p6 = scmp.lt.s32.totalorder %s9111_s8, 63 }
  0x62   : > { %352 = sbr.rel (%p12391_p9) target bundleno = 106 (0x6a), region = 68 }
  0x63   : > { %s12397_s8 = smov (!%p342_p6, %s9111_s8), 63 }
  0x64   : > { %s9112_s17 = sshll.u32 %s12397_s8, 1 }
  0x65   : > { %s10804_s19 = scalar_lea.vmem %s12370_s0, %s9112_s17 }
  0x67   : > { %v10614_v1 = vmov 0.0  }
  0x68   : > { %353 = vst [vmem:[#allocation2 + $0x10] sm:$0xff] %v10614_v1  ;;  %354 = vst [vmem:[#allocation2] sm:$0xff] %v10614_v1 }
  0x69   : > { %355 = vst [vmem:[#allocation2 + $0x18] sm:$0xff] %v10614_v1  ;;  %356 = vst [vmem:[#allocation2 + $0x8] sm:$0xff] %v10614_v1 }
  0x6a PF: > { %v421_v2 = vld [vmem:[%s10786_s22 + $0x1c0] sm:$0xff]  ;;  %v10615_v34 = vmov 1983009808   ;;  %v1397_v36 = vlaneseq  ;;  %p10138_p2 = scmp.ne.s32.totalorder %s10678_s6, 3 }
  0x6b   : > { %v425_v3 = vld [vmem:[%s10786_s22 + $0x1e0] sm:$0xff]  ;;  %v1395_v35 = vunpack.c.l.s4 %v10615_v34 }
  0x6c   : > { %v549_v4 = vld [vmem:[%s10786_s22 + $0x5c0] sm:$0xff]  ;;  %v9171_v5 = vcombine.high %v421_v2, %v425_v3  ;;  %v9170_v7 = vcombine.low %v421_v2, %v425_v3  ;;  %v10830_v46 = vshrl.u32 %v1397_v36, 7 }
  0x6d   : > { %v553_v6 = vld [vmem:[%s10786_s22 + $0x5e0] sm:$0xff]  ;;  %v1396_v45 = vunpack.c.0.s8 %v1395_v35 }
  0x6e   : > { %v413_v8 = vld [vmem:[%s10786_s22 + $0x180] sm:$0xff]  ;;  %v9299_v10 = vcombine.high %v549_v4, %v553_v6  ;;  %v9298_v11 = vcombine.low %v549_v4, %v553_v6  ;;  %6597 = vmatprep.subr.bf16.mxu0 %v9171_v5 }
  0x6f   : > { %v417_v9 = vld [vmem:[%s10786_s22 + $0x1a0] sm:$0xff]  ;;  %6598 = vmatpush1.bf16.msra.mxu0 %v9170_v7  ;;  %v10837_v55 = vsub.s32 %v1396_v45, %v10830_v46 }
  0x70   : > { %v9163_v12 = vcombine.high %v413_v8, %v417_v9  ;;  %v541_v13 = vld [vmem:[%s10786_s22 + $0x580] sm:$0xff]  ;;  %6638 = vmatprep.subr.bf16.mxu1 %v9299_v10  ;;  %v9162_v20 = vcombine.low %v413_v8, %v417_v9 }
  0x71   : > { %v545_v14 = vld [vmem:[%s10786_s22 + $0x5a0] sm:$0xff]  ;;  %6639 = vmatpush1.bf16.msra.mxu1 %v9298_v11 }
  0x72   : > { %v405_v15 = vld [vmem:[%s10786_s22 + $0x140] sm:$0xff]  ;;  %v9291_v16 = vcombine.high %v541_v13, %v545_v14  ;;  %6599 = vmatprep.subr.bf16.mxu0 %v9163_v12  ;;  %v9290_v21 = vcombine.low %v541_v13, %v545_v14 }
  0x73   : > { %v409_v17 = vld [vmem:[%s10786_s22 + $0x160] sm:$0xff]  ;;  %6600 = vmatpush1.bf16.msra.mxu0 %v9162_v20 }
  0x74   : > { %v533_v18 = vld [vmem:[%s10786_s22 + $0x540] sm:$0xff]  ;;  %v9155_v22 = vcombine.high %v405_v15, %v409_v17  ;;  %6640 = vmatprep.subr.bf16.mxu1 %v9291_v16  ;;  %v9154_v28 = vcombine.low %v405_v15, %v409_v17 }
  0x75   : > { %v537_v19 = vld [vmem:[%s10786_s22 + $0x560] sm:$0xff]  ;;  %6641 = vmatpush1.bf16.msra.mxu1 %v9290_v21 }
  0x76   : > { %v9283_v23 = vcombine.high %v533_v18, %v537_v19  ;;  %v397_v24 = vld [vmem:[%s10786_s22 + $0x100] sm:$0xff]  ;;  %6601 = vmatprep.subr.bf16.mxu0 %v9155_v22  ;;  %v9282_v29 = vcombine.low %v533_v18, %v537_v19 }
  0x77   : > { %v401_v25 = vld [vmem:[%s10786_s22 + $0x120] sm:$0xff]  ;;  %6602 = vmatpush1.bf16.msra.mxu0 %v9154_v28 }
  0x78   : > { %v525_v26 = vld [vmem:[%s10786_s22 + $0x500] sm:$0xff]  ;;  %v9147_v30 = vcombine.high %v397_v24, %v401_v25  ;;  %6642 = vmatprep.subr.bf16.mxu1 %v9283_v23  ;;  %v9146_v39 = vcombine.low %v397_v24, %v401_v25 }
  0x79   : > { %v529_v27 = vld [vmem:[%s10786_s22 + $0x520] sm:$0xff]  ;;  %6643 = vmatpush1.bf16.msra.mxu1 %v9282_v29 }
  0x7a   : > { %v9275_v31 = vcombine.high %v525_v26, %v529_v27  ;;  %v389_v32 = vld [vmem:[%s10786_s22 + $0xc0] sm:$0xff]  ;;  %6603 = vmatprep.subr.bf16.mxu0 %v9147_v30  ;;  %v9274_v40 = vcombine.low %v525_v26, %v529_v27 }
  0x7b   : > { %v393_v33 = vld [vmem:[%s10786_s22 + $0xe0] sm:$0xff]  ;;  %6604 = vmatpush1.bf16.msra.mxu0 %v9146_v39 }
  0x7c   : > { %v517_v37 = vld [vmem:[%s10786_s22 + $0x4c0] sm:$0xff]  ;;  %v9139_v41 = vcombine.high %v389_v32, %v393_v33  ;;  %6644 = vmatprep.subr.bf16.mxu1 %v9275_v31  ;;  %v9138_v49 = vcombine.low %v389_v32, %v393_v33 }
  0x7d   : > { %v521_v38 = vld [vmem:[%s10786_s22 + $0x4e0] sm:$0xff]  ;;  %6645 = vmatpush1.bf16.msra.mxu1 %v9274_v40 }
  0x7e   : > { %v9267_v42 = vcombine.high %v517_v37, %v521_v38  ;;  %v381_v43 = vld [vmem:[%s10786_s22 + $0x80] sm:$0xff]  ;;  %6605 = vmatprep.subr.bf16.mxu0 %v9139_v41  ;;  %v9266_v50 = vcombine.low %v517_v37, %v521_v38 }
  0x7f   : > { %v385_v44 = vld [vmem:[%s10786_s22 + $0xa0] sm:$0xff]  ;;  %6606 = vmatpush1.bf16.msra.mxu0 %v9138_v49 }
  0x80   : > { %v509_v47 = vld [vmem:[%s10786_s22 + $0x480] sm:$0xff]  ;;  %v9131_v51 = vcombine.high %v381_v43, %v385_v44  ;;  %6646 = vmatprep.subr.bf16.mxu1 %v9267_v42  ;;  %v9130_v58 = vcombine.low %v381_v43, %v385_v44 }
  0x81   : > { %v513_v48 = vld [vmem:[%s10786_s22 + $0x4a0] sm:$0xff]  ;;  %6647 = vmatpush1.bf16.msra.mxu1 %v9266_v50 }
  0x82   : > { %v9259_v52 = vcombine.high %v509_v47, %v513_v48  ;;  %v373_v53 = vld [vmem:[%s10786_s22 + $0x40] sm:$0xff]  ;;  %6607 = vmatprep.subr.bf16.mxu0 %v9131_v51  ;;  %v9258_v59 = vcombine.low %v509_v47, %v513_v48 }
  0x83   : > { %v377_v54 = vld [vmem:[%s10786_s22 + $0x60] sm:$0xff]  ;;  %6608 = vmatpush1.bf16.msra.mxu0 %v9130_v58 }
  0x84   : > { %v501_v56 = vld [vmem:[%s10786_s22 + $0x440] sm:$0xff]  ;;  %v9123_v60 = vcombine.high %v373_v53, %v377_v54  ;;  %6648 = vmatprep.subr.bf16.mxu1 %v9259_v52  ;;  %v9122_v5 = vcombine.low %v373_v53, %v377_v54 }
  0x85   : > { %v505_v57 = vld [vmem:[%s10786_s22 + $0x460] sm:$0xff]  ;;  %6649 = vmatpush1.bf16.msra.mxu1 %v9258_v59 }
  0x86   : > { %v361_v61 = vld [vmem:[%s10804_s19] sm:$0xff]  ;;  %v9251_v62 = vcombine.high %v501_v56, %v505_v57  ;;  %6609 = vmatprep.subr.bf16.mxu0 %v9123_v60  ;;  %v9250_v8 = vcombine.low %v501_v56, %v505_v57 }
  0x87   : > { %v365_v63 = vld [vmem:[%s10786_s22] sm:$0xff]  ;;  %v10845_v1 = vrot.slane %v361_v61, %v10837_v55  ;;  %v1393_v2 = vcombine.high %v361_v61, %v361_v61  ;;  %6610 = vmatpush1.bf16.msra.mxu0 %v9122_v5 }
  0x88   : > { %v369_v0 = vld [vmem:[%s10786_s22 + $0x20] sm:$0xff]  ;;  %6650 = vmatprep.subr.bf16.mxu1 %v9251_v62 }
  0x89   : > { %v493_v3 = vld [vmem:[%s10786_s22 + $0x400] sm:$0xff]  ;;  %v10851_v6 = vcombine.high %v10845_v1, %v10845_v1  ;;  %v10854_v7 = vrot.slane %v1393_v2, %v10837_v55  ;;  %v9115_v9 = vcombine.high %v365_v63, %v369_v0  ;;  %v9114_v16 = vcombine.low %v365_v63, %v369_v0  ;;  %6651 = vmatpush1.bf16.msra.mxu1 %v9250_v8 }
  0x8a   : > { %v497_v4 = vld [vmem:[%s10786_s22 + $0x420] sm:$0xff] }
  0x8b   : > { %v9243_v10 = vcombine.high %v493_v3, %v497_v4  ;;  %v485_v11 = vld [vmem:[%s10786_s22 + $0x3c0] sm:$0xff]  ;;  %6629 = vmatprep.mubr.bf16.mxu0 %v10851_v6  ;;  %v10861_v13 = vcombine.high %v10854_v7, %v10854_v7  ;;  %6611 = vmatprep.subr.bf16.mxu0 %v9115_v9  ;;  %v9242_v17 = vcombine.low %v493_v3, %v497_v4 }
  0x8c   : > { %v489_v12 = vld [vmem:[%s10786_s22 + $0x3e0] sm:$0xff]  ;;  %6612 = vmatpush1.bf16.msra.mxu0 %v9114_v16 }
  0x8d   : > { %v613_v14 = vld [vmem:[%s10786_s22 + $0x7c0] sm:$0xff]  ;;  %6670 = vmatprep.mubr.bf16.mxu1 %v10861_v13  ;;  %v9235_v18 = vcombine.high %v485_v11, %v489_v12  ;;  %6652 = vmatprep.subr.bf16.mxu1 %v9243_v10  ;;  %v9234_v24 = vcombine.low %v485_v11, %v489_v12 }
  0x8e   : > { %v617_v15 = vld [vmem:[%s10786_s22 + $0x7e0] sm:$0xff]  ;;  %6653 = vmatpush1.bf16.msra.mxu1 %v9242_v17 }
  0x8f   : > { %v9363_v19 = vcombine.high %v613_v14, %v617_v15  ;;  %v477_v20 = vld [vmem:[%s10786_s22 + $0x380] sm:$0xff]  ;;  %6613 = vmatprep.subr.bf16.mxu0 %v9235_v18  ;;  %v9362_v25 = vcombine.low %v613_v14, %v617_v15 }
  0x90   : > { %v481_v21 = vld [vmem:[%s10786_s22 + $0x3a0] sm:$0xff]  ;;  %6614 = vmatpush2.bf16.msra.mxu0 %v9234_v24 }
  0x91   : > { %v605_v22 = vld [vmem:[%s10786_s22 + $0x780] sm:$0xff]  ;;  %v9227_v26 = vcombine.high %v477_v20, %v481_v21  ;;  %6654 = vmatprep.subr.bf16.mxu1 %v9363_v19  ;;  %v9226_v32 = vcombine.low %v477_v20, %v481_v21 }
  0x92   : > { %v609_v23 = vld [vmem:[%s10786_s22 + $0x7a0] sm:$0xff]  ;;  %6655 = vmatpush2.bf16.msra.mxu1 %v9362_v25 }
  0x93   : > { %v9355_v27 = vcombine.high %v605_v22, %v609_v23  ;;  %v469_v28 = vld [vmem:[%s10786_s22 + $0x340] sm:$0xff]  ;;  %6615 = vmatprep.subr.bf16.mxu0 %v9227_v26  ;;  %v9354_v33 = vcombine.low %v605_v22, %v609_v23 }
  0x94   : > { %v473_v29 = vld [vmem:[%s10786_s22 + $0x360] sm:$0xff]  ;;  %6616 = vmatpush2.bf16.msra.mxu0 %v9226_v32 }
  0x95   : > { %v597_v30 = vld [vmem:[%s10786_s22 + $0x740] sm:$0xff]  ;;  %v9219_v34 = vcombine.high %v469_v28, %v473_v29  ;;  %6656 = vmatprep.subr.bf16.mxu1 %v9355_v27  ;;  %v9218_v40 = vcombine.low %v469_v28, %v473_v29 }
  0x96   : > { %v601_v31 = vld [vmem:[%s10786_s22 + $0x760] sm:$0xff]  ;;  %6657 = vmatpush2.bf16.msra.mxu1 %v9354_v33 }
  0x97   : > { %v9347_v35 = vcombine.high %v597_v30, %v601_v31  ;;  %v461_v36 = vld [vmem:[%s10786_s22 + $0x300] sm:$0xff]  ;;  %6617 = vmatprep.subr.bf16.mxu0 %v9219_v34  ;;  %v9346_v41 = vcombine.low %v597_v30, %v601_v31 }
  0x98   : > { %v465_v37 = vld [vmem:[%s10786_s22 + $0x320] sm:$0xff]  ;;  %6618 = vmatpush2.bf16.msra.mxu0 %v9218_v40 }
  0x99   : > { %v589_v38 = vld [vmem:[%s10786_s22 + $0x700] sm:$0xff]  ;;  %v9211_v42 = vcombine.high %v461_v36, %v465_v37  ;;  %6658 = vmatprep.subr.bf16.mxu1 %v9347_v35  ;;  %v9210_v49 = vcombine.low %v461_v36, %v465_v37 }
  0x9a   : > { %v593_v39 = vld [vmem:[%s10786_s22 + $0x720] sm:$0xff]  ;;  %6659 = vmatpush2.bf16.msra.mxu1 %v9346_v41 }
  0x9b   : > { %v9339_v43 = vcombine.high %v589_v38, %v593_v39  ;;  %v453_v44 = vld [vmem:[%s10786_s22 + $0x2c0] sm:$0xff]  ;;  %6619 = vmatprep.subr.bf16.mxu0 %v9211_v42  ;;  %v9338_v50 = vcombine.low %v589_v38, %v593_v39 }
  0x9c   : > { %v457_v45 = vld [vmem:[%s10786_s22 + $0x2e0] sm:$0xff]  ;;  %6620 = vmatpush2.bf16.msra.mxu0 %v9210_v49 }
  0x9d   : > { %v581_v47 = vld [vmem:[%s10786_s22 + $0x6c0] sm:$0xff]  ;;  %v9203_v51 = vcombine.high %v453_v44, %v457_v45  ;;  %6660 = vmatprep.subr.bf16.mxu1 %v9339_v43  ;;  %v9202_v58 = vcombine.low %v453_v44, %v457_v45 }
  0x9e   : > { %v585_v48 = vld [vmem:[%s10786_s22 + $0x6e0] sm:$0xff]  ;;  %6661 = vmatpush2.bf16.msra.mxu1 %v9338_v50 }
  0x9f   : > { %v9331_v52 = vcombine.high %v581_v47, %v585_v48  ;;  %v445_v53 = vld [vmem:[%s10786_s22 + $0x280] sm:$0xff]  ;;  %6621 = vmatprep.subr.bf16.mxu0 %v9203_v51  ;;  %v9330_v59 = vcombine.low %v581_v47, %v585_v48 }
  0xa0   : > { %v449_v54 = vld [vmem:[%s10786_s22 + $0x2a0] sm:$0xff]  ;;  %6622 = vmatpush2.bf16.msra.mxu0 %v9202_v58 }
  0xa1   : > { %v573_v56 = vld [vmem:[%s10786_s22 + $0x680] sm:$0xff]  ;;  %v9195_v60 = vcombine.high %v445_v53, %v449_v54  ;;  %6662 = vmatprep.subr.bf16.mxu1 %v9331_v52  ;;  %v9194_v3 = vcombine.low %v445_v53, %v449_v54 }
  0xa2   : > { %v577_v57 = vld [vmem:[%s10786_s22 + $0x6a0] sm:$0xff]  ;;  %6663 = vmatpush2.bf16.msra.mxu1 %v9330_v59 }
  0xa3   : > { %v9323_v61 = vcombine.high %v573_v56, %v577_v57  ;;  %v437_v62 = vld [vmem:[%s10786_s22 + $0x240] sm:$0xff]  ;;  %6623 = vmatprep.subr.bf16.mxu0 %v9195_v60  ;;  %v9322_v4 = vcombine.low %v573_v56, %v577_v57 }
  0xa4   : > { %v441_v63 = vld [vmem:[%s10786_s22 + $0x260] sm:$0xff]  ;;  %6624 = vmatpush2.bf16.msra.mxu0 %v9194_v3 }
  0xa5   : > { %v565_v0 = vld [vmem:[%s10786_s22 + $0x640] sm:$0xff]  ;;  %v9187_v5 = vcombine.high %v437_v62, %v441_v63  ;;  %6664 = vmatprep.subr.bf16.mxu1 %v9323_v61  ;;  %v9186_v14 = vcombine.low %v437_v62, %v441_v63 }
  0xa6   : > { %v569_v2 = vld [vmem:[%s10786_s22 + $0x660] sm:$0xff]  ;;  %6665 = vmatpush2.bf16.msra.mxu1 %v9322_v4 }
  0xa7   : > { %v9315_v8 = vcombine.high %v565_v0, %v569_v2  ;;  %v429_v9 = vld [vmem:[%s10786_s22 + $0x200] sm:$0xff]  ;;  %6625 = vmatprep.subr.bf16.mxu0 %v9187_v5  ;;  %v9314_v16 = vcombine.low %v565_v0, %v569_v2 }
  0xa8   : > { %v433_v10 = vld [vmem:[%s10786_s22 + $0x220] sm:$0xff]  ;;  %6626 = vmatpush2.bf16.msra.mxu0 %v9186_v14 }
  0xa9   : > { %v557_v11 = vld [vmem:[%s10786_s22 + $0x600] sm:$0xff]  ;;  %v9179_v17 = vcombine.high %v429_v9, %v433_v10  ;;  %6666 = vmatprep.subr.bf16.mxu1 %v9315_v8  ;;  %v9178_v24 = vcombine.low %v429_v9, %v433_v10 }
  0xaa   : > { %v561_v12 = vld [vmem:[%s10786_s22 + $0x620] sm:$0xff]  ;;  %6667 = vmatpush2.bf16.msra.mxu1 %v9314_v16 }
  0xab   : > { %v362_v15 = vld [vmem:[%s10804_s19 + $0x8] sm:$0xff]  ;;  %v9307_v18 = vcombine.high %v557_v11, %v561_v12  ;;  %6627 = vmatprep.subr.bf16.mxu0 %v9179_v17  ;;  %v9306_v25 = vcombine.low %v557_v11, %v561_v12 }
  0xac   : > { %v677_v19 = vld [vmem:[%s10786_s22 + $0x9c0] sm:$0xff]  ;;  %v1410_v23 = vcombine.high %v362_v15, %v362_v15  ;;  %v10902_v30 = vrot.slane %v362_v15, %v10837_v55  ;;  %6628 = vmatpush2.bf16.msra.mxu0 %v9178_v24 }
  0xad   : > { %v681_v20 = vld [vmem:[%s10786_s22 + $0x9e0] sm:$0xff]  ;;  %6668 = vmatprep.subr.bf16.mxu1 %v9307_v18 }
  0xae   : > { %v805_v21 = vld [vmem:[%s10786_s22 + $0xdc0] sm:$0xff]  ;;  %v9427_v26 = vcombine.high %v677_v19, %v681_v20  ;;  %v10907_v33 = vrot.slane %v1410_v23, %v10837_v55  ;;  %v9426_v34 = vcombine.low %v677_v19, %v681_v20  ;;  %6669 = vmatpush2.bf16.msra.mxu1 %v9306_v25  ;;  %v10913_v40 = vcombine.high %v10902_v30, %v10902_v30 }
  0xaf   : > { %v809_v22 = vld [vmem:[%s10786_s22 + $0xde0] sm:$0xff]  ;;  %6630 = vmatmul.mubr.bf16.vlgmr.msra.gmra.mxu0 %v10845_v1 }
  0xb0   : > { %v9555_v27 = vcombine.high %v805_v21, %v809_v22  ;;  %v669_v28 = vld [vmem:[%s10786_s22 + $0x980] sm:$0xff]  ;;  %6679 = vmatprep.subr.bf16.mxu0 %v9427_v26  ;;  %v9554_v35 = vcombine.low %v805_v21, %v809_v22  ;;  %v10920_v43 = vcombine.high %v10907_v33, %v10907_v33  ;;  %6711 = vmatprep.mubr.bf16.mxu0 %v10913_v40 }
  0xb1   : > { %v673_v29 = vld [vmem:[%s10786_s22 + $0x9a0] sm:$0xff]  ;;  %6671 = vmatmul.mubr.bf16.vlgmr.msra.gmra.mxu1 %v10854_v7  ;;  %6680 = vmatpush1.bf16.msra.mxu0 %v9426_v34 }
  0xb2   : > { %v797_v31 = vld [vmem:[%s10786_s22 + $0xd80] sm:$0xff]  ;;  %v9419_v36 = vcombine.high %v669_v28, %v673_v29  ;;  %6720 = vmatprep.subr.bf16.mxu1 %v9555_v27  ;;  %v9418_v44 = vcombine.low %v669_v28, %v673_v29  ;;  %6752 = vmatprep.mubr.bf16.mxu1 %v10920_v43 }
  0xb3   : > { %v801_v32 = vld [vmem:[%s10786_s22 + $0xda0] sm:$0xff]  ;;  %6721 = vmatpush1.bf16.msra.mxu1 %v9554_v35 }
  0xb4   : > { %v9547_v37 = vcombine.high %v797_v31, %v801_v32  ;;  %v661_v38 = vld [vmem:[%s10786_s22 + $0x940] sm:$0xff]  ;;  %6681 = vmatprep.subr.bf16.mxu0 %v9419_v36  ;;  %v9546_v45 = vcombine.low %v797_v31, %v801_v32 }
  0xb5   : > { %v665_v39 = vld [vmem:[%s10786_s22 + $0x960] sm:$0xff]  ;;  %6682 = vmatpush1.bf16.msra.mxu0 %v9418_v44 }
  0xb6   : > { %v789_v41 = vld [vmem:[%s10786_s22 + $0xd40] sm:$0xff]  ;;  %v9411_v47 = vcombine.high %v661_v38, %v665_v39  ;;  %6722 = vmatprep.subr.bf16.mxu1 %v9547_v37  ;;  %v9410_v53 = vcombine.low %v661_v38, %v665_v39 }
  0xb7   : > { %v793_v42 = vld [vmem:[%s10786_s22 + $0xd60] sm:$0xff]  ;;  %6723 = vmatpush1.bf16.msra.mxu1 %v9546_v45 }
  0xb8   : > { %v9539_v48 = vcombine.high %v789_v41, %v793_v42  ;;  %v653_v49 = vld [vmem:[%s10786_s22 + $0x900] sm:$0xff]  ;;  %6683 = vmatprep.subr.bf16.mxu0 %v9411_v47  ;;  %v9538_v54 = vcombine.low %v789_v41, %v793_v42 }
  0xb9   : > { %v657_v50 = vld [vmem:[%s10786_s22 + $0x920] sm:$0xff]  ;;  %6684 = vmatpush1.bf16.msra.mxu0 %v9410_v53 }
  0xba   : > { %v781_v51 = vld [vmem:[%s10786_s22 + $0xd00] sm:$0xff]  ;;  %v9403_v56 = vcombine.high %v653_v49, %v657_v50  ;;  %6724 = vmatprep.subr.bf16.mxu1 %v9539_v48  ;;  %v9402_v62 = vcombine.low %v653_v49, %v657_v50 }
  0xbb   : > { %v785_v52 = vld [vmem:[%s10786_s22 + $0xd20] sm:$0xff]  ;;  %6725 = vmatpush1.bf16.msra.mxu1 %v9538_v54 }
  0xbc   : > { %v9531_v57 = vcombine.high %v781_v51, %v785_v52  ;;  %v645_v58 = vld [vmem:[%s10786_s22 + $0x8c0] sm:$0xff]  ;;  %6685 = vmatprep.subr.bf16.mxu0 %v9403_v56  ;;  %v9530_v63 = vcombine.low %v781_v51, %v785_v52 }
  0xbd   : > { %v649_v59 = vld [vmem:[%s10786_s22 + $0x8e0] sm:$0xff]  ;;  %6686 = vmatpush1.bf16.msra.mxu0 %v9402_v62 }
  0xbe   : > { %v773_v60 = vld [vmem:[%s10786_s22 + $0xcc0] sm:$0xff]  ;;  %v9395_v0 = vcombine.high %v645_v58, %v649_v59  ;;  %6726 = vmatprep.subr.bf16.mxu1 %v9531_v57  ;;  %v9394_v9 = vcombine.low %v645_v58, %v649_v59 }
  0xbf   : > { %v777_v61 = vld [vmem:[%s10786_s22 + $0xce0] sm:$0xff]  ;;  %6727 = vmatpush1.bf16.msra.mxu1 %v9530_v63 }
  0xc0   : > { %v9523_v2 = vcombine.high %v773_v60, %v777_v61  ;;  %v637_v3 = vld [vmem:[%s10786_s22 + $0x880] sm:$0xff]  ;;  %6687 = vmatprep.subr.bf16.mxu0 %v9395_v0  ;;  %v9522_v10 = vcombine.low %v773_v60, %v777_v61 }
  0xc1   : > { %v641_v4 = vld [vmem:[%s10786_s22 + $0x8a0] sm:$0xff]  ;;  %6688 = vmatpush1.bf16.msra.mxu0 %v9394_v9 }
  0xc2   : > { %v765_v5 = vld [vmem:[%s10786_s22 + $0xc80] sm:$0xff]  ;;  %v9387_v11 = vcombine.high %v637_v3, %v641_v4  ;;  %6728 = vmatprep.subr.bf16.mxu1 %v9523_v2  ;;  %v9386_v18 = vcombine.low %v637_v3, %v641_v4 }
  0xc3   : > { %v769_v8 = vld [vmem:[%s10786_s22 + $0xca0] sm:$0xff]  ;;  %6729 = vmatpush1.bf16.msra.mxu1 %v9522_v10 }
  0xc4   : > { %v9515_v12 = vcombine.high %v765_v5, %v769_v8  ;;  %v629_v14 = vld [vmem:[%s10786_s22 + $0x840] sm:$0xff]  ;;  %6689 = vmatprep.subr.bf16.mxu0 %v9387_v11  ;;  %v9514_v19 = vcombine.low %v765_v5, %v769_v8 }
  0xc5   : > { %v633_v15 = vld [vmem:[%s10786_s22 + $0x860] sm:$0xff]  ;;  %6690 = vmatpush1.bf16.msra.mxu0 %v9386_v18 }
  0xc6   : > { %v757_v16 = vld [vmem:[%s10786_s22 + $0xc40] sm:$0xff]  ;;  %v9379_v20 = vcombine.high %v629_v14, %v633_v15  ;;  %6730 = vmatprep.subr.bf16.mxu1 %v9515_v12  ;;  %v9378_v26 = vcombine.low %v629_v14, %v633_v15 }
  0xc7   : > { %v761_v17 = vld [vmem:[%s10786_s22 + $0xc60] sm:$0xff]  ;;  %6731 = vmatpush1.bf16.msra.mxu1 %v9514_v19 }
  0xc8   : > { %v9507_v21 = vcombine.high %v757_v16, %v761_v17  ;;  %v621_v22 = vld [vmem:[%s10786_s22 + $0x800] sm:$0xff]  ;;  %6691 = vmatprep.subr.bf16.mxu0 %v9379_v20  ;;  %v9506_v27 = vcombine.low %v757_v16, %v761_v17 }
  0xc9   : > { %v625_v23 = vld [vmem:[%s10786_s22 + $0x820] sm:$0xff]  ;;  %6692 = vmatpush1.bf16.msra.mxu0 %v9378_v26 }
  0xca   : > { %v749_v24 = vld [vmem:[%s10786_s22 + $0xc00] sm:$0xff]  ;;  %v9371_v28 = vcombine.high %v621_v22, %v625_v23  ;;  %6732 = vmatprep.subr.bf16.mxu1 %v9507_v21  ;;  %v9370_v36 = vcombine.low %v621_v22, %v625_v23 }
  0xcb   : > { %v753_v25 = vld [vmem:[%s10786_s22 + $0xc20] sm:$0xff]  ;;  %6733 = vmatpush1.bf16.msra.mxu1 %v9506_v27 }
  0xcc   : > { %v9499_v29 = vcombine.high %v749_v24, %v753_v25  ;;  %v741_v31 = vld [vmem:[%s10786_s22 + $0xbc0] sm:$0xff]  ;;  %6693 = vmatprep.subr.bf16.mxu0 %v9371_v28  ;;  %v9498_v37 = vcombine.low %v749_v24, %v753_v25 }
  0xcd   : > { %v745_v32 = vld [vmem:[%s10786_s22 + $0xbe0] sm:$0xff]  ;;  %6694 = vmatpush1.bf16.msra.mxu0 %v9370_v36 }
  0xce   : > { %v869_v34 = vld [vmem:[%s10786_s22 + $0xfc0] sm:$0xff]  ;;  %v9491_v38 = vcombine.high %v741_v31, %v745_v32  ;;  %6734 = vmatprep.subr.bf16.mxu1 %v9499_v29  ;;  %v9490_v47 = vcombine.low %v741_v31, %v745_v32 }
  0xcf   : > { %v873_v35 = vld [vmem:[%s10786_s22 + $0xfe0] sm:$0xff]  ;;  %6735 = vmatpush1.bf16.msra.mxu1 %v9498_v37 }
  0xd0   : > { %v9619_v39 = vcombine.high %v869_v34, %v873_v35  ;;  %v733_v41 = vld [vmem:[%s10786_s22 + $0xb80] sm:$0xff]  ;;  %6695 = vmatprep.subr.bf16.mxu0 %v9491_v38  ;;  %v9618_v48 = vcombine.low %v869_v34, %v873_v35 }
  0xd1   : > { %v737_v42 = vld [vmem:[%s10786_s22 + $0xba0] sm:$0xff]  ;;  %6696 = vmatpush2.bf16.msra.mxu0 %v9490_v47 }
  0xd2   : > { %v861_v44 = vld [vmem:[%s10786_s22 + $0xf80] sm:$0xff]  ;;  %v9483_v49 = vcombine.high %v733_v41, %v737_v42  ;;  %6736 = vmatprep.subr.bf16.mxu1 %v9619_v39  ;;  %v9482_v56 = vcombine.low %v733_v41, %v737_v42  ;;  %v363_v39 = vld [vmem:[%s10804_s19 + $0x10] sm:$0xff] }
  0xd3   : > { %v865_v45 = vld [vmem:[%s10786_s22 + $0xfa0] sm:$0xff]  ;;  %6737 = vmatpush2.bf16.msra.mxu1 %v9618_v48 }
  0xd4   : > { %v9611_v50 = vcombine.high %v861_v44, %v865_v45  ;;  %v725_v51 = vld [vmem:[%s10786_s22 + $0xb40] sm:$0xff]  ;;  %6697 = vmatprep.subr.bf16.mxu0 %v9483_v49  ;;  %v9610_v57 = vcombine.low %v861_v44, %v865_v45 }
  0xd5   : > { %v729_v52 = vld [vmem:[%s10786_s22 + $0xb60] sm:$0xff]  ;;  %6698 = vmatpush2.bf16.msra.mxu0 %v9482_v56 }
  0xd6   : > { %v853_v53 = vld [vmem:[%s10786_s22 + $0xf40] sm:$0xff]  ;;  %v9475_v58 = vcombine.high %v725_v51, %v729_v52  ;;  %6738 = vmatprep.subr.bf16.mxu1 %v9611_v50  ;;  %v9474_v0 = vcombine.low %v725_v51, %v729_v52  ;;  %v1427_v50 = vcombine.high %v363_v39, %v363_v39 }
  0xd7   : > { %v857_v54 = vld [vmem:[%s10786_s22 + $0xf60] sm:$0xff]  ;;  %6739 = vmatpush2.bf16.msra.mxu1 %v9610_v57 }
  0xd8   : > { %v9603_v59 = vcombine.high %v853_v53, %v857_v54  ;;  %v717_v60 = vld [vmem:[%s10786_s22 + $0xb00] sm:$0xff]  ;;  %6699 = vmatprep.subr.bf16.mxu0 %v9475_v58  ;;  %v9602_v2 = vcombine.low %v853_v53, %v857_v54  ;;  %v10985_v58 = vrot.slane %v363_v39, %v10837_v55 }
  0xd9   : > { %v721_v61 = vld [vmem:[%s10786_s22 + $0xb20] sm:$0xff]  ;;  %6700 = vmatpush2.bf16.msra.mxu0 %v9474_v0 }
  0xda   : > { %v845_v62 = vld [vmem:[%s10786_s22 + $0xf00] sm:$0xff]  ;;  %v9467_v3 = vcombine.high %v717_v60, %v721_v61  ;;  %6740 = vmatprep.subr.bf16.mxu1 %v9603_v59  ;;  %v9466_v11 = vcombine.low %v717_v60, %v721_v61  ;;  %v10990_v61 = vrot.slane %v1427_v50, %v10837_v55 }
  0xdb   : > { %v849_v63 = vld [vmem:[%s10786_s22 + $0xf20] sm:$0xff]  ;;  %6741 = vmatpush2.bf16.msra.mxu1 %v9602_v2 }
  0xdc   : > { %v9595_v4 = vcombine.high %v845_v62, %v849_v63  ;;  %v709_v5 = vld [vmem:[%s10786_s22 + $0xac0] sm:$0xff]  ;;  %6701 = vmatprep.subr.bf16.mxu0 %v9467_v3  ;;  %v9594_v12 = vcombine.low %v845_v62, %v849_v63 }
  0xdd   : > { %v713_v8 = vld [vmem:[%s10786_s22 + $0xae0] sm:$0xff]  ;;  %6702 = vmatpush2.bf16.msra.mxu0 %v9466_v11 }
  0xde   : > { %v837_v9 = vld [vmem:[%s10786_s22 + $0xec0] sm:$0xff]  ;;  %v9459_v14 = vcombine.high %v709_v5, %v713_v8  ;;  %6742 = vmatprep.subr.bf16.mxu1 %v9595_v4  ;;  %v9458_v20 = vcombine.low %v709_v5, %v713_v8  ;;  %v10996_v5 = vcombine.high %v10985_v58, %v10985_v58 }
  0xdf   : > { %v841_v10 = vld [vmem:[%s10786_s22 + $0xee0] sm:$0xff]  ;;  %6743 = vmatpush2.bf16.msra.mxu1 %v9594_v12 }
  0xe0   : > { %v9587_v15 = vcombine.high %v837_v9, %v841_v10  ;;  %v701_v16 = vld [vmem:[%s10786_s22 + $0xa80] sm:$0xff]  ;;  %6703 = vmatprep.subr.bf16.mxu0 %v9459_v14  ;;  %v9586_v21 = vcombine.low %v837_v9, %v841_v10  ;;  %v11003_v10 = vcombine.high %v10990_v61, %v10990_v61 }
  0xe1   : > { %v705_v17 = vld [vmem:[%s10786_s22 + $0xaa0] sm:$0xff]  ;;  %6704 = vmatpush2.bf16.msra.mxu0 %v9458_v20 }
  0xe2   : > { %v829_v18 = vld [vmem:[%s10786_s22 + $0xe80] sm:$0xff]  ;;  %v9451_v22 = vcombine.high %v701_v16, %v705_v17  ;;  %6744 = vmatprep.subr.bf16.mxu1 %v9587_v15  ;;  %v9450_v28 = vcombine.low %v701_v16, %v705_v17 }
  0xe3   : > { %v833_v19 = vld [vmem:[%s10786_s22 + $0xea0] sm:$0xff]  ;;  %6745 = vmatpush2.bf16.msra.mxu1 %v9586_v21 }
  0xe4   : > { %v9579_v23 = vcombine.high %v829_v18, %v833_v19  ;;  %v693_v24 = vld [vmem:[%s10786_s22 + $0xa40] sm:$0xff]  ;;  %6705 = vmatprep.subr.bf16.mxu0 %v9451_v22  ;;  %v9578_v29 = vcombine.low %v829_v18, %v833_v19 }
  0xe5   : > { %v697_v25 = vld [vmem:[%s10786_s22 + $0xa60] sm:$0xff]  ;;  %6706 = vmatpush2.bf16.msra.mxu0 %v9450_v28 }
  0xe6   : > { %v821_v26 = vld [vmem:[%s10786_s22 + $0xe40] sm:$0xff]  ;;  %v9443_v31 = vcombine.high %v693_v24, %v697_v25  ;;  %6746 = vmatprep.subr.bf16.mxu1 %v9579_v23  ;;  %v9442_v38 = vcombine.low %v693_v24, %v697_v25 }
  0xe7   : > { %v825_v27 = vld [vmem:[%s10786_s22 + $0xe60] sm:$0xff]  ;;  %6747 = vmatpush2.bf16.msra.mxu1 %v9578_v29 }
  0xe8   : > { %v9571_v32 = vcombine.high %v821_v26, %v825_v27  ;;  %v685_v34 = vld [vmem:[%s10786_s22 + $0xa00] sm:$0xff]  ;;  %6707 = vmatprep.subr.bf16.mxu0 %v9443_v31  ;;  %v9570_v41 = vcombine.low %v821_v26, %v825_v27 }
  0xe9   : > { %v689_v35 = vld [vmem:[%s10786_s22 + $0xa20] sm:$0xff]  ;;  %6708 = vmatpush2.bf16.msra.mxu0 %v9442_v38 }
  0xea   : > { %v813_v36 = vld [vmem:[%s10786_s22 + $0xe00] sm:$0xff]  ;;  %v9435_v42 = vcombine.high %v685_v34, %v689_v35  ;;  %6748 = vmatprep.subr.bf16.mxu1 %v9571_v32  ;;  %v9434_v51 = vcombine.low %v685_v34, %v689_v35 }
  0xeb   : > { %v817_v37 = vld [vmem:[%s10786_s22 + $0xe20] sm:$0xff]  ;;  %6749 = vmatpush2.bf16.msra.mxu1 %v9570_v41 }
  0xec   : > { %v9563_v44 = vcombine.high %v813_v36, %v817_v37  ;;  %v933_v45 = vld [vmem:[%s10786_s22 + $0x11c0] sm:$0xff]  ;;  %6709 = vmatprep.subr.bf16.mxu0 %v9435_v42  ;;  %v9562_v52 = vcombine.low %v813_v36, %v817_v37 }
  0xed   : > { %v937_v47 = vld [vmem:[%s10786_s22 + $0x11e0] sm:$0xff]  ;;  %6710 = vmatpush2.bf16.msra.mxu0 %v9434_v51 }
  0xee   : > { %v1061_v48 = vld [vmem:[%s10786_s22 + $0x15c0] sm:$0xff]  ;;  %v9683_v53 = vcombine.high %v933_v45, %v937_v47  ;;  %6750 = vmatprep.subr.bf16.mxu1 %v9563_v44  ;;  %v9682_v62 = vcombine.low %v933_v45, %v937_v47 }
  0xef   : > { %v1065_v49 = vld [vmem:[%s10786_s22 + $0x15e0] sm:$0xff]  ;;  %6751 = vmatpush2.bf16.msra.mxu1 %v9562_v52 }
  0xf0   : > { %v9811_v54 = vcombine.high %v1061_v48, %v1065_v49  ;;  %v925_v56 = vld [vmem:[%s10786_s22 + $0x1180] sm:$0xff]  ;;  %6761 = vmatprep.subr.bf16.mxu0 %v9683_v53  ;;  %v9810_v63 = vcombine.low %v1061_v48, %v1065_v49  ;;  %6712 = vmatmul.mubr.bf16.vlgmr.msra.gmra.mxu0 %v10902_v30 }
  0xf1   : > { %v929_v57 = vld [vmem:[%s10786_s22 + $0x11a0] sm:$0xff]  ;;  %6762 = vmatpush1.bf16.msra.mxu0 %v9682_v62  ;;  %6793 = vmatprep.mubr.bf16.mxu0 %v10996_v5 }
  0xf2   : > { %v1053_v59 = vld [vmem:[%s10786_s22 + $0x1580] sm:$0xff]  ;;  %v9675_v0 = vcombine.high %v925_v56, %v929_v57  ;;  %6802 = vmatprep.subr.bf16.mxu1 %v9811_v54  ;;  %6753 = vmatmul.mubr.bf16.vlgmr.msra.gmra.mxu1 %v10907_v33  ;;  %v9674_v11 = vcombine.low %v925_v56, %v929_v57 }
  0xf3   : > { %v1057_v60 = vld [vmem:[%s10786_s22 + $0x15a0] sm:$0xff]  ;;  %6803 = vmatpush1.bf16.msra.mxu1 %v9810_v63  ;;  %6834 = vmatprep.mubr.bf16.mxu1 %v11003_v10 }
  0xf4   : > { %v9803_v2 = vcombine.high %v1053_v59, %v1057_v60  ;;  %v917_v3 = vld [vmem:[%s10786_s22 + $0x1140] sm:$0xff]  ;;  %6763 = vmatprep.subr.bf16.mxu0 %v9675_v0  ;;  %v9802_v12 = vcombine.low %v1053_v59, %v1057_v60 }
  0xf5   : > { %v921_v4 = vld [vmem:[%s10786_s22 + $0x1160] sm:$0xff]  ;;  %6764 = vmatpush1.bf16.msra.mxu0 %v9674_v11 }
  0xf6   : > { %v1045_v8 = vld [vmem:[%s10786_s22 + $0x1540] sm:$0xff]  ;;  %v9667_v14 = vcombine.high %v917_v3, %v921_v4  ;;  %6804 = vmatprep.subr.bf16.mxu1 %v9803_v2  ;;  %v9666_v20 = vcombine.low %v917_v3, %v921_v4 }
  0xf7   : > { %v1049_v9 = vld [vmem:[%s10786_s22 + $0x1560] sm:$0xff]  ;;  %6805 = vmatpush1.bf16.msra.mxu1 %v9802_v12 }
  0xf8   : > { %v9795_v15 = vcombine.high %v1045_v8, %v1049_v9  ;;  %v909_v16 = vld [vmem:[%s10786_s22 + $0x1100] sm:$0xff]  ;;  %6765 = vmatprep.subr.bf16.mxu0 %v9667_v14  ;;  %v9794_v21 = vcombine.low %v1045_v8, %v1049_v9 }
  0xf9   : > { %v913_v17 = vld [vmem:[%s10786_s22 + $0x1120] sm:$0xff]  ;;  %6766 = vmatpush1.bf16.msra.mxu0 %v9666_v20 }
  0xfa   : > { %v1037_v18 = vld [vmem:[%s10786_s22 + $0x1500] sm:$0xff]  ;;  %v9659_v22 = vcombine.high %v909_v16, %v913_v17  ;;  %6806 = vmatprep.subr.bf16.mxu1 %v9795_v15  ;;  %v9658_v28 = vcombine.low %v909_v16, %v913_v17 }
  0xfb   : > { %v1041_v19 = vld [vmem:[%s10786_s22 + $0x1520] sm:$0xff]  ;;  %6807 = vmatpush1.bf16.msra.mxu1 %v9794_v21 }
  0xfc   : > { %v9787_v23 = vcombine.high %v1037_v18, %v1041_v19  ;;  %v901_v24 = vld [vmem:[%s10786_s22 + $0x10c0] sm:$0xff]  ;;  %6767 = vmatprep.subr.bf16.mxu0 %v9659_v22  ;;  %v9786_v29 = vcombine.low %v1037_v18, %v1041_v19 }
  0xfd   : > { %v905_v25 = vld [vmem:[%s10786_s22 + $0x10e0] sm:$0xff]  ;;  %6768 = vmatpush1.bf16.msra.mxu0 %v9658_v28 }
  0xfe   : > { %v1029_v26 = vld [vmem:[%s10786_s22 + $0x14c0] sm:$0xff]  ;;  %v9651_v31 = vcombine.high %v901_v24, %v905_v25  ;;  %6808 = vmatprep.subr.bf16.mxu1 %v9787_v23  ;;  %v9650_v38 = vcombine.low %v901_v24, %v905_v25 }
  0xff   : > { %v1033_v27 = vld [vmem:[%s10786_s22 + $0x14e0] sm:$0xff]  ;;  %6809 = vmatpush1.bf16.msra.mxu1 %v9786_v29 }
 0x100   : > { %v9779_v32 = vcombine.high %v1029_v26, %v1033_v27  ;;  %v893_v34 = vld [vmem:[%s10786_s22 + $0x1080] sm:$0xff]  ;;  %6769 = vmatprep.subr.bf16.mxu0 %v9651_v31  ;;  %v9778_v39 = vcombine.low %v1029_v26, %v1033_v27 }
 0x101   : > { %v897_v35 = vld [vmem:[%s10786_s22 + $0x10a0] sm:$0xff]  ;;  %6770 = vmatpush1.bf16.msra.mxu0 %v9650_v38 }
 0x102   : > { %v1021_v36 = vld [vmem:[%s10786_s22 + $0x1480] sm:$0xff]  ;;  %v9643_v41 = vcombine.high %v893_v34, %v897_v35  ;;  %6810 = vmatprep.subr.bf16.mxu1 %v9779_v32  ;;  %v9642_v49 = vcombine.low %v893_v34, %v897_v35 }
 0x103   : > { %v1025_v37 = vld [vmem:[%s10786_s22 + $0x14a0] sm:$0xff]  ;;  %6811 = vmatpush1.bf16.msra.mxu1 %v9778_v39 }
 0x104   : > { %v9771_v42 = vcombine.high %v1021_v36, %v1025_v37  ;;  %v885_v44 = vld [vmem:[%s10786_s22 + $0x1040] sm:$0xff]  ;;  %6771 = vmatprep.subr.bf16.mxu0 %v9643_v41  ;;  %v9770_v50 = vcombine.low %v1021_v36, %v1025_v37 }
 0x105   : > { %v889_v45 = vld [vmem:[%s10786_s22 + $0x1060] sm:$0xff]  ;;  %6772 = vmatpush1.bf16.msra.mxu0 %v9642_v49 }
 0x106   : > { %v1013_v47 = vld [vmem:[%s10786_s22 + $0x1440] sm:$0xff]  ;;  %v9635_v51 = vcombine.high %v885_v44, %v889_v45  ;;  %6812 = vmatprep.subr.bf16.mxu1 %v9771_v42  ;;  %v9634_v59 = vcombine.low %v885_v44, %v889_v45 }
 0x107   : > { %v1017_v48 = vld [vmem:[%s10786_s22 + $0x1460] sm:$0xff]  ;;  %6813 = vmatpush1.bf16.msra.mxu1 %v9770_v50 }
 0x108   : > { %v9763_v52 = vcombine.high %v1013_v47, %v1017_v48  ;;  %v877_v53 = vld [vmem:[%s10786_s22 + $0x1000] sm:$0xff]  ;;  %6773 = vmatprep.subr.bf16.mxu0 %v9635_v51  ;;  %v9762_v60 = vcombine.low %v1013_v47, %v1017_v48 }
 0x109   : > { %v881_v54 = vld [vmem:[%s10786_s22 + $0x1020] sm:$0xff]  ;;  %6774 = vmatpush1.bf16.msra.mxu0 %v9634_v59 }
 0x10a   : > { %v1005_v56 = vld [vmem:[%s10786_s22 + $0x1400] sm:$0xff]  ;;  %v9627_v62 = vcombine.high %v877_v53, %v881_v54  ;;  %6814 = vmatprep.subr.bf16.mxu1 %v9763_v52  ;;  %v9626_v8 = vcombine.low %v877_v53, %v881_v54 }
 0x10b   : > { %v1009_v57 = vld [vmem:[%s10786_s22 + $0x1420] sm:$0xff]  ;;  %6815 = vmatpush1.bf16.msra.mxu1 %v9762_v60 }
 0x10c   : > { %v9755_v63 = vcombine.high %v1005_v56, %v1009_v57  ;;  %v997_v0 = vld [vmem:[%s10786_s22 + $0x13c0] sm:$0xff]  ;;  %6775 = vmatprep.subr.bf16.mxu0 %v9627_v62  ;;  %v9754_v9 = vcombine.low %v1005_v56, %v1009_v57 }
 0x10d   : > { %v1001_v2 = vld [vmem:[%s10786_s22 + $0x13e0] sm:$0xff]  ;;  %6776 = vmatpush1.bf16.msra.mxu0 %v9626_v8 }
 0x10e   : > { %v1125_v3 = vld [vmem:[%s10786_s22 + $0x17c0] sm:$0xff]  ;;  %v9747_v11 = vcombine.high %v997_v0, %v1001_v2  ;;  %6816 = vmatprep.subr.bf16.mxu1 %v9755_v63  ;;  %v9746_v18 = vcombine.low %v997_v0, %v1001_v2 }
 0x10f   : > { %v1129_v4 = vld [vmem:[%s10786_s22 + $0x17e0] sm:$0xff]  ;;  %6817 = vmatpush1.bf16.msra.mxu1 %v9754_v9 }
 0x110   : > { %v9875_v12 = vcombine.high %v1125_v3, %v1129_v4  ;;  %v989_v14 = vld [vmem:[%s10786_s22 + $0x1380] sm:$0xff]  ;;  %6777 = vmatprep.subr.bf16.mxu0 %v9747_v11  ;;  %v9874_v19 = vcombine.low %v1125_v3, %v1129_v4 }
 0x111   : > { %v993_v15 = vld [vmem:[%s10786_s22 + $0x13a0] sm:$0xff]  ;;  %6778 = vmatpush2.bf16.msra.mxu0 %v9746_v18 }
 0x112   : > { %v1117_v16 = vld [vmem:[%s10786_s22 + $0x1780] sm:$0xff]  ;;  %v9739_v20 = vcombine.high %v989_v14, %v993_v15  ;;  %6818 = vmatprep.subr.bf16.mxu1 %v9875_v12  ;;  %v9738_v26 = vcombine.low %v989_v14, %v993_v15 }
 0x113   : > { %v1121_v17 = vld [vmem:[%s10786_s22 + $0x17a0] sm:$0xff]  ;;  %6819 = vmatpush2.bf16.msra.mxu1 %v9874_v19 }
 0x114   : > { %v9867_v21 = vcombine.high %v1117_v16, %v1121_v17  ;;  %v981_v22 = vld [vmem:[%s10786_s22 + $0x1340] sm:$0xff]  ;;  %6779 = vmatprep.subr.bf16.mxu0 %v9739_v20  ;;  %v9866_v27 = vcombine.low %v1117_v16, %v1121_v17  ;;  %v364_v17 = vld [vmem:[%s10804_s19 + $0x18] sm:$0xff] }
 0x115   : > { %v985_v23 = vld [vmem:[%s10786_s22 + $0x1360] sm:$0xff]  ;;  %6780 = vmatpush2.bf16.msra.mxu0 %v9738_v26 }
 0x116   : > { %v1109_v24 = vld [vmem:[%s10786_s22 + $0x1740] sm:$0xff]  ;;  %v9731_v28 = vcombine.high %v981_v22, %v985_v23  ;;  %6820 = vmatprep.subr.bf16.mxu1 %v9867_v21  ;;  %v9730_v36 = vcombine.low %v981_v22, %v985_v23 }
 0x117   : > { %v1113_v25 = vld [vmem:[%s10786_s22 + $0x1760] sm:$0xff]  ;;  %6821 = vmatpush2.bf16.msra.mxu1 %v9866_v27 }
 0x118   : > { %v9859_v29 = vcombine.high %v1109_v24, %v1113_v25  ;;  %v973_v31 = vld [vmem:[%s10786_s22 + $0x1300] sm:$0xff]  ;;  %6781 = vmatprep.subr.bf16.mxu0 %v9731_v28  ;;  %v9858_v37 = vcombine.low %v1109_v24, %v1113_v25  ;;  %v1444_v25 = vcombine.high %v364_v17, %v364_v17 }
 0x119   : > { %v977_v32 = vld [vmem:[%s10786_s22 + $0x1320] sm:$0xff]  ;;  %6782 = vmatpush2.bf16.msra.mxu0 %v9730_v36 }
 0x11a   : > { %v1101_v34 = vld [vmem:[%s10786_s22 + $0x1700] sm:$0xff]  ;;  %v9723_v38 = vcombine.high %v973_v31, %v977_v32  ;;  %6822 = vmatprep.subr.bf16.mxu1 %v9859_v29  ;;  %v9722_v47 = vcombine.low %v973_v31, %v977_v32 }
 0x11b   : > { %v1105_v35 = vld [vmem:[%s10786_s22 + $0x1720] sm:$0xff]  ;;  %6823 = vmatpush2.bf16.msra.mxu1 %v9858_v37  ;;  %v11073_v37 = vrot.slane %v1444_v25, %v10837_v55 }
 0x11c   : > { %v9851_v39 = vcombine.high %v1101_v34, %v1105_v35  ;;  %v965_v41 = vld [vmem:[%s10786_s22 + $0x12c0] sm:$0xff]  ;;  %6783 = vmatprep.subr.bf16.mxu0 %v9723_v38  ;;  %v9850_v48 = vcombine.low %v1101_v34, %v1105_v35  ;;  %v11068_v34 = vrot.slane %v364_v17, %v10837_v55 }
 0x11d   : > { %v969_v42 = vld [vmem:[%s10786_s22 + $0x12e0] sm:$0xff]  ;;  %6784 = vmatpush2.bf16.msra.mxu0 %v9722_v47 }
 0x11e   : > { %v1093_v44 = vld [vmem:[%s10786_s22 + $0x16c0] sm:$0xff]  ;;  %v9715_v49 = vcombine.high %v965_v41, %v969_v42  ;;  %6824 = vmatprep.subr.bf16.mxu1 %v9851_v39  ;;  %v9714_v56 = vcombine.low %v965_v41, %v969_v42  ;;  %v11079_v47 = vcombine.high %v11068_v34, %v11068_v34 }
 0x11f   : > { %v1097_v45 = vld [vmem:[%s10786_s22 + $0x16e0] sm:$0xff]  ;;  %6825 = vmatpush2.bf16.msra.mxu1 %v9850_v48 }
 0x120   : > { %v9843_v50 = vcombine.high %v1093_v44, %v1097_v45  ;;  %v957_v51 = vld [vmem:[%s10786_s22 + $0x1280] sm:$0xff]  ;;  %6785 = vmatprep.subr.bf16.mxu0 %v9715_v49  ;;  %v9842_v57 = vcombine.low %v1093_v44, %v1097_v45  ;;  %v11086_v49 = vcombine.high %v11073_v37, %v11073_v37 }
 0x121   : > { %v961_v52 = vld [vmem:[%s10786_s22 + $0x12a0] sm:$0xff]  ;;  %6786 = vmatpush2.bf16.msra.mxu0 %v9714_v56 }
 0x122   : > { %v1085_v53 = vld [vmem:[%s10786_s22 + $0x1680] sm:$0xff]  ;;  %v9707_v59 = vcombine.high %v957_v51, %v961_v52  ;;  %6826 = vmatprep.subr.bf16.mxu1 %v9843_v50  ;;  %v9706_v3 = vcombine.low %v957_v51, %v961_v52 }
 0x123   : > { %v1089_v54 = vld [vmem:[%s10786_s22 + $0x16a0] sm:$0xff]  ;;  %6827 = vmatpush2.bf16.msra.mxu1 %v9842_v57 }
 0x124   : > { %v9835_v60 = vcombine.high %v1085_v53, %v1089_v54  ;;  %v949_v62 = vld [vmem:[%s10786_s22 + $0x1240] sm:$0xff]  ;;  %6787 = vmatprep.subr.bf16.mxu0 %v9707_v59  ;;  %v9834_v4 = vcombine.low %v1085_v53, %v1089_v54 }
 0x125   : > { %v953_v63 = vld [vmem:[%s10786_s22 + $0x1260] sm:$0xff]  ;;  %6788 = vmatpush2.bf16.msra.mxu0 %v9706_v3 }
 0x126   : > { %v1077_v0 = vld [vmem:[%s10786_s22 + $0x1640] sm:$0xff]  ;;  %v9699_v8 = vcombine.high %v949_v62, %v953_v63  ;;  %6828 = vmatprep.subr.bf16.mxu1 %v9835_v60  ;;  %v9698_v16 = vcombine.low %v949_v62, %v953_v63 }
 0x127   : > { %v1081_v2 = vld [vmem:[%s10786_s22 + $0x1660] sm:$0xff]  ;;  %6829 = vmatpush2.bf16.msra.mxu1 %v9834_v4 }
 0x128   : > { %v9827_v9 = vcombine.high %v1077_v0, %v1081_v2  ;;  %v941_v11 = vld [vmem:[%s10786_s22 + $0x1200] sm:$0xff]  ;;  %6789 = vmatprep.subr.bf16.mxu0 %v9699_v8  ;;  %v9826_v18 = vcombine.low %v1077_v0, %v1081_v2 }
 0x129   : > { %v945_v12 = vld [vmem:[%s10786_s22 + $0x1220] sm:$0xff]  ;;  %6790 = vmatpush2.bf16.msra.mxu0 %v9698_v16 }
 0x12a   : > { %v1069_v14 = vld [vmem:[%s10786_s22 + $0x1600] sm:$0xff]  ;;  %v9691_v19 = vcombine.high %v941_v11, %v945_v12  ;;  %6830 = vmatprep.subr.bf16.mxu1 %v9827_v9  ;;  %v9690_v26 = vcombine.low %v941_v11, %v945_v12 }
 0x12b   : > { %v1073_v15 = vld [vmem:[%s10786_s22 + $0x1620] sm:$0xff]  ;;  %6831 = vmatpush2.bf16.msra.mxu1 %v9826_v18 }
 0x12c   : > { %v9819_v20 = vcombine.high %v1069_v14, %v1073_v15  ;;  %v1189_v21 = vld [vmem:[%s10786_s22 + $0x19c0] sm:$0xff]  ;;  %6791 = vmatprep.subr.bf16.mxu0 %v9691_v19  ;;  %v9818_v27 = vcombine.low %v1069_v14, %v1073_v15 }
 0x12d   : > { %v1193_v22 = vld [vmem:[%s10786_s22 + $0x19e0] sm:$0xff]  ;;  %6792 = vmatpush2.bf16.msra.mxu0 %v9690_v26 }
 0x12e   : > { %v1317_v23 = vld [vmem:[%s10786_s22 + $0x1dc0] sm:$0xff]  ;;  %v9939_v28 = vcombine.high %v1189_v21, %v1193_v22  ;;  %6832 = vmatprep.subr.bf16.mxu1 %v9819_v20  ;;  %v9938_v38 = vcombine.low %v1189_v21, %v1193_v22 }
 0x12f   : > { %v1321_v24 = vld [vmem:[%s10786_s22 + $0x1de0] sm:$0xff]  ;;  %6833 = vmatpush2.bf16.msra.mxu1 %v9818_v27 }
 0x130   : > { %v10067_v29 = vcombine.high %v1317_v23, %v1321_v24  ;;  %v1181_v31 = vld [vmem:[%s10786_s22 + $0x1980] sm:$0xff]  ;;  %6843 = vmatprep.subr.bf16.mxu0 %v9939_v28  ;;  %v10066_v39 = vcombine.low %v1317_v23, %v1321_v24  ;;  %6794 = vmatmul.mubr.bf16.vlgmr.msra.gmra.mxu0 %v10985_v58 }
 0x131   : > { %v1185_v32 = vld [vmem:[%s10786_s22 + $0x19a0] sm:$0xff]  ;;  %6844 = vmatpush1.bf16.msra.mxu0 %v9938_v38  ;;  %6875 = vmatprep.mubr.bf16.mxu0 %v11079_v47 }
 0x132   : > { %v1309_v35 = vld [vmem:[%s10786_s22 + $0x1d80] sm:$0xff]  ;;  %v9931_v41 = vcombine.high %v1181_v31, %v1185_v32  ;;  %6884 = vmatprep.subr.bf16.mxu1 %v10067_v29  ;;  %6835 = vmatmul.mubr.bf16.vlgmr.msra.gmra.mxu1 %v10990_v61  ;;  %v9930_v50 = vcombine.low %v1181_v31, %v1185_v32 }
 0x133   : > { %v1313_v36 = vld [vmem:[%s10786_s22 + $0x1da0] sm:$0xff]  ;;  %6885 = vmatpush1.bf16.msra.mxu1 %v10066_v39  ;;  %6916 = vmatprep.mubr.bf16.mxu1 %v11086_v49 }
 0x134   : > { %v10059_v42 = vcombine.high %v1309_v35, %v1313_v36  ;;  %v1173_v44 = vld [vmem:[%s10786_s22 + $0x1940] sm:$0xff]  ;;  %6845 = vmatprep.subr.bf16.mxu0 %v9931_v41  ;;  %v10058_v51 = vcombine.low %v1309_v35, %v1313_v36 }
 0x135   : > { %v1177_v45 = vld [vmem:[%s10786_s22 + $0x1960] sm:$0xff]  ;;  %6846 = vmatpush1.bf16.msra.mxu0 %v9930_v50 }
 0x136   : > { %v1301_v55 = vld [vmem:[%s10786_s22 + $0x1d40] sm:$0xff]  ;;  %v9923_v52 = vcombine.high %v1173_v44, %v1177_v45  ;;  %6886 = vmatprep.subr.bf16.mxu1 %v10059_v42  ;;  %v9922_v60 = vcombine.low %v1173_v44, %v1177_v45 }
 0x137   : > { %v1305_v48 = vld [vmem:[%s10786_s22 + $0x1d60] sm:$0xff]  ;;  %6887 = vmatpush1.bf16.msra.mxu1 %v10058_v51 }
 0x138   : > { %v10051_v53 = vcombine.high %v1301_v55, %v1305_v48  ;;  %v1165_v54 = vld [vmem:[%s10786_s22 + $0x1900] sm:$0xff]  ;;  %6847 = vmatprep.subr.bf16.mxu0 %v9923_v52  ;;  %v10050_v62 = vcombine.low %v1301_v55, %v1305_v48 }
 0x139   : > { %v1169_v56 = vld [vmem:[%s10786_s22 + $0x1920] sm:$0xff]  ;;  %6848 = vmatpush1.bf16.msra.mxu0 %v9922_v60 }
 0x13a   : > { %v1293_v57 = vld [vmem:[%s10786_s22 + $0x1d00] sm:$0xff]  ;;  %v9915_v63 = vcombine.high %v1165_v54, %v1169_v56  ;;  %6888 = vmatprep.subr.bf16.mxu1 %v10051_v53  ;;  %v9914_v9 = vcombine.low %v1165_v54, %v1169_v56 }
 0x13b   : > { %v1297_v59 = vld [vmem:[%s10786_s22 + $0x1d20] sm:$0xff]  ;;  %6889 = vmatpush1.bf16.msra.mxu1 %v10050_v62 }
 0x13c   : > { %v10043_v0 = vcombine.high %v1293_v57, %v1297_v59  ;;  %v1157_v2 = vld [vmem:[%s10786_s22 + $0x18c0] sm:$0xff]  ;;  %6849 = vmatprep.subr.bf16.mxu0 %v9915_v63  ;;  %v10042_v11 = vcombine.low %v1293_v57, %v1297_v59 }
 0x13d   : > { %v1161_v3 = vld [vmem:[%s10786_s22 + $0x18e0] sm:$0xff]  ;;  %6850 = vmatpush1.bf16.msra.mxu0 %v9914_v9 }
 0x13e   : > { %v1285_v4 = vld [vmem:[%s10786_s22 + $0x1cc0] sm:$0xff]  ;;  %v9907_v12 = vcombine.high %v1157_v2, %v1161_v3  ;;  %6890 = vmatprep.subr.bf16.mxu1 %v10043_v0  ;;  %v9906_v19 = vcombine.low %v1157_v2, %v1161_v3 }
 0x13f   : > { %v1289_v8 = vld [vmem:[%s10786_s22 + $0x1ce0] sm:$0xff]  ;;  %6891 = vmatpush1.bf16.msra.mxu1 %v10042_v11 }
 0x140   : > { %v10035_v14 = vcombine.high %v1285_v4, %v1289_v8  ;;  %v1149_v15 = vld [vmem:[%s10786_s22 + $0x1880] sm:$0xff]  ;;  %6851 = vmatprep.subr.bf16.mxu0 %v9907_v12  ;;  %v10034_v20 = vcombine.low %v1285_v4, %v1289_v8 }
 0x141   : > { %v1153_v16 = vld [vmem:[%s10786_s22 + $0x18a0] sm:$0xff]  ;;  %6852 = vmatpush1.bf16.msra.mxu0 %v9906_v19 }
 0x142   : > { %v1277_v17 = vld [vmem:[%s10786_s22 + $0x1c80] sm:$0xff]  ;;  %v9899_v21 = vcombine.high %v1149_v15, %v1153_v16  ;;  %6892 = vmatprep.subr.bf16.mxu1 %v10035_v14  ;;  %v9898_v27 = vcombine.low %v1149_v15, %v1153_v16 }
 0x143   : > { %v1281_v18 = vld [vmem:[%s10786_s22 + $0x1ca0] sm:$0xff]  ;;  %6893 = vmatpush1.bf16.msra.mxu1 %v10034_v20 }
 0x144   : > { %v10027_v22 = vcombine.high %v1277_v17, %v1281_v18  ;;  %v1141_v23 = vld [vmem:[%s10786_s22 + $0x1840] sm:$0xff]  ;;  %6853 = vmatprep.subr.bf16.mxu0 %v9899_v21  ;;  %v10026_v28 = vcombine.low %v1277_v17, %v1281_v18 }
 0x145   : > { %v1145_v24 = vld [vmem:[%s10786_s22 + $0x1860] sm:$0xff]  ;;  %6854 = vmatpush1.bf16.msra.mxu0 %v9898_v27 }
 0x146   : > { %v1269_v25 = vld [vmem:[%s10786_s22 + $0x1c40] sm:$0xff]  ;;  %v9891_v29 = vcombine.high %v1141_v23, %v1145_v24  ;;  %6894 = vmatprep.subr.bf16.mxu1 %v10027_v22  ;;  %v9890_v39 = vcombine.low %v1141_v23, %v1145_v24 }
 0x147   : > { %v1273_v26 = vld [vmem:[%s10786_s22 + $0x1c60] sm:$0xff]  ;;  %6895 = vmatpush1.bf16.msra.mxu1 %v10026_v28 }
 0x148   : > { %v10019_v31 = vcombine.high %v1269_v25, %v1273_v26  ;;  %v1133_v32 = vld [vmem:[%s10786_s22 + $0x1800] sm:$0xff]  ;;  %6855 = vmatprep.subr.bf16.mxu0 %v9891_v29  ;;  %v10018_v41 = vcombine.low %v1269_v25, %v1273_v26 }
 0x149   : > { %v1137_v35 = vld [vmem:[%s10786_s22 + $0x1820] sm:$0xff]  ;;  %6856 = vmatpush1.bf16.msra.mxu0 %v9890_v39 }
 0x14a   : > { %v1261_v36 = vld [vmem:[%s10786_s22 + $0x1c00] sm:$0xff]  ;;  %v9883_v42 = vcombine.high %v1133_v32, %v1137_v35  ;;  %6896 = vmatprep.subr.bf16.mxu1 %v10019_v31  ;;  %v9882_v51 = vcombine.low %v1133_v32, %v1137_v35 }
 0x14b   : > { %v1265_v38 = vld [vmem:[%s10786_s22 + $0x1c20] sm:$0xff]  ;;  %6897 = vmatpush1.bf16.msra.mxu1 %v10018_v41 }
 0x14c   : > { %v10011_v44 = vcombine.high %v1261_v36, %v1265_v38  ;;  %v1253_v45 = vld [vmem:[%s10786_s22 + $0x1bc0] sm:$0xff]  ;;  %6857 = vmatprep.subr.bf16.mxu0 %v9883_v42  ;;  %v10010_v52 = vcombine.low %v1261_v36, %v1265_v38 }
 0x14d   : > { %v1257_v55 = vld [vmem:[%s10786_s22 + $0x1be0] sm:$0xff]  ;;  %6858 = vmatpush1.bf16.msra.mxu0 %v9882_v51 }
 0x14e   : > { %v1381_v48 = vld [vmem:[%s10786_s22 + $0x1fc0] sm:$0xff]  ;;  %v10003_v53 = vcombine.high %v1253_v45, %v1257_v55  ;;  %6898 = vmatprep.subr.bf16.mxu1 %v10011_v44  ;;  %v10002_v62 = vcombine.low %v1253_v45, %v1257_v55 }
 0x14f   : > { %v1385_v50 = vld [vmem:[%s10786_s22 + $0x1fe0] sm:$0xff]  ;;  %6899 = vmatpush1.bf16.msra.mxu1 %v10010_v52 }
 0x150   : > { %v10131_v54 = vcombine.high %v1381_v48, %v1385_v50  ;;  %v1245_v56 = vld [vmem:[%s10786_s22 + $0x1b80] sm:$0xff]  ;;  %6859 = vmatprep.subr.bf16.mxu0 %v10003_v53  ;;  %v10130_v63 = vcombine.low %v1381_v48, %v1385_v50 }
 0x151   : > { %v1249_v57 = vld [vmem:[%s10786_s22 + $0x1ba0] sm:$0xff]  ;;  %6860 = vmatpush2.bf16.msra.mxu0 %v10002_v62 }
 0x152   : > { %v1373_v59 = vld [vmem:[%s10786_s22 + $0x1f80] sm:$0xff]  ;;  %v9995_v0 = vcombine.high %v1245_v56, %v1249_v57  ;;  %6900 = vmatprep.subr.bf16.mxu1 %v10131_v54  ;;  %v9994_v11 = vcombine.low %v1245_v56, %v1249_v57 }
 0x153   : > { %v1377_v60 = vld [vmem:[%s10786_s22 + $0x1fa0] sm:$0xff]  ;;  %6901 = vmatpush2.bf16.msra.mxu1 %v10130_v63 }
 0x154   : > { %v10123_v2 = vcombine.high %v1373_v59, %v1377_v60  ;;  %v1237_v3 = vld [vmem:[%s10786_s22 + $0x1b40] sm:$0xff]  ;;  %6861 = vmatprep.subr.bf16.mxu0 %v9995_v0  ;;  %v10122_v12 = vcombine.low %v1373_v59, %v1377_v60 }
 0x155   : > { %v1241_v4 = vld [vmem:[%s10786_s22 + $0x1b60] sm:$0xff]  ;;  %6862 = vmatpush2.bf16.msra.mxu0 %v9994_v11  ;;  %v554_v11 = vld [vmem:[%s10786_s22 + $0x5e8] sm:$0xff] }
 0x156   : > { %v1365_v8 = vld [vmem:[%s10786_s22 + $0x1f40] sm:$0xff]  ;;  %v9987_v14 = vcombine.high %v1237_v3, %v1241_v4  ;;  %6902 = vmatprep.subr.bf16.mxu1 %v10123_v2  ;;  %v9986_v20 = vcombine.low %v1237_v3, %v1241_v4  ;;  %v422_v4 = vld [vmem:[%s10786_s22 + $0x1c8] sm:$0xff] }
 0x157   : > { %v1369_v9 = vld [vmem:[%s10786_s22 + $0x1f60] sm:$0xff]  ;;  %6903 = vmatpush2.bf16.msra.mxu1 %v10122_v12 }
 0x158   : > { %v10115_v15 = vcombine.high %v1365_v8, %v1369_v9  ;;  %v1229_v16 = vld [vmem:[%s10786_s22 + $0x1b00] sm:$0xff]  ;;  %6863 = vmatprep.subr.bf16.mxu0 %v9987_v14  ;;  %v10114_v21 = vcombine.low %v1365_v8, %v1369_v9  ;;  %v426_v8 = vld [vmem:[%s10786_s22 + $0x1e8] sm:$0xff] }
 0x159   : > { %v1233_v17 = vld [vmem:[%s10786_s22 + $0x1b20] sm:$0xff]  ;;  %6864 = vmatpush2.bf16.msra.mxu0 %v9986_v20  ;;  %v550_v9 = vld [vmem:[%s10786_s22 + $0x5c8] sm:$0xff] }
 0x15a   : > { %v1357_v18 = vld [vmem:[%s10786_s22 + $0x1f00] sm:$0xff]  ;;  %v9979_v22 = vcombine.high %v1229_v16, %v1233_v17  ;;  %6904 = vmatprep.subr.bf16.mxu1 %v10115_v15  ;;  %v9978_v28 = vcombine.low %v1229_v16, %v1233_v17  ;;  %v9173_v15 = vcombine.high %v422_v4, %v426_v8  ;;  %v9301_v16 = vcombine.high %v550_v9, %v554_v11  ;;  %v414_v17 = vld [vmem:[%s10786_s22 + $0x188] sm:$0xff] }
 0x15b   : > { %v1361_v19 = vld [vmem:[%s10786_s22 + $0x1f20] sm:$0xff]  ;;  %6905 = vmatpush2.bf16.msra.mxu1 %v10114_v21  ;;  %v546_v20 = vld [vmem:[%s10786_s22 + $0x5a8] sm:$0xff]  ;;  %v9172_v21 = vcombine.low %v422_v4, %v426_v8 }
 0x15c   : > { %v10107_v23 = vcombine.high %v1357_v18, %v1361_v19  ;;  %v1221_v24 = vld [vmem:[%s10786_s22 + $0x1ac0] sm:$0xff]  ;;  %6865 = vmatprep.subr.bf16.mxu0 %v9979_v22  ;;  %v10106_v29 = vcombine.low %v1357_v18, %v1361_v19  ;;  %v418_v18 = vld [vmem:[%s10786_s22 + $0x1a8] sm:$0xff]  ;;  %v9300_v22 = vcombine.low %v550_v9, %v554_v11 }
 0x15d   : > { %v1225_v25 = vld [vmem:[%s10786_s22 + $0x1ae0] sm:$0xff]  ;;  %6866 = vmatpush2.bf16.msra.mxu0 %v9978_v28  ;;  %v542_v19 = vld [vmem:[%s10786_s22 + $0x588] sm:$0xff] }
 0x15e   : > { %v1349_v26 = vld [vmem:[%s10786_s22 + $0x1ec0] sm:$0xff]  ;;  %v9971_v31 = vcombine.high %v1221_v24, %v1225_v25  ;;  %6906 = vmatprep.subr.bf16.mxu1 %v10107_v23  ;;  %v9970_v41 = vcombine.low %v1221_v24, %v1225_v25  ;;  %v9165_v23 = vcombine.high %v414_v17, %v418_v18  ;;  %v9293_v24 = vcombine.high %v542_v19, %v546_v20  ;;  %v406_v25 = vld [vmem:[%s10786_s22 + $0x148] sm:$0xff] }
 0x15f   : > { %v1353_v27 = vld [vmem:[%s10786_s22 + $0x1ee0] sm:$0xff]  ;;  %6907 = vmatpush2.bf16.msra.mxu1 %v10106_v29  ;;  %v534_v28 = vld [vmem:[%s10786_s22 + $0x548] sm:$0xff] }
 0x160   : > { %v10099_v32 = vcombine.high %v1349_v26, %v1353_v27  ;;  %v1213_v35 = vld [vmem:[%s10786_s22 + $0x1a80] sm:$0xff]  ;;  %6867 = vmatprep.subr.bf16.mxu0 %v9971_v31  ;;  %v10098_v42 = vcombine.low %v1349_v26, %v1353_v27  ;;  %v410_v26 = vld [vmem:[%s10786_s22 + $0x168] sm:$0xff] }
 0x161   : > { %v1217_v36 = vld [vmem:[%s10786_s22 + $0x1aa0] sm:$0xff]  ;;  %6868 = vmatpush2.bf16.msra.mxu0 %v9970_v41  ;;  %v538_v29 = vld [vmem:[%s10786_s22 + $0x568] sm:$0xff] }
 0x162   : > { %v1341_v38 = vld [vmem:[%s10786_s22 + $0x1e80] sm:$0xff]  ;;  %v9963_v44 = vcombine.high %v1213_v35, %v1217_v36  ;;  %6908 = vmatprep.subr.bf16.mxu1 %v10099_v32  ;;  %v9962_v52 = vcombine.low %v1213_v35, %v1217_v36  ;;  %v9164_v32 = vcombine.low %v414_v17, %v418_v18  ;;  %v382_v11 = vld [vmem:[%s10786_s22 + $0x88] sm:$0xff] }
 0x163   : > { %v1345_v39 = vld [vmem:[%s10786_s22 + $0x1ea0] sm:$0xff]  ;;  %6909 = vmatpush2.bf16.msra.mxu1 %v10098_v42  ;;  %v9285_v42 = vcombine.high %v534_v28, %v538_v29 }
 0x164   : > { %v10091_v45 = vcombine.high %v1341_v38, %v1345_v39  ;;  %v1205_v55 = vld [vmem:[%s10786_s22 + $0x1a40] sm:$0xff]  ;;  %6869 = vmatprep.subr.bf16.mxu0 %v9963_v44  ;;  %v10090_v53 = vcombine.low %v1341_v38, %v1345_v39  ;;  %v9292_v38 = vcombine.low %v542_v19, %v546_v20  ;;  %v9157_v39 = vcombine.high %v406_v25, %v410_v26  ;;  %v398_v44 = vld [vmem:[%s10786_s22 + $0x108] sm:$0xff] }
 0x165   : > { %v1209_v48 = vld [vmem:[%s10786_s22 + $0x1a60] sm:$0xff]  ;;  %6870 = vmatpush2.bf16.msra.mxu0 %v9962_v52  ;;  %v374_v20 = vld [vmem:[%s10786_s22 + $0x48] sm:$0xff] }
 0x166   : > { %v1333_v50 = vld [vmem:[%s10786_s22 + $0x1e40] sm:$0xff]  ;;  %v9955_v54 = vcombine.high %v1205_v55, %v1209_v48  ;;  %6910 = vmatprep.subr.bf16.mxu1 %v10091_v45  ;;  %v9954_v63 = vcombine.low %v1205_v55, %v1209_v48  ;;  %v402_v45 = vld [vmem:[%s10786_s22 + $0x128] sm:$0xff] }
 0x167   : > { %v1337_v51 = vld [vmem:[%s10786_s22 + $0x1e60] sm:$0xff]  ;;  %6911 = vmatpush2.bf16.msra.mxu1 %v10090_v53  ;;  %v9156_v53 = vcombine.low %v406_v25, %v410_v26 }
 0x168   : > { %v10083_v56 = vcombine.high %v1333_v50, %v1337_v51  ;;  %v1197_v57 = vld [vmem:[%s10786_s22 + $0x1a00] sm:$0xff]  ;;  %6871 = vmatprep.subr.bf16.mxu0 %v9955_v54  ;;  %v10082_v0 = vcombine.low %v1333_v50, %v1337_v51  ;;  %v526_v50 = vld [vmem:[%s10786_s22 + $0x508] sm:$0xff] }
 0x169   : > { %v1201_v59 = vld [vmem:[%s10786_s22 + $0x1a20] sm:$0xff]  ;;  %6872 = vmatpush2.bf16.msra.mxu0 %v9954_v63  ;;  %v530_v51 = vld [vmem:[%s10786_s22 + $0x528] sm:$0xff] }
 0x16a   : > { %v1325_v60 = vld [vmem:[%s10786_s22 + $0x1e00] sm:$0xff]  ;;  %v9947_v2 = vcombine.high %v1197_v57, %v1201_v59  ;;  %6912 = vmatprep.subr.bf16.mxu1 %v10083_v56  ;;  %v9946_v12 = vcombine.low %v1197_v57, %v1201_v59  ;;  %v9284_v56 = vcombine.low %v534_v28, %v538_v29  ;;  %v9149_v57 = vcombine.high %v398_v44, %v402_v45  ;;  %v394_v63 = vld [vmem:[%s10786_s22 + $0xe8] sm:$0xff] }
 0x16b   : > { %v1329_v62 = vld [vmem:[%s10786_s22 + $0x1e20] sm:$0xff]  ;;  %6913 = vmatpush2.bf16.msra.mxu1 %v10082_v0  ;;  %v518_v0 = vld [vmem:[%s10786_s22 + $0x4c8] sm:$0xff]  ;;  %v9276_v4 = vcombine.low %v526_v50, %v530_v51 }
 0x16c   : > { %v10075_v3 = vcombine.high %v1325_v60, %v1329_v62  ;;  %6873 = vmatprep.subr.bf16.mxu0 %v9947_v2  ;;  %v10074_v14 = vcombine.low %v1325_v60, %v1329_v62  ;;  %v9277_v60 = vcombine.high %v526_v50, %v530_v51  ;;  %v390_v62 = vld [vmem:[%s10786_s22 + $0xc8] sm:$0xff] }
 0x16d   : > { %6874 = vmatpush2.bf16.msra.mxu0 %v9946_v12  ;;  %v522_v2 = vld [vmem:[%s10786_s22 + $0x4e8] sm:$0xff]  ;;  %v9141_v8 = vcombine.high %v390_v62, %v394_v63 }
 0x16e   : > { %6914 = vmatprep.subr.bf16.mxu1 %v10075_v3  ;;  %6925 = vmatprep.subr.bf16.mxu0 %v9173_v15  ;;  %v9148_v3 = vcombine.low %v398_v44, %v402_v45  ;;  %v9269_v9 = vcombine.high %v518_v0, %v522_v2  ;;  %v386_v12 = vld [vmem:[%s10786_s22 + $0xa8] sm:$0xff]  ;;  %v9268_v17 = vcombine.low %v518_v0, %v522_v2 }
 0x16f   : > { %6915 = vmatpush2.bf16.msra.mxu1 %v10074_v14  ;;  %v6631_v27 = vpop.f32.mrf.mxu0  ;;  %v510_v14 = vld [vmem:[%s10786_s22 + $0x488] sm:$0xff]  ;;  %v9133_v18 = vcombine.high %v382_v11, %v386_v12 }
 0x170   : > { %6966 = vmatprep.subr.bf16.mxu1 %v9301_v16  ;;  %6876 = vmatmul.mubr.bf16.vlgmr.msra.gmra.mxu0 %v11068_v34  ;;  %v514_v15 = vld [vmem:[%s10786_s22 + $0x4a8] sm:$0xff]  ;;  %v9140_v16 = vcombine.low %v390_v62, %v394_v63 }
 0x171   : > { %v6672_v31 = vpop.f32.mrf.mxu1  ;;  %6926 = vmatpush1.bf16.msra.mxu0 %v9172_v21  ;;  %v6633_v36 = vpop.f32.mrf.mxu0  ;;  %6957 = vmatprep.mubr.bf16.mxu0 %v10851_v6  ;;  %v9261_v19 = vcombine.high %v510_v14, %v514_v15  ;;  %v378_v21 = vld [vmem:[%s10786_s22 + $0x68] sm:$0xff]  ;;  %v9260_v25 = vcombine.low %v510_v14, %v514_v15 }
 0x172   : > { %6917 = vmatmul.mubr.bf16.vlgmr.msra.gmra.mxu1 %v11073_v37  ;;  %v11157_v35 = vadd.f32 %v6672_v31, %v6631_v27  ;;  %6927 = vmatprep.subr.bf16.mxu0 %v9165_v23  ;;  %v506_v23 = vld [vmem:[%s10786_s22 + $0x468] sm:$0xff]  ;;  %v9125_v26 = vcombine.high %v374_v20, %v378_v21 }
 0x173   : > { %6967 = vmatpush1.bf16.msra.mxu1 %v9300_v22  ;;  %v6674_v41 = vpop.f32.mrf.mxu1  ;;  %v6635_v48 = vpop.f32.mrf.mxu0  ;;  %6998 = vmatprep.mubr.bf16.mxu1 %v10861_v13  ;;  %v502_v22 = vld [vmem:[%s10786_s22 + $0x448] sm:$0xff] }
 0x174   : > { %6968 = vmatprep.subr.bf16.mxu1 %v9293_v24  ;;  %v11162_v55 = vadd.f32 %v6674_v41, %v6633_v36  ;;  %v9132_v24 = vcombine.low %v382_v11, %v386_v12  ;;  %v9253_v27 = vcombine.high %v502_v22, %v506_v23  ;;  %v366_v28 = vld [vmem:[%s10786_s22 + $0x8] sm:$0xff]  ;;  %v9124_v36 = vcombine.low %v374_v20, %v378_v21 }
 0x175   : > { %v6676_v52 = vpop.f32.mrf.mxu1  ;;  %6928 = vmatpush1.bf16.msra.mxu0 %v9164_v32  ;;  %v6636_v54 = vpop.f32.mrf.mxu0  ;;  %v370_v29 = vld [vmem:[%s10786_s22 + $0x28] sm:$0xff] }
 0x176   : > { %6929 = vmatprep.subr.bf16.mxu0 %v9157_v39  ;;  %v494_v31 = vld [vmem:[%s10786_s22 + $0x408] sm:$0xff]  ;;  %v9117_v39 = vcombine.high %v366_v28, %v370_v29  ;;  %v9116_v50 = vcombine.low %v366_v28, %v370_v29 }
 0x177   : > { %6969 = vmatpush1.bf16.msra.mxu1 %v9292_v38  ;;  %v6677_v59 = vpop.f32.mrf.mxu1  ;;  %v498_v32 = vld [vmem:[%s10786_s22 + $0x428] sm:$0xff]  ;;  %v9252_v38 = vcombine.low %v502_v22, %v506_v23 }
 0x178   : > { %6970 = vmatprep.subr.bf16.mxu1 %v9285_v42  ;;  %v9245_v41 = vcombine.high %v494_v31, %v498_v32  ;;  %v486_v42 = vld [vmem:[%s10786_s22 + $0x3c8] sm:$0xff]  ;;  %v9244_v51 = vcombine.low %v494_v31, %v498_v32 }
 0x179   : > { %6930 = vmatpush1.bf16.msra.mxu0 %v9156_v53  ;;  %v490_v44 = vld [vmem:[%s10786_s22 + $0x3e8] sm:$0xff] }
 0x17a   : > { %6931 = vmatprep.subr.bf16.mxu0 %v9149_v57  ;;  %v614_v45 = vld [vmem:[%s10786_s22 + $0x7c8] sm:$0xff]  ;;  %v9237_v52 = vcombine.high %v486_v42, %v490_v44 }
 0x17b   : > { %6971 = vmatpush1.bf16.msra.mxu1 %v9284_v56  ;;  %v618_v48 = vld [vmem:[%s10786_s22 + $0x7e8] sm:$0xff] }
 0x17c   : > { %6972 = vmatprep.subr.bf16.mxu1 %v9277_v60  ;;  %v9365_v53 = vcombine.high %v614_v45, %v618_v48  ;;  %v478_v54 = vld [vmem:[%s10786_s22 + $0x388] sm:$0xff]  ;;  %v9236_v60 = vcombine.low %v486_v42, %v490_v44  ;;  %v9364_v62 = vcombine.low %v614_v45, %v618_v48 }
 0x17d   : > { %6932 = vmatpush1.bf16.msra.mxu0 %v9148_v3  ;;  %v482_v56 = vld [vmem:[%s10786_s22 + $0x3a8] sm:$0xff] }
 0x17e   : > { %6933 = vmatprep.subr.bf16.mxu0 %v9141_v8  ;;  %v606_v57 = vld [vmem:[%s10786_s22 + $0x788] sm:$0xff]  ;;  %v9229_v63 = vcombine.high %v478_v54, %v482_v56 }
 0x17f   : > { %6973 = vmatpush1.bf16.msra.mxu1 %v9276_v4  ;;  %v610_v59 = vld [vmem:[%s10786_s22 + $0x7a8] sm:$0xff] }
 0x180   : > { %6974 = vmatprep.subr.bf16.mxu1 %v9269_v9  ;;  %v9357_v0 = vcombine.high %v606_v57, %v610_v59  ;;  %v470_v2 = vld [vmem:[%s10786_s22 + $0x348] sm:$0xff]  ;;  %v9228_v9 = vcombine.low %v478_v54, %v482_v56  ;;  %v9356_v11 = vcombine.low %v606_v57, %v610_v59 }
 0x181   : > { %6934 = vmatpush1.bf16.msra.mxu0 %v9140_v16  ;;  %v474_v3 = vld [vmem:[%s10786_s22 + $0x368] sm:$0xff] }
 0x182   : > { %6935 = vmatprep.subr.bf16.mxu0 %v9133_v18  ;;  %v598_v4 = vld [vmem:[%s10786_s22 + $0x748] sm:$0xff]  ;;  %v9221_v12 = vcombine.high %v470_v2, %v474_v3 }
 0x183   : > { %6975 = vmatpush1.bf16.msra.mxu1 %v9268_v17  ;;  %v602_v8 = vld [vmem:[%s10786_s22 + $0x768] sm:$0xff] }
 0x184   : > { %6976 = vmatprep.subr.bf16.mxu1 %v9261_v19  ;;  %v9349_v14 = vcombine.high %v598_v4, %v602_v8  ;;  %v462_v15 = vld [vmem:[%s10786_s22 + $0x308] sm:$0xff]  ;;  %v9220_v19 = vcombine.low %v470_v2, %v474_v3  ;;  %v9348_v20 = vcombine.low %v598_v4, %v602_v8 }
 0x185   : > { %6936 = vmatpush1.bf16.msra.mxu0 %v9132_v24  ;;  %v466_v16 = vld [vmem:[%s10786_s22 + $0x328] sm:$0xff] }
 0x186   : > { %6937 = vmatprep.subr.bf16.mxu0 %v9125_v26  ;;  %v590_v17 = vld [vmem:[%s10786_s22 + $0x708] sm:$0xff]  ;;  %v9213_v21 = vcombine.high %v462_v15, %v466_v16 }
 0x187   : > { %6977 = vmatpush1.bf16.msra.mxu1 %v9260_v25  ;;  %v594_v18 = vld [vmem:[%s10786_s22 + $0x728] sm:$0xff] }
 0x188   : > { %6978 = vmatprep.subr.bf16.mxu1 %v9253_v27  ;;  %v9341_v22 = vcombine.high %v590_v17, %v594_v18  ;;  %v454_v23 = vld [vmem:[%s10786_s22 + $0x2c8] sm:$0xff]  ;;  %v9212_v27 = vcombine.low %v462_v15, %v466_v16  ;;  %v9340_v28 = vcombine.low %v590_v17, %v594_v18 }
 0x189   : > { %6938 = vmatpush1.bf16.msra.mxu0 %v9124_v36  ;;  %v458_v24 = vld [vmem:[%s10786_s22 + $0x2e8] sm:$0xff] }
 0x18a   : > { %6939 = vmatprep.subr.bf16.mxu0 %v9117_v39  ;;  %v582_v25 = vld [vmem:[%s10786_s22 + $0x6c8] sm:$0xff]  ;;  %v9205_v29 = vcombine.high %v454_v23, %v458_v24 }
 0x18b   : > { %6979 = vmatpush1.bf16.msra.mxu1 %v9252_v38  ;;  %v586_v26 = vld [vmem:[%s10786_s22 + $0x6e8] sm:$0xff] }
 0x18c   : > { %6980 = vmatprep.subr.bf16.mxu1 %v9245_v41  ;;  %v9333_v31 = vcombine.high %v582_v25, %v586_v26  ;;  %v446_v32 = vld [vmem:[%s10786_s22 + $0x288] sm:$0xff]  ;;  %v9204_v41 = vcombine.low %v454_v23, %v458_v24  ;;  %v9332_v42 = vcombine.low %v582_v25, %v586_v26 }
 0x18d   : > { %6940 = vmatpush1.bf16.msra.mxu0 %v9116_v50  ;;  %v450_v36 = vld [vmem:[%s10786_s22 + $0x2a8] sm:$0xff] }
 0x18e   : > { %6941 = vmatprep.subr.bf16.mxu0 %v9237_v52  ;;  %v574_v38 = vld [vmem:[%s10786_s22 + $0x688] sm:$0xff]  ;;  %v9197_v44 = vcombine.high %v446_v32, %v450_v36 }
 0x18f   : > { %6981 = vmatpush1.bf16.msra.mxu1 %v9244_v51  ;;  %v578_v39 = vld [vmem:[%s10786_s22 + $0x6a8] sm:$0xff] }
 0x190   : > { %6982 = vmatprep.subr.bf16.mxu1 %v9365_v53  ;;  %v9325_v45 = vcombine.high %v574_v38, %v578_v39  ;;  %v438_v48 = vld [vmem:[%s10786_s22 + $0x248] sm:$0xff]  ;;  %v9196_v53 = vcombine.low %v446_v32, %v450_v36  ;;  %v9324_v54 = vcombine.low %v574_v38, %v578_v39 }
 0x191   : > { %6942 = vmatpush2.bf16.msra.mxu0 %v9236_v60  ;;  %v442_v50 = vld [vmem:[%s10786_s22 + $0x268] sm:$0xff] }
 0x192   : > { %6943 = vmatprep.subr.bf16.mxu0 %v9229_v63  ;;  %v566_v51 = vld [vmem:[%s10786_s22 + $0x648] sm:$0xff]  ;;  %v9189_v56 = vcombine.high %v438_v48, %v442_v50 }
 0x193   : > { %6983 = vmatpush2.bf16.msra.mxu1 %v9364_v62  ;;  %v570_v52 = vld [vmem:[%s10786_s22 + $0x668] sm:$0xff] }
 0x194   : > { %6984 = vmatprep.subr.bf16.mxu1 %v9357_v0  ;;  %v9317_v57 = vcombine.high %v566_v51, %v570_v52  ;;  %v430_v59 = vld [vmem:[%s10786_s22 + $0x208] sm:$0xff]  ;;  %v9188_v0 = vcombine.low %v438_v48, %v442_v50  ;;  %v9316_v2 = vcombine.low %v566_v51, %v570_v52 }
 0x195   : > { %6944 = vmatpush2.bf16.msra.mxu0 %v9228_v9  ;;  %v434_v60 = vld [vmem:[%s10786_s22 + $0x228] sm:$0xff] }
 0x196   : > { %6945 = vmatprep.subr.bf16.mxu0 %v9221_v12  ;;  %v558_v62 = vld [vmem:[%s10786_s22 + $0x608] sm:$0xff]  ;;  %v9181_v3 = vcombine.high %v430_v59, %v434_v60 }
 0x197   : > { %6985 = vmatpush2.bf16.msra.mxu1 %v9356_v11  ;;  %v562_v63 = vld [vmem:[%s10786_s22 + $0x628] sm:$0xff] }
 0x198   : > { %6986 = vmatprep.subr.bf16.mxu1 %v9349_v14  ;;  %v9309_v4 = vcombine.high %v558_v62, %v562_v63  ;;  %v678_v8 = vld [vmem:[%s10786_s22 + $0x9c8] sm:$0xff]  ;;  %v9180_v14 = vcombine.low %v430_v59, %v434_v60  ;;  %v9308_v15 = vcombine.low %v558_v62, %v562_v63 }
 0x199   : > { %6946 = vmatpush2.bf16.msra.mxu0 %v9220_v19  ;;  %v682_v9 = vld [vmem:[%s10786_s22 + $0x9e8] sm:$0xff] }
 0x19a   : > { %6947 = vmatprep.subr.bf16.mxu0 %v9213_v21  ;;  %v806_v11 = vld [vmem:[%s10786_s22 + $0xdc8] sm:$0xff]  ;;  %v9429_v16 = vcombine.high %v678_v8, %v682_v9 }
 0x19b   : > { %6987 = vmatpush2.bf16.msra.mxu1 %v9348_v20  ;;  %v810_v12 = vld [vmem:[%s10786_s22 + $0xde8] sm:$0xff] }
 0x19c   : > { %6988 = vmatprep.subr.bf16.mxu1 %v9341_v22  ;;  %v9557_v17 = vcombine.high %v806_v11, %v810_v12  ;;  %v670_v18 = vld [vmem:[%s10786_s22 + $0x988] sm:$0xff]  ;;  %v9428_v22 = vcombine.low %v678_v8, %v682_v9  ;;  %v9556_v23 = vcombine.low %v806_v11, %v810_v12 }
 0x19d   : > { %6948 = vmatpush2.bf16.msra.mxu0 %v9212_v27  ;;  %v674_v19 = vld [vmem:[%s10786_s22 + $0x9a8] sm:$0xff] }
 0x19e   : > { %6949 = vmatprep.subr.bf16.mxu0 %v9205_v29  ;;  %v798_v20 = vld [vmem:[%s10786_s22 + $0xd88] sm:$0xff]  ;;  %v9421_v24 = vcombine.high %v670_v18, %v674_v19  ;;  %v9420_v38 = vcombine.low %v670_v18, %v674_v19 }
 0x19f   : > { %6989 = vmatpush2.bf16.msra.mxu1 %v9340_v28  ;;  %v802_v21 = vld [vmem:[%s10786_s22 + $0xda8] sm:$0xff] }
 0x1a0   : > { %6990 = vmatprep.subr.bf16.mxu1 %v9333_v31  ;;  %v9549_v25 = vcombine.high %v798_v20, %v802_v21  ;;  %v662_v26 = vld [vmem:[%s10786_s22 + $0x948] sm:$0xff] }
 0x1a1   : > { %6950 = vmatpush2.bf16.msra.mxu0 %v9204_v41  ;;  %v666_v27 = vld [vmem:[%s10786_s22 + $0x968] sm:$0xff]  ;;  %v9548_v41 = vcombine.low %v798_v20, %v802_v21 }
 0x1a2   : > { %6951 = vmatprep.subr.bf16.mxu0 %v9197_v44  ;;  %v790_v29 = vld [vmem:[%s10786_s22 + $0xd48] sm:$0xff] }
 0x1a3   : > { %6991 = vmatpush2.bf16.msra.mxu1 %v9332_v42  ;;  %v794_v31 = vld [vmem:[%s10786_s22 + $0xd68] sm:$0xff]  ;;  %v9413_v42 = vcombine.high %v662_v26, %v666_v27 }
 0x1a4   : > { %6992 = vmatprep.subr.bf16.mxu1 %v9325_v45  ;;  %v654_v50 = vld [vmem:[%s10786_s22 + $0x908] sm:$0xff]  ;;  %v9540_v60 = vcombine.low %v790_v29, %v794_v31 }
 0x1a5   : > { %6952 = vmatpush2.bf16.msra.mxu0 %v9196_v53  ;;  %v658_v51 = vld [vmem:[%s10786_s22 + $0x928] sm:$0xff] }
 0x1a6   : > { %6953 = vmatprep.subr.bf16.mxu0 %v9189_v56  ;;  %v782_v53 = vld [vmem:[%s10786_s22 + $0xd08] sm:$0xff]  ;;  %v9405_v62 = vcombine.high %v654_v50, %v658_v51  ;;  %v9404_v9 = vcombine.low %v654_v50, %v658_v51 }
 0x1a7   : > { %6993 = vmatpush2.bf16.msra.mxu1 %v9324_v54  ;;  %v786_v54 = vld [vmem:[%s10786_s22 + $0xd28] sm:$0xff] }
 0x1a8   : > { %6994 = vmatprep.subr.bf16.mxu1 %v9317_v57  ;;  %v778_v8 = vld [vmem:[%s10786_s22 + $0xce8] sm:$0xff]  ;;  %v9532_v11 = vcombine.low %v782_v53, %v786_v54 }
 0x1a9   : > { %6954 = vmatpush2.bf16.msra.mxu0 %v9188_v0  ;;  %v9533_v0 = vcombine.high %v782_v53, %v786_v54  ;;  %v770_v18 = vld [vmem:[%s10786_s22 + $0xca8] sm:$0xff] }
 0x1aa   : > { %6955 = vmatprep.subr.bf16.mxu0 %v9181_v3  ;;  %v650_v3 = vld [vmem:[%s10786_s22 + $0x8e8] sm:$0xff] }
 0x1ab   : > { %6995 = vmatpush2.bf16.msra.mxu1 %v9316_v2  ;;  %v646_v2 = vld [vmem:[%s10786_s22 + $0x8c8] sm:$0xff] }
 0x1ac   : > { %6996 = vmatprep.subr.bf16.mxu1 %v9309_v4  ;;  %v774_v4 = vld [vmem:[%s10786_s22 + $0xcc8] sm:$0xff]  ;;  %v9397_v12 = vcombine.high %v646_v2, %v650_v3  ;;  %v9396_v19 = vcombine.low %v646_v2, %v650_v3 }
 0x1ad   : > { %6956 = vmatpush2.bf16.msra.mxu0 %v9180_v14  ;;  %v9525_v14 = vcombine.high %v774_v4, %v778_v8  ;;  %v9524_v20 = vcombine.low %v774_v4, %v778_v8  ;;  %v746_v50 = vld [vmem:[%s10786_s22 + $0xbe8] sm:$0xff] }
 0x1ae   : > { %7007 = vmatprep.subr.bf16.mxu0 %v9429_v16  ;;  %v642_v16 = vld [vmem:[%s10786_s22 + $0x8a8] sm:$0xff] }
 0x1af   : > { %6997 = vmatpush2.bf16.msra.mxu1 %v9308_v15  ;;  %v638_v15 = vld [vmem:[%s10786_s22 + $0x888] sm:$0xff] }
 0x1b0   : > { %7048 = vmatprep.subr.bf16.mxu1 %v9557_v17  ;;  %v6713_v28 = vpop.f32.mrf.mxu0  ;;  %6958 = vmatmul.mubr.bf16.vlgmr.msra.gmra.mxu0 %v10845_v1  ;;  %v766_v17 = vld [vmem:[%s10786_s22 + $0xc88] sm:$0xff]  ;;  %v9389_v21 = vcombine.high %v638_v15, %v642_v16 }
 0x1b1   : > { %v6714_v32 = vadd.f32 %v6713_v28, %v11157_v35  ;;  %7008 = vmatpush1.bf16.msra.mxu0 %v9428_v22  ;;  %v9541_v35 = vcombine.high %v790_v29, %v794_v31  ;;  %7039 = vmatprep.mubr.bf16.mxu0 %v10913_v40  ;;  %v9517_v22 = vcombine.high %v766_v17, %v770_v18  ;;  %v870_v51 = vld [vmem:[%s10786_s22 + $0xfc8] sm:$0xff] }
 0x1b2   : > { %v6754_v36 = vpop.f32.mrf.mxu1  ;;  %6999 = vmatmul.mubr.bf16.vlgmr.msra.gmra.mxu1 %v10854_v7  ;;  %v6715_v39 = vpop.f32.mrf.mxu0  ;;  %7009 = vmatprep.subr.bf16.mxu0 %v9421_v24  ;;  %v634_v24 = vld [vmem:[%s10786_s22 + $0x868] sm:$0xff]  ;;  %v9516_v28 = vcombine.low %v766_v17, %v770_v18 }
 0x1b3   : > { %7049 = vmatpush1.bf16.msra.mxu1 %v9556_v23  ;;  %v11230_v44 = vadd.f32 %v6754_v36, %v6714_v32  ;;  %v6716_v45 = vadd.f32 %v6715_v39, %v11162_v55  ;;  %7080 = vmatprep.mubr.bf16.mxu1 %v10920_v43  ;;  %v9412_v55 = vcombine.low %v662_v26, %v666_v27  ;;  %v630_v23 = vld [vmem:[%s10786_s22 + $0x848] sm:$0xff] }
 0x1b4   : > { %v6756_v48 = vpop.f32.mrf.mxu1  ;;  %7050 = vmatprep.subr.bf16.mxu1 %v9549_v25  ;;  %v6717_v52 = vpop.f32.mrf.mxu0  ;;  %v758_v25 = vld [vmem:[%s10786_s22 + $0xc48] sm:$0xff]  ;;  %v9388_v27 = vcombine.low %v638_v15, %v642_v16  ;;  %v9381_v29 = vcombine.high %v630_v23, %v634_v24 }
 0x1b5   : > { %v11239_v56 = vadd.f32 %v6756_v48, %v6716_v45  ;;  %7010 = vmatpush1.bf16.msra.mxu0 %v9420_v38  ;;  %v762_v26 = vld [vmem:[%s10786_s22 + $0xc68] sm:$0xff] }
 0x1b6   : > { %v6758_v57 = vpop.f32.mrf.mxu1  ;;  %v6718_v59 = vpop.f32.mrf.mxu0  ;;  %7011 = vmatprep.subr.bf16.mxu0 %v9413_v42  ;;  %v9509_v31 = vcombine.high %v758_v25, %v762_v26  ;;  %v622_v32 = vld [vmem:[%s10786_s22 + $0x808] sm:$0xff]  ;;  %v9508_v42 = vcombine.low %v758_v25, %v762_v26 }
 0x1b7   : > { %7051 = vmatpush1.bf16.msra.mxu1 %v9548_v41  ;;  %v626_v36 = vld [vmem:[%s10786_s22 + $0x828] sm:$0xff]  ;;  %v9380_v41 = vcombine.low %v630_v23, %v634_v24 }
 0x1b8   : > { %v6759_v63 = vpop.f32.mrf.mxu1  ;;  %7052 = vmatprep.subr.bf16.mxu1 %v9541_v35  ;;  %v750_v38 = vld [vmem:[%s10786_s22 + $0xc08] sm:$0xff]  ;;  %v9373_v45 = vcombine.high %v622_v32, %v626_v36  ;;  %v9372_v53 = vcombine.low %v622_v32, %v626_v36 }
 0x1b9   : > { %7012 = vmatpush1.bf16.msra.mxu0 %v9412_v55  ;;  %v754_v39 = vld [vmem:[%s10786_s22 + $0xc28] sm:$0xff] }
 0x1ba   : > { %7013 = vmatprep.subr.bf16.mxu0 %v9405_v62  ;;  %v9501_v48 = vcombine.high %v750_v38, %v754_v39  ;;  %v742_v35 = vld [vmem:[%s10786_s22 + $0xbc8] sm:$0xff]  ;;  %v9500_v54 = vcombine.low %v750_v38, %v754_v39 }
 0x1bb   : > { %7053 = vmatpush1.bf16.msra.mxu1 %v9540_v60  ;;  %v874_v52 = vld [vmem:[%s10786_s22 + $0xfe8] sm:$0xff]  ;;  %v9493_v57 = vcombine.high %v742_v35, %v746_v50 }
 0x1bc   : > { %7054 = vmatprep.subr.bf16.mxu1 %v9533_v0  ;;  %v9621_v55 = vcombine.high %v870_v51, %v874_v52  ;;  %v734_v59 = vld [vmem:[%s10786_s22 + $0xb88] sm:$0xff]  ;;  %v9492_v0 = vcombine.low %v742_v35, %v746_v50  ;;  %v9620_v2 = vcombine.low %v870_v51, %v874_v52 }
 0x1bd   : > { %7014 = vmatpush1.bf16.msra.mxu0 %v9404_v9  ;;  %v738_v60 = vld [vmem:[%s10786_s22 + $0xba8] sm:$0xff] }
 0x1be   : > { %7015 = vmatprep.subr.bf16.mxu0 %v9397_v12  ;;  %v862_v62 = vld [vmem:[%s10786_s22 + $0xf88] sm:$0xff]  ;;  %v9485_v3 = vcombine.high %v734_v59, %v738_v60 }
 0x1bf   : > { %7055 = vmatpush1.bf16.msra.mxu1 %v9532_v11  ;;  %v866_v63 = vld [vmem:[%s10786_s22 + $0xfa8] sm:$0xff] }
 0x1c0   : > { %7056 = vmatprep.subr.bf16.mxu1 %v9525_v14  ;;  %v9613_v4 = vcombine.high %v862_v62, %v866_v63  ;;  %v726_v8 = vld [vmem:[%s10786_s22 + $0xb48] sm:$0xff]  ;;  %v9484_v14 = vcombine.low %v734_v59, %v738_v60  ;;  %v9612_v15 = vcombine.low %v862_v62, %v866_v63 }
 0x1c1   : > { %7016 = vmatpush1.bf16.msra.mxu0 %v9396_v19  ;;  %v730_v9 = vld [vmem:[%s10786_s22 + $0xb68] sm:$0xff] }
 0x1c2   : > { %7017 = vmatprep.subr.bf16.mxu0 %v9389_v21  ;;  %v854_v11 = vld [vmem:[%s10786_s22 + $0xf48] sm:$0xff]  ;;  %v9477_v16 = vcombine.high %v726_v8, %v730_v9 }
 0x1c3   : > { %7057 = vmatpush1.bf16.msra.mxu1 %v9524_v20  ;;  %v858_v12 = vld [vmem:[%s10786_s22 + $0xf68] sm:$0xff] }
 0x1c4   : > { %7058 = vmatprep.subr.bf16.mxu1 %v9517_v22  ;;  %v9605_v17 = vcombine.high %v854_v11, %v858_v12  ;;  %v718_v18 = vld [vmem:[%s10786_s22 + $0xb08] sm:$0xff]  ;;  %v9476_v22 = vcombine.low %v726_v8, %v730_v9  ;;  %v9604_v23 = vcombine.low %v854_v11, %v858_v12 }
 0x1c5   : > { %7018 = vmatpush1.bf16.msra.mxu0 %v9388_v27  ;;  %v722_v19 = vld [vmem:[%s10786_s22 + $0xb28] sm:$0xff] }
 0x1c6   : > { %7019 = vmatprep.subr.bf16.mxu0 %v9381_v29  ;;  %v846_v20 = vld [vmem:[%s10786_s22 + $0xf08] sm:$0xff]  ;;  %v9469_v24 = vcombine.high %v718_v18, %v722_v19 }
 0x1c7   : > { %7059 = vmatpush1.bf16.msra.mxu1 %v9516_v28  ;;  %v850_v21 = vld [vmem:[%s10786_s22 + $0xf28] sm:$0xff] }
 0x1c8   : > { %7060 = vmatprep.subr.bf16.mxu1 %v9509_v31  ;;  %v9597_v25 = vcombine.high %v846_v20, %v850_v21  ;;  %v710_v26 = vld [vmem:[%s10786_s22 + $0xac8] sm:$0xff]  ;;  %v9468_v31 = vcombine.low %v718_v18, %v722_v19  ;;  %v9596_v32 = vcombine.low %v846_v20, %v850_v21 }
 0x1c9   : > { %7020 = vmatpush1.bf16.msra.mxu0 %v9380_v41  ;;  %v714_v27 = vld [vmem:[%s10786_s22 + $0xae8] sm:$0xff] }
 0x1ca   : > { %7021 = vmatprep.subr.bf16.mxu0 %v9373_v45  ;;  %v838_v28 = vld [vmem:[%s10786_s22 + $0xec8] sm:$0xff]  ;;  %v9461_v36 = vcombine.high %v710_v26, %v714_v27 }
 0x1cb   : > { %7061 = vmatpush1.bf16.msra.mxu1 %v9508_v42  ;;  %v842_v29 = vld [vmem:[%s10786_s22 + $0xee8] sm:$0xff] }
 0x1cc   : > { %7062 = vmatprep.subr.bf16.mxu1 %v9501_v48  ;;  %v9589_v38 = vcombine.high %v838_v28, %v842_v29  ;;  %v702_v39 = vld [vmem:[%s10786_s22 + $0xa88] sm:$0xff]  ;;  %v9460_v48 = vcombine.low %v710_v26, %v714_v27  ;;  %v9588_v35 = vcombine.low %v838_v28, %v842_v29 }
 0x1cd   : > { %7022 = vmatpush1.bf16.msra.mxu0 %v9372_v53  ;;  %v706_v41 = vld [vmem:[%s10786_s22 + $0xaa8] sm:$0xff] }
 0x1ce   : > { %7023 = vmatprep.subr.bf16.mxu0 %v9493_v57  ;;  %v830_v42 = vld [vmem:[%s10786_s22 + $0xe88] sm:$0xff]  ;;  %v9453_v50 = vcombine.high %v702_v39, %v706_v41 }
 0x1cf   : > { %7063 = vmatpush1.bf16.msra.mxu1 %v9500_v54  ;;  %v834_v45 = vld [vmem:[%s10786_s22 + $0xea8] sm:$0xff] }
 0x1d0   : > { %7064 = vmatprep.subr.bf16.mxu1 %v9621_v55  ;;  %v9581_v51 = vcombine.high %v830_v42, %v834_v45  ;;  %v694_v52 = vld [vmem:[%s10786_s22 + $0xa48] sm:$0xff]  ;;  %v9452_v55 = vcombine.low %v702_v39, %v706_v41  ;;  %v9580_v59 = vcombine.low %v830_v42, %v834_v45 }
 0x1d1   : > { %7024 = vmatpush2.bf16.msra.mxu0 %v9492_v0  ;;  %v698_v53 = vld [vmem:[%s10786_s22 + $0xa68] sm:$0xff] }
 0x1d2   : > { %7025 = vmatprep.subr.bf16.mxu0 %v9485_v3  ;;  %v822_v54 = vld [vmem:[%s10786_s22 + $0xe48] sm:$0xff]  ;;  %v9445_v60 = vcombine.high %v694_v52, %v698_v53 }
 0x1d3   : > { %7065 = vmatpush2.bf16.msra.mxu1 %v9620_v2  ;;  %v826_v57 = vld [vmem:[%s10786_s22 + $0xe68] sm:$0xff] }
 0x1d4   : > { %7066 = vmatprep.subr.bf16.mxu1 %v9613_v4  ;;  %v9573_v62 = vcombine.high %v822_v54, %v826_v57  ;;  %v686_v63 = vld [vmem:[%s10786_s22 + $0xa08] sm:$0xff]  ;;  %v9444_v4 = vcombine.low %v694_v52, %v698_v53  ;;  %v9572_v8 = vcombine.low %v822_v54, %v826_v57 }
 0x1d5   : > { %7026 = vmatpush2.bf16.msra.mxu0 %v9484_v14  ;;  %v690_v0 = vld [vmem:[%s10786_s22 + $0xa28] sm:$0xff] }
 0x1d6   : > { %7027 = vmatprep.subr.bf16.mxu0 %v9477_v16  ;;  %v814_v2 = vld [vmem:[%s10786_s22 + $0xe08] sm:$0xff]  ;;  %v9437_v9 = vcombine.high %v686_v63, %v690_v0 }
 0x1d7   : > { %7067 = vmatpush2.bf16.msra.mxu1 %v9612_v15  ;;  %v818_v3 = vld [vmem:[%s10786_s22 + $0xe28] sm:$0xff] }
 0x1d8   : > { %7068 = vmatprep.subr.bf16.mxu1 %v9605_v17  ;;  %v9565_v11 = vcombine.high %v814_v2, %v818_v3  ;;  %v934_v12 = vld [vmem:[%s10786_s22 + $0x11c8] sm:$0xff]  ;;  %v9436_v17 = vcombine.low %v686_v63, %v690_v0  ;;  %v9564_v18 = vcombine.low %v814_v2, %v818_v3 }
 0x1d9   : > { %7028 = vmatpush2.bf16.msra.mxu0 %v9476_v22  ;;  %v938_v14 = vld [vmem:[%s10786_s22 + $0x11e8] sm:$0xff] }
 0x1da   : > { %7029 = vmatprep.subr.bf16.mxu0 %v9469_v24  ;;  %v1062_v15 = vld [vmem:[%s10786_s22 + $0x15c8] sm:$0xff]  ;;  %v9685_v19 = vcombine.high %v934_v12, %v938_v14 }
 0x1db   : > { %7069 = vmatpush2.bf16.msra.mxu1 %v9604_v23  ;;  %v1066_v16 = vld [vmem:[%s10786_s22 + $0x15e8] sm:$0xff] }
 0x1dc   : > { %7070 = vmatprep.subr.bf16.mxu1 %v9597_v25  ;;  %v9813_v20 = vcombine.high %v1062_v15, %v1066_v16  ;;  %v926_v21 = vld [vmem:[%s10786_s22 + $0x1188] sm:$0xff]  ;;  %v9684_v25 = vcombine.low %v934_v12, %v938_v14  ;;  %v9812_v26 = vcombine.low %v1062_v15, %v1066_v16 }
 0x1dd   : > { %7030 = vmatpush2.bf16.msra.mxu0 %v9468_v31  ;;  %v930_v22 = vld [vmem:[%s10786_s22 + $0x11a8] sm:$0xff] }
 0x1de   : > { %7031 = vmatprep.subr.bf16.mxu0 %v9461_v36  ;;  %v1054_v23 = vld [vmem:[%s10786_s22 + $0x1588] sm:$0xff]  ;;  %v9677_v27 = vcombine.high %v926_v21, %v930_v22  ;;  %v9676_v41 = vcombine.low %v926_v21, %v930_v22 }
 0x1df   : > { %7071 = vmatpush2.bf16.msra.mxu1 %v9596_v32  ;;  %v1058_v24 = vld [vmem:[%s10786_s22 + $0x15a8] sm:$0xff] }
 0x1e0   : > { %7072 = vmatprep.subr.bf16.mxu1 %v9589_v38  ;;  %v9805_v28 = vcombine.high %v1054_v23, %v1058_v24  ;;  %v918_v29 = vld [vmem:[%s10786_s22 + $0x1148] sm:$0xff]  ;;  %v9804_v45 = vcombine.low %v1054_v23, %v1058_v24 }
 0x1e1   : > { %7032 = vmatpush2.bf16.msra.mxu0 %v9460_v48  ;;  %v922_v31 = vld [vmem:[%s10786_s22 + $0x1168] sm:$0xff] }
 0x1e2   : > { %7033 = vmatprep.subr.bf16.mxu0 %v9453_v50  ;;  %v1046_v36 = vld [vmem:[%s10786_s22 + $0x1548] sm:$0xff]  ;;  %v9669_v48 = vcombine.high %v918_v29, %v922_v31 }
 0x1e3   : > { %7073 = vmatpush2.bf16.msra.mxu1 %v9588_v35  ;;  %v1050_v38 = vld [vmem:[%s10786_s22 + $0x1568] sm:$0xff] }
 0x1e4   : > { %7074 = vmatprep.subr.bf16.mxu1 %v9581_v51  ;;  %v9797_v50 = vcombine.high %v1046_v36, %v1050_v38  ;;  %v910_v51 = vld [vmem:[%s10786_s22 + $0x1108] sm:$0xff] }
 0x1e5   : > { %7034 = vmatpush2.bf16.msra.mxu0 %v9452_v55  ;;  %v914_v52 = vld [vmem:[%s10786_s22 + $0x1128] sm:$0xff] }
 0x1e6   : > { %7035 = vmatprep.subr.bf16.mxu0 %v9445_v60  ;;  %v1038_v54 = vld [vmem:[%s10786_s22 + $0x1508] sm:$0xff]  ;;  %v9661_v63 = vcombine.high %v910_v51, %v914_v52 }
 0x1e7   : > { %7075 = vmatpush2.bf16.msra.mxu1 %v9580_v59  ;;  %v1042_v57 = vld [vmem:[%s10786_s22 + $0x1528] sm:$0xff]  ;;  %v9668_v59 = vcombine.low %v918_v29, %v922_v31 }
 0x1e8   : > { %7076 = vmatprep.subr.bf16.mxu1 %v9573_v62  ;;  %v9796_v62 = vcombine.low %v1046_v36, %v1050_v38  ;;  %v9789_v2 = vcombine.high %v1038_v54, %v1042_v57  ;;  %v902_v3 = vld [vmem:[%s10786_s22 + $0x10c8] sm:$0xff]  ;;  %v9788_v12 = vcombine.low %v1038_v54, %v1042_v57 }
 0x1e9   : > { %7036 = vmatpush2.bf16.msra.mxu0 %v9444_v4  ;;  %v906_v4 = vld [vmem:[%s10786_s22 + $0x10e8] sm:$0xff] }
 0x1ea   : > { %7037 = vmatprep.subr.bf16.mxu0 %v9437_v9  ;;  %v1034_v9 = vld [vmem:[%s10786_s22 + $0x14e8] sm:$0xff]  ;;  %v9653_v14 = vcombine.high %v902_v3, %v906_v4 }
 0x1eb   : > { %7077 = vmatpush2.bf16.msra.mxu1 %v9572_v8  ;;  %v1030_v8 = vld [vmem:[%s10786_s22 + $0x14c8] sm:$0xff] }
 0x1ec   : > { %7078 = vmatprep.subr.bf16.mxu1 %v9565_v11  ;;  %v9660_v11 = vcombine.low %v910_v51, %v914_v52  ;;  %v9781_v15 = vcombine.high %v1030_v8, %v1034_v9  ;;  %v894_v16 = vld [vmem:[%s10786_s22 + $0x1088] sm:$0xff]  ;;  %v9780_v21 = vcombine.low %v1030_v8, %v1034_v9 }
 0x1ed   : > { %7038 = vmatpush2.bf16.msra.mxu0 %v9436_v17  ;;  %v898_v17 = vld [vmem:[%s10786_s22 + $0x10a8] sm:$0xff] }
 0x1ee   : > { %7089 = vmatprep.subr.bf16.mxu0 %v9685_v19  ;;  %v1026_v19 = vld [vmem:[%s10786_s22 + $0x14a8] sm:$0xff]  ;;  %v9645_v22 = vcombine.high %v894_v16, %v898_v17 }
 0x1ef   : > { %7079 = vmatpush2.bf16.msra.mxu1 %v9564_v18  ;;  %v1022_v18 = vld [vmem:[%s10786_s22 + $0x1488] sm:$0xff] }
 0x1f0   : > { %7130 = vmatprep.subr.bf16.mxu1 %v9813_v20  ;;  %v11299_v32 = vpop.f32.mrf.mxu0  ;;  %7040 = vmatmul.mubr.bf16.vlgmr.msra.gmra.mxu0 %v10902_v30  ;;  %v9652_v20 = vcombine.low %v902_v3, %v906_v4  ;;  %v9773_v23 = vcombine.high %v1022_v18, %v1026_v19  ;;  %v886_v24 = vld [vmem:[%s10786_s22 + $0x1048] sm:$0xff]  ;;  %v9772_v29 = vcombine.low %v1022_v18, %v1026_v19 }
 0x1f1   : > { %7090 = vmatpush1.bf16.msra.mxu0 %v9684_v25  ;;  %7121 = vmatprep.mubr.bf16.mxu0 %v10996_v5  ;;  %v890_v25 = vld [vmem:[%s10786_s22 + $0x1068] sm:$0xff] }
 0x1f2   : > { %v11304_v39 = vpop.f32.mrf.mxu1  ;;  %7081 = vmatmul.mubr.bf16.vlgmr.msra.gmra.mxu1 %v10907_v33  ;;  %v11307_v42 = vpop.f32.mrf.mxu0  ;;  %7091 = vmatprep.subr.bf16.mxu0 %v9677_v27  ;;  %v1018_v27 = vld [vmem:[%s10786_s22 + $0x1468] sm:$0xff]  ;;  %v9637_v31 = vcombine.high %v886_v24, %v890_v25 }
 0x1f3   : > { %7131 = vmatpush1.bf16.msra.mxu1 %v9812_v26  ;;  %7162 = vmatprep.mubr.bf16.mxu1 %v11003_v10  ;;  %v1014_v26 = vld [vmem:[%s10786_s22 + $0x1448] sm:$0xff] }
 0x1f4   : > { %v11309_v35 = vpop.f32.mrf.mxu1  ;;  %7132 = vmatprep.subr.bf16.mxu1 %v9805_v28  ;;  %v6799_v53 = vpop.f32.mrf.mxu0  ;;  %v9644_v28 = vcombine.low %v894_v16, %v898_v17  ;;  %v9765_v36 = vcombine.high %v1014_v26, %v1018_v27  ;;  %v878_v38 = vld [vmem:[%s10786_s22 + $0x1008] sm:$0xff]  ;;  %v9764_v51 = vcombine.low %v1014_v26, %v1018_v27 }
 0x1f5   : > { %7092 = vmatpush1.bf16.msra.mxu0 %v9676_v41  ;;  %v882_v41 = vld [vmem:[%s10786_s22 + $0x1028] sm:$0xff] }
 0x1f6   : > { %v6840_v55 = vpop.f32.mrf.mxu1  ;;  %v6800_v60 = vpop.f32.mrf.mxu0  ;;  %7093 = vmatprep.subr.bf16.mxu0 %v9669_v48  ;;  %v1010_v48 = vld [vmem:[%s10786_s22 + $0x1428] sm:$0xff]  ;;  %v9629_v52 = vcombine.high %v878_v38, %v882_v41 }
 0x1f7   : > { %7133 = vmatpush1.bf16.msra.mxu1 %v9804_v45  ;;  %v1006_v45 = vld [vmem:[%s10786_s22 + $0x1408] sm:$0xff]  ;;  %v9628_v60 = vcombine.low %v878_v38, %v882_v41 }
 0x1f8   : > { %v6841_v0 = vpop.f32.mrf.mxu1  ;;  %7134 = vmatprep.subr.bf16.mxu1 %v9797_v50  ;;  %v9636_v50 = vcombine.low %v886_v24, %v890_v25  ;;  %v9757_v53 = vcombine.high %v1006_v45, %v1010_v48  ;;  %v998_v54 = vld [vmem:[%s10786_s22 + $0x13c8] sm:$0xff] }
 0x1f9   : > { %7094 = vmatpush1.bf16.msra.mxu0 %v9668_v59  ;;  %v1002_v57 = vld [vmem:[%s10786_s22 + $0x13e8] sm:$0xff] }
 0x1fa   : > { %7095 = vmatprep.subr.bf16.mxu0 %v9661_v63  ;;  %v1126_v55 = vld [vmem:[%s10786_s22 + $0x17c8] sm:$0xff]  ;;  %v9749_v63 = vcombine.high %v998_v54, %v1002_v57  ;;  %v9748_v9 = vcombine.low %v998_v54, %v1002_v57 }
 0x1fb   : > { %7135 = vmatpush1.bf16.msra.mxu1 %v9796_v62  ;;  %v1130_v59 = vld [vmem:[%s10786_s22 + $0x17e8] sm:$0xff]  ;;  %v9756_v62 = vcombine.low %v1006_v45, %v1010_v48 }
 0x1fc   : > { %7136 = vmatprep.subr.bf16.mxu1 %v9789_v2  ;;  %v9877_v0 = vcombine.high %v1126_v55, %v1130_v59  ;;  %v990_v2 = vld [vmem:[%s10786_s22 + $0x1388] sm:$0xff] }
 0x1fd   : > { %7096 = vmatpush1.bf16.msra.mxu0 %v9660_v11  ;;  %v994_v3 = vld [vmem:[%s10786_s22 + $0x13a8] sm:$0xff]  ;;  %v9876_v11 = vcombine.low %v1126_v55, %v1130_v59 }
 0x1fe   : > { %7097 = vmatprep.subr.bf16.mxu0 %v9653_v14  ;;  %v1118_v4 = vld [vmem:[%s10786_s22 + $0x1788] sm:$0xff]  ;;  %v9740_v19 = vcombine.low %v990_v2, %v994_v3 }
 0x1ff   : > { %7137 = vmatpush1.bf16.msra.mxu1 %v9788_v12  ;;  %v1122_v8 = vld [vmem:[%s10786_s22 + $0x17a8] sm:$0xff]  ;;  %v9741_v12 = vcombine.high %v990_v2, %v994_v3 }
 0x200   : > { %7138 = vmatprep.subr.bf16.mxu1 %v9781_v15  ;;  %v9869_v14 = vcombine.high %v1118_v4, %v1122_v8  ;;  %v982_v15 = vld [vmem:[%s10786_s22 + $0x1348] sm:$0xff] }
 0x201   : > { %7098 = vmatpush1.bf16.msra.mxu0 %v9652_v20  ;;  %v986_v16 = vld [vmem:[%s10786_s22 + $0x1368] sm:$0xff]  ;;  %v9868_v20 = vcombine.low %v1118_v4, %v1122_v8 }
 0x202   : > { %7099 = vmatprep.subr.bf16.mxu0 %v9645_v22  ;;  %v1110_v17 = vld [vmem:[%s10786_s22 + $0x1748] sm:$0xff]  ;;  %v9732_v27 = vcombine.low %v982_v15, %v986_v16 }
 0x203   : > { %7139 = vmatpush1.bf16.msra.mxu1 %v9780_v21  ;;  %v1114_v18 = vld [vmem:[%s10786_s22 + $0x1768] sm:$0xff]  ;;  %v9733_v21 = vcombine.high %v982_v15, %v986_v16 }
 0x204   : > { %7140 = vmatprep.subr.bf16.mxu1 %v9773_v23  ;;  %v9861_v22 = vcombine.high %v1110_v17, %v1114_v18  ;;  %v974_v23 = vld [vmem:[%s10786_s22 + $0x1308] sm:$0xff] }
 0x205   : > { %7100 = vmatpush1.bf16.msra.mxu0 %v9644_v28  ;;  %v978_v24 = vld [vmem:[%s10786_s22 + $0x1328] sm:$0xff]  ;;  %v9860_v28 = vcombine.low %v1110_v17, %v1114_v18 }
 0x206   : > { %7101 = vmatprep.subr.bf16.mxu0 %v9637_v31  ;;  %v1102_v25 = vld [vmem:[%s10786_s22 + $0x1708] sm:$0xff]  ;;  %v9724_v48 = vcombine.low %v974_v23, %v978_v24 }
 0x207   : > { %7141 = vmatpush1.bf16.msra.mxu1 %v9772_v29  ;;  %v1106_v26 = vld [vmem:[%s10786_s22 + $0x1728] sm:$0xff]  ;;  %v9725_v29 = vcombine.high %v974_v23, %v978_v24 }
 0x208   : > { %7142 = vmatprep.subr.bf16.mxu1 %v9765_v36  ;;  %v9853_v31 = vcombine.high %v1102_v25, %v1106_v26  ;;  %v966_v36 = vld [vmem:[%s10786_s22 + $0x12c8] sm:$0xff] }
 0x209   : > { %7102 = vmatpush1.bf16.msra.mxu0 %v9636_v50  ;;  %v970_v38 = vld [vmem:[%s10786_s22 + $0x12e8] sm:$0xff]  ;;  %v9852_v50 = vcombine.low %v1102_v25, %v1106_v26 }
 0x20a   : > { %7103 = vmatprep.subr.bf16.mxu0 %v9629_v52  ;;  %v1094_v41 = vld [vmem:[%s10786_s22 + $0x16c8] sm:$0xff]  ;;  %v9716_v59 = vcombine.low %v966_v36, %v970_v38 }
 0x20b   : > { %7143 = vmatpush1.bf16.msra.mxu1 %v9764_v51  ;;  %v1098_v45 = vld [vmem:[%s10786_s22 + $0x16e8] sm:$0xff]  ;;  %v9717_v51 = vcombine.high %v966_v36, %v970_v38 }
 0x20c   : > { %7144 = vmatprep.subr.bf16.mxu1 %v9757_v53  ;;  %v9845_v52 = vcombine.high %v1094_v41, %v1098_v45  ;;  %v958_v53 = vld [vmem:[%s10786_s22 + $0x1288] sm:$0xff] }
 0x20d   : > { %7104 = vmatpush1.bf16.msra.mxu0 %v9628_v60  ;;  %v962_v54 = vld [vmem:[%s10786_s22 + $0x12a8] sm:$0xff]  ;;  %v9844_v60 = vcombine.low %v1094_v41, %v1098_v45 }
 0x20e   : > { %7105 = vmatprep.subr.bf16.mxu0 %v9749_v63  ;;  %v1086_v57 = vld [vmem:[%s10786_s22 + $0x1688] sm:$0xff]  ;;  %v9708_v8 = vcombine.low %v958_v53, %v962_v54 }
 0x20f   : > { %7145 = vmatpush1.bf16.msra.mxu1 %v9756_v62  ;;  %v1090_v55 = vld [vmem:[%s10786_s22 + $0x16a8] sm:$0xff]  ;;  %v9709_v62 = vcombine.high %v958_v53, %v962_v54 }
 0x210   : > { %7146 = vmatprep.subr.bf16.mxu1 %v9877_v0  ;;  %v9837_v63 = vcombine.high %v1086_v57, %v1090_v55  ;;  %v950_v0 = vld [vmem:[%s10786_s22 + $0x1248] sm:$0xff] }
 0x211   : > { %7106 = vmatpush2.bf16.msra.mxu0 %v9748_v9  ;;  %v954_v2 = vld [vmem:[%s10786_s22 + $0x1268] sm:$0xff]  ;;  %v9836_v9 = vcombine.low %v1086_v57, %v1090_v55 }
 0x212   : > { %7107 = vmatprep.subr.bf16.mxu0 %v9741_v12  ;;  %v1078_v3 = vld [vmem:[%s10786_s22 + $0x1648] sm:$0xff]  ;;  %v9700_v18 = vcombine.low %v950_v0, %v954_v2 }
 0x213   : > { %7147 = vmatpush2.bf16.msra.mxu1 %v9876_v11  ;;  %v1082_v4 = vld [vmem:[%s10786_s22 + $0x1668] sm:$0xff]  ;;  %v9701_v11 = vcombine.high %v950_v0, %v954_v2 }
 0x214   : > { %7148 = vmatprep.subr.bf16.mxu1 %v9869_v14  ;;  %v9829_v12 = vcombine.high %v1078_v3, %v1082_v4  ;;  %v942_v14 = vld [vmem:[%s10786_s22 + $0x1208] sm:$0xff] }
 0x215   : > { %7108 = vmatpush2.bf16.msra.mxu0 %v9740_v19  ;;  %v946_v15 = vld [vmem:[%s10786_s22 + $0x1228] sm:$0xff]  ;;  %v9828_v19 = vcombine.low %v1078_v3, %v1082_v4 }
 0x216   : > { %7109 = vmatprep.subr.bf16.mxu0 %v9733_v21  ;;  %v1070_v16 = vld [vmem:[%s10786_s22 + $0x1608] sm:$0xff]  ;;  %v9692_v26 = vcombine.low %v942_v14, %v946_v15 }
 0x217   : > { %7149 = vmatpush2.bf16.msra.mxu1 %v9868_v20  ;;  %v1074_v17 = vld [vmem:[%s10786_s22 + $0x1628] sm:$0xff]  ;;  %v9693_v20 = vcombine.high %v942_v14, %v946_v15 }
 0x218   : > { %7150 = vmatprep.subr.bf16.mxu1 %v9861_v22  ;;  %v9821_v21 = vcombine.high %v1070_v16, %v1074_v17  ;;  %v1190_v22 = vld [vmem:[%s10786_s22 + $0x19c8] sm:$0xff] }
 0x219   : > { %7110 = vmatpush2.bf16.msra.mxu0 %v9732_v27  ;;  %v1194_v23 = vld [vmem:[%s10786_s22 + $0x19e8] sm:$0xff]  ;;  %v9820_v27 = vcombine.low %v1070_v16, %v1074_v17 }
 0x21a   : > { %7111 = vmatprep.subr.bf16.mxu0 %v9725_v29  ;;  %v1318_v24 = vld [vmem:[%s10786_s22 + $0x1dc8] sm:$0xff]  ;;  %v6796_v29 = vadd.f32 %v11299_v32, %v11230_v44 }
 0x21b   : > { %7151 = vmatpush2.bf16.msra.mxu1 %v9860_v28  ;;  %v1322_v25 = vld [vmem:[%s10786_s22 + $0x1de8] sm:$0xff]  ;;  %v9941_v28 = vcombine.high %v1190_v22, %v1194_v23 }
 0x21c   : > { %7152 = vmatprep.subr.bf16.mxu1 %v9853_v31  ;;  %v10069_v31 = vcombine.high %v1318_v24, %v1322_v25  ;;  %v1182_v36 = vld [vmem:[%s10786_s22 + $0x1988] sm:$0xff]  ;;  %v6837_v44 = vadd.f32 %v11304_v39, %v6796_v29 }
 0x21d   : > { %7112 = vmatpush2.bf16.msra.mxu0 %v9724_v48  ;;  %v1186_v38 = vld [vmem:[%s10786_s22 + $0x19a8] sm:$0xff]  ;;  %v6798_v48 = vadd.f32 %v11307_v42, %v11239_v56 }
 0x21e   : > { %7113 = vmatprep.subr.bf16.mxu0 %v9717_v51  ;;  %v1310_v41 = vld [vmem:[%s10786_s22 + $0x1d88] sm:$0xff]  ;;  %v10068_v51 = vcombine.low %v1318_v24, %v1322_v25  ;;  %v9932_v39 = vcombine.low %v1182_v36, %v1186_v38 }
 0x21f   : > { %7153 = vmatpush2.bf16.msra.mxu1 %v9852_v50  ;;  %v1314_v45 = vld [vmem:[%s10786_s22 + $0x1da8] sm:$0xff]  ;;  %v9940_v50 = vcombine.low %v1190_v22, %v1194_v23  ;;  %v6839_v56 = vadd.f32 %v11309_v35, %v6798_v48 }
 0x220   : > { %7154 = vmatprep.subr.bf16.mxu1 %v9845_v52  ;;  %v9933_v52 = vcombine.high %v1182_v36, %v1186_v38  ;;  %v10061_v32 = vcombine.high %v1310_v41, %v1314_v45  ;;  %v1174_v53 = vld [vmem:[%s10786_s22 + $0x1948] sm:$0xff] }
 0x221   : > { %7114 = vmatpush2.bf16.msra.mxu0 %v9716_v59  ;;  %v1178_v54 = vld [vmem:[%s10786_s22 + $0x1968] sm:$0xff] }
 0x222   : > { %7115 = vmatprep.subr.bf16.mxu0 %v9709_v62  ;;  %v1302_v55 = vld [vmem:[%s10786_s22 + $0x1d48] sm:$0xff]  ;;  %v9925_v0 = vcombine.high %v1174_v53, %v1178_v54  ;;  %v9924_v17 = vcombine.low %v1174_v53, %v1178_v54 }
 0x223   : > { %7155 = vmatpush2.bf16.msra.mxu1 %v9844_v60  ;;  %v1306_v59 = vld [vmem:[%s10786_s22 + $0x1d68] sm:$0xff] }
 0x224   : > { %7156 = vmatprep.subr.bf16.mxu1 %v9837_v63  ;;  %v10060_v63 = vcombine.low %v1310_v41, %v1314_v45  ;;  %v10053_v4 = vcombine.high %v1302_v55, %v1306_v59  ;;  %v1170_v35 = vld [vmem:[%s10786_s22 + $0x1928] sm:$0xff] }
 0x225   : > { %7116 = vmatpush2.bf16.msra.mxu0 %v9708_v8  ;;  %v1166_v8 = vld [vmem:[%s10786_s22 + $0x1908] sm:$0xff] }
 0x226   : > { %7117 = vmatprep.subr.bf16.mxu0 %v9701_v11  ;;  %v1294_v11 = vld [vmem:[%s10786_s22 + $0x1d08] sm:$0xff] }
 0x227   : > { %7157 = vmatpush2.bf16.msra.mxu1 %v9836_v9  ;;  %v1158_v25 = vld [vmem:[%s10786_s22 + $0x18c8] sm:$0xff] }
 0x228   : > { %7158 = vmatprep.subr.bf16.mxu1 %v9829_v12  ;;  %v1298_v12 = vld [vmem:[%s10786_s22 + $0x1d28] sm:$0xff] }
 0x229   : > { %7118 = vmatpush2.bf16.msra.mxu0 %v9700_v18  ;;  %v357_v18 = vld [vmem:[#allocation2 + $0x10] sm:$0xff]  ;;  %v10045_v24 = vcombine.high %v1294_v11, %v1298_v12  ;;  %v10044_v36 = vcombine.low %v1294_v11, %v1298_v12 }
 0x22a   : > { %7119 = vmatprep.subr.bf16.mxu0 %v9693_v20  ;;  %v10052_v20 = vcombine.low %v1302_v55, %v1306_v59  ;;  %v1150_v45 = vld [vmem:[%s10786_s22 + $0x1888] sm:$0xff] }
 0x22b   : > { %7159 = vmatpush2.bf16.msra.mxu1 %v9828_v19  ;;  %v1154_v48 = vld [vmem:[%s10786_s22 + $0x18a8] sm:$0xff] }
 0x22c   : > { %7160 = vmatprep.subr.bf16.mxu1 %v9821_v21  ;;  %v9917_v21 = vcombine.high %v1166_v8, %v1170_v35  ;;  %v1142_v54 = vld [vmem:[%s10786_s22 + $0x1848] sm:$0xff] }
 0x22d   : > { %7120 = vmatpush2.bf16.msra.mxu0 %v9692_v26  ;;  %v1162_v26 = vld [vmem:[%s10786_s22 + $0x18e8] sm:$0xff] }
 0x22e   : > { %7171 = vmatprep.subr.bf16.mxu0 %v9941_v28  ;;  %v1290_v28 = vld [vmem:[%s10786_s22 + $0x1ce8] sm:$0xff]  ;;  %v9909_v38 = vcombine.high %v1158_v25, %v1162_v26 }
 0x22f   : > { %7161 = vmatpush2.bf16.msra.mxu1 %v9820_v27  ;;  %v1286_v27 = vld [vmem:[%s10786_s22 + $0x1cc8] sm:$0xff] }
 0x230   : > { %7212 = vmatprep.subr.bf16.mxu1 %v10069_v31  ;;  %v6877_v57 = vpop.f32.mrf.mxu0  ;;  %7122 = vmatmul.mubr.bf16.vlgmr.msra.gmra.mxu0 %v10985_v58  ;;  %v9916_v31 = vcombine.low %v1166_v8, %v1170_v35  ;;  %v10037_v41 = vcombine.high %v1286_v27, %v1290_v28  ;;  %v1270_v55 = vld [vmem:[%s10786_s22 + $0x1c48] sm:$0xff] }
 0x231   : > { %v6878_v42 = vadd.f32 %v6877_v57, %v6837_v44  ;;  %7172 = vmatpush1.bf16.msra.mxu0 %v9940_v50  ;;  %7203 = vmatprep.mubr.bf16.mxu0 %v11079_v47  ;;  %v1278_v50 = vld [vmem:[%s10786_s22 + $0x1c88] sm:$0xff]  ;;  %v10036_v44 = vcombine.low %v1286_v27, %v1290_v28 }
 0x232   : > { %v6918_v60 = vpop.f32.mrf.mxu1  ;;  %7163 = vmatmul.mubr.bf16.vlgmr.msra.gmra.mxu1 %v10990_v61  ;;  %v6879_v62 = vpop.f32.mrf.mxu0  ;;  %7173 = vmatprep.subr.bf16.mxu0 %v9933_v52  ;;  %v9908_v52 = vcombine.low %v1158_v25, %v1162_v26  ;;  %v1146_v57 = vld [vmem:[%s10786_s22 + $0x1868] sm:$0xff] }
 0x233   : > { %7213 = vmatpush1.bf16.msra.mxu1 %v10068_v51  ;;  %v6880_v2 = vadd.f32 %v6879_v62, %v6839_v56  ;;  %7244 = vmatprep.mubr.bf16.mxu1 %v11086_v49  ;;  %v6919_v14 = vadd.f32 %v6918_v60, %v6878_v42  ;;  %v1282_v51 = vld [vmem:[%s10786_s22 + $0x1ca8] sm:$0xff]  ;;  %v9900_v56 = vcombine.low %v1150_v45, %v1154_v48 }
 0x234   : > { %v6920_v3 = vpop.f32.mrf.mxu1  ;;  %7214 = vmatprep.subr.bf16.mxu1 %v10061_v32  ;;  %v6881_v9 = vpop.f32.mrf.mxu0  ;;  %v9901_v32 = vcombine.high %v1150_v45, %v1154_v48  ;;  %v10029_v53 = vcombine.high %v1278_v50, %v1282_v51  ;;  %v1274_v59 = vld [vmem:[%s10786_s22 + $0x1c68] sm:$0xff]  ;;  %v10028_v42 = vcombine.low %v1278_v50, %v1282_v51  ;;  %v9893_v60 = vcombine.high %v1142_v54, %v1146_v57 }
 0x235   : > { %v6921_v15 = vadd.f32 %v6920_v3, %v6880_v2  ;;  %7174 = vmatpush1.bf16.msra.mxu0 %v9932_v39  ;;  %v10021_v39 = vcombine.high %v1270_v55, %v1274_v59  ;;  %v1134_v62 = vld [vmem:[%s10786_s22 + $0x1808] sm:$0xff]  ;;  %v9892_v3 = vcombine.low %v1142_v54, %v1146_v57 }
 0x236   : > { %v6922_v16 = vpop.f32.mrf.mxu1  ;;  %v6882_v19 = vpop.f32.mrf.mxu0  ;;  %7175 = vmatprep.subr.bf16.mxu0 %v9925_v0  ;;  %v1262_v0 = vld [vmem:[%s10786_s22 + $0x1c08] sm:$0xff] }
 0x237   : > { %7215 = vmatpush1.bf16.msra.mxu1 %v10060_v63  ;;  %v7917_v22 = vcombine.low %v6919_v14, %v6921_v15  ;;  %v1138_v63 = vld [vmem:[%s10786_s22 + $0x1828] sm:$0xff] }
 0x238   : > { %v6923_v23 = vpop.f32.mrf.mxu1  ;;  %7216 = vmatprep.subr.bf16.mxu1 %v10053_v4  ;;  %v1266_v2 = vld [vmem:[%s10786_s22 + $0x1c28] sm:$0xff]  ;;  %v10020_v4 = vcombine.low %v1270_v55, %v1274_v59  ;;  %v9885_v8 = vcombine.high %v1134_v62, %v1138_v63  ;;  %v9884_v15 = vcombine.low %v1134_v62, %v1138_v63 }
 0x239   : > { %v7925_v29 = vadd.f32 %v7917_v22, %v357_v18  ;;  %7176 = vmatpush1.bf16.msra.mxu0 %v9924_v17  ;;  %v10013_v35 = vcombine.high %v1262_v0, %v1266_v2  ;;  %v1254_v9 = vld [vmem:[%s10786_s22 + $0x1bc8] sm:$0xff]  ;;  %v10012_v16 = vcombine.low %v1262_v0, %v1266_v2 }
 0x23a   : > { %7177 = vmatprep.subr.bf16.mxu0 %v9917_v21  ;;  %v1258_v11 = vld [vmem:[%s10786_s22 + $0x1be8] sm:$0xff] }
 0x23b   : > { %7217 = vmatpush1.bf16.msra.mxu1 %v10052_v20  ;;  %7929 = vst [vmem:[#allocation2 + $0x10] sm:$0xff] %v7925_v29  ;;  %v1382_v12 = vld [vmem:[%s10786_s22 + $0x1fc8] sm:$0xff]  ;;  %v10005_v17 = vcombine.high %v1254_v9, %v1258_v11  ;;  %v10004_v23 = vcombine.low %v1254_v9, %v1258_v11 }
 0x23c   : > { %7218 = vmatprep.subr.bf16.mxu1 %v10045_v24  ;;  %v1386_v14 = vld [vmem:[%s10786_s22 + $0x1fe8] sm:$0xff] }
 0x23d   : > { %7178 = vmatpush1.bf16.msra.mxu0 %v9916_v31  ;;  %v10133_v18 = vcombine.high %v1382_v12, %v1386_v14  ;;  %v1246_v19 = vld [vmem:[%s10786_s22 + $0x1b88] sm:$0xff]  ;;  %v10132_v24 = vcombine.low %v1382_v12, %v1386_v14 }
 0x23e   : > { %7179 = vmatprep.subr.bf16.mxu0 %v9909_v38  ;;  %v1250_v20 = vld [vmem:[%s10786_s22 + $0x1ba8] sm:$0xff] }
 0x23f   : > { %7219 = vmatpush1.bf16.msra.mxu1 %v10044_v36  ;;  %v1374_v21 = vld [vmem:[%s10786_s22 + $0x1f88] sm:$0xff]  ;;  %v9997_v25 = vcombine.high %v1246_v19, %v1250_v20  ;;  %v9996_v36 = vcombine.low %v1246_v19, %v1250_v20 }
 0x240   : > { %7220 = vmatprep.subr.bf16.mxu1 %v10037_v41  ;;  %v1378_v22 = vld [vmem:[%s10786_s22 + $0x1fa8] sm:$0xff] }
 0x241   : > { %7180 = vmatpush1.bf16.msra.mxu0 %v9908_v52  ;;  %v10125_v26 = vcombine.high %v1374_v21, %v1378_v22  ;;  %v1238_v27 = vld [vmem:[%s10786_s22 + $0x1b48] sm:$0xff]  ;;  %v10124_v38 = vcombine.low %v1374_v21, %v1378_v22 }
 0x242   : > { %7181 = vmatprep.subr.bf16.mxu0 %v9901_v32  ;;  %v1242_v28 = vld [vmem:[%s10786_s22 + $0x1b68] sm:$0xff] }
 0x243   : > { %7221 = vmatpush1.bf16.msra.mxu1 %v10036_v44  ;;  %v1366_v29 = vld [vmem:[%s10786_s22 + $0x1f48] sm:$0xff]  ;;  %v9989_v41 = vcombine.high %v1238_v27, %v1242_v28  ;;  %v9988_v44 = vcombine.low %v1238_v27, %v1242_v28  ;;  %v423_v28 = vld [vmem:[%s10786_s22 + $0x1d0] sm:$0xff] }
 0x244   : > { %7222 = vmatprep.subr.bf16.mxu1 %v10029_v53  ;;  %v1370_v31 = vld [vmem:[%s10786_s22 + $0x1f68] sm:$0xff] }
 0x245   : > { %7182 = vmatpush1.bf16.msra.mxu0 %v9900_v56  ;;  %v10117_v45 = vcombine.high %v1366_v29, %v1370_v31  ;;  %v1230_v48 = vld [vmem:[%s10786_s22 + $0x1b08] sm:$0xff]  ;;  %v10116_v32 = vcombine.low %v1366_v29, %v1370_v31  ;;  %v427_v29 = vld [vmem:[%s10786_s22 + $0x1f0] sm:$0xff] }
 0x246   : > { %7183 = vmatprep.subr.bf16.mxu0 %v9893_v60  ;;  %v1234_v50 = vld [vmem:[%s10786_s22 + $0x1b28] sm:$0xff]  ;;  %v551_v31 = vld [vmem:[%s10786_s22 + $0x5d0] sm:$0xff] }
 0x247   : > { %7223 = vmatpush1.bf16.msra.mxu1 %v10028_v42  ;;  %v1358_v51 = vld [vmem:[%s10786_s22 + $0x1f08] sm:$0xff]  ;;  %v9981_v53 = vcombine.high %v1230_v48, %v1234_v50  ;;  %v9980_v42 = vcombine.low %v1230_v48, %v1234_v50  ;;  %v415_v50 = vld [vmem:[%s10786_s22 + $0x190] sm:$0xff] }
 0x248   : > { %7224 = vmatprep.subr.bf16.mxu1 %v10021_v39  ;;  %v1362_v52 = vld [vmem:[%s10786_s22 + $0x1f28] sm:$0xff] }
 0x249   : > { %7184 = vmatpush1.bf16.msra.mxu0 %v9892_v3  ;;  %v10109_v54 = vcombine.high %v1358_v51, %v1362_v52  ;;  %v1222_v57 = vld [vmem:[%s10786_s22 + $0x1ac8] sm:$0xff]  ;;  %v10108_v60 = vcombine.low %v1358_v51, %v1362_v52  ;;  %v419_v51 = vld [vmem:[%s10786_s22 + $0x1b0] sm:$0xff] }
 0x24a   : > { %7185 = vmatprep.subr.bf16.mxu0 %v9885_v8  ;;  %v1226_v55 = vld [vmem:[%s10786_s22 + $0x1ae8] sm:$0xff]  ;;  %v543_v52 = vld [vmem:[%s10786_s22 + $0x590] sm:$0xff] }
 0x24b   : > { %7225 = vmatpush1.bf16.msra.mxu1 %v10020_v4  ;;  %v1350_v59 = vld [vmem:[%s10786_s22 + $0x1ec8] sm:$0xff]  ;;  %v9973_v39 = vcombine.high %v1222_v57, %v1226_v55  ;;  %v9972_v4 = vcombine.low %v1222_v57, %v1226_v55  ;;  %v407_v55 = vld [vmem:[%s10786_s22 + $0x150] sm:$0xff] }
 0x24c   : > { %7226 = vmatprep.subr.bf16.mxu1 %v10013_v35  ;;  %v1354_v56 = vld [vmem:[%s10786_s22 + $0x1ee8] sm:$0xff] }
 0x24d   : > { %7186 = vmatpush1.bf16.msra.mxu0 %v9884_v15  ;;  %v10101_v62 = vcombine.high %v1350_v59, %v1354_v56  ;;  %v1214_v63 = vld [vmem:[%s10786_s22 + $0x1a88] sm:$0xff]  ;;  %v10100_v8 = vcombine.low %v1350_v59, %v1354_v56  ;;  %v411_v59 = vld [vmem:[%s10786_s22 + $0x170] sm:$0xff] }
 0x24e   : > { %7187 = vmatprep.subr.bf16.mxu0 %v10005_v17  ;;  %v1218_v0 = vld [vmem:[%s10786_s22 + $0x1aa8] sm:$0xff] }
 0x24f   : > { %7227 = vmatpush1.bf16.msra.mxu1 %v10012_v16  ;;  %v1342_v2 = vld [vmem:[%s10786_s22 + $0x1e88] sm:$0xff]  ;;  %v9965_v35 = vcombine.high %v1214_v63, %v1218_v0  ;;  %v9964_v16 = vcombine.low %v1214_v63, %v1218_v0 }
 0x250   : > { %7228 = vmatprep.subr.bf16.mxu1 %v10133_v18  ;;  %v1346_v3 = vld [vmem:[%s10786_s22 + $0x1ea8] sm:$0xff] }
 0x251   : > { %7188 = vmatpush2.bf16.msra.mxu0 %v10004_v23  ;;  %v10093_v9 = vcombine.high %v1342_v2, %v1346_v3  ;;  %v1206_v11 = vld [vmem:[%s10786_s22 + $0x1a48] sm:$0xff]  ;;  %v10092_v17 = vcombine.low %v1342_v2, %v1346_v3  ;;  %v9159_v3 = vcombine.high %v407_v55, %v411_v59 }
 0x252   : > { %7189 = vmatprep.subr.bf16.mxu0 %v9997_v25  ;;  %v1210_v12 = vld [vmem:[%s10786_s22 + $0x1a68] sm:$0xff] }
 0x253   : > { %7229 = vmatpush2.bf16.msra.mxu1 %v10132_v24  ;;  %v1334_v14 = vld [vmem:[%s10786_s22 + $0x1e48] sm:$0xff]  ;;  %v9957_v18 = vcombine.high %v1206_v11, %v1210_v12  ;;  %v9956_v24 = vcombine.low %v1206_v11, %v1210_v12 }
 0x254   : > { %7230 = vmatprep.subr.bf16.mxu1 %v10125_v26  ;;  %v1338_v15 = vld [vmem:[%s10786_s22 + $0x1e68] sm:$0xff] }
 0x255   : > { %7190 = vmatpush2.bf16.msra.mxu0 %v9996_v36  ;;  %v10085_v19 = vcombine.high %v1334_v14, %v1338_v15  ;;  %v1198_v20 = vld [vmem:[%s10786_s22 + $0x1a08] sm:$0xff]  ;;  %v10084_v25 = vcombine.low %v1334_v14, %v1338_v15  ;;  %v555_v36 = vld [vmem:[%s10786_s22 + $0x5f0] sm:$0xff] }
 0x256   : > { %7191 = vmatprep.subr.bf16.mxu0 %v9989_v41  ;;  %v1202_v21 = vld [vmem:[%s10786_s22 + $0x1a28] sm:$0xff]  ;;  %v9303_v48 = vcombine.high %v551_v31, %v555_v36  ;;  %v527_v14 = vld [vmem:[%s10786_s22 + $0x510] sm:$0xff] }
 0x257   : > { %7231 = vmatpush2.bf16.msra.mxu1 %v10124_v38  ;;  %v1326_v22 = vld [vmem:[%s10786_s22 + $0x1e08] sm:$0xff]  ;;  %v9949_v26 = vcombine.high %v1198_v20, %v1202_v21  ;;  %v9948_v38 = vcombine.low %v1198_v20, %v1202_v21  ;;  %v531_v15 = vld [vmem:[%s10786_s22 + $0x530] sm:$0xff] }
 0x258   : > { %7232 = vmatprep.subr.bf16.mxu1 %v10117_v45  ;;  %v1330_v23 = vld [vmem:[%s10786_s22 + $0x1e28] sm:$0xff]  ;;  %v9175_v45 = vcombine.high %v423_v28, %v427_v29 }
 0x259   : > { %7192 = vmatpush2.bf16.msra.mxu0 %v9988_v44  ;;  %v10077_v27 = vcombine.high %v1326_v22, %v1330_v23  ;;  %v10076_v41 = vcombine.low %v1326_v22, %v1330_v23  ;;  %v547_v44 = vld [vmem:[%s10786_s22 + $0x5b0] sm:$0xff]  ;;  %v9279_v22 = vcombine.high %v527_v14, %v531_v15 }
 0x25a   : > { %7193 = vmatprep.subr.bf16.mxu0 %v9981_v53  ;;  %v9302_v53 = vcombine.low %v551_v31, %v555_v36  ;;  %v9295_v57 = vcombine.high %v543_v52, %v547_v44  ;;  %v9294_v2 = vcombine.low %v543_v52, %v547_v44  ;;  %v391_v23 = vld [vmem:[%s10786_s22 + $0xd0] sm:$0xff] }
 0x25b   : > { %7233 = vmatpush2.bf16.msra.mxu1 %v10116_v32  ;;  %v9174_v32 = vcombine.low %v423_v28, %v427_v29  ;;  %v9278_v28 = vcombine.low %v527_v14, %v531_v15  ;;  %v383_v36 = vld [vmem:[%s10786_s22 + $0x90] sm:$0xff] }
 0x25c   : > { %7234 = vmatprep.subr.bf16.mxu1 %v10109_v54  ;;  %v9167_v54 = vcombine.high %v415_v50, %v419_v51  ;;  %v375_v44 = vld [vmem:[%s10786_s22 + $0x50] sm:$0xff] }
 0x25d   : > { %7194 = vmatpush2.bf16.msra.mxu0 %v9980_v42  ;;  %v535_v42 = vld [vmem:[%s10786_s22 + $0x550] sm:$0xff] }
 0x25e   : > { %7195 = vmatprep.subr.bf16.mxu0 %v9973_v39 }
 0x25f   : > { %7235 = vmatpush2.bf16.msra.mxu1 %v10108_v60  ;;  %v539_v60 = vld [vmem:[%s10786_s22 + $0x570] sm:$0xff] }
 0x260   : > { %7236 = vmatprep.subr.bf16.mxu1 %v10101_v62  ;;  %v9166_v62 = vcombine.low %v415_v50, %v419_v51 }
 0x261   : > { %7196 = vmatpush2.bf16.msra.mxu0 %v9972_v4 }
 0x262   : > { %7197 = vmatprep.subr.bf16.mxu0 %v9965_v35  ;;  %v399_v35 = vld [vmem:[%s10786_s22 + $0x110] sm:$0xff] }
 0x263   : > { %7237 = vmatpush2.bf16.msra.mxu1 %v10100_v8  ;;  %v9287_v8 = vcombine.high %v535_v42, %v539_v60 }
 0x264   : > { %7238 = vmatprep.subr.bf16.mxu1 %v10093_v9  ;;  %v403_v9 = vld [vmem:[%s10786_s22 + $0x130] sm:$0xff] }
 0x265   : > { %7198 = vmatpush2.bf16.msra.mxu0 %v9964_v16  ;;  %v9151_v20 = vcombine.high %v399_v35, %v403_v9 }
 0x266   : > { %7199 = vmatprep.subr.bf16.mxu0 %v9957_v18 }
 0x267   : > { %7239 = vmatpush2.bf16.msra.mxu1 %v10092_v17  ;;  %v9158_v17 = vcombine.low %v407_v55, %v411_v59 }
 0x268   : > { %7240 = vmatprep.subr.bf16.mxu1 %v10085_v19  ;;  %v9286_v19 = vcombine.low %v535_v42, %v539_v60  ;;  %v367_v42 = vld [vmem:[%s10786_s22 + $0x10] sm:$0xff] }
 0x269   : > { %7200 = vmatpush2.bf16.msra.mxu0 %v9956_v24  ;;  %v395_v24 = vld [vmem:[%s10786_s22 + $0xf0] sm:$0xff] }
 0x26a   : > { %7201 = vmatprep.subr.bf16.mxu0 %v9949_v26  ;;  %v523_v26 = vld [vmem:[%s10786_s22 + $0x4f0] sm:$0xff]  ;;  %v9143_v29 = vcombine.high %v391_v23, %v395_v24 }
 0x26b   : > { %7241 = vmatpush2.bf16.msra.mxu1 %v10084_v25  ;;  %v519_v25 = vld [vmem:[%s10786_s22 + $0x4d0] sm:$0xff] }
 0x26c   : > { %7242 = vmatprep.subr.bf16.mxu1 %v10077_v27  ;;  %v9150_v27 = vcombine.low %v399_v35, %v403_v9  ;;  %v9271_v31 = vcombine.high %v519_v25, %v523_v26  ;;  %v9270_v50 = vcombine.low %v519_v25, %v523_v26  ;;  %v371_v60 = vld [vmem:[%s10786_s22 + $0x30] sm:$0xff] }
 0x26d   : > { %7202 = vmatpush2.bf16.msra.mxu0 %v9948_v38  ;;  %v387_v38 = vld [vmem:[%s10786_s22 + $0xb0] sm:$0xff]  ;;  %v9118_v14 = vcombine.low %v367_v42, %v371_v60 }
 0x26e   : > { %7253 = vmatprep.subr.bf16.mxu0 %v9175_v45  ;;  %v515_v45 = vld [vmem:[%s10786_s22 + $0x4b0] sm:$0xff]  ;;  %v9135_v51 = vcombine.high %v383_v36, %v387_v38 }
 0x26f   : > { %7243 = vmatpush2.bf16.msra.mxu1 %v10076_v41  ;;  %v511_v41 = vld [vmem:[%s10786_s22 + $0x490] sm:$0xff] }
 0x270   : > { %7294 = vmatprep.subr.bf16.mxu1 %v9303_v48  ;;  %v6959_v56 = vpop.f32.mrf.mxu0  ;;  %7204 = vmatmul.mubr.bf16.vlgmr.msra.gmra.mxu0 %v11068_v34  ;;  %v9142_v48 = vcombine.low %v391_v23, %v395_v24  ;;  %v9263_v52 = vcombine.high %v511_v41, %v515_v45  ;;  %v9262_v55 = vcombine.low %v511_v41, %v515_v45  ;;  %v491_v35 = vld [vmem:[%s10786_s22 + $0x3f0] sm:$0xff] }
 0x271   : > { %7254 = vmatpush1.bf16.msra.mxu0 %v9174_v32  ;;  %7285 = vmatprep.mubr.bf16.mxu0 %v10851_v6  ;;  %v379_v32 = vld [vmem:[%s10786_s22 + $0x70] sm:$0xff] }
 0x272   : > { %v7000_v39 = vpop.f32.mrf.mxu1  ;;  %7245 = vmatmul.mubr.bf16.vlgmr.msra.gmra.mxu1 %v11073_v37  ;;  %v6961_v0 = vpop.f32.mrf.mxu0  ;;  %7255 = vmatprep.subr.bf16.mxu0 %v9167_v54  ;;  %v507_v54 = vld [vmem:[%s10786_s22 + $0x470] sm:$0xff]  ;;  %v9127_v59 = vcombine.high %v375_v44, %v379_v32 }
 0x273   : > { %v11453_v63 = vadd.f32 %v7000_v39, %v6959_v56  ;;  %7295 = vmatpush1.bf16.msra.mxu1 %v9302_v53  ;;  %7326 = vmatprep.mubr.bf16.mxu1 %v10861_v13  ;;  %v503_v53 = vld [vmem:[%s10786_s22 + $0x450] sm:$0xff] }
 0x274   : > { %v7002_v4 = vpop.f32.mrf.mxu1  ;;  %7296 = vmatprep.subr.bf16.mxu1 %v9295_v57  ;;  %v6963_v12 = vpop.f32.mrf.mxu0  ;;  %v9134_v57 = vcombine.low %v383_v36, %v387_v38  ;;  %v9255_v56 = vcombine.high %v503_v53, %v507_v54  ;;  %v495_v39 = vld [vmem:[%s10786_s22 + $0x410] sm:$0xff] }
 0x275   : > { %v11458_v11 = vadd.f32 %v7002_v4, %v6961_v0  ;;  %7256 = vmatpush1.bf16.msra.mxu0 %v9166_v62  ;;  %v499_v62 = vld [vmem:[%s10786_s22 + $0x430] sm:$0xff]  ;;  %v9126_v0 = vcombine.low %v375_v44, %v379_v32 }
 0x276   : > { %v7004_v16 = vpop.f32.mrf.mxu1  ;;  %v6964_v18 = vpop.f32.mrf.mxu0  ;;  %7257 = vmatprep.subr.bf16.mxu0 %v9159_v3  ;;  %v9119_v3 = vcombine.high %v367_v42, %v371_v60  ;;  %v9247_v4 = vcombine.high %v495_v39, %v499_v62  ;;  %v615_v9 = vld [vmem:[%s10786_s22 + $0x7d0] sm:$0xff]  ;;  %v9246_v15 = vcombine.low %v495_v39, %v499_v62 }
 0x277   : > { %7297 = vmatpush1.bf16.msra.mxu1 %v9294_v2  ;;  %v9254_v2 = vcombine.low %v503_v53, %v507_v54  ;;  %v619_v12 = vld [vmem:[%s10786_s22 + $0x7f0] sm:$0xff] }
 0x278   : > { %v7005_v21 = vpop.f32.mrf.mxu1  ;;  %7298 = vmatprep.subr.bf16.mxu1 %v9287_v8  ;;  %v487_v8 = vld [vmem:[%s10786_s22 + $0x3d0] sm:$0xff]  ;;  %v9366_v23 = vcombine.low %v615_v9, %v619_v12 }
 0x279   : > { %7258 = vmatpush1.bf16.msra.mxu0 %v9158_v17  ;;  %v9239_v16 = vcombine.high %v487_v8, %v491_v35  ;;  %v9367_v17 = vcombine.high %v615_v9, %v619_v12  ;;  %v479_v18 = vld [vmem:[%s10786_s22 + $0x390] sm:$0xff] }
 0x27a   : > { %7259 = vmatprep.subr.bf16.mxu0 %v9151_v20  ;;  %v607_v20 = vld [vmem:[%s10786_s22 + $0x790] sm:$0xff] }
 0x27b   : > { %7299 = vmatpush1.bf16.msra.mxu1 %v9286_v19  ;;  %v483_v19 = vld [vmem:[%s10786_s22 + $0x3b0] sm:$0xff] }
 0x27c   : > { %7300 = vmatprep.subr.bf16.mxu1 %v9279_v22  ;;  %v611_v21 = vld [vmem:[%s10786_s22 + $0x7b0] sm:$0xff]  ;;  %v9238_v22 = vcombine.low %v487_v8, %v491_v35  ;;  %v9231_v24 = vcombine.high %v479_v18, %v483_v19 }
 0x27d   : > { %7260 = vmatpush1.bf16.msra.mxu0 %v9150_v27  ;;  %v9359_v25 = vcombine.high %v607_v20, %v611_v21  ;;  %v471_v26 = vld [vmem:[%s10786_s22 + $0x350] sm:$0xff]  ;;  %v9358_v36 = vcombine.low %v607_v20, %v611_v21 }
 0x27e   : > { %7261 = vmatprep.subr.bf16.mxu0 %v9143_v29  ;;  %v475_v27 = vld [vmem:[%s10786_s22 + $0x370] sm:$0xff] }
 0x27f   : > { %7301 = vmatpush1.bf16.msra.mxu1 %v9278_v28  ;;  %v599_v28 = vld [vmem:[%s10786_s22 + $0x750] sm:$0xff]  ;;  %v9223_v38 = vcombine.high %v471_v26, %v475_v27 }
 0x280   : > { %7302 = vmatprep.subr.bf16.mxu1 %v9271_v31  ;;  %v603_v29 = vld [vmem:[%s10786_s22 + $0x770] sm:$0xff]  ;;  %v9230_v31 = vcombine.low %v479_v18, %v483_v19 }
 0x281   : > { %7262 = vmatpush1.bf16.msra.mxu0 %v9142_v48  ;;  %v9351_v41 = vcombine.high %v599_v28, %v603_v29  ;;  %v463_v45 = vld [vmem:[%s10786_s22 + $0x310] sm:$0xff]  ;;  %v9350_v44 = vcombine.low %v599_v28, %v603_v29 }
 0x282   : > { %7263 = vmatprep.subr.bf16.mxu0 %v9135_v51  ;;  %v467_v48 = vld [vmem:[%s10786_s22 + $0x330] sm:$0xff] }
 0x283   : > { %7303 = vmatpush1.bf16.msra.mxu1 %v9270_v50  ;;  %v591_v50 = vld [vmem:[%s10786_s22 + $0x710] sm:$0xff]  ;;  %v9215_v32 = vcombine.high %v463_v45, %v467_v48 }
 0x284   : > { %7304 = vmatprep.subr.bf16.mxu1 %v9263_v52  ;;  %v595_v51 = vld [vmem:[%s10786_s22 + $0x730] sm:$0xff]  ;;  %v9222_v52 = vcombine.low %v471_v26, %v475_v27 }
 0x285   : > { %7264 = vmatpush1.bf16.msra.mxu0 %v9134_v57  ;;  %v9343_v53 = vcombine.high %v591_v50, %v595_v51  ;;  %v455_v54 = vld [vmem:[%s10786_s22 + $0x2d0] sm:$0xff]  ;;  %v9342_v42 = vcombine.low %v591_v50, %v595_v51 }
 0x286   : > { %7265 = vmatprep.subr.bf16.mxu0 %v9127_v59  ;;  %v459_v57 = vld [vmem:[%s10786_s22 + $0x2f0] sm:$0xff] }
 0x287   : > { %7305 = vmatpush1.bf16.msra.mxu1 %v9262_v55  ;;  %v583_v55 = vld [vmem:[%s10786_s22 + $0x6d0] sm:$0xff]  ;;  %v9207_v60 = vcombine.high %v455_v54, %v459_v57 }
 0x288   : > { %7306 = vmatprep.subr.bf16.mxu1 %v9255_v56  ;;  %v587_v59 = vld [vmem:[%s10786_s22 + $0x6f0] sm:$0xff]  ;;  %v9214_v56 = vcombine.low %v463_v45, %v467_v48 }
 0x289   : > { %7266 = vmatpush1.bf16.msra.mxu0 %v9126_v0  ;;  %v9335_v39 = vcombine.high %v583_v55, %v587_v59  ;;  %v447_v62 = vld [vmem:[%s10786_s22 + $0x290] sm:$0xff]  ;;  %v9334_v8 = vcombine.low %v583_v55, %v587_v59 }
 0x28a   : > { %7267 = vmatprep.subr.bf16.mxu0 %v9119_v3  ;;  %v451_v0 = vld [vmem:[%s10786_s22 + $0x2b0] sm:$0xff] }
 0x28b   : > { %7307 = vmatpush1.bf16.msra.mxu1 %v9254_v2  ;;  %v575_v2 = vld [vmem:[%s10786_s22 + $0x690] sm:$0xff]  ;;  %v9199_v35 = vcombine.high %v447_v62, %v451_v0 }
 0x28c   : > { %7308 = vmatprep.subr.bf16.mxu1 %v9247_v4  ;;  %v579_v3 = vld [vmem:[%s10786_s22 + $0x6b0] sm:$0xff]  ;;  %v9206_v4 = vcombine.low %v455_v54, %v459_v57 }
 0x28d   : > { %7268 = vmatpush1.bf16.msra.mxu0 %v9118_v14  ;;  %v9327_v9 = vcombine.high %v575_v2, %v579_v3  ;;  %v439_v12 = vld [vmem:[%s10786_s22 + $0x250] sm:$0xff]  ;;  %v9326_v18 = vcombine.low %v575_v2, %v579_v3 }
 0x28e   : > { %7269 = vmatprep.subr.bf16.mxu0 %v9239_v16  ;;  %v443_v14 = vld [vmem:[%s10786_s22 + $0x270] sm:$0xff] }
 0x28f   : > { %7309 = vmatpush1.bf16.msra.mxu1 %v9246_v15  ;;  %v567_v15 = vld [vmem:[%s10786_s22 + $0x650] sm:$0xff]  ;;  %v9191_v19 = vcombine.high %v439_v12, %v443_v14 }
 0x290   : > { %7310 = vmatprep.subr.bf16.mxu1 %v9367_v17  ;;  %v571_v16 = vld [vmem:[%s10786_s22 + $0x670] sm:$0xff]  ;;  %v9198_v17 = vcombine.low %v447_v62, %v451_v0 }
 0x291   : > { %7270 = vmatpush2.bf16.msra.mxu0 %v9238_v22  ;;  %v9319_v20 = vcombine.high %v567_v15, %v571_v16  ;;  %v431_v21 = vld [vmem:[%s10786_s22 + $0x210] sm:$0xff]  ;;  %v9318_v26 = vcombine.low %v567_v15, %v571_v16 }
 0x292   : > { %7271 = vmatprep.subr.bf16.mxu0 %v9231_v24  ;;  %v435_v22 = vld [vmem:[%s10786_s22 + $0x230] sm:$0xff] }
 0x293   : > { %7311 = vmatpush2.bf16.msra.mxu1 %v9366_v23  ;;  %v559_v23 = vld [vmem:[%s10786_s22 + $0x610] sm:$0xff]  ;;  %v9183_v27 = vcombine.high %v431_v21, %v435_v22 }
 0x294   : > { %7312 = vmatprep.subr.bf16.mxu1 %v9359_v25  ;;  %v563_v24 = vld [vmem:[%s10786_s22 + $0x630] sm:$0xff]  ;;  %v9190_v25 = vcombine.low %v439_v12, %v443_v14 }
 0x295   : > { %7272 = vmatpush2.bf16.msra.mxu0 %v9230_v31  ;;  %v9311_v28 = vcombine.high %v559_v23, %v563_v24  ;;  %v679_v29 = vld [vmem:[%s10786_s22 + $0x9d0] sm:$0xff]  ;;  %v9310_v45 = vcombine.low %v559_v23, %v563_v24 }
 0x296   : > { %7273 = vmatprep.subr.bf16.mxu0 %v9223_v38  ;;  %v683_v31 = vld [vmem:[%s10786_s22 + $0x9f0] sm:$0xff] }
 0x297   : > { %7313 = vmatpush2.bf16.msra.mxu1 %v9358_v36  ;;  %v807_v36 = vld [vmem:[%s10786_s22 + $0xdd0] sm:$0xff]  ;;  %v9431_v48 = vcombine.high %v679_v29, %v683_v31 }
 0x298   : > { %7314 = vmatprep.subr.bf16.mxu1 %v9351_v41  ;;  %v811_v38 = vld [vmem:[%s10786_s22 + $0xdf0] sm:$0xff]  ;;  %v9182_v41 = vcombine.low %v431_v21, %v435_v22 }
 0x299   : > { %7274 = vmatpush2.bf16.msra.mxu0 %v9222_v52  ;;  %v9559_v50 = vcombine.high %v807_v36, %v811_v38  ;;  %v671_v51 = vld [vmem:[%s10786_s22 + $0x990] sm:$0xff]  ;;  %v9558_v54 = vcombine.low %v807_v36, %v811_v38 }
 0x29a   : > { %7275 = vmatprep.subr.bf16.mxu0 %v9215_v32  ;;  %v675_v52 = vld [vmem:[%s10786_s22 + $0x9b0] sm:$0xff] }
 0x29b   : > { %7315 = vmatpush2.bf16.msra.mxu1 %v9350_v44  ;;  %v799_v44 = vld [vmem:[%s10786_s22 + $0xd90] sm:$0xff]  ;;  %v9423_v57 = vcombine.high %v671_v51, %v675_v52  ;;  %v9422_v2 = vcombine.low %v671_v51, %v675_v52 }
 0x29c   : > { %7316 = vmatprep.subr.bf16.mxu1 %v9343_v53  ;;  %v803_v32 = vld [vmem:[%s10786_s22 + $0xdb0] sm:$0xff]  ;;  %v9430_v53 = vcombine.low %v679_v29, %v683_v31 }
 0x29d   : > { %7276 = vmatpush2.bf16.msra.mxu0 %v9214_v56  ;;  %v9551_v55 = vcombine.high %v799_v44, %v803_v32  ;;  %v663_v59 = vld [vmem:[%s10786_s22 + $0x950] sm:$0xff] }
 0x29e   : > { %7277 = vmatprep.subr.bf16.mxu0 %v9207_v60  ;;  %v667_v56 = vld [vmem:[%s10786_s22 + $0x970] sm:$0xff] }
 0x29f   : > { %7317 = vmatpush2.bf16.msra.mxu1 %v9342_v42  ;;  %v791_v60 = vld [vmem:[%s10786_s22 + $0xd50] sm:$0xff] }
 0x2a0   : > { %7318 = vmatprep.subr.bf16.mxu1 %v9335_v39  ;;  %v795_v39 = vld [vmem:[%s10786_s22 + $0xd70] sm:$0xff] }
 0x2a1   : > { %7278 = vmatpush2.bf16.msra.mxu0 %v9206_v4  ;;  %v9550_v4 = vcombine.low %v799_v44, %v803_v32  ;;  %v655_v14 = vld [vmem:[%s10786_s22 + $0x910] sm:$0xff]  ;;  %v9542_v22 = vcombine.low %v791_v60, %v795_v39 }
 0x2a2   : > { %7279 = vmatprep.subr.bf16.mxu0 %v9199_v35  ;;  %v659_v15 = vld [vmem:[%s10786_s22 + $0x930] sm:$0xff] }
 0x2a3   : > { %7319 = vmatpush2.bf16.msra.mxu1 %v9334_v8  ;;  %v9415_v8 = vcombine.high %v663_v59, %v667_v56  ;;  %v9407_v23 = vcombine.high %v655_v14, %v659_v15  ;;  %v779_v29 = vld [vmem:[%s10786_s22 + $0xcf0] sm:$0xff]  ;;  %v9406_v31 = vcombine.low %v655_v14, %v659_v15 }
 0x2a4   : > { %7320 = vmatprep.subr.bf16.mxu1 %v9327_v9  ;;  %v771_v51 = vld [vmem:[%s10786_s22 + $0xcb0] sm:$0xff] }
 0x2a5   : > { %7280 = vmatpush2.bf16.msra.mxu0 %v9198_v17  ;;  %v783_v17 = vld [vmem:[%s10786_s22 + $0xd10] sm:$0xff] }
 0x2a6   : > { %7281 = vmatprep.subr.bf16.mxu0 %v9191_v19  ;;  %v747_v14 = vld [vmem:[%s10786_s22 + $0xbf0] sm:$0xff] }
 0x2a7   : > { %7321 = vmatpush2.bf16.msra.mxu1 %v9326_v18  ;;  %v787_v18 = vld [vmem:[%s10786_s22 + $0xd30] sm:$0xff] }
 0x2a8   : > { %7322 = vmatprep.subr.bf16.mxu1 %v9319_v20  ;;  %v9534_v36 = vcombine.low %v783_v17, %v787_v18  ;;  %v871_v15 = vld [vmem:[%s10786_s22 + $0xfd0] sm:$0xff] }
 0x2a9   : > { %7282 = vmatpush2.bf16.msra.mxu0 %v9190_v25  ;;  %v9535_v25 = vcombine.high %v783_v17, %v787_v18 }
 0x2aa   : > { %7283 = vmatprep.subr.bf16.mxu0 %v9183_v27  ;;  %v651_v27 = vld [vmem:[%s10786_s22 + $0x8f0] sm:$0xff] }
 0x2ab   : > { %7323 = vmatpush2.bf16.msra.mxu1 %v9318_v26  ;;  %v647_v26 = vld [vmem:[%s10786_s22 + $0x8d0] sm:$0xff] }
 0x2ac   : > { %7324 = vmatprep.subr.bf16.mxu1 %v9311_v28  ;;  %v775_v28 = vld [vmem:[%s10786_s22 + $0xcd0] sm:$0xff]  ;;  %v9399_v38 = vcombine.high %v647_v26, %v651_v27  ;;  %v9398_v52 = vcombine.low %v647_v26, %v651_v27 }
 0x2ad   : > { %7284 = vmatpush2.bf16.msra.mxu0 %v9182_v41  ;;  %v9527_v41 = vcombine.high %v775_v28, %v779_v29  ;;  %v9526_v44 = vcombine.low %v775_v28, %v779_v29  ;;  %v727_v29 = vld [vmem:[%s10786_s22 + $0xb50] sm:$0xff] }
 0x2ae   : > { %7335 = vmatprep.subr.bf16.mxu0 %v9431_v48  ;;  %v643_v48 = vld [vmem:[%s10786_s22 + $0x8b0] sm:$0xff] }
 0x2af   : > { %7325 = vmatpush2.bf16.msra.mxu1 %v9310_v45  ;;  %v639_v45 = vld [vmem:[%s10786_s22 + $0x890] sm:$0xff] }
 0x2b0   : > { %7376 = vmatprep.subr.bf16.mxu1 %v9559_v50  ;;  %v7041_v42 = vpop.f32.mrf.mxu0  ;;  %7286 = vmatmul.mubr.bf16.vlgmr.msra.gmra.mxu0 %v10845_v1  ;;  %v767_v50 = vld [vmem:[%s10786_s22 + $0xc90] sm:$0xff]  ;;  %v9391_v32 = vcombine.high %v639_v45, %v643_v48 }
 0x2b1   : > { %v7042_v62 = vadd.f32 %v7041_v42, %v11453_v63  ;;  %7336 = vmatpush1.bf16.msra.mxu0 %v9430_v53  ;;  %v9543_v63 = vcombine.high %v791_v60, %v795_v39  ;;  %7367 = vmatprep.mubr.bf16.mxu0 %v10913_v40  ;;  %v9519_v53 = vcombine.high %v767_v50, %v771_v51 }
 0x2b2   : > { %v7082_v0 = vpop.f32.mrf.mxu1  ;;  %7327 = vmatmul.mubr.bf16.vlgmr.msra.gmra.mxu1 %v10854_v7  ;;  %v7043_v3 = vpop.f32.mrf.mxu0  ;;  %7337 = vmatprep.subr.bf16.mxu0 %v9423_v57  ;;  %v635_v57 = vld [vmem:[%s10786_s22 + $0x870] sm:$0xff]  ;;  %v9518_v42 = vcombine.low %v767_v50, %v771_v51 }
 0x2b3   : > { %7377 = vmatpush1.bf16.msra.mxu1 %v9558_v54  ;;  %v11526_v35 = vadd.f32 %v7082_v0, %v7042_v62  ;;  %v7044_v9 = vadd.f32 %v7043_v3, %v11458_v11  ;;  %7408 = vmatprep.mubr.bf16.mxu1 %v10920_v43  ;;  %v9414_v11 = vcombine.low %v663_v59, %v667_v56  ;;  %v631_v54 = vld [vmem:[%s10786_s22 + $0x850] sm:$0xff] }
 0x2b4   : > { %v7084_v12 = vpop.f32.mrf.mxu1  ;;  %7378 = vmatprep.subr.bf16.mxu1 %v9551_v55  ;;  %v7045_v16 = vpop.f32.mrf.mxu0  ;;  %v759_v55 = vld [vmem:[%s10786_s22 + $0xc50] sm:$0xff]  ;;  %v9390_v56 = vcombine.low %v639_v45, %v643_v48  ;;  %v9383_v60 = vcombine.high %v631_v54, %v635_v57 }
 0x2b5   : > { %v11535_v19 = vadd.f32 %v7084_v12, %v7044_v9  ;;  %7338 = vmatpush1.bf16.msra.mxu0 %v9422_v2  ;;  %v763_v59 = vld [vmem:[%s10786_s22 + $0xc70] sm:$0xff] }
 0x2b6   : > { %v7086_v20 = vpop.f32.mrf.mxu1  ;;  %v7046_v21 = vpop.f32.mrf.mxu0  ;;  %7339 = vmatprep.subr.bf16.mxu0 %v9415_v8  ;;  %v9511_v39 = vcombine.high %v759_v55, %v763_v59  ;;  %v623_v62 = vld [vmem:[%s10786_s22 + $0x810] sm:$0xff]  ;;  %v9510_v8 = vcombine.low %v759_v55, %v763_v59 }
 0x2b7   : > { %7379 = vmatpush1.bf16.msra.mxu1 %v9550_v4  ;;  %v627_v0 = vld [vmem:[%s10786_s22 + $0x830] sm:$0xff]  ;;  %v9382_v4 = vcombine.low %v631_v54, %v635_v57 }
 0x2b8   : > { %v7087_v24 = vpop.f32.mrf.mxu1  ;;  %7380 = vmatprep.subr.bf16.mxu1 %v9543_v63  ;;  %v751_v2 = vld [vmem:[%s10786_s22 + $0xc10] sm:$0xff]  ;;  %v9375_v9 = vcombine.high %v623_v62, %v627_v0  ;;  %v9374_v17 = vcombine.low %v623_v62, %v627_v0 }
 0x2b9   : > { %7340 = vmatpush1.bf16.msra.mxu0 %v9414_v11  ;;  %v755_v3 = vld [vmem:[%s10786_s22 + $0xc30] sm:$0xff] }
 0x2ba   : > { %7341 = vmatprep.subr.bf16.mxu0 %v9407_v23  ;;  %v9503_v12 = vcombine.high %v751_v2, %v755_v3  ;;  %v743_v63 = vld [vmem:[%s10786_s22 + $0xbd0] sm:$0xff]  ;;  %v9502_v18 = vcombine.low %v751_v2, %v755_v3 }
 0x2bb   : > { %7381 = vmatpush1.bf16.msra.mxu1 %v9542_v22  ;;  %v875_v16 = vld [vmem:[%s10786_s22 + $0xff0] sm:$0xff]  ;;  %v9495_v20 = vcombine.high %v743_v63, %v747_v14 }
 0x2bc   : > { %7382 = vmatprep.subr.bf16.mxu1 %v9535_v25  ;;  %v9623_v11 = vcombine.high %v871_v15, %v875_v16  ;;  %v735_v21 = vld [vmem:[%s10786_s22 + $0xb90] sm:$0xff]  ;;  %v9494_v25 = vcombine.low %v743_v63, %v747_v14  ;;  %v9622_v26 = vcombine.low %v871_v15, %v875_v16 }
 0x2bd   : > { %7342 = vmatpush1.bf16.msra.mxu0 %v9406_v31  ;;  %v739_v22 = vld [vmem:[%s10786_s22 + $0xbb0] sm:$0xff] }
 0x2be   : > { %7343 = vmatprep.subr.bf16.mxu0 %v9399_v38  ;;  %v863_v23 = vld [vmem:[%s10786_s22 + $0xf90] sm:$0xff]  ;;  %v9487_v27 = vcombine.high %v735_v21, %v739_v22 }
 0x2bf   : > { %7383 = vmatpush1.bf16.msra.mxu1 %v9534_v36  ;;  %v867_v24 = vld [vmem:[%s10786_s22 + $0xfb0] sm:$0xff] }
 0x2c0   : > { %7384 = vmatprep.subr.bf16.mxu1 %v9527_v41  ;;  %v9615_v28 = vcombine.high %v863_v23, %v867_v24  ;;  %v731_v31 = vld [vmem:[%s10786_s22 + $0xb70] sm:$0xff]  ;;  %v9486_v41 = vcombine.low %v735_v21, %v739_v22  ;;  %v9614_v45 = vcombine.low %v863_v23, %v867_v24 }
 0x2c1   : > { %7344 = vmatpush1.bf16.msra.mxu0 %v9398_v52  ;;  %v855_v36 = vld [vmem:[%s10786_s22 + $0xf50] sm:$0xff]  ;;  %v9479_v48 = vcombine.high %v727_v29, %v731_v31 }
 0x2c2   : > { %7345 = vmatprep.subr.bf16.mxu0 %v9391_v32  ;;  %v859_v38 = vld [vmem:[%s10786_s22 + $0xf70] sm:$0xff] }
 0x2c3   : > { %7385 = vmatpush1.bf16.msra.mxu1 %v9526_v44  ;;  %v9607_v50 = vcombine.high %v855_v36, %v859_v38  ;;  %v719_v51 = vld [vmem:[%s10786_s22 + $0xb10] sm:$0xff]  ;;  %v9606_v54 = vcombine.low %v855_v36, %v859_v38 }
 0x2c4   : > { %7386 = vmatprep.subr.bf16.mxu1 %v9519_v53  ;;  %v723_v52 = vld [vmem:[%s10786_s22 + $0xb30] sm:$0xff]  ;;  %v9478_v53 = vcombine.low %v727_v29, %v731_v31 }
 0x2c5   : > { %7346 = vmatpush1.bf16.msra.mxu0 %v9390_v56  ;;  %v847_v44 = vld [vmem:[%s10786_s22 + $0xf10] sm:$0xff]  ;;  %v9471_v57 = vcombine.high %v719_v51, %v723_v52 }
 0x2c6   : > { %7347 = vmatprep.subr.bf16.mxu0 %v9383_v60  ;;  %v851_v32 = vld [vmem:[%s10786_s22 + $0xf30] sm:$0xff] }
 0x2c7   : > { %7387 = vmatpush1.bf16.msra.mxu1 %v9518_v42  ;;  %v9599_v55 = vcombine.high %v847_v44, %v851_v32  ;;  %v711_v59 = vld [vmem:[%s10786_s22 + $0xad0] sm:$0xff]  ;;  %v9598_v62 = vcombine.low %v847_v44, %v851_v32 }
 0x2c8   : > { %7388 = vmatprep.subr.bf16.mxu1 %v9511_v39  ;;  %v715_v56 = vld [vmem:[%s10786_s22 + $0xaf0] sm:$0xff]  ;;  %v9470_v39 = vcombine.low %v719_v51, %v723_v52 }
 0x2c9   : > { %7348 = vmatpush1.bf16.msra.mxu0 %v9382_v4  ;;  %v839_v42 = vld [vmem:[%s10786_s22 + $0xed0] sm:$0xff]  ;;  %v9463_v0 = vcombine.high %v711_v59, %v715_v56 }
 0x2ca   : > { %7349 = vmatprep.subr.bf16.mxu0 %v9375_v9  ;;  %v843_v60 = vld [vmem:[%s10786_s22 + $0xef0] sm:$0xff] }
 0x2cb   : > { %7389 = vmatpush1.bf16.msra.mxu1 %v9510_v8  ;;  %v9591_v2 = vcombine.high %v839_v42, %v843_v60  ;;  %v703_v3 = vld [vmem:[%s10786_s22 + $0xa90] sm:$0xff]  ;;  %v9590_v63 = vcombine.low %v839_v42, %v843_v60 }
 0x2cc   : > { %7390 = vmatprep.subr.bf16.mxu1 %v9503_v12  ;;  %v707_v4 = vld [vmem:[%s10786_s22 + $0xab0] sm:$0xff]  ;;  %v9462_v12 = vcombine.low %v711_v59, %v715_v56 }
 0x2cd   : > { %7350 = vmatpush1.bf16.msra.mxu0 %v9374_v17  ;;  %v831_v8 = vld [vmem:[%s10786_s22 + $0xe90] sm:$0xff]  ;;  %v9455_v14 = vcombine.high %v703_v3, %v707_v4 }
 0x2ce   : > { %7351 = vmatprep.subr.bf16.mxu0 %v9495_v20  ;;  %v835_v9 = vld [vmem:[%s10786_s22 + $0xeb0] sm:$0xff] }
 0x2cf   : > { %7391 = vmatpush1.bf16.msra.mxu1 %v9502_v18  ;;  %v9583_v15 = vcombine.high %v831_v8, %v835_v9  ;;  %v695_v16 = vld [vmem:[%s10786_s22 + $0xa50] sm:$0xff]  ;;  %v9582_v21 = vcombine.low %v831_v8, %v835_v9 }
 0x2d0   : > { %7392 = vmatprep.subr.bf16.mxu1 %v9623_v11  ;;  %v699_v17 = vld [vmem:[%s10786_s22 + $0xa70] sm:$0xff]  ;;  %v9454_v11 = vcombine.low %v703_v3, %v707_v4 }
 0x2d1   : > { %7352 = vmatpush2.bf16.msra.mxu0 %v9494_v25  ;;  %v823_v18 = vld [vmem:[%s10786_s22 + $0xe50] sm:$0xff]  ;;  %v9447_v22 = vcombine.high %v695_v16, %v699_v17 }
 0x2d2   : > { %7353 = vmatprep.subr.bf16.mxu0 %v9487_v27  ;;  %v827_v20 = vld [vmem:[%s10786_s22 + $0xe70] sm:$0xff] }
 0x2d3   : > { %7393 = vmatpush2.bf16.msra.mxu1 %v9622_v26  ;;  %v9575_v23 = vcombine.high %v823_v18, %v827_v20  ;;  %v687_v24 = vld [vmem:[%s10786_s22 + $0xa10] sm:$0xff]  ;;  %v9574_v29 = vcombine.low %v823_v18, %v827_v20 }
 0x2d4   : > { %7394 = vmatprep.subr.bf16.mxu1 %v9615_v28  ;;  %v691_v25 = vld [vmem:[%s10786_s22 + $0xa30] sm:$0xff]  ;;  %v9446_v28 = vcombine.low %v695_v16, %v699_v17 }
 0x2d5   : > { %7354 = vmatpush2.bf16.msra.mxu0 %v9486_v41  ;;  %v815_v26 = vld [vmem:[%s10786_s22 + $0xe10] sm:$0xff]  ;;  %v9439_v31 = vcombine.high %v687_v24, %v691_v25 }
 0x2d6   : > { %7355 = vmatprep.subr.bf16.mxu0 %v9479_v48  ;;  %v819_v27 = vld [vmem:[%s10786_s22 + $0xe30] sm:$0xff] }
 0x2d7   : > { %7395 = vmatpush2.bf16.msra.mxu1 %v9614_v45  ;;  %v9567_v36 = vcombine.high %v815_v26, %v819_v27  ;;  %v935_v38 = vld [vmem:[%s10786_s22 + $0x11d0] sm:$0xff]  ;;  %v9566_v51 = vcombine.low %v815_v26, %v819_v27 }
 0x2d8   : > { %7396 = vmatprep.subr.bf16.mxu1 %v9607_v50  ;;  %v939_v41 = vld [vmem:[%s10786_s22 + $0x11f0] sm:$0xff]  ;;  %v9438_v50 = vcombine.low %v687_v24, %v691_v25 }
 0x2d9   : > { %7356 = vmatpush2.bf16.msra.mxu0 %v9478_v53  ;;  %v1063_v45 = vld [vmem:[%s10786_s22 + $0x15d0] sm:$0xff]  ;;  %v9687_v52 = vcombine.high %v935_v38, %v939_v41 }
 0x2da   : > { %7357 = vmatprep.subr.bf16.mxu0 %v9471_v57  ;;  %v1067_v48 = vld [vmem:[%s10786_s22 + $0x15f0] sm:$0xff] }
 0x2db   : > { %7397 = vmatpush2.bf16.msra.mxu1 %v9606_v54  ;;  %v9815_v44 = vcombine.high %v1063_v45, %v1067_v48  ;;  %v927_v32 = vld [vmem:[%s10786_s22 + $0x1190] sm:$0xff]  ;;  %v9814_v59 = vcombine.low %v1063_v45, %v1067_v48 }
 0x2dc   : > { %7398 = vmatprep.subr.bf16.mxu1 %v9599_v55  ;;  %v931_v53 = vld [vmem:[%s10786_s22 + $0x11b0] sm:$0xff]  ;;  %v9686_v55 = vcombine.low %v935_v38, %v939_v41 }
 0x2dd   : > { %7358 = vmatpush2.bf16.msra.mxu0 %v9470_v39  ;;  %v1055_v54 = vld [vmem:[%s10786_s22 + $0x1590] sm:$0xff]  ;;  %v9679_v56 = vcombine.high %v927_v32, %v931_v53  ;;  %v9678_v4 = vcombine.low %v927_v32, %v931_v53 }
 0x2de   : > { %7359 = vmatprep.subr.bf16.mxu0 %v9463_v0  ;;  %v1059_v57 = vld [vmem:[%s10786_s22 + $0x15b0] sm:$0xff] }
 0x2df   : > { %7399 = vmatpush2.bf16.msra.mxu1 %v9598_v62  ;;  %v9807_v42 = vcombine.high %v1055_v54, %v1059_v57  ;;  %v919_v60 = vld [vmem:[%s10786_s22 + $0x1150] sm:$0xff]  ;;  %v9806_v9 = vcombine.low %v1055_v54, %v1059_v57 }
 0x2e0   : > { %7400 = vmatprep.subr.bf16.mxu1 %v9591_v2  ;;  %v923_v39 = vld [vmem:[%s10786_s22 + $0x1170] sm:$0xff] }
 0x2e1   : > { %7360 = vmatpush2.bf16.msra.mxu0 %v9462_v12  ;;  %v1047_v0 = vld [vmem:[%s10786_s22 + $0x1550] sm:$0xff]  ;;  %v9671_v12 = vcombine.high %v919_v60, %v923_v39 }
 0x2e2   : > { %7361 = vmatprep.subr.bf16.mxu0 %v9455_v14  ;;  %v1051_v2 = vld [vmem:[%s10786_s22 + $0x1570] sm:$0xff] }
 0x2e3   : > { %7401 = vmatpush2.bf16.msra.mxu1 %v9590_v63  ;;  %v9799_v14 = vcombine.high %v1047_v0, %v1051_v2  ;;  %v915_v16 = vld [vmem:[%s10786_s22 + $0x1130] sm:$0xff] }
 0x2e4   : > { %7402 = vmatprep.subr.bf16.mxu1 %v9583_v15  ;;  %v911_v15 = vld [vmem:[%s10786_s22 + $0x1110] sm:$0xff] }
 0x2e5   : > { %7362 = vmatpush2.bf16.msra.mxu0 %v9454_v11  ;;  %v1039_v18 = vld [vmem:[%s10786_s22 + $0x1510] sm:$0xff]  ;;  %v9663_v24 = vcombine.high %v911_v15, %v915_v16 }
 0x2e6   : > { %7363 = vmatprep.subr.bf16.mxu0 %v9447_v22  ;;  %v1043_v20 = vld [vmem:[%s10786_s22 + $0x1530] sm:$0xff] }
 0x2e7   : > { %7403 = vmatpush2.bf16.msra.mxu1 %v9582_v21  ;;  %v9670_v21 = vcombine.low %v919_v60, %v923_v39  ;;  %v9791_v26 = vcombine.high %v1039_v18, %v1043_v20  ;;  %v903_v27 = vld [vmem:[%s10786_s22 + $0x10d0] sm:$0xff]  ;;  %v9790_v38 = vcombine.low %v1039_v18, %v1043_v20 }
 0x2e8   : > { %7404 = vmatprep.subr.bf16.mxu1 %v9575_v23  ;;  %v9798_v23 = vcombine.low %v1047_v0, %v1051_v2  ;;  %v895_v48 = vld [vmem:[%s10786_s22 + $0x1090] sm:$0xff] }
 0x2e9   : > { %7364 = vmatpush2.bf16.msra.mxu0 %v9446_v28  ;;  %v907_v28 = vld [vmem:[%s10786_s22 + $0x10f0] sm:$0xff] }
 0x2ea   : > { %7365 = vmatprep.subr.bf16.mxu0 %v9439_v31  ;;  %v1035_v31 = vld [vmem:[%s10786_s22 + $0x14f0] sm:$0xff]  ;;  %v9655_v41 = vcombine.high %v903_v27, %v907_v28 }
 0x2eb   : > { %7405 = vmatpush2.bf16.msra.mxu1 %v9574_v29  ;;  %v1031_v29 = vld [vmem:[%s10786_s22 + $0x14d0] sm:$0xff] }
 0x2ec   : > { %7406 = vmatprep.subr.bf16.mxu1 %v9567_v36  ;;  %v9662_v36 = vcombine.low %v911_v15, %v915_v16  ;;  %v9783_v45 = vcombine.high %v1031_v29, %v1035_v31  ;;  %v9782_v32 = vcombine.low %v1031_v29, %v1035_v31  ;;  %v887_v57 = vld [vmem:[%s10786_s22 + $0x1050] sm:$0xff] }
 0x2ed   : > { %7366 = vmatpush2.bf16.msra.mxu0 %v9438_v50  ;;  %v899_v50 = vld [vmem:[%s10786_s22 + $0x10b0] sm:$0xff] }
 0x2ee   : > { %7417 = vmatprep.subr.bf16.mxu0 %v9687_v52  ;;  %v1027_v52 = vld [vmem:[%s10786_s22 + $0x14b0] sm:$0xff]  ;;  %v9647_v53 = vcombine.high %v895_v48, %v899_v50 }
 0x2ef   : > { %7407 = vmatpush2.bf16.msra.mxu1 %v9566_v51  ;;  %v1023_v51 = vld [vmem:[%s10786_s22 + $0x1490] sm:$0xff] }
 0x2f0   : > { %7458 = vmatprep.subr.bf16.mxu1 %v9815_v44  ;;  %v11595_v62 = vpop.f32.mrf.mxu0  ;;  %7368 = vmatmul.mubr.bf16.vlgmr.msra.gmra.mxu0 %v10902_v30  ;;  %v9654_v44 = vcombine.low %v903_v27, %v907_v28  ;;  %v9775_v54 = vcombine.high %v1023_v51, %v1027_v52  ;;  %v9774_v60 = vcombine.low %v1023_v51, %v1027_v52  ;;  %v879_v2 = vld [vmem:[%s10786_s22 + $0x1010] sm:$0xff] }
 0x2f1   : > { %7418 = vmatpush1.bf16.msra.mxu0 %v9686_v55  ;;  %7449 = vmatprep.mubr.bf16.mxu0 %v10996_v5  ;;  %v891_v55 = vld [vmem:[%s10786_s22 + $0x1070] sm:$0xff] }
 0x2f2   : > { %v11600_v3 = vpop.f32.mrf.mxu1  ;;  %7409 = vmatmul.mubr.bf16.vlgmr.msra.gmra.mxu1 %v10907_v33  ;;  %v11603_v8 = vpop.f32.mrf.mxu0  ;;  %7419 = vmatprep.subr.bf16.mxu0 %v9679_v56  ;;  %v1019_v56 = vld [vmem:[%s10786_s22 + $0x1470] sm:$0xff]  ;;  %v9639_v39 = vcombine.high %v887_v57, %v891_v55 }
 0x2f3   : > { %7459 = vmatpush1.bf16.msra.mxu1 %v9814_v59  ;;  %7490 = vmatprep.mubr.bf16.mxu1 %v11003_v10  ;;  %v1015_v59 = vld [vmem:[%s10786_s22 + $0x1450] sm:$0xff] }
 0x2f4   : > { %v11605_v63 = vpop.f32.mrf.mxu1  ;;  %7460 = vmatprep.subr.bf16.mxu1 %v9807_v42  ;;  %v7127_v17 = vpop.f32.mrf.mxu0  ;;  %v9646_v42 = vcombine.low %v895_v48, %v899_v50  ;;  %v9767_v0 = vcombine.high %v1015_v59, %v1019_v56  ;;  %v9766_v15 = vcombine.low %v1015_v59, %v1019_v56  ;;  %v999_v18 = vld [vmem:[%s10786_s22 + $0x13d0] sm:$0xff] }
 0x2f5   : > { %7420 = vmatpush1.bf16.msra.mxu0 %v9678_v4  ;;  %v883_v4 = vld [vmem:[%s10786_s22 + $0x1030] sm:$0xff] }
 0x2f6   : > { %v7168_v11 = vpop.f32.mrf.mxu1  ;;  %v7128_v22 = vpop.f32.mrf.mxu0  ;;  %7421 = vmatprep.subr.bf16.mxu0 %v9671_v12  ;;  %v1011_v12 = vld [vmem:[%s10786_s22 + $0x1430] sm:$0xff]  ;;  %v9631_v16 = vcombine.high %v879_v2, %v883_v4 }
 0x2f7   : > { %7461 = vmatpush1.bf16.msra.mxu1 %v9806_v9  ;;  %v1007_v9 = vld [vmem:[%s10786_s22 + $0x1410] sm:$0xff]  ;;  %v9630_v22 = vcombine.low %v879_v2, %v883_v4 }
 0x2f8   : > { %v7169_v25 = vpop.f32.mrf.mxu1  ;;  %7462 = vmatprep.subr.bf16.mxu1 %v9799_v14  ;;  %v9638_v14 = vcombine.low %v887_v57, %v891_v55  ;;  %v9759_v17 = vcombine.high %v1007_v9, %v1011_v12  ;;  %v1003_v20 = vld [vmem:[%s10786_s22 + $0x13f0] sm:$0xff] }
 0x2f9   : > { %7422 = vmatpush1.bf16.msra.mxu0 %v9670_v21  ;;  %v1127_v11 = vld [vmem:[%s10786_s22 + $0x17d0] sm:$0xff]  ;;  %v9750_v31 = vcombine.low %v999_v18, %v1003_v20 }
 0x2fa   : > { %7423 = vmatprep.subr.bf16.mxu0 %v9663_v24  ;;  %v1131_v21 = vld [vmem:[%s10786_s22 + $0x17f0] sm:$0xff]  ;;  %v9751_v24 = vcombine.high %v999_v18, %v1003_v20 }
 0x2fb   : > { %7463 = vmatpush1.bf16.msra.mxu1 %v9798_v23  ;;  %v9758_v23 = vcombine.low %v1007_v9, %v1011_v12  ;;  %v9879_v25 = vcombine.high %v1127_v11, %v1131_v21  ;;  %v995_v27 = vld [vmem:[%s10786_s22 + $0x13b0] sm:$0xff] }
 0x2fc   : > { %7464 = vmatprep.subr.bf16.mxu1 %v9791_v26  ;;  %v991_v26 = vld [vmem:[%s10786_s22 + $0x1390] sm:$0xff] }
 0x2fd   : > { %7424 = vmatpush1.bf16.msra.mxu0 %v9662_v36  ;;  %v1119_v28 = vld [vmem:[%s10786_s22 + $0x1790] sm:$0xff]  ;;  %v9878_v36 = vcombine.low %v1127_v11, %v1131_v21  ;;  %v9742_v52 = vcombine.low %v991_v26, %v995_v27 }
 0x2fe   : > { %7425 = vmatprep.subr.bf16.mxu0 %v9655_v41  ;;  %v1123_v29 = vld [vmem:[%s10786_s22 + $0x17b0] sm:$0xff] }
 0x2ff   : > { %7465 = vmatpush1.bf16.msra.mxu1 %v9790_v38  ;;  %v9743_v38 = vcombine.high %v991_v26, %v995_v27  ;;  %v9871_v41 = vcombine.high %v1119_v28, %v1123_v29  ;;  %v987_v48 = vld [vmem:[%s10786_s22 + $0x1370] sm:$0xff] }
 0x300   : > { %7466 = vmatprep.subr.bf16.mxu1 %v9783_v45  ;;  %v983_v45 = vld [vmem:[%s10786_s22 + $0x1350] sm:$0xff] }
 0x301   : > { %7426 = vmatpush1.bf16.msra.mxu0 %v9654_v44  ;;  %v1111_v50 = vld [vmem:[%s10786_s22 + $0x1750] sm:$0xff]  ;;  %v9870_v44 = vcombine.low %v1119_v28, %v1123_v29  ;;  %v9734_v56 = vcombine.low %v983_v45, %v987_v48 }
 0x302   : > { %7427 = vmatprep.subr.bf16.mxu0 %v9647_v53  ;;  %v1115_v51 = vld [vmem:[%s10786_s22 + $0x1770] sm:$0xff] }
 0x303   : > { %7467 = vmatpush1.bf16.msra.mxu1 %v9782_v32  ;;  %v9735_v32 = vcombine.high %v983_v45, %v987_v48  ;;  %v9863_v53 = vcombine.high %v1111_v50, %v1115_v51  ;;  %v979_v57 = vld [vmem:[%s10786_s22 + $0x1330] sm:$0xff] }
 0x304   : > { %7468 = vmatprep.subr.bf16.mxu1 %v9775_v54  ;;  %v975_v54 = vld [vmem:[%s10786_s22 + $0x1310] sm:$0xff] }
 0x305   : > { %7428 = vmatpush1.bf16.msra.mxu0 %v9646_v42  ;;  %v1103_v55 = vld [vmem:[%s10786_s22 + $0x1710] sm:$0xff]  ;;  %v9862_v42 = vcombine.low %v1111_v50, %v1115_v51  ;;  %v9726_v12 = vcombine.low %v975_v54, %v979_v57 }
 0x306   : > { %7429 = vmatprep.subr.bf16.mxu0 %v9639_v39  ;;  %v1107_v59 = vld [vmem:[%s10786_s22 + $0x1730] sm:$0xff] }
 0x307   : > { %7469 = vmatpush1.bf16.msra.mxu1 %v9774_v60  ;;  %v9727_v60 = vcombine.high %v975_v54, %v979_v57  ;;  %v9855_v39 = vcombine.high %v1103_v55, %v1107_v59  ;;  %v971_v2 = vld [vmem:[%s10786_s22 + $0x12f0] sm:$0xff] }
 0x308   : > { %7470 = vmatprep.subr.bf16.mxu1 %v9767_v0  ;;  %v967_v0 = vld [vmem:[%s10786_s22 + $0x12d0] sm:$0xff] }
 0x309   : > { %7430 = vmatpush1.bf16.msra.mxu0 %v9638_v14  ;;  %v1095_v4 = vld [vmem:[%s10786_s22 + $0x16d0] sm:$0xff]  ;;  %v9854_v14 = vcombine.low %v1103_v55, %v1107_v59  ;;  %v9718_v21 = vcombine.low %v967_v0, %v971_v2 }
 0x30a   : > { %7431 = vmatprep.subr.bf16.mxu0 %v9631_v16  ;;  %v1099_v9 = vld [vmem:[%s10786_s22 + $0x16f0] sm:$0xff] }
 0x30b   : > { %7471 = vmatpush1.bf16.msra.mxu1 %v9766_v15  ;;  %v9719_v15 = vcombine.high %v967_v0, %v971_v2  ;;  %v9847_v16 = vcombine.high %v1095_v4, %v1099_v9  ;;  %v963_v18 = vld [vmem:[%s10786_s22 + $0x12b0] sm:$0xff] }
 0x30c   : > { %7472 = vmatprep.subr.bf16.mxu1 %v9759_v17  ;;  %v959_v17 = vld [vmem:[%s10786_s22 + $0x1290] sm:$0xff] }
 0x30d   : > { %7432 = vmatpush1.bf16.msra.mxu0 %v9630_v22  ;;  %v1087_v20 = vld [vmem:[%s10786_s22 + $0x1690] sm:$0xff]  ;;  %v9846_v22 = vcombine.low %v1095_v4, %v1099_v9  ;;  %v9710_v29 = vcombine.low %v959_v17, %v963_v18 }
 0x30e   : > { %7433 = vmatprep.subr.bf16.mxu0 %v9751_v24  ;;  %v1091_v11 = vld [vmem:[%s10786_s22 + $0x16b0] sm:$0xff] }
 0x30f   : > { %7473 = vmatpush1.bf16.msra.mxu1 %v9758_v23  ;;  %v9711_v23 = vcombine.high %v959_v17, %v963_v18  ;;  %v9839_v24 = vcombine.high %v1087_v20, %v1091_v11  ;;  %v955_v26 = vld [vmem:[%s10786_s22 + $0x1270] sm:$0xff] }
 0x310   : > { %7474 = vmatprep.subr.bf16.mxu1 %v9879_v25  ;;  %v951_v25 = vld [vmem:[%s10786_s22 + $0x1250] sm:$0xff] }
 0x311   : > { %7434 = vmatpush2.bf16.msra.mxu0 %v9750_v31  ;;  %v1079_v27 = vld [vmem:[%s10786_s22 + $0x1650] sm:$0xff]  ;;  %v9838_v31 = vcombine.low %v1087_v20, %v1091_v11  ;;  %v9702_v51 = vcombine.low %v951_v25, %v955_v26 }
 0x312   : > { %7435 = vmatprep.subr.bf16.mxu0 %v9743_v38  ;;  %v1083_v28 = vld [vmem:[%s10786_s22 + $0x1670] sm:$0xff] }
 0x313   : > { %7475 = vmatpush2.bf16.msra.mxu1 %v9878_v36  ;;  %v9703_v36 = vcombine.high %v951_v25, %v955_v26  ;;  %v9831_v38 = vcombine.high %v1079_v27, %v1083_v28  ;;  %v947_v45 = vld [vmem:[%s10786_s22 + $0x1230] sm:$0xff] }
 0x314   : > { %7476 = vmatprep.subr.bf16.mxu1 %v9871_v41  ;;  %v943_v41 = vld [vmem:[%s10786_s22 + $0x1210] sm:$0xff] }
 0x315   : > { %7436 = vmatpush2.bf16.msra.mxu0 %v9742_v52  ;;  %v1071_v48 = vld [vmem:[%s10786_s22 + $0x1610] sm:$0xff]  ;;  %v9830_v52 = vcombine.low %v1079_v27, %v1083_v28  ;;  %v9694_v59 = vcombine.low %v943_v41, %v947_v45 }
 0x316   : > { %7437 = vmatprep.subr.bf16.mxu0 %v9735_v32  ;;  %v1075_v50 = vld [vmem:[%s10786_s22 + $0x1630] sm:$0xff] }
 0x317   : > { %7477 = vmatpush2.bf16.msra.mxu1 %v9870_v44  ;;  %v9695_v44 = vcombine.high %v943_v41, %v947_v45  ;;  %v9823_v32 = vcombine.high %v1071_v48, %v1075_v50  ;;  %v1195_v54 = vld [vmem:[%s10786_s22 + $0x19f0] sm:$0xff] }
 0x318   : > { %7478 = vmatprep.subr.bf16.mxu1 %v9863_v53  ;;  %v1191_v53 = vld [vmem:[%s10786_s22 + $0x19d0] sm:$0xff] }
 0x319   : > { %7438 = vmatpush2.bf16.msra.mxu0 %v9734_v56  ;;  %v1319_v57 = vld [vmem:[%s10786_s22 + $0x1dd0] sm:$0xff]  ;;  %v9822_v56 = vcombine.low %v1071_v48, %v1075_v50 }
 0x31a   : > { %7439 = vmatprep.subr.bf16.mxu0 %v9727_v60  ;;  %v1323_v55 = vld [vmem:[%s10786_s22 + $0x1df0] sm:$0xff]  ;;  %v7124_v60 = vadd.f32 %v11595_v62, %v11526_v35 }
 0x31b   : > { %7479 = vmatpush2.bf16.msra.mxu1 %v9862_v42  ;;  %v9943_v42 = vcombine.high %v1191_v53, %v1195_v54  ;;  %v1183_v0 = vld [vmem:[%s10786_s22 + $0x1990] sm:$0xff] }
 0x31c   : > { %7480 = vmatprep.subr.bf16.mxu1 %v9855_v39  ;;  %v10071_v39 = vcombine.high %v1319_v57, %v1323_v55  ;;  %v1187_v2 = vld [vmem:[%s10786_s22 + $0x19b0] sm:$0xff]  ;;  %v7165_v35 = vadd.f32 %v11600_v3, %v7124_v60 }
 0x31d   : > { %7440 = vmatpush2.bf16.msra.mxu0 %v9726_v12  ;;  %v1311_v4 = vld [vmem:[%s10786_s22 + $0x1d90] sm:$0xff]  ;;  %v7126_v12 = vadd.f32 %v11603_v8, %v11535_v19  ;;  %v9934_v3 = vcombine.low %v1183_v0, %v1187_v2 }
 0x31e   : > { %7441 = vmatprep.subr.bf16.mxu0 %v9719_v15  ;;  %v1315_v9 = vld [vmem:[%s10786_s22 + $0x1db0] sm:$0xff]  ;;  %v10070_v15 = vcombine.low %v1319_v57, %v1323_v55 }
 0x31f   : > { %7481 = vmatpush2.bf16.msra.mxu1 %v9854_v14  ;;  %v9942_v14 = vcombine.low %v1191_v53, %v1195_v54  ;;  %v10063_v62 = vcombine.high %v1311_v4, %v1315_v9  ;;  %v1175_v17 = vld [vmem:[%s10786_s22 + $0x1950] sm:$0xff]  ;;  %v7167_v19 = vadd.f32 %v11605_v63, %v7126_v12 }
 0x320   : > { %7482 = vmatprep.subr.bf16.mxu1 %v9847_v16  ;;  %v9935_v16 = vcombine.high %v1183_v0, %v1187_v2  ;;  %v1179_v18 = vld [vmem:[%s10786_s22 + $0x1970] sm:$0xff] }
 0x321   : > { %7442 = vmatpush2.bf16.msra.mxu0 %v9718_v21  ;;  %v1303_v11 = vld [vmem:[%s10786_s22 + $0x1d50] sm:$0xff]  ;;  %v9927_v25 = vcombine.high %v1175_v17, %v1179_v18  ;;  %v9926_v50 = vcombine.low %v1175_v17, %v1179_v18 }
 0x322   : > { %7443 = vmatprep.subr.bf16.mxu0 %v9711_v23  ;;  %v1307_v21 = vld [vmem:[%s10786_s22 + $0x1d70] sm:$0xff] }
 0x323   : > { %7483 = vmatpush2.bf16.msra.mxu1 %v9846_v22  ;;  %v10055_v28 = vcombine.high %v1303_v11, %v1307_v21  ;;  %v1171_v63 = vld [vmem:[%s10786_s22 + $0x1930] sm:$0xff] }
 0x324   : > { %7484 = vmatprep.subr.bf16.mxu1 %v9839_v24  ;;  %v10062_v24 = vcombine.low %v1311_v4, %v1315_v9  ;;  %v1159_v55 = vld [vmem:[%s10786_s22 + $0x18d0] sm:$0xff] }
 0x325   : > { %7444 = vmatpush2.bf16.msra.mxu0 %v9710_v29  ;;  %v1167_v29 = vld [vmem:[%s10786_s22 + $0x1910] sm:$0xff] }
 0x326   : > { %7445 = vmatprep.subr.bf16.mxu0 %v9703_v36  ;;  %v1295_v36 = vld [vmem:[%s10786_s22 + $0x1d10] sm:$0xff] }
 0x327   : > { %7485 = vmatpush2.bf16.msra.mxu1 %v9838_v31  ;;  %v1151_v9 = vld [vmem:[%s10786_s22 + $0x1890] sm:$0xff] }
 0x328   : > { %7486 = vmatprep.subr.bf16.mxu1 %v9831_v38  ;;  %v1299_v38 = vld [vmem:[%s10786_s22 + $0x1d30] sm:$0xff] }
 0x329   : > { %7446 = vmatpush2.bf16.msra.mxu0 %v9702_v51  ;;  %v358_v51 = vld [vmem:[#allocation2] sm:$0xff]  ;;  %v10047_v57 = vcombine.high %v1295_v36, %v1299_v38  ;;  %v10046_v0 = vcombine.low %v1295_v36, %v1299_v38  ;;  %v1155_v12 = vld [vmem:[%s10786_s22 + $0x18b0] sm:$0xff] }
 0x32a   : > { %7447 = vmatprep.subr.bf16.mxu0 %v9695_v44  ;;  %v10054_v44 = vcombine.low %v1303_v11, %v1307_v21  ;;  %v1143_v18 = vld [vmem:[%s10786_s22 + $0x1850] sm:$0xff] }
 0x32b   : > { %7487 = vmatpush2.bf16.msra.mxu1 %v9830_v52  ;;  %v1271_v11 = vld [vmem:[%s10786_s22 + $0x1c50] sm:$0xff] }
 0x32c   : > { %7488 = vmatprep.subr.bf16.mxu1 %v9823_v32  ;;  %v9919_v32 = vcombine.high %v1167_v29, %v1171_v63  ;;  %v1275_v21 = vld [vmem:[%s10786_s22 + $0x1c70] sm:$0xff] }
 0x32d   : > { %7448 = vmatpush2.bf16.msra.mxu0 %v9694_v59  ;;  %v1163_v59 = vld [vmem:[%s10786_s22 + $0x18f0] sm:$0xff] }
 0x32e   : > { %7499 = vmatprep.subr.bf16.mxu0 %v9943_v42  ;;  %v1291_v42 = vld [vmem:[%s10786_s22 + $0x1cf0] sm:$0xff]  ;;  %v9911_v2 = vcombine.high %v1159_v55, %v1163_v59 }
 0x32f   : > { %7489 = vmatpush2.bf16.msra.mxu1 %v9822_v56  ;;  %v1287_v56 = vld [vmem:[%s10786_s22 + $0x1cd0] sm:$0xff] }
 0x330   : > { %7540 = vmatprep.subr.bf16.mxu1 %v10071_v39  ;;  %v7205_v20 = vpop.f32.mrf.mxu0  ;;  %7450 = vmatmul.mubr.bf16.vlgmr.msra.gmra.mxu0 %v10985_v58  ;;  %v9918_v39 = vcombine.low %v1167_v29, %v1171_v63  ;;  %v10039_v4 = vcombine.high %v1287_v56, %v1291_v42  ;;  %v1259_v36 = vld [vmem:[%s10786_s22 + $0x1bf0] sm:$0xff] }
 0x331   : > { %v7206_v8 = vadd.f32 %v7205_v20, %v7165_v35  ;;  %7500 = vmatpush1.bf16.msra.mxu0 %v9942_v14  ;;  %7531 = vmatprep.mubr.bf16.mxu0 %v11079_v47  ;;  %v1279_v14 = vld [vmem:[%s10786_s22 + $0x1c90] sm:$0xff]  ;;  %v10038_v35 = vcombine.low %v1287_v56, %v1291_v42 }
 0x332   : > { %v7246_v22 = vpop.f32.mrf.mxu1  ;;  %7491 = vmatmul.mubr.bf16.vlgmr.msra.gmra.mxu1 %v10990_v61  ;;  %v7207_v23 = vpop.f32.mrf.mxu0  ;;  %7501 = vmatprep.subr.bf16.mxu0 %v9935_v16  ;;  %v9910_v16 = vcombine.low %v1159_v55, %v1163_v59  ;;  %v1147_v20 = vld [vmem:[%s10786_s22 + $0x1870] sm:$0xff] }
 0x333   : > { %7541 = vmatpush1.bf16.msra.mxu1 %v10070_v15  ;;  %v7208_v26 = vadd.f32 %v7207_v23, %v7167_v19  ;;  %7572 = vmatprep.mubr.bf16.mxu1 %v11086_v49  ;;  %v7247_v41 = vadd.f32 %v7246_v22, %v7206_v8  ;;  %v1283_v15 = vld [vmem:[%s10786_s22 + $0x1cb0] sm:$0xff]  ;;  %v9902_v19 = vcombine.low %v1151_v9, %v1155_v12 }
 0x334   : > { %v7248_v27 = vpop.f32.mrf.mxu1  ;;  %7542 = vmatprep.subr.bf16.mxu1 %v10063_v62  ;;  %v7209_v31 = vpop.f32.mrf.mxu0  ;;  %v9903_v62 = vcombine.high %v1151_v9, %v1155_v12  ;;  %v10031_v17 = vcombine.high %v1279_v14, %v1283_v15  ;;  %v10030_v8 = vcombine.low %v1279_v14, %v1283_v15  ;;  %v9895_v22 = vcombine.high %v1143_v18, %v1147_v20  ;;  %v1135_v23 = vld [vmem:[%s10786_s22 + $0x1810] sm:$0xff] }
 0x335   : > { %v7249_v45 = vadd.f32 %v7248_v27, %v7208_v26  ;;  %7502 = vmatpush1.bf16.msra.mxu0 %v9934_v3  ;;  %v10023_v3 = vcombine.high %v1271_v11, %v1275_v21  ;;  %v1267_v26 = vld [vmem:[%s10786_s22 + $0x1c30] sm:$0xff]  ;;  %v9894_v27 = vcombine.low %v1143_v18, %v1147_v20 }
 0x336   : > { %v7250_v48 = vpop.f32.mrf.mxu1  ;;  %v7210_v52 = vpop.f32.mrf.mxu0  ;;  %7503 = vmatprep.subr.bf16.mxu0 %v9927_v25  ;;  %v1263_v25 = vld [vmem:[%s10786_s22 + $0x1c10] sm:$0xff] }
 0x337   : > { %7543 = vmatpush1.bf16.msra.mxu1 %v10062_v24  ;;  %v7918_v53 = vcombine.low %v7247_v41, %v7249_v45  ;;  %v1139_v24 = vld [vmem:[%s10786_s22 + $0x1830] sm:$0xff]  ;;  %v10015_v63 = vcombine.high %v1263_v25, %v1267_v26  ;;  %v10014_v48 = vcombine.low %v1263_v25, %v1267_v26 }
 0x338   : > { %v7251_v54 = vpop.f32.mrf.mxu1  ;;  %7544 = vmatprep.subr.bf16.mxu1 %v10055_v28  ;;  %v10022_v28 = vcombine.low %v1271_v11, %v1275_v21  ;;  %v9887_v29 = vcombine.high %v1135_v23, %v1139_v24  ;;  %v1255_v31 = vld [vmem:[%s10786_s22 + $0x1bd0] sm:$0xff]  ;;  %v9886_v45 = vcombine.low %v1135_v23, %v1139_v24 }
 0x339   : > { %v7926_v60 = vadd.f32 %v7918_v53, %v358_v51  ;;  %7504 = vmatpush1.bf16.msra.mxu0 %v9926_v50  ;;  %v1383_v38 = vld [vmem:[%s10786_s22 + $0x1fd0] sm:$0xff]  ;;  %v10007_v50 = vcombine.high %v1255_v31, %v1259_v36  ;;  %v10006_v54 = vcombine.low %v1255_v31, %v1259_v36 }
 0x33a   : > { %7505 = vmatprep.subr.bf16.mxu0 %v9919_v32  ;;  %v1387_v41 = vld [vmem:[%s10786_s22 + $0x1ff0] sm:$0xff] }
 0x33b   : > { %7545 = vmatpush1.bf16.msra.mxu1 %v10054_v44  ;;  %7930 = vst [vmem:[#allocation2] sm:$0xff] %v7926_v60  ;;  %v10135_v51 = vcombine.high %v1383_v38, %v1387_v41  ;;  %v1247_v52 = vld [vmem:[%s10786_s22 + $0x1b90] sm:$0xff] }
 0x33c   : > { %7546 = vmatprep.subr.bf16.mxu1 %v10047_v57  ;;  %v1251_v44 = vld [vmem:[%s10786_s22 + $0x1bb0] sm:$0xff]  ;;  %v10134_v57 = vcombine.low %v1383_v38, %v1387_v41 }
 0x33d   : > { %7506 = vmatpush1.bf16.msra.mxu0 %v9918_v39  ;;  %v1375_v32 = vld [vmem:[%s10786_s22 + $0x1f90] sm:$0xff]  ;;  %v9999_v55 = vcombine.high %v1247_v52, %v1251_v44 }
 0x33e   : > { %7507 = vmatprep.subr.bf16.mxu0 %v9911_v2  ;;  %v1379_v53 = vld [vmem:[%s10786_s22 + $0x1fb0] sm:$0xff] }
 0x33f   : > { %7547 = vmatpush1.bf16.msra.mxu1 %v10046_v0  ;;  %v10127_v59 = vcombine.high %v1375_v32, %v1379_v53  ;;  %v1239_v56 = vld [vmem:[%s10786_s22 + $0x1b50] sm:$0xff]  ;;  %v9998_v0 = vcombine.low %v1247_v52, %v1251_v44  ;;  %v10126_v2 = vcombine.low %v1375_v32, %v1379_v53 }
 0x340   : > { %7548 = vmatprep.subr.bf16.mxu1 %v10039_v4  ;;  %v1243_v42 = vld [vmem:[%s10786_s22 + $0x1b70] sm:$0xff] }
 0x341   : > { %7508 = vmatpush1.bf16.msra.mxu0 %v9910_v16  ;;  %v1367_v60 = vld [vmem:[%s10786_s22 + $0x1f50] sm:$0xff]  ;;  %v9991_v4 = vcombine.high %v1239_v56, %v1243_v42 }
 0x342   : > { %7509 = vmatprep.subr.bf16.mxu0 %v9903_v62  ;;  %v1371_v39 = vld [vmem:[%s10786_s22 + $0x1f70] sm:$0xff] }
 0x343   : > { %7549 = vmatpush1.bf16.msra.mxu1 %v10038_v35  ;;  %v10119_v9 = vcombine.high %v1367_v60, %v1371_v39  ;;  %v1231_v12 = vld [vmem:[%s10786_s22 + $0x1b10] sm:$0xff]  ;;  %v9990_v35 = vcombine.low %v1239_v56, %v1243_v42  ;;  %v10118_v62 = vcombine.low %v1367_v60, %v1371_v39  ;;  %v424_v42 = vld [vmem:[%s10786_s22 + $0x1d8] sm:$0xff] }
 0x344   : > { %7550 = vmatprep.subr.bf16.mxu1 %v10031_v17  ;;  %v1235_v14 = vld [vmem:[%s10786_s22 + $0x1b30] sm:$0xff]  ;;  %v428_v60 = vld [vmem:[%s10786_s22 + $0x1f8] sm:$0xff] }
 0x345   : > { %7510 = vmatpush1.bf16.msra.mxu0 %v9902_v19  ;;  %v1359_v15 = vld [vmem:[%s10786_s22 + $0x1f10] sm:$0xff]  ;;  %v9983_v17 = vcombine.high %v1231_v12, %v1235_v14  ;;  %v552_v39 = vld [vmem:[%s10786_s22 + $0x5d8] sm:$0xff] }
 0x346   : > { %7511 = vmatprep.subr.bf16.mxu0 %v9895_v22  ;;  %v1363_v16 = vld [vmem:[%s10786_s22 + $0x1f30] sm:$0xff] }
 0x347   : > { %7551 = vmatpush1.bf16.msra.mxu1 %v10030_v8  ;;  %v10111_v18 = vcombine.high %v1359_v15, %v1363_v16  ;;  %v1223_v20 = vld [vmem:[%s10786_s22 + $0x1ad0] sm:$0xff]  ;;  %v9982_v8 = vcombine.low %v1231_v12, %v1235_v14  ;;  %v10110_v22 = vcombine.low %v1359_v15, %v1363_v16  ;;  %v416_v14 = vld [vmem:[%s10786_s22 + $0x198] sm:$0xff] }
 0x348   : > { %7552 = vmatprep.subr.bf16.mxu1 %v10023_v3  ;;  %v1227_v11 = vld [vmem:[%s10786_s22 + $0x1af0] sm:$0xff]  ;;  %v420_v15 = vld [vmem:[%s10786_s22 + $0x1b8] sm:$0xff] }
 0x349   : > { %7512 = vmatpush1.bf16.msra.mxu0 %v9894_v27  ;;  %v1351_v21 = vld [vmem:[%s10786_s22 + $0x1ed0] sm:$0xff]  ;;  %v9975_v3 = vcombine.high %v1223_v20, %v1227_v11  ;;  %v544_v16 = vld [vmem:[%s10786_s22 + $0x598] sm:$0xff] }
 0x34a   : > { %7513 = vmatprep.subr.bf16.mxu0 %v9887_v29  ;;  %v1355_v19 = vld [vmem:[%s10786_s22 + $0x1ef0] sm:$0xff] }
 0x34b   : > { %7553 = vmatpush1.bf16.msra.mxu1 %v10022_v28  ;;  %v10103_v23 = vcombine.high %v1351_v21, %v1355_v19  ;;  %v1215_v24 = vld [vmem:[%s10786_s22 + $0x1a90] sm:$0xff]  ;;  %v9974_v28 = vcombine.low %v1223_v20, %v1227_v11  ;;  %v10102_v29 = vcombine.low %v1351_v21, %v1355_v19  ;;  %v408_v11 = vld [vmem:[%s10786_s22 + $0x158] sm:$0xff] }
 0x34c   : > { %7554 = vmatprep.subr.bf16.mxu1 %v10015_v63  ;;  %v1219_v25 = vld [vmem:[%s10786_s22 + $0x1ab0] sm:$0xff]  ;;  %v412_v21 = vld [vmem:[%s10786_s22 + $0x178] sm:$0xff] }
 0x34d   : > { %7514 = vmatpush1.bf16.msra.mxu0 %v9886_v45  ;;  %v1343_v26 = vld [vmem:[%s10786_s22 + $0x1e90] sm:$0xff]  ;;  %v9967_v63 = vcombine.high %v1215_v24, %v1219_v25 }
 0x34e   : > { %7515 = vmatprep.subr.bf16.mxu0 %v10007_v50  ;;  %v1347_v27 = vld [vmem:[%s10786_s22 + $0x1eb0] sm:$0xff] }
 0x34f   : > { %7555 = vmatpush1.bf16.msra.mxu1 %v10014_v48  ;;  %v10095_v31 = vcombine.high %v1343_v26, %v1347_v27  ;;  %v1207_v36 = vld [vmem:[%s10786_s22 + $0x1a50] sm:$0xff]  ;;  %v9966_v48 = vcombine.low %v1215_v24, %v1219_v25  ;;  %v10094_v50 = vcombine.low %v1343_v26, %v1347_v27  ;;  %v9161_v27 = vcombine.high %v408_v11, %v412_v21 }
 0x350   : > { %7556 = vmatprep.subr.bf16.mxu1 %v10135_v51  ;;  %v1211_v38 = vld [vmem:[%s10786_s22 + $0x1a70] sm:$0xff] }
 0x351   : > { %7516 = vmatpush2.bf16.msra.mxu0 %v10006_v54  ;;  %v1335_v41 = vld [vmem:[%s10786_s22 + $0x1e50] sm:$0xff]  ;;  %v9959_v51 = vcombine.high %v1207_v36, %v1211_v38 }
 0x352   : > { %7517 = vmatprep.subr.bf16.mxu0 %v9999_v55  ;;  %v1339_v45 = vld [vmem:[%s10786_s22 + $0x1e70] sm:$0xff] }
 0x353   : > { %7557 = vmatpush2.bf16.msra.mxu1 %v10134_v57  ;;  %v10087_v52 = vcombine.high %v1335_v41, %v1339_v45  ;;  %v1199_v44 = vld [vmem:[%s10786_s22 + $0x1a10] sm:$0xff]  ;;  %v9958_v57 = vcombine.low %v1207_v36, %v1211_v38  ;;  %v10086_v55 = vcombine.low %v1335_v41, %v1339_v45  ;;  %v528_v41 = vld [vmem:[%s10786_s22 + $0x518] sm:$0xff] }
 0x354   : > { %7558 = vmatprep.subr.bf16.mxu1 %v10127_v59  ;;  %v1203_v32 = vld [vmem:[%s10786_s22 + $0x1a30] sm:$0xff]  ;;  %v532_v45 = vld [vmem:[%s10786_s22 + $0x538] sm:$0xff] }
 0x355   : > { %7518 = vmatpush2.bf16.msra.mxu0 %v9998_v0  ;;  %v1327_v53 = vld [vmem:[%s10786_s22 + $0x1e10] sm:$0xff]  ;;  %v9951_v59 = vcombine.high %v1199_v44, %v1203_v32  ;;  %v556_v0 = vld [vmem:[%s10786_s22 + $0x5f8] sm:$0xff] }
 0x356   : > { %7519 = vmatprep.subr.bf16.mxu0 %v9991_v4  ;;  %v1331_v54 = vld [vmem:[%s10786_s22 + $0x1e30] sm:$0xff]  ;;  %v9305_v12 = vcombine.high %v552_v39, %v556_v0 }
 0x357   : > { %7559 = vmatpush2.bf16.msra.mxu1 %v10126_v2  ;;  %v10079_v56 = vcombine.high %v1327_v53, %v1331_v54  ;;  %v9950_v2 = vcombine.low %v1199_v44, %v1203_v32  ;;  %v10078_v4 = vcombine.low %v1327_v53, %v1331_v54  ;;  %v9281_v32 = vcombine.high %v528_v41, %v532_v45  ;;  %v392_v53 = vld [vmem:[%s10786_s22 + $0xd8] sm:$0xff] }
 0x358   : > { %7560 = vmatprep.subr.bf16.mxu1 %v10119_v9  ;;  %v9177_v9 = vcombine.high %v424_v42, %v428_v60  ;;  %v396_v54 = vld [vmem:[%s10786_s22 + $0xf8] sm:$0xff] }
 0x359   : > { %7520 = vmatpush2.bf16.msra.mxu0 %v9990_v35  ;;  %v548_v35 = vld [vmem:[%s10786_s22 + $0x5b8] sm:$0xff] }
 0x35a   : > { %7521 = vmatprep.subr.bf16.mxu0 %v9983_v17  ;;  %v9304_v17 = vcombine.low %v552_v39, %v556_v0  ;;  %v9297_v20 = vcombine.high %v544_v16, %v548_v35  ;;  %v9296_v26 = vcombine.low %v544_v16, %v548_v35  ;;  %v388_v39 = vld [vmem:[%s10786_s22 + $0xb8] sm:$0xff] }
 0x35b   : > { %7561 = vmatpush2.bf16.msra.mxu1 %v10118_v62  ;;  %v9176_v62 = vcombine.low %v424_v42, %v428_v60  ;;  %v384_v60 = vld [vmem:[%s10786_s22 + $0x98] sm:$0xff] }
 0x35c   : > { %7562 = vmatprep.subr.bf16.mxu1 %v10111_v18  ;;  %v9169_v18 = vcombine.high %v416_v14, %v420_v15  ;;  %v512_v0 = vld [vmem:[%s10786_s22 + $0x498] sm:$0xff] }
 0x35d   : > { %7522 = vmatpush2.bf16.msra.mxu0 %v9982_v8  ;;  %v536_v8 = vld [vmem:[%s10786_s22 + $0x558] sm:$0xff] }
 0x35e   : > { %7523 = vmatprep.subr.bf16.mxu0 %v9975_v3  ;;  %v380_v16 = vld [vmem:[%s10786_s22 + $0x78] sm:$0xff] }
 0x35f   : > { %7563 = vmatpush2.bf16.msra.mxu1 %v10110_v22  ;;  %v540_v22 = vld [vmem:[%s10786_s22 + $0x578] sm:$0xff] }
 0x360   : > { %7564 = vmatprep.subr.bf16.mxu1 %v10103_v23  ;;  %v9168_v23 = vcombine.low %v416_v14, %v420_v15  ;;  %v376_v15 = vld [vmem:[%s10786_s22 + $0x58] sm:$0xff] }
 0x361   : > { %7524 = vmatpush2.bf16.msra.mxu0 %v9974_v28  ;;  %v504_v35 = vld [vmem:[%s10786_s22 + $0x458] sm:$0xff] }
 0x362   : > { %7525 = vmatprep.subr.bf16.mxu0 %v9967_v63  ;;  %v400_v63 = vld [vmem:[%s10786_s22 + $0x118] sm:$0xff] }
 0x363   : > { %7565 = vmatpush2.bf16.msra.mxu1 %v10102_v29  ;;  %v9289_v29 = vcombine.high %v536_v8, %v540_v22 }
 0x364   : > { %7566 = vmatprep.subr.bf16.mxu1 %v10095_v31  ;;  %v404_v31 = vld [vmem:[%s10786_s22 + $0x138] sm:$0xff] }
 0x365   : > { %7526 = vmatpush2.bf16.msra.mxu0 %v9966_v48  ;;  %v9153_v44 = vcombine.high %v400_v63, %v404_v31 }
 0x366   : > { %7527 = vmatprep.subr.bf16.mxu0 %v9959_v51 }
 0x367   : > { %7567 = vmatpush2.bf16.msra.mxu1 %v10094_v50  ;;  %v9160_v50 = vcombine.low %v408_v11, %v412_v21  ;;  %v368_v21 = vld [vmem:[%s10786_s22 + $0x18] sm:$0xff] }
 0x368   : > { %7568 = vmatprep.subr.bf16.mxu1 %v10087_v52  ;;  %v9288_v52 = vcombine.low %v536_v8, %v540_v22  ;;  %v496_v8 = vld [vmem:[%s10786_s22 + $0x418] sm:$0xff] }
 0x369   : > { %7528 = vmatpush2.bf16.msra.mxu0 %v9958_v57  ;;  %v520_v57 = vld [vmem:[%s10786_s22 + $0x4d8] sm:$0xff] }
 0x36a   : > { %7529 = vmatprep.subr.bf16.mxu0 %v9951_v59  ;;  %v9280_v59 = vcombine.low %v528_v41, %v532_v45  ;;  %v500_v22 = vld [vmem:[%s10786_s22 + $0x438] sm:$0xff] }
 0x36b   : > { %7569 = vmatpush2.bf16.msra.mxu1 %v10086_v55  ;;  %v524_v55 = vld [vmem:[%s10786_s22 + $0x4f8] sm:$0xff] }
 0x36c   : > { %7570 = vmatprep.subr.bf16.mxu1 %v10079_v56  ;;  %v9145_v56 = vcombine.high %v392_v53, %v396_v54  ;;  %v9273_v42 = vcombine.high %v520_v57, %v524_v55 }
 0x36d   : > { %7530 = vmatpush2.bf16.msra.mxu0 %v9950_v2  ;;  %v516_v2 = vld [vmem:[%s10786_s22 + $0x4b8] sm:$0xff] }
 0x36e   : > { %7581 = vmatprep.subr.bf16.mxu0 %v9177_v9  ;;  %v9272_v9 = vcombine.low %v520_v57, %v524_v55  ;;  %v9265_v14 = vcombine.high %v512_v0, %v516_v2  ;;  %v476_v57 = vld [vmem:[%s10786_s22 + $0x378] sm:$0xff] }
 0x36f   : > { %7571 = vmatpush2.bf16.msra.mxu1 %v10078_v4  ;;  %v9144_v4 = vcombine.low %v392_v53, %v396_v54  ;;  %v472_v54 = vld [vmem:[%s10786_s22 + $0x358] sm:$0xff] }
 0x370   : > { %7622 = vmatprep.subr.bf16.mxu1 %v9305_v12  ;;  %v7287_v19 = vpop.f32.mrf.mxu0  ;;  %7532 = vmatmul.mubr.bf16.vlgmr.msra.gmra.mxu0 %v11068_v34  ;;  %v9137_v12 = vcombine.high %v384_v60, %v388_v39  ;;  %v600_v55 = vld [vmem:[%s10786_s22 + $0x758] sm:$0xff] }
 0x371   : > { %7582 = vmatpush1.bf16.msra.mxu0 %v9176_v62  ;;  %7613 = vmatprep.mubr.bf16.mxu0 %v10851_v6  ;;  %v508_v62 = vld [vmem:[%s10786_s22 + $0x478] sm:$0xff] }
 0x372   : > { %v7328_v3 = vpop.f32.mrf.mxu1  ;;  %7573 = vmatmul.mubr.bf16.vlgmr.msra.gmra.mxu1 %v11073_v37  ;;  %v7289_v25 = vpop.f32.mrf.mxu0  ;;  %7583 = vmatprep.subr.bf16.mxu0 %v9169_v18  ;;  %v9264_v18 = vcombine.low %v512_v0, %v516_v2  ;;  %v9257_v11 = vcombine.high %v504_v35, %v508_v62  ;;  %v468_v0 = vld [vmem:[%s10786_s22 + $0x338] sm:$0xff] }
 0x373   : > { %v11749_v24 = vadd.f32 %v7328_v3, %v7287_v19  ;;  %7623 = vmatpush1.bf16.msra.mxu1 %v9304_v17  ;;  %7654 = vmatprep.mubr.bf16.mxu1 %v10861_v13  ;;  %v9152_v13 = vcombine.low %v400_v63, %v404_v31  ;;  %v9136_v17 = vcombine.low %v384_v60, %v388_v39  ;;  %v372_v19 = vld [vmem:[%s10786_s22 + $0x38] sm:$0xff] }
 0x374   : > { %v7330_v28 = vpop.f32.mrf.mxu1  ;;  %7624 = vmatprep.subr.bf16.mxu1 %v9297_v20  ;;  %v7291_v38 = vpop.f32.mrf.mxu0  ;;  %v9129_v20 = vcombine.high %v376_v15, %v380_v16  ;;  %v9128_v3 = vcombine.low %v376_v15, %v380_v16  ;;  %v620_v63 = vld [vmem:[%s10786_s22 + $0x7f8] sm:$0xff]  ;;  %v9120_v31 = vcombine.low %v368_v21, %v372_v19 }
 0x375   : > { %v11754_v36 = vadd.f32 %v7330_v28, %v7289_v25  ;;  %7584 = vmatpush1.bf16.msra.mxu0 %v9168_v23  ;;  %v9256_v23 = vcombine.low %v504_v35, %v508_v62  ;;  %v9121_v25 = vcombine.high %v368_v21, %v372_v19  ;;  %v492_v28 = vld [vmem:[%s10786_s22 + $0x3f8] sm:$0xff]  ;;  %v9248_v38 = vcombine.low %v496_v8, %v500_v22 }
 0x376   : > { %v7332_v48 = vpop.f32.mrf.mxu1  ;;  %v7292_v51 = vpop.f32.mrf.mxu0  ;;  %7585 = vmatprep.subr.bf16.mxu0 %v9161_v27  ;;  %v488_v27 = vld [vmem:[%s10786_s22 + $0x3d8] sm:$0xff] }
 0x377   : > { %7625 = vmatpush1.bf16.msra.mxu1 %v9296_v26  ;;  %v9249_v26 = vcombine.high %v496_v8, %v500_v22  ;;  %v9241_v41 = vcombine.high %v488_v27, %v492_v28  ;;  %v480_v48 = vld [vmem:[%s10786_s22 + $0x398] sm:$0xff] }
 0x378   : > { %v7333_v6 = vpop.f32.mrf.mxu1  ;;  %7626 = vmatprep.subr.bf16.mxu1 %v9289_v29  ;;  %v616_v29 = vld [vmem:[%s10786_s22 + $0x7d8] sm:$0xff] }
 0x379   : > { %7586 = vmatpush1.bf16.msra.mxu0 %v9160_v50  ;;  %v9369_v45 = vcombine.high %v616_v29, %v620_v63  ;;  %v484_v50 = vld [vmem:[%s10786_s22 + $0x3b8] sm:$0xff]  ;;  %v9368_v6 = vcombine.low %v616_v29, %v620_v63 }
 0x37a   : > { %7587 = vmatprep.subr.bf16.mxu0 %v9153_v44  ;;  %v608_v51 = vld [vmem:[%s10786_s22 + $0x798] sm:$0xff]  ;;  %v9240_v44 = vcombine.low %v488_v27, %v492_v28 }
 0x37b   : > { %7627 = vmatpush1.bf16.msra.mxu1 %v9288_v52  ;;  %v612_v52 = vld [vmem:[%s10786_s22 + $0x7b8] sm:$0xff] }
 0x37c   : > { %7628 = vmatprep.subr.bf16.mxu1 %v9281_v32  ;;  %v9233_v32 = vcombine.high %v480_v48, %v484_v50  ;;  %v9361_v53 = vcombine.high %v608_v51, %v612_v52  ;;  %v464_v39 = vld [vmem:[%s10786_s22 + $0x318] sm:$0xff] }
 0x37d   : > { %7588 = vmatpush1.bf16.msra.mxu0 %v9152_v13  ;;  %v604_v13 = vld [vmem:[%s10786_s22 + $0x778] sm:$0xff] }
 0x37e   : > { %7589 = vmatprep.subr.bf16.mxu0 %v9145_v56  ;;  %v9360_v56 = vcombine.low %v608_v51, %v612_v52  ;;  %v9353_v60 = vcombine.high %v600_v55, %v604_v13  ;;  %v592_v2 = vld [vmem:[%s10786_s22 + $0x718] sm:$0xff] }
 0x37f   : > { %7629 = vmatpush1.bf16.msra.mxu1 %v9280_v59  ;;  %v9232_v59 = vcombine.low %v480_v48, %v484_v50  ;;  %v456_v16 = vld [vmem:[%s10786_s22 + $0x2d8] sm:$0xff] }
 0x380   : > { %7630 = vmatprep.subr.bf16.mxu1 %v9273_v42  ;;  %v9225_v42 = vcombine.high %v472_v54, %v476_v57  ;;  %v460_v35 = vld [vmem:[%s10786_s22 + $0x2f8] sm:$0xff] }
 0x381   : > { %7590 = vmatpush1.bf16.msra.mxu0 %v9144_v4  ;;  %v596_v4 = vld [vmem:[%s10786_s22 + $0x738] sm:$0xff] }
 0x382   : > { %7591 = vmatprep.subr.bf16.mxu0 %v9137_v12  ;;  %v9352_v12 = vcombine.low %v600_v55, %v604_v13  ;;  %v9345_v15 = vcombine.high %v592_v2, %v596_v4  ;;  %v584_v62 = vld [vmem:[%s10786_s22 + $0x6d8] sm:$0xff] }
 0x383   : > { %7631 = vmatpush1.bf16.msra.mxu1 %v9272_v9  ;;  %v9224_v9 = vcombine.low %v472_v54, %v476_v57  ;;  %v448_v19 = vld [vmem:[%s10786_s22 + $0x298] sm:$0xff] }
 0x384   : > { %7632 = vmatprep.subr.bf16.mxu1 %v9265_v14  ;;  %v9217_v14 = vcombine.high %v464_v39, %v468_v0  ;;  %v452_v8 = vld [vmem:[%s10786_s22 + $0x2b8] sm:$0xff] }
 0x385   : > { %7592 = vmatpush1.bf16.msra.mxu0 %v9136_v17  ;;  %v588_v17 = vld [vmem:[%s10786_s22 + $0x6f8] sm:$0xff] }
 0x386   : > { %7593 = vmatprep.subr.bf16.mxu0 %v9129_v20  ;;  %v9344_v20 = vcombine.low %v592_v2, %v596_v4  ;;  %v9337_v21 = vcombine.high %v584_v62, %v588_v17  ;;  %v576_v22 = vld [vmem:[%s10786_s22 + $0x698] sm:$0xff] }
 0x387   : > { %7633 = vmatpush1.bf16.msra.mxu1 %v9264_v18  ;;  %v9216_v18 = vcombine.low %v464_v39, %v468_v0  ;;  %v440_v28 = vld [vmem:[%s10786_s22 + $0x258] sm:$0xff] }
 0x388   : > { %7634 = vmatprep.subr.bf16.mxu1 %v9257_v11  ;;  %v9209_v11 = vcombine.high %v456_v16, %v460_v35  ;;  %v444_v29 = vld [vmem:[%s10786_s22 + $0x278] sm:$0xff] }
 0x389   : > { %7594 = vmatpush1.bf16.msra.mxu0 %v9128_v3  ;;  %v580_v3 = vld [vmem:[%s10786_s22 + $0x6b8] sm:$0xff] }
 0x38a   : > { %7595 = vmatprep.subr.bf16.mxu0 %v9121_v25  ;;  %v9336_v25 = vcombine.low %v584_v62, %v588_v17  ;;  %v9329_v27 = vcombine.high %v576_v22, %v580_v3  ;;  %v568_v63 = vld [vmem:[%s10786_s22 + $0x658] sm:$0xff] }
 0x38b   : > { %7635 = vmatpush1.bf16.msra.mxu1 %v9256_v23  ;;  %v9208_v23 = vcombine.low %v456_v16, %v460_v35  ;;  %v432_v50 = vld [vmem:[%s10786_s22 + $0x218] sm:$0xff] }
 0x38c   : > { %7636 = vmatprep.subr.bf16.mxu1 %v9249_v26  ;;  %v9201_v26 = vcombine.high %v448_v19, %v452_v8  ;;  %v436_v51 = vld [vmem:[%s10786_s22 + $0x238] sm:$0xff] }
 0x38d   : > { %7596 = vmatpush1.bf16.msra.mxu0 %v9120_v31  ;;  %v572_v31 = vld [vmem:[%s10786_s22 + $0x678] sm:$0xff] }
 0x38e   : > { %7597 = vmatprep.subr.bf16.mxu0 %v9241_v41  ;;  %v9328_v41 = vcombine.low %v576_v22, %v580_v3  ;;  %v9321_v48 = vcombine.high %v568_v63, %v572_v31  ;;  %v560_v52 = vld [vmem:[%s10786_s22 + $0x618] sm:$0xff] }
 0x38f   : > { %7637 = vmatpush1.bf16.msra.mxu1 %v9248_v38  ;;  %v9200_v38 = vcombine.low %v448_v19, %v452_v8  ;;  %v680_v57 = vld [vmem:[%s10786_s22 + $0x9d8] sm:$0xff] }
 0x390   : > { %7638 = vmatprep.subr.bf16.mxu1 %v9369_v45  ;;  %v9193_v45 = vcombine.high %v440_v28, %v444_v29  ;;  %v684_v55 = vld [vmem:[%s10786_s22 + $0x9f8] sm:$0xff] }
 0x391   : > { %7598 = vmatpush2.bf16.msra.mxu0 %v9240_v44  ;;  %v564_v44 = vld [vmem:[%s10786_s22 + $0x638] sm:$0xff] }
 0x392   : > { %7599 = vmatprep.subr.bf16.mxu0 %v9233_v32  ;;  %v9320_v32 = vcombine.low %v568_v63, %v572_v31  ;;  %v9313_v54 = vcombine.high %v560_v52, %v564_v44  ;;  %v808_v13 = vld [vmem:[%s10786_s22 + $0xdd8] sm:$0xff] }
 0x393   : > { %7639 = vmatpush2.bf16.msra.mxu1 %v9368_v6  ;;  %v9192_v6 = vcombine.low %v440_v28, %v444_v29  ;;  %v672_v0 = vld [vmem:[%s10786_s22 + $0x998] sm:$0xff] }
 0x394   : > { %7640 = vmatprep.subr.bf16.mxu1 %v9361_v53  ;;  %v9185_v53 = vcombine.high %v432_v50, %v436_v51  ;;  %v676_v2 = vld [vmem:[%s10786_s22 + $0x9b8] sm:$0xff] }
 0x395   : > { %7600 = vmatpush2.bf16.msra.mxu0 %v9232_v59  ;;  %v812_v59 = vld [vmem:[%s10786_s22 + $0xdf8] sm:$0xff]  ;;  %v9424_v19 = vcombine.low %v672_v0, %v676_v2 }
 0x396   : > { %7601 = vmatprep.subr.bf16.mxu0 %v9225_v42  ;;  %v9312_v42 = vcombine.low %v560_v52, %v564_v44  ;;  %v9561_v39 = vcombine.high %v808_v13, %v812_v59  ;;  %v800_v4 = vld [vmem:[%s10786_s22 + $0xd98] sm:$0xff] }
 0x397   : > { %7641 = vmatpush2.bf16.msra.mxu1 %v9360_v56  ;;  %v9184_v56 = vcombine.low %v432_v50, %v436_v51  ;;  %v664_v35 = vld [vmem:[%s10786_s22 + $0x958] sm:$0xff] }
 0x398   : > { %7642 = vmatprep.subr.bf16.mxu1 %v9353_v60  ;;  %v9433_v60 = vcombine.high %v680_v57, %v684_v55  ;;  %v668_v62 = vld [vmem:[%s10786_s22 + $0x978] sm:$0xff] }
 0x399   : > { %7602 = vmatpush2.bf16.msra.mxu0 %v9224_v9  ;;  %v804_v9 = vld [vmem:[%s10786_s22 + $0xdb8] sm:$0xff]  ;;  %v9417_v3 = vcombine.high %v664_v35, %v668_v62 }
 0x39a   : > { %7603 = vmatprep.subr.bf16.mxu0 %v9217_v14  ;;  %v9560_v14 = vcombine.low %v808_v13, %v812_v59  ;;  %v9553_v16 = vcombine.high %v800_v4, %v804_v9  ;;  %v9552_v22 = vcombine.low %v800_v4, %v804_v9  ;;  %v784_v28 = vld [vmem:[%s10786_s22 + $0xd18] sm:$0xff] }
 0x39b   : > { %7643 = vmatpush2.bf16.msra.mxu1 %v9352_v12  ;;  %v9432_v12 = vcombine.low %v680_v57, %v684_v55  ;;  %v788_v29 = vld [vmem:[%s10786_s22 + $0xd38] sm:$0xff] }
 0x39c   : > { %7644 = vmatprep.subr.bf16.mxu1 %v9345_v15  ;;  %v9425_v15 = vcombine.high %v672_v0, %v676_v2  ;;  %v648_v50 = vld [vmem:[%s10786_s22 + $0x8d8] sm:$0xff] }
 0x39d   : > { %7604 = vmatpush2.bf16.msra.mxu0 %v9216_v18  ;;  %v792_v18 = vld [vmem:[%s10786_s22 + $0xd58] sm:$0xff] }
 0x39e   : > { %7605 = vmatprep.subr.bf16.mxu0 %v9209_v11  ;;  %v776_v51 = vld [vmem:[%s10786_s22 + $0xcd8] sm:$0xff] }
 0x39f   : > { %7645 = vmatpush2.bf16.msra.mxu1 %v9344_v20  ;;  %v796_v20 = vld [vmem:[%s10786_s22 + $0xd78] sm:$0xff] }
 0x3a0   : > { %7646 = vmatprep.subr.bf16.mxu1 %v9337_v21  ;;  %v780_v52 = vld [vmem:[%s10786_s22 + $0xcf8] sm:$0xff] }
 0x3a1   : > { %7606 = vmatpush2.bf16.msra.mxu0 %v9208_v23  ;;  %v644_v57 = vld [vmem:[%s10786_s22 + $0x8b8] sm:$0xff] }
 0x3a2   : > { %7607 = vmatprep.subr.bf16.mxu0 %v9201_v26  ;;  %v656_v26 = vld [vmem:[%s10786_s22 + $0x918] sm:$0xff] }
 0x3a3   : > { %7647 = vmatpush2.bf16.msra.mxu1 %v9336_v25  ;;  %v768_v55 = vld [vmem:[%s10786_s22 + $0xc98] sm:$0xff] }
 0x3a4   : > { %7648 = vmatprep.subr.bf16.mxu1 %v9329_v27  ;;  %v660_v27 = vld [vmem:[%s10786_s22 + $0x938] sm:$0xff] }
 0x3a5   : > { %7608 = vmatpush2.bf16.msra.mxu0 %v9200_v38  ;;  %v9408_v44 = vcombine.low %v656_v26, %v660_v27  ;;  %v772_v13 = vld [vmem:[%s10786_s22 + $0xcb8] sm:$0xff] }
 0x3a6   : > { %7609 = vmatprep.subr.bf16.mxu0 %v9193_v45  ;;  %v9409_v45 = vcombine.high %v656_v26, %v660_v27  ;;  %v636_v0 = vld [vmem:[%s10786_s22 + $0x878] sm:$0xff] }
 0x3a7   : > { %7649 = vmatpush2.bf16.msra.mxu1 %v9328_v41  ;;  %v9544_v41 = vcombine.low %v792_v18, %v796_v20  ;;  %v760_v2 = vld [vmem:[%s10786_s22 + $0xc58] sm:$0xff] }
 0x3a8   : > { %7650 = vmatprep.subr.bf16.mxu1 %v9321_v48  ;;  %v9537_v48 = vcombine.high %v784_v28, %v788_v29  ;;  %v764_v4 = vld [vmem:[%s10786_s22 + $0xc78] sm:$0xff] }
 0x3a9   : > { %7610 = vmatpush2.bf16.msra.mxu0 %v9192_v6  ;;  %v9536_v6 = vcombine.low %v784_v28, %v788_v29  ;;  %v736_v27 = vld [vmem:[%s10786_s22 + $0xb98] sm:$0xff] }
 0x3aa   : > { %7611 = vmatprep.subr.bf16.mxu0 %v9185_v53  ;;  %v9529_v53 = vcombine.high %v776_v51, %v780_v52  ;;  %v864_v28 = vld [vmem:[%s10786_s22 + $0xf98] sm:$0xff] }
 0x3ab   : > { %7651 = vmatpush2.bf16.msra.mxu1 %v9320_v32  ;;  %v868_v29 = vld [vmem:[%s10786_s22 + $0xfb8] sm:$0xff] }
 0x3ac   : > { %7652 = vmatprep.subr.bf16.mxu1 %v9313_v54  ;;  %v640_v54 = vld [vmem:[%s10786_s22 + $0x898] sm:$0xff] }
 0x3ad   : > { %7612 = vmatpush2.bf16.msra.mxu0 %v9184_v56  ;;  %v9528_v56 = vcombine.low %v776_v51, %v780_v52  ;;  %v9392_v9 = vcombine.low %v640_v54, %v644_v57  ;;  %v9616_v51 = vcombine.low %v864_v28, %v868_v29 }
 0x3ae   : > { %7663 = vmatprep.subr.bf16.mxu0 %v9433_v60  ;;  %v9521_v60 = vcombine.high %v768_v55, %v772_v13 }
 0x3af   : > { %7653 = vmatpush2.bf16.msra.mxu1 %v9312_v42  ;;  %v9393_v42 = vcombine.high %v640_v54, %v644_v57  ;;  %v852_v54 = vld [vmem:[%s10786_s22 + $0xf38] sm:$0xff] }
 0x3b0   : > { %7704 = vmatprep.subr.bf16.mxu1 %v9561_v39  ;;  %v7369_v17 = vpop.f32.mrf.mxu0  ;;  %7614 = vmatmul.mubr.bf16.vlgmr.msra.gmra.mxu0 %v10845_v1  ;;  %v632_v39 = vld [vmem:[%s10786_s22 + $0x858] sm:$0xff] }
 0x3b1   : > { %v7370_v11 = vadd.f32 %v7369_v17, %v11749_v24  ;;  %7664 = vmatpush1.bf16.msra.mxu0 %v9432_v12  ;;  %v9545_v24 = vcombine.high %v792_v18, %v796_v20  ;;  %7695 = vmatprep.mubr.bf16.mxu0 %v10913_v40  ;;  %v9520_v12 = vcombine.low %v768_v55, %v772_v13  ;;  %v756_v17 = vld [vmem:[%s10786_s22 + $0xc38] sm:$0xff] }
 0x3b2   : > { %v7410_v21 = vpop.f32.mrf.mxu1  ;;  %7655 = vmatmul.mubr.bf16.vlgmr.msra.gmra.mxu1 %v10854_v7  ;;  %v7371_v8 = vpop.f32.mrf.mxu0  ;;  %7665 = vmatprep.subr.bf16.mxu0 %v9425_v15  ;;  %v9513_v15 = vcombine.high %v760_v2, %v764_v4  ;;  %v9384_v18 = vcombine.low %v632_v39, %v636_v0  ;;  %v9512_v20 = vcombine.low %v760_v2, %v764_v4 }
 0x3b3   : > { %7705 = vmatpush1.bf16.msra.mxu1 %v9560_v14  ;;  %v11822_v23 = vadd.f32 %v7410_v21, %v7370_v11  ;;  %v7372_v1 = vadd.f32 %v7371_v8, %v11754_v36  ;;  %7736 = vmatprep.mubr.bf16.mxu1 %v10920_v43  ;;  %v9416_v36 = vcombine.low %v664_v35, %v668_v62  ;;  %v652_v43 = vld [vmem:[%s10786_s22 + $0x8f8] sm:$0xff] }
 0x3b4   : > { %v7412_v25 = vpop.f32.mrf.mxu1  ;;  %7706 = vmatprep.subr.bf16.mxu1 %v9553_v16  ;;  %v7373_v7 = vpop.f32.mrf.mxu0  ;;  %v9401_v32 = vcombine.high %v648_v50, %v652_v43  ;;  %v9400_v59 = vcombine.low %v648_v50, %v652_v43  ;;  %v9385_v14 = vcombine.high %v632_v39, %v636_v0  ;;  %v624_v16 = vld [vmem:[%s10786_s22 + $0x818] sm:$0xff] }
 0x3b5   : > { %v11831_v63 = vadd.f32 %v7412_v25, %v7372_v1  ;;  %7666 = vmatpush1.bf16.msra.mxu0 %v9424_v19  ;;  %v628_v35 = vld [vmem:[%s10786_s22 + $0x838] sm:$0xff] }
 0x3b6   : > { %v7414_v31 = vpop.f32.mrf.mxu1  ;;  %v7374_v38 = vpop.f32.mrf.mxu0  ;;  %7667 = vmatprep.subr.bf16.mxu0 %v9417_v3  ;;  %v752_v62 = vld [vmem:[%s10786_s22 + $0xc18] sm:$0xff]  ;;  %v9377_v11 = vcombine.high %v624_v16, %v628_v35  ;;  %v9376_v1 = vcombine.low %v624_v16, %v628_v35 }
 0x3b7   : > { %7707 = vmatpush1.bf16.msra.mxu1 %v9552_v22  ;;  %v9505_v21 = vcombine.high %v752_v62, %v756_v17  ;;  %v744_v19 = vld [vmem:[%s10786_s22 + $0xbd8] sm:$0xff]  ;;  %v9504_v25 = vcombine.low %v752_v62, %v756_v17 }
 0x3b8   : > { %v7415_v40 = vpop.f32.mrf.mxu1  ;;  %7708 = vmatprep.subr.bf16.mxu1 %v9545_v24  ;;  %v748_v8 = vld [vmem:[%s10786_s22 + $0xbf8] sm:$0xff] }
 0x3b9   : > { %7668 = vmatpush1.bf16.msra.mxu0 %v9416_v36  ;;  %v872_v22 = vld [vmem:[%s10786_s22 + $0xfd8] sm:$0xff]  ;;  %v9497_v24 = vcombine.high %v744_v19, %v748_v8  ;;  %v9496_v31 = vcombine.low %v744_v19, %v748_v8 }
 0x3ba   : > { %7669 = vmatprep.subr.bf16.mxu0 %v9409_v45  ;;  %v876_v3 = vld [vmem:[%s10786_s22 + $0xff8] sm:$0xff] }
 0x3bb   : > { %7709 = vmatpush1.bf16.msra.mxu1 %v9544_v41  ;;  %v9625_v26 = vcombine.high %v872_v22, %v876_v3  ;;  %v740_v7 = vld [vmem:[%s10786_s22 + $0xbb8] sm:$0xff]  ;;  %v9624_v36 = vcombine.low %v872_v22, %v876_v3  ;;  %v9617_v41 = vcombine.high %v864_v28, %v868_v29 }
 0x3bc   : > { %7710 = vmatprep.subr.bf16.mxu1 %v9537_v48  ;;  %v9489_v38 = vcombine.high %v736_v27, %v740_v7  ;;  %v728_v45 = vld [vmem:[%s10786_s22 + $0xb58] sm:$0xff]  ;;  %v9488_v43 = vcombine.low %v736_v27, %v740_v7 }
 0x3bd   : > { %7670 = vmatpush1.bf16.msra.mxu0 %v9408_v44  ;;  %v732_v40 = vld [vmem:[%s10786_s22 + $0xb78] sm:$0xff] }
 0x3be   : > { %7671 = vmatprep.subr.bf16.mxu0 %v9401_v32  ;;  %v856_v48 = vld [vmem:[%s10786_s22 + $0xf58] sm:$0xff]  ;;  %v9481_v52 = vcombine.high %v728_v45, %v732_v40  ;;  %v9480_v57 = vcombine.low %v728_v45, %v732_v40 }
 0x3bf   : > { %7711 = vmatpush1.bf16.msra.mxu1 %v9536_v6  ;;  %v860_v50 = vld [vmem:[%s10786_s22 + $0xf78] sm:$0xff] }
 0x3c0   : > { %7712 = vmatprep.subr.bf16.mxu1 %v9529_v53  ;;  %v9609_v44 = vcombine.high %v856_v48, %v860_v50  ;;  %v720_v6 = vld [vmem:[%s10786_s22 + $0xb18] sm:$0xff]  ;;  %v9608_v55 = vcombine.low %v856_v48, %v860_v50 }
 0x3c1   : > { %7672 = vmatpush1.bf16.msra.mxu0 %v9400_v59  ;;  %v724_v32 = vld [vmem:[%s10786_s22 + $0xb38] sm:$0xff] }
 0x3c2   : > { %7673 = vmatprep.subr.bf16.mxu0 %v9393_v42  ;;  %v848_v53 = vld [vmem:[%s10786_s22 + $0xf18] sm:$0xff]  ;;  %v9473_v13 = vcombine.high %v720_v6, %v724_v32  ;;  %v9472_v0 = vcombine.low %v720_v6, %v724_v32 }
 0x3c3   : > { %7713 = vmatpush1.bf16.msra.mxu1 %v9528_v56  ;;  %v9601_v59 = vcombine.high %v848_v53, %v852_v54  ;;  %v712_v56 = vld [vmem:[%s10786_s22 + $0xad8] sm:$0xff]  ;;  %v9600_v2 = vcombine.low %v848_v53, %v852_v54 }
 0x3c4   : > { %7714 = vmatprep.subr.bf16.mxu1 %v9521_v60  ;;  %v716_v42 = vld [vmem:[%s10786_s22 + $0xaf8] sm:$0xff] }
 0x3c5   : > { %7674 = vmatpush1.bf16.msra.mxu0 %v9392_v9  ;;  %v840_v60 = vld [vmem:[%s10786_s22 + $0xed8] sm:$0xff]  ;;  %v9465_v4 = vcombine.high %v712_v56, %v716_v42  ;;  %v9464_v35 = vcombine.low %v712_v56, %v716_v42 }
 0x3c6   : > { %7675 = vmatprep.subr.bf16.mxu0 %v9385_v14  ;;  %v844_v39 = vld [vmem:[%s10786_s22 + $0xef8] sm:$0xff] }
 0x3c7   : > { %7715 = vmatpush1.bf16.msra.mxu1 %v9520_v12  ;;  %v9593_v9 = vcombine.high %v840_v60, %v844_v39  ;;  %v704_v12 = vld [vmem:[%s10786_s22 + $0xa98] sm:$0xff]  ;;  %v9592_v62 = vcombine.low %v840_v60, %v844_v39 }
 0x3c8   : > { %7716 = vmatprep.subr.bf16.mxu1 %v9513_v15  ;;  %v708_v14 = vld [vmem:[%s10786_s22 + $0xab8] sm:$0xff] }
 0x3c9   : > { %7676 = vmatpush1.bf16.msra.mxu0 %v9384_v18  ;;  %v832_v15 = vld [vmem:[%s10786_s22 + $0xe98] sm:$0xff]  ;;  %v9457_v17 = vcombine.high %v704_v12, %v708_v14  ;;  %v9456_v8 = vcombine.low %v704_v12, %v708_v14 }
 0x3ca   : > { %7677 = vmatprep.subr.bf16.mxu0 %v9377_v11  ;;  %v836_v16 = vld [vmem:[%s10786_s22 + $0xeb8] sm:$0xff] }
 0x3cb   : > { %7717 = vmatpush1.bf16.msra.mxu1 %v9512_v20  ;;  %v9585_v18 = vcombine.high %v832_v15, %v836_v16  ;;  %v696_v20 = vld [vmem:[%s10786_s22 + $0xa58] sm:$0xff]  ;;  %v9584_v22 = vcombine.low %v832_v15, %v836_v16 }
 0x3cc   : > { %7718 = vmatprep.subr.bf16.mxu1 %v9505_v21  ;;  %v700_v11 = vld [vmem:[%s10786_s22 + $0xa78] sm:$0xff] }
 0x3cd   : > { %7678 = vmatpush1.bf16.msra.mxu0 %v9376_v1  ;;  %v824_v21 = vld [vmem:[%s10786_s22 + $0xe58] sm:$0xff]  ;;  %v9449_v3 = vcombine.high %v696_v20, %v700_v11  ;;  %v9448_v7 = vcombine.low %v696_v20, %v700_v11 }
 0x3ce   : > { %7679 = vmatprep.subr.bf16.mxu0 %v9497_v24  ;;  %v828_v19 = vld [vmem:[%s10786_s22 + $0xe78] sm:$0xff] }
 0x3cf   : > { %7719 = vmatpush1.bf16.msra.mxu1 %v9504_v25  ;;  %v9577_v1 = vcombine.high %v824_v21, %v828_v19  ;;  %v688_v25 = vld [vmem:[%s10786_s22 + $0xa18] sm:$0xff]  ;;  %v9576_v28 = vcombine.low %v824_v21, %v828_v19 }
 0x3d0   : > { %7720 = vmatprep.subr.bf16.mxu1 %v9625_v26  ;;  %v692_v24 = vld [vmem:[%s10786_s22 + $0xa38] sm:$0xff] }
 0x3d1   : > { %7680 = vmatpush2.bf16.msra.mxu0 %v9496_v31  ;;  %v816_v26 = vld [vmem:[%s10786_s22 + $0xe18] sm:$0xff]  ;;  %v9441_v29 = vcombine.high %v688_v25, %v692_v24  ;;  %v9440_v40 = vcombine.low %v688_v25, %v692_v24 }
 0x3d2   : > { %7681 = vmatprep.subr.bf16.mxu0 %v9489_v38  ;;  %v820_v27 = vld [vmem:[%s10786_s22 + $0xe38] sm:$0xff] }
 0x3d3   : > { %7721 = vmatpush2.bf16.msra.mxu1 %v9624_v36  ;;  %v9569_v31 = vcombine.high %v816_v26, %v820_v27  ;;  %v936_v36 = vld [vmem:[%s10786_s22 + $0x11d8] sm:$0xff]  ;;  %v9568_v48 = vcombine.low %v816_v26, %v820_v27 }
 0x3d4   : > { %7722 = vmatprep.subr.bf16.mxu1 %v9617_v41  ;;  %v940_v38 = vld [vmem:[%s10786_s22 + $0x11f8] sm:$0xff] }
 0x3d5   : > { %7682 = vmatpush2.bf16.msra.mxu0 %v9488_v43  ;;  %v1064_v41 = vld [vmem:[%s10786_s22 + $0x15d8] sm:$0xff]  ;;  %v9689_v50 = vcombine.high %v936_v36, %v940_v38  ;;  %v9688_v32 = vcombine.low %v936_v36, %v940_v38 }
 0x3d6   : > { %7683 = vmatprep.subr.bf16.mxu0 %v9481_v52  ;;  %v1068_v45 = vld [vmem:[%s10786_s22 + $0x15f8] sm:$0xff] }
 0x3d7   : > { %7723 = vmatpush2.bf16.msra.mxu1 %v9616_v51  ;;  %v9817_v43 = vcombine.high %v1064_v41, %v1068_v45  ;;  %v928_v51 = vld [vmem:[%s10786_s22 + $0x1198] sm:$0xff]  ;;  %v9816_v53 = vcombine.low %v1064_v41, %v1068_v45 }
 0x3d8   : > { %7724 = vmatprep.subr.bf16.mxu1 %v9609_v44  ;;  %v932_v52 = vld [vmem:[%s10786_s22 + $0x11b8] sm:$0xff] }
 0x3d9   : > { %7684 = vmatpush2.bf16.msra.mxu0 %v9480_v57  ;;  %v1056_v44 = vld [vmem:[%s10786_s22 + $0x1598] sm:$0xff]  ;;  %v9681_v54 = vcombine.high %v928_v51, %v932_v52  ;;  %v9680_v39 = vcombine.low %v928_v51, %v932_v52 }
 0x3da   : > { %7685 = vmatprep.subr.bf16.mxu0 %v9473_v13  ;;  %v1060_v6 = vld [vmem:[%s10786_s22 + $0x15b8] sm:$0xff] }
 0x3db   : > { %7725 = vmatpush2.bf16.msra.mxu1 %v9608_v55  ;;  %v9809_v57 = vcombine.high %v1056_v44, %v1060_v6  ;;  %v920_v55 = vld [vmem:[%s10786_s22 + $0x1158] sm:$0xff] }
 0x3dc   : > { %7726 = vmatprep.subr.bf16.mxu1 %v9601_v59  ;;  %v924_v13 = vld [vmem:[%s10786_s22 + $0x1178] sm:$0xff] }
 0x3dd   : > { %7686 = vmatpush2.bf16.msra.mxu0 %v9472_v0  ;;  %v1048_v56 = vld [vmem:[%s10786_s22 + $0x1558] sm:$0xff] }
 0x3de   : > { %7687 = vmatprep.subr.bf16.mxu0 %v9465_v4  ;;  %v1052_v42 = vld [vmem:[%s10786_s22 + $0x1578] sm:$0xff]  ;;  %v9673_v4 = vcombine.high %v920_v55, %v924_v13 }
 0x3df   : > { %7727 = vmatpush2.bf16.msra.mxu1 %v9600_v2  ;;  %v9808_v2 = vcombine.low %v1056_v44, %v1060_v6  ;;  %v912_v12 = vld [vmem:[%s10786_s22 + $0x1118] sm:$0xff] }
 0x3e0   : > { %7728 = vmatprep.subr.bf16.mxu1 %v9593_v9  ;;  %v916_v14 = vld [vmem:[%s10786_s22 + $0x1138] sm:$0xff] }
 0x3e1   : > { %7688 = vmatpush2.bf16.msra.mxu0 %v9464_v35  ;;  %v1044_v16 = vld [vmem:[%s10786_s22 + $0x1538] sm:$0xff]  ;;  %v9665_v20 = vcombine.high %v912_v12, %v916_v14 }
 0x3e2   : > { %7689 = vmatprep.subr.bf16.mxu0 %v9457_v17  ;;  %v904_v21 = vld [vmem:[%s10786_s22 + $0x10d8] sm:$0xff] }
 0x3e3   : > { %7729 = vmatpush2.bf16.msra.mxu1 %v9592_v62  ;;  %v9672_v62 = vcombine.low %v920_v55, %v924_v13  ;;  %v908_v19 = vld [vmem:[%s10786_s22 + $0x10f8] sm:$0xff] }
 0x3e4   : > { %7730 = vmatprep.subr.bf16.mxu1 %v9585_v18  ;;  %v9800_v18 = vcombine.low %v1048_v56, %v1052_v42  ;;  %v896_v24 = vld [vmem:[%s10786_s22 + $0x1098] sm:$0xff] }
 0x3e5   : > { %7690 = vmatpush2.bf16.msra.mxu0 %v9456_v8  ;;  %v1032_v8 = vld [vmem:[%s10786_s22 + $0x14d8] sm:$0xff] }
 0x3e6   : > { %7691 = vmatprep.subr.bf16.mxu0 %v9449_v3  ;;  %v900_v26 = vld [vmem:[%s10786_s22 + $0x10b8] sm:$0xff] }
 0x3e7   : > { %7731 = vmatpush2.bf16.msra.mxu1 %v9584_v22  ;;  %v1036_v22 = vld [vmem:[%s10786_s22 + $0x14f8] sm:$0xff] }
 0x3e8   : > { %7732 = vmatprep.subr.bf16.mxu1 %v9577_v1  ;;  %v9657_v1 = vcombine.high %v904_v21, %v908_v19  ;;  %v9785_v25 = vcombine.high %v1032_v8, %v1036_v22  ;;  %v1024_v27 = vld [vmem:[%s10786_s22 + $0x1498] sm:$0xff] }
 0x3e9   : > { %7692 = vmatpush2.bf16.msra.mxu0 %v9448_v7  ;;  %v1028_v7 = vld [vmem:[%s10786_s22 + $0x14b8] sm:$0xff] }
 0x3ea   : > { %7693 = vmatprep.subr.bf16.mxu0 %v9441_v29  ;;  %v9784_v29 = vcombine.low %v1032_v8, %v1036_v22  ;;  %v9777_v36 = vcombine.high %v1024_v27, %v1028_v7  ;;  %v888_v38 = vld [vmem:[%s10786_s22 + $0x1058] sm:$0xff] }
 0x3eb   : > { %7733 = vmatpush2.bf16.msra.mxu1 %v9576_v28  ;;  %v9656_v28 = vcombine.low %v904_v21, %v908_v19  ;;  %v892_v41 = vld [vmem:[%s10786_s22 + $0x1078] sm:$0xff] }
 0x3ec   : > { %7734 = vmatprep.subr.bf16.mxu1 %v9569_v31  ;;  %v9649_v31 = vcombine.high %v896_v24, %v900_v26  ;;  %v1016_v45 = vld [vmem:[%s10786_s22 + $0x1458] sm:$0xff] }
 0x3ed   : > { %7694 = vmatpush2.bf16.msra.mxu0 %v9440_v40  ;;  %v1020_v40 = vld [vmem:[%s10786_s22 + $0x1478] sm:$0xff] }
 0x3ee   : > { %7745 = vmatprep.subr.bf16.mxu0 %v9689_v50  ;;  %v9776_v50 = vcombine.low %v1024_v27, %v1028_v7  ;;  %v9769_v51 = vcombine.high %v1016_v45, %v1020_v40  ;;  %v880_v52 = vld [vmem:[%s10786_s22 + $0x1018] sm:$0xff] }
 0x3ef   : > { %7735 = vmatpush2.bf16.msra.mxu1 %v9568_v48  ;;  %v9648_v48 = vcombine.low %v896_v24, %v900_v26  ;;  %v884_v44 = vld [vmem:[%s10786_s22 + $0x1038] sm:$0xff] }
 0x3f0   : > { %7786 = vmatprep.subr.bf16.mxu1 %v9817_v43  ;;  %v11891_v59 = vpop.f32.mrf.mxu0  ;;  %7696 = vmatmul.mubr.bf16.vlgmr.msra.gmra.mxu0 %v10902_v30  ;;  %v9801_v30 = vcombine.high %v1048_v56, %v1052_v42  ;;  %v9641_v43 = vcombine.high %v888_v38, %v892_v41  ;;  %v1008_v6 = vld [vmem:[%s10786_s22 + $0x1418] sm:$0xff] }
 0x3f1   : > { %7746 = vmatpush1.bf16.msra.mxu0 %v9688_v32  ;;  %7777 = vmatprep.mubr.bf16.mxu0 %v10996_v5  ;;  %v1012_v32 = vld [vmem:[%s10786_s22 + $0x1438] sm:$0xff] }
 0x3f2   : > { %v11896_v60 = vpop.f32.mrf.mxu1  ;;  %7737 = vmatmul.mubr.bf16.vlgmr.msra.gmra.mxu1 %v10907_v33  ;;  %v11899_v0 = vpop.f32.mrf.mxu0  ;;  %7747 = vmatprep.subr.bf16.mxu0 %v9681_v54  ;;  %v1040_v33 = vld [vmem:[%s10786_s22 + $0x1518] sm:$0xff]  ;;  %v9768_v54 = vcombine.low %v1016_v45, %v1020_v40  ;;  %v9761_v55 = vcombine.high %v1008_v6, %v1012_v32 }
 0x3f3   : > { %7787 = vmatpush1.bf16.msra.mxu1 %v9816_v53  ;;  %7818 = vmatprep.mubr.bf16.mxu1 %v11003_v10  ;;  %v9793_v5 = vcombine.high %v1040_v33, %v1044_v16  ;;  %v9664_v10 = vcombine.low %v912_v12, %v916_v14  ;;  %v9792_v3 = vcombine.low %v1040_v33, %v1044_v16  ;;  %v1000_v13 = vld [vmem:[%s10786_s22 + $0x13d8] sm:$0xff] }
 0x3f4   : > { %v11901_v9 = vpop.f32.mrf.mxu1  ;;  %7788 = vmatprep.subr.bf16.mxu1 %v9809_v57  ;;  %v7455_v15 = vpop.f32.mrf.mxu0  ;;  %v9640_v53 = vcombine.low %v888_v38, %v892_v41  ;;  %v9633_v57 = vcombine.high %v880_v52, %v884_v44  ;;  %v1004_v56 = vld [vmem:[%s10786_s22 + $0x13f8] sm:$0xff] }
 0x3f5   : > { %7748 = vmatpush1.bf16.msra.mxu0 %v9680_v39  ;;  %v1128_v42 = vld [vmem:[%s10786_s22 + $0x17d8] sm:$0xff] }
 0x3f6   : > { %v7496_v35 = vpop.f32.mrf.mxu1  ;;  %v7456_v17 = vpop.f32.mrf.mxu0  ;;  %7749 = vmatprep.subr.bf16.mxu0 %v9673_v4  ;;  %v1132_v39 = vld [vmem:[%s10786_s22 + $0x17f8] sm:$0xff]  ;;  %v9760_v4 = vcombine.low %v1008_v6, %v1012_v32 }
 0x3f7   : > { %7789 = vmatpush1.bf16.msra.mxu1 %v9808_v2  ;;  %v9632_v2 = vcombine.low %v880_v52, %v884_v44  ;;  %v9881_v12 = vcombine.high %v1128_v42, %v1132_v39  ;;  %v992_v14 = vld [vmem:[%s10786_s22 + $0x1398] sm:$0xff]  ;;  %v9752_v35 = vcombine.low %v1000_v13, %v1004_v56 }
 0x3f8   : > { %v7497_v11 = vpop.f32.mrf.mxu1  ;;  %7790 = vmatprep.subr.bf16.mxu1 %v9801_v30  ;;  %v9753_v30 = vcombine.high %v1000_v13, %v1004_v56  ;;  %v996_v15 = vld [vmem:[%s10786_s22 + $0x13b8] sm:$0xff] }
 0x3f9   : > { %7750 = vmatpush1.bf16.msra.mxu0 %v9672_v62  ;;  %v1120_v33 = vld [vmem:[%s10786_s22 + $0x1798] sm:$0xff]  ;;  %v9880_v62 = vcombine.low %v1128_v42, %v1132_v39  ;;  %v9745_v17 = vcombine.high %v992_v14, %v996_v15  ;;  %v9744_v19 = vcombine.low %v992_v14, %v996_v15 }
 0x3fa   : > { %7751 = vmatprep.subr.bf16.mxu0 %v9665_v20  ;;  %v1124_v16 = vld [vmem:[%s10786_s22 + $0x17b8] sm:$0xff] }
 0x3fb   : > { %7791 = vmatpush1.bf16.msra.mxu1 %v9800_v18  ;;  %v9873_v18 = vcombine.high %v1120_v33, %v1124_v16  ;;  %v984_v20 = vld [vmem:[%s10786_s22 + $0x1358] sm:$0xff]  ;;  %v9872_v8 = vcombine.low %v1120_v33, %v1124_v16 }
 0x3fc   : > { %7792 = vmatprep.subr.bf16.mxu1 %v9793_v5  ;;  %v988_v11 = vld [vmem:[%s10786_s22 + $0x1378] sm:$0xff] }
 0x3fd   : > { %7752 = vmatpush1.bf16.msra.mxu0 %v9664_v10  ;;  %v1112_v5 = vld [vmem:[%s10786_s22 + $0x1758] sm:$0xff]  ;;  %v9737_v22 = vcombine.high %v984_v20, %v988_v11  ;;  %v9736_v26 = vcombine.low %v984_v20, %v988_v11 }
 0x3fe   : > { %7753 = vmatprep.subr.bf16.mxu0 %v9657_v1  ;;  %v1116_v21 = vld [vmem:[%s10786_s22 + $0x1778] sm:$0xff] }
 0x3ff   : > { %7793 = vmatpush1.bf16.msra.mxu1 %v9792_v3  ;;  %v9865_v10 = vcombine.high %v1112_v5, %v1116_v21  ;;  %v976_v3 = vld [vmem:[%s10786_s22 + $0x1318] sm:$0xff]  ;;  %v9864_v27 = vcombine.low %v1112_v5, %v1116_v21 }
 0x400   : > { %7794 = vmatprep.subr.bf16.mxu1 %v9785_v25  ;;  %v980_v1 = vld [vmem:[%s10786_s22 + $0x1338] sm:$0xff] }
 0x401   : > { %7754 = vmatpush1.bf16.msra.mxu0 %v9656_v28  ;;  %v1104_v25 = vld [vmem:[%s10786_s22 + $0x1718] sm:$0xff]  ;;  %v9729_v7 = vcombine.high %v976_v3, %v980_v1  ;;  %v9728_v41 = vcombine.low %v976_v3, %v980_v1 }
 0x402   : > { %7755 = vmatprep.subr.bf16.mxu0 %v9649_v31  ;;  %v1108_v24 = vld [vmem:[%s10786_s22 + $0x1738] sm:$0xff] }
 0x403   : > { %7795 = vmatpush1.bf16.msra.mxu1 %v9784_v29  ;;  %v9857_v28 = vcombine.high %v1104_v25, %v1108_v24  ;;  %v968_v29 = vld [vmem:[%s10786_s22 + $0x12d8] sm:$0xff]  ;;  %v9856_v45 = vcombine.low %v1104_v25, %v1108_v24  ;;  %v7454_v25 = vadd.f32 %v11899_v0, %v11831_v63 }
 0x404   : > { %7796 = vmatprep.subr.bf16.mxu1 %v9777_v36  ;;  %v972_v31 = vld [vmem:[%s10786_s22 + $0x12f8] sm:$0xff] }
 0x405   : > { %7756 = vmatpush1.bf16.msra.mxu0 %v9648_v48  ;;  %v1096_v36 = vld [vmem:[%s10786_s22 + $0x16d8] sm:$0xff]  ;;  %v9721_v40 = vcombine.high %v968_v29, %v972_v31  ;;  %v9720_v44 = vcombine.low %v968_v29, %v972_v31  ;;  %v7495_v63 = vadd.f32 %v11901_v9, %v7454_v25 }
 0x406   : > { %7757 = vmatprep.subr.bf16.mxu0 %v9641_v43  ;;  %v1100_v38 = vld [vmem:[%s10786_s22 + $0x16f8] sm:$0xff] }
 0x407   : > { %7797 = vmatpush1.bf16.msra.mxu1 %v9776_v50  ;;  %v9849_v48 = vcombine.high %v1096_v36, %v1100_v38  ;;  %v960_v50 = vld [vmem:[%s10786_s22 + $0x1298] sm:$0xff]  ;;  %v9848_v6 = vcombine.low %v1096_v36, %v1100_v38 }
 0x408   : > { %7798 = vmatprep.subr.bf16.mxu1 %v9769_v51  ;;  %v964_v43 = vld [vmem:[%s10786_s22 + $0x12b8] sm:$0xff] }
 0x409   : > { %7758 = vmatpush1.bf16.msra.mxu0 %v9640_v53  ;;  %v1088_v51 = vld [vmem:[%s10786_s22 + $0x1698] sm:$0xff]  ;;  %v9713_v32 = vcombine.high %v960_v50, %v964_v43  ;;  %v9712_v56 = vcombine.low %v960_v50, %v964_v43 }
 0x40a   : > { %7759 = vmatprep.subr.bf16.mxu0 %v9633_v57  ;;  %v1092_v52 = vld [vmem:[%s10786_s22 + $0x16b8] sm:$0xff] }
 0x40b   : > { %7799 = vmatpush1.bf16.msra.mxu1 %v9768_v54  ;;  %v9841_v53 = vcombine.high %v1088_v51, %v1092_v52  ;;  %v952_v54 = vld [vmem:[%s10786_s22 + $0x1258] sm:$0xff]  ;;  %v9840_v42 = vcombine.low %v1088_v51, %v1092_v52 }
 0x40c   : > { %7800 = vmatprep.subr.bf16.mxu1 %v9761_v55  ;;  %v956_v57 = vld [vmem:[%s10786_s22 + $0x1278] sm:$0xff] }
 0x40d   : > { %7760 = vmatpush1.bf16.msra.mxu0 %v9632_v2  ;;  %v1080_v55 = vld [vmem:[%s10786_s22 + $0x1658] sm:$0xff]  ;;  %v9705_v39 = vcombine.high %v952_v54, %v956_v57  ;;  %v9704_v15 = vcombine.low %v952_v54, %v956_v57 }
 0x40e   : > { %7761 = vmatprep.subr.bf16.mxu0 %v9753_v30  ;;  %v1084_v13 = vld [vmem:[%s10786_s22 + $0x1678] sm:$0xff] }
 0x40f   : > { %7801 = vmatpush1.bf16.msra.mxu1 %v9760_v4  ;;  %v9833_v2 = vcombine.high %v1080_v55, %v1084_v13  ;;  %v944_v4 = vld [vmem:[%s10786_s22 + $0x1218] sm:$0xff]  ;;  %v9832_v33 = vcombine.low %v1080_v55, %v1084_v13 }
 0x410   : > { %7802 = vmatprep.subr.bf16.mxu1 %v9881_v12  ;;  %v948_v30 = vld [vmem:[%s10786_s22 + $0x1238] sm:$0xff] }
 0x411   : > { %7762 = vmatpush2.bf16.msra.mxu0 %v9752_v35  ;;  %v1072_v12 = vld [vmem:[%s10786_s22 + $0x1618] sm:$0xff]  ;;  %v9697_v16 = vcombine.high %v944_v4, %v948_v30  ;;  %v9696_v11 = vcombine.low %v944_v4, %v948_v30 }
 0x412   : > { %7763 = vmatprep.subr.bf16.mxu0 %v9745_v17  ;;  %v1076_v14 = vld [vmem:[%s10786_s22 + $0x1638] sm:$0xff] }
 0x413   : > { %7803 = vmatpush2.bf16.msra.mxu1 %v9880_v62  ;;  %v9825_v35 = vcombine.high %v1072_v12, %v1076_v14  ;;  %v1192_v62 = vld [vmem:[%s10786_s22 + $0x19d8] sm:$0xff]  ;;  %v9824_v5 = vcombine.low %v1072_v12, %v1076_v14 }
 0x414   : > { %7804 = vmatprep.subr.bf16.mxu1 %v9873_v18  ;;  %v1196_v17 = vld [vmem:[%s10786_s22 + $0x19f8] sm:$0xff] }
 0x415   : > { %7764 = vmatpush2.bf16.msra.mxu0 %v9744_v19  ;;  %v1320_v18 = vld [vmem:[%s10786_s22 + $0x1dd8] sm:$0xff]  ;;  %v9945_v21 = vcombine.high %v1192_v62, %v1196_v17  ;;  %v7452_v19 = vadd.f32 %v11891_v59, %v11822_v23  ;;  %v9944_v24 = vcombine.low %v1192_v62, %v1196_v17 }
 0x416   : > { %7765 = vmatprep.subr.bf16.mxu0 %v9737_v22  ;;  %v1324_v20 = vld [vmem:[%s10786_s22 + $0x1df8] sm:$0xff] }
 0x417   : > { %7805 = vmatpush2.bf16.msra.mxu1 %v9872_v8  ;;  %v10073_v8 = vcombine.high %v1320_v18, %v1324_v20  ;;  %v1184_v22 = vld [vmem:[%s10786_s22 + $0x1998] sm:$0xff]  ;;  %v7493_v23 = vadd.f32 %v11896_v60, %v7452_v19 }
 0x418   : > { %7806 = vmatprep.subr.bf16.mxu1 %v9865_v10  ;;  %v1188_v10 = vld [vmem:[%s10786_s22 + $0x19b8] sm:$0xff] }
 0x419   : > { %7766 = vmatpush2.bf16.msra.mxu0 %v9736_v26  ;;  %v1312_v3 = vld [vmem:[%s10786_s22 + $0x1d98] sm:$0xff]  ;;  %v10072_v26 = vcombine.low %v1320_v18, %v1324_v20  ;;  %v9936_v60 = vcombine.low %v1184_v22, %v1188_v10 }
 0x41a   : > { %7767 = vmatprep.subr.bf16.mxu0 %v9729_v7  ;;  %v1316_v1 = vld [vmem:[%s10786_s22 + $0x1db8] sm:$0xff] }
 0x41b   : > { %7807 = vmatpush2.bf16.msra.mxu1 %v9864_v27  ;;  %v9937_v27 = vcombine.high %v1184_v22, %v1188_v10  ;;  %v10065_v59 = vcombine.high %v1312_v3, %v1316_v1  ;;  %v1176_v7 = vld [vmem:[%s10786_s22 + $0x1958] sm:$0xff] }
 0x41c   : > { %7808 = vmatprep.subr.bf16.mxu1 %v9857_v28  ;;  %v1180_v28 = vld [vmem:[%s10786_s22 + $0x1978] sm:$0xff] }
 0x41d   : > { %7768 = vmatpush2.bf16.msra.mxu0 %v9728_v41  ;;  %v1304_v31 = vld [vmem:[%s10786_s22 + $0x1d58] sm:$0xff] }
 0x41e   : > { %7769 = vmatprep.subr.bf16.mxu0 %v9721_v40  ;;  %v1308_v36 = vld [vmem:[%s10786_s22 + $0x1d78] sm:$0xff]  ;;  %v9929_v40 = vcombine.high %v1176_v7, %v1180_v28 }
 0x41f   : > { %7809 = vmatpush2.bf16.msra.mxu1 %v9856_v45  ;;  %v10064_v45 = vcombine.low %v1312_v3, %v1316_v1  ;;  %v10057_v50 = vcombine.high %v1304_v31, %v1308_v36  ;;  %v1168_v43 = vld [vmem:[%s10786_s22 + $0x1918] sm:$0xff]  ;;  %v10056_v55 = vcombine.low %v1304_v31, %v1308_v36 }
 0x420   : > { %7810 = vmatprep.subr.bf16.mxu1 %v9849_v48  ;;  %v1172_v9 = vld [vmem:[%s10786_s22 + $0x1938] sm:$0xff] }
 0x421   : > { %7770 = vmatpush2.bf16.msra.mxu0 %v9720_v44  ;;  %v1296_v52 = vld [vmem:[%s10786_s22 + $0x1d18] sm:$0xff]  ;;  %v9920_v12 = vcombine.low %v1168_v43, %v1172_v9 }
 0x422   : > { %7771 = vmatprep.subr.bf16.mxu0 %v9713_v32  ;;  %v359_v54 = vld [vmem:[#allocation2 + $0x18] sm:$0xff] }
 0x423   : > { %7811 = vmatpush2.bf16.msra.mxu1 %v9848_v6  ;;  %v1292_v4 = vld [vmem:[%s10786_s22 + $0x1cf8] sm:$0xff] }
 0x424   : > { %7812 = vmatprep.subr.bf16.mxu1 %v9841_v53  ;;  %v9928_v53 = vcombine.low %v1176_v7, %v1180_v28  ;;  %v1280_v62 = vld [vmem:[%s10786_s22 + $0x1c98] sm:$0xff] }
 0x425   : > { %7772 = vmatpush2.bf16.msra.mxu0 %v9712_v56  ;;  %v1284_v17 = vld [vmem:[%s10786_s22 + $0x1cb8] sm:$0xff] }
 0x426   : > { %7773 = vmatprep.subr.bf16.mxu0 %v9705_v39  ;;  %v1164_v39 = vld [vmem:[%s10786_s22 + $0x18f8] sm:$0xff]  ;;  %v10032_v3 = vcombine.low %v1280_v62, %v1284_v17 }
 0x427   : > { %7813 = vmatpush2.bf16.msra.mxu1 %v9840_v42  ;;  %v1160_v42 = vld [vmem:[%s10786_s22 + $0x18d8] sm:$0xff] }
 0x428   : > { %7814 = vmatprep.subr.bf16.mxu1 %v9833_v2  ;;  %v1288_v2 = vld [vmem:[%s10786_s22 + $0x1cd8] sm:$0xff]  ;;  %v9912_v18 = vcombine.low %v1160_v42, %v1164_v39 }
 0x429   : > { %7774 = vmatpush2.bf16.msra.mxu0 %v9704_v15  ;;  %v9913_v15 = vcombine.high %v1160_v42, %v1164_v39  ;;  %v10040_v20 = vcombine.low %v1288_v2, %v1292_v4  ;;  %v1148_v19 = vld [vmem:[%s10786_s22 + $0x1878] sm:$0xff] }
 0x42a   : > { %7775 = vmatprep.subr.bf16.mxu0 %v9697_v16  ;;  %v1152_v16 = vld [vmem:[%s10786_s22 + $0x1898] sm:$0xff] }
 0x42b   : > { %7815 = vmatpush2.bf16.msra.mxu1 %v9832_v33  ;;  %v10041_v33 = vcombine.high %v1288_v2, %v1292_v4  ;;  %v1276_v22 = vld [vmem:[%s10786_s22 + $0x1c78] sm:$0xff] }
 0x42c   : > { %7816 = vmatprep.subr.bf16.mxu1 %v9825_v35  ;;  %v1156_v35 = vld [vmem:[%s10786_s22 + $0x18b8] sm:$0xff] }
 0x42d   : > { %7776 = vmatpush2.bf16.msra.mxu0 %v9696_v11  ;;  %v9905_v11 = vcombine.high %v1152_v16, %v1156_v35  ;;  %v9904_v10 = vcombine.low %v1152_v16, %v1156_v35  ;;  %v1256_v31 = vld [vmem:[%s10786_s22 + $0x1bd8] sm:$0xff] }
 0x42e   : > { %7827 = vmatprep.subr.bf16.mxu0 %v9945_v21  ;;  %v1144_v21 = vld [vmem:[%s10786_s22 + $0x1858] sm:$0xff] }
 0x42f   : > { %7817 = vmatpush2.bf16.msra.mxu1 %v9824_v5  ;;  %v10033_v5 = vcombine.high %v1280_v62, %v1284_v17  ;;  %v9897_v1 = vcombine.high %v1144_v21, %v1148_v19  ;;  %v1260_v36 = vld [vmem:[%s10786_s22 + $0x1bf8] sm:$0xff] }
 0x430   : > { %7868 = vmatprep.subr.bf16.mxu1 %v10073_v8  ;;  %v7533_v29 = vpop.f32.mrf.mxu0  ;;  %7778 = vmatmul.mubr.bf16.vlgmr.msra.gmra.mxu0 %v10985_v58  ;;  %v1272_v8 = vld [vmem:[%s10786_s22 + $0x1c58] sm:$0xff] }
 0x431   : > { %v7534_v0 = vadd.f32 %v7533_v29, %v7493_v23  ;;  %7828 = vmatpush1.bf16.msra.mxu0 %v9944_v24  ;;  %7859 = vmatprep.mubr.bf16.mxu0 %v11079_v47  ;;  %v9921_v47 = vcombine.high %v1168_v43, %v1172_v9  ;;  %v10025_v25 = vcombine.high %v1272_v8, %v1276_v22  ;;  %v1136_v24 = vld [vmem:[%s10786_s22 + $0x1818] sm:$0xff] }
 0x432   : > { %v7574_v38 = vpop.f32.mrf.mxu1  ;;  %7819 = vmatmul.mubr.bf16.vlgmr.msra.gmra.mxu1 %v10990_v61  ;;  %v7535_v41 = vpop.f32.mrf.mxu0  ;;  %7829 = vmatprep.subr.bf16.mxu0 %v9937_v27  ;;  %v1300_v61 = vld [vmem:[%s10786_s22 + $0x1d38] sm:$0xff]  ;;  %v10024_v7 = vcombine.low %v1272_v8, %v1276_v22  ;;  %v10008_v43 = vcombine.low %v1256_v31, %v1260_v36 }
 0x433   : > { %7869 = vmatpush1.bf16.msra.mxu1 %v10072_v26  ;;  %v7536_v58 = vadd.f32 %v7535_v41, %v7495_v63  ;;  %7900 = vmatprep.mubr.bf16.mxu1 %v11086_v49  ;;  %v7575_v44 = vadd.f32 %v7574_v38, %v7534_v0  ;;  %v10049_v49 = vcombine.high %v1296_v52, %v1300_v61  ;;  %v1140_v26 = vld [vmem:[%s10786_s22 + $0x1838] sm:$0xff] }
 0x434   : > { %v7576_v48 = vpop.f32.mrf.mxu1  ;;  %7870 = vmatprep.subr.bf16.mxu1 %v10065_v59  ;;  %v7537_v51 = vpop.f32.mrf.mxu0  ;;  %v10048_v14 = vcombine.low %v1296_v52, %v1300_v61  ;;  %v1264_v27 = vld [vmem:[%s10786_s22 + $0x1c18] sm:$0xff]  ;;  %v9896_v59 = vcombine.low %v1144_v21, %v1148_v19  ;;  %v9889_v28 = vcombine.high %v1136_v24, %v1140_v26  ;;  %v9888_v38 = vcombine.low %v1136_v24, %v1140_v26 }
 0x435   : > { %v7577_v6 = vadd.f32 %v7576_v48, %v7536_v58  ;;  %7830 = vmatpush1.bf16.msra.mxu0 %v9936_v60  ;;  %v1268_v23 = vld [vmem:[%s10786_s22 + $0x1c38] sm:$0xff]  ;;  %v10009_v41 = vcombine.high %v1256_v31, %v1260_v36 }
 0x436   : > { %v7578_v32 = vpop.f32.mrf.mxu1  ;;  %v7538_v57 = vpop.f32.mrf.mxu0  ;;  %7831 = vmatprep.subr.bf16.mxu0 %v9929_v40  ;;  %v10017_v29 = vcombine.high %v1264_v27, %v1268_v23  ;;  %v1384_v63 = vld [vmem:[%s10786_s22 + $0x1fd8] sm:$0xff]  ;;  %v10016_v60 = vcombine.low %v1264_v27, %v1268_v23 }
 0x437   : > { %7871 = vmatpush1.bf16.msra.mxu1 %v10064_v45  ;;  %v7919_v13 = vcombine.low %v7575_v44, %v7577_v6  ;;  %v1388_v0 = vld [vmem:[%s10786_s22 + $0x1ff8] sm:$0xff] }
 0x438   : > { %v7579_v56 = vpop.f32.mrf.mxu1  ;;  %7872 = vmatprep.subr.bf16.mxu1 %v10057_v50  ;;  %v10137_v45 = vcombine.high %v1384_v63, %v1388_v0  ;;  %v1248_v40 = vld [vmem:[%s10786_s22 + $0x1b98] sm:$0xff]  ;;  %v10136_v9 = vcombine.low %v1384_v63, %v1388_v0 }
 0x439   : > { %v7927_v30 = vadd.f32 %v7919_v13, %v359_v54  ;;  %7832 = vmatpush1.bf16.msra.mxu0 %v9928_v53  ;;  %v1252_v58 = vld [vmem:[%s10786_s22 + $0x1bb8] sm:$0xff] }
 0x43a   : > { %7833 = vmatprep.subr.bf16.mxu0 %v9921_v47  ;;  %v1376_v48 = vld [vmem:[%s10786_s22 + $0x1f98] sm:$0xff]  ;;  %v10001_v51 = vcombine.high %v1248_v40, %v1252_v58  ;;  %v10000_v53 = vcombine.low %v1248_v40, %v1252_v58 }
 0x43b   : > { %7873 = vmatpush1.bf16.msra.mxu1 %v10056_v55  ;;  %7931 = vst [vmem:[#allocation2 + $0x18] sm:$0xff] %v7927_v30  ;;  %v1380_v50 = vld [vmem:[%s10786_s22 + $0x1fb8] sm:$0xff] }
 0x43c   : > { %7874 = vmatprep.subr.bf16.mxu1 %v10049_v49  ;;  %v10129_v52 = vcombine.high %v1376_v48, %v1380_v50  ;;  %v1240_v61 = vld [vmem:[%s10786_s22 + $0x1b58] sm:$0xff]  ;;  %v10128_v54 = vcombine.low %v1376_v48, %v1380_v50 }
 0x43d   : > { %7834 = vmatpush1.bf16.msra.mxu0 %v9920_v12  ;;  %v1244_v44 = vld [vmem:[%s10786_s22 + $0x1b78] sm:$0xff] }
 0x43e   : > { %7835 = vmatprep.subr.bf16.mxu0 %v9913_v15  ;;  %v1368_v6 = vld [vmem:[%s10786_s22 + $0x1f58] sm:$0xff]  ;;  %v9993_v57 = vcombine.high %v1240_v61, %v1244_v44  ;;  %v9992_v42 = vcombine.low %v1240_v61, %v1244_v44 }
 0x43f   : > { %7875 = vmatpush1.bf16.msra.mxu1 %v10048_v14  ;;  %v1372_v32 = vld [vmem:[%s10786_s22 + $0x1f78] sm:$0xff] }
 0x440   : > { %7876 = vmatprep.subr.bf16.mxu1 %v10041_v33  ;;  %v10121_v55 = vcombine.high %v1368_v6, %v1372_v32  ;;  %v1232_v47 = vld [vmem:[%s10786_s22 + $0x1b18] sm:$0xff]  ;;  %v10120_v39 = vcombine.low %v1368_v6, %v1372_v32 }
 0x441   : > { %7836 = vmatpush1.bf16.msra.mxu0 %v9912_v18  ;;  %v1236_v13 = vld [vmem:[%s10786_s22 + $0x1b38] sm:$0xff] }
 0x442   : > { %7837 = vmatprep.subr.bf16.mxu0 %v9905_v11  ;;  %v1360_v56 = vld [vmem:[%s10786_s22 + $0x1f18] sm:$0xff]  ;;  %v9985_v2 = vcombine.high %v1232_v47, %v1236_v13  ;;  %v9984_v33 = vcombine.low %v1232_v47, %v1236_v13 }
 0x443   : > { %7877 = vmatpush1.bf16.msra.mxu1 %v10040_v20  ;;  %v1364_v49 = vld [vmem:[%s10786_s22 + $0x1f38] sm:$0xff] }
 0x444   : > { %7878 = vmatprep.subr.bf16.mxu1 %v10033_v5  ;;  %v10113_v4 = vcombine.high %v1360_v56, %v1364_v49  ;;  %v1224_v30 = vld [vmem:[%s10786_s22 + $0x1ad8] sm:$0xff]  ;;  %v10112_v16 = vcombine.low %v1360_v56, %v1364_v49 }
 0x445   : > { %7838 = vmatpush1.bf16.msra.mxu0 %v9904_v10  ;;  %v1228_v12 = vld [vmem:[%s10786_s22 + $0x1af8] sm:$0xff] }
 0x446   : > { %7839 = vmatprep.subr.bf16.mxu0 %v9897_v1  ;;  %v1352_v14 = vld [vmem:[%s10786_s22 + $0x1ed8] sm:$0xff]  ;;  %v9977_v35 = vcombine.high %v1224_v30, %v1228_v12  ;;  %v9976_v5 = vcombine.low %v1224_v30, %v1228_v12 }
 0x447   : > { %7879 = vmatpush1.bf16.msra.mxu1 %v10032_v3  ;;  %v1356_v15 = vld [vmem:[%s10786_s22 + $0x1ef8] sm:$0xff] }
 0x448   : > { %7880 = vmatprep.subr.bf16.mxu1 %v10025_v25  ;;  %v10105_v62 = vcombine.high %v1352_v14, %v1356_v15  ;;  %v1216_v17 = vld [vmem:[%s10786_s22 + $0x1a98] sm:$0xff]  ;;  %v10104_v21 = vcombine.low %v1352_v14, %v1356_v15 }
 0x449   : > { %7840 = vmatpush1.bf16.msra.mxu0 %v9896_v59  ;;  %v1220_v18 = vld [vmem:[%s10786_s22 + $0x1ab8] sm:$0xff] }
 0x44a   : > { %7841 = vmatprep.subr.bf16.mxu0 %v9889_v28  ;;  %v1344_v20 = vld [vmem:[%s10786_s22 + $0x1e98] sm:$0xff]  ;;  %v9969_v19 = vcombine.high %v1216_v17, %v1220_v18  ;;  %v9968_v25 = vcombine.low %v1216_v17, %v1220_v18 }
 0x44b   : > { %7881 = vmatpush1.bf16.msra.mxu1 %v10024_v7  ;;  %v1348_v11 = vld [vmem:[%s10786_s22 + $0x1eb8] sm:$0xff] }
 0x44c   : > { %7882 = vmatprep.subr.bf16.mxu1 %v10017_v29  ;;  %v10097_v8 = vcombine.high %v1344_v20, %v1348_v11  ;;  %v1208_v22 = vld [vmem:[%s10786_s22 + $0x1a58] sm:$0xff]  ;;  %v10096_v24 = vcombine.low %v1344_v20, %v1348_v11 }
 0x44d   : > { %7842 = vmatpush1.bf16.msra.mxu0 %v9888_v38  ;;  %v1212_v10 = vld [vmem:[%s10786_s22 + $0x1a78] sm:$0xff] }
 0x44e   : > { %7843 = vmatprep.subr.bf16.mxu0 %v10009_v41  ;;  %v1336_v3 = vld [vmem:[%s10786_s22 + $0x1e58] sm:$0xff]  ;;  %v9961_v26 = vcombine.high %v1208_v22, %v1212_v10  ;;  %v9960_v29 = vcombine.low %v1208_v22, %v1212_v10 }
 0x44f   : > { %7883 = vmatpush1.bf16.msra.mxu1 %v10016_v60  ;;  %v1340_v1 = vld [vmem:[%s10786_s22 + $0x1e78] sm:$0xff] }
 0x450   : > { %7884 = vmatprep.subr.bf16.mxu1 %v10137_v45  ;;  %v10089_v27 = vcombine.high %v1336_v3, %v1340_v1  ;;  %v1200_v23 = vld [vmem:[%s10786_s22 + $0x1a18] sm:$0xff]  ;;  %v10088_v31 = vcombine.low %v1336_v3, %v1340_v1 }
 0x451   : > { %7844 = vmatpush2.bf16.msra.mxu0 %v10008_v43  ;;  %v1204_v59 = vld [vmem:[%s10786_s22 + $0x1a38] sm:$0xff] }
 0x452   : > { %7845 = vmatprep.subr.bf16.mxu0 %v10001_v51  ;;  %v1328_v7 = vld [vmem:[%s10786_s22 + $0x1e18] sm:$0xff]  ;;  %v9953_v36 = vcombine.high %v1200_v23, %v1204_v59  ;;  %v9952_v0 = vcombine.low %v1200_v23, %v1204_v59 }
 0x453   : > { %7885 = vmatpush2.bf16.msra.mxu1 %v10136_v9  ;;  %v1332_v28 = vld [vmem:[%s10786_s22 + $0x1e38] sm:$0xff] }
 0x454   : > { %7886 = vmatprep.subr.bf16.mxu1 %v10129_v52  ;;  %v10081_v63 = vcombine.high %v1328_v7, %v1332_v28  ;;  %v10080_v38 = vcombine.low %v1328_v7, %v1332_v28 }
 0x455   : > { %7846 = vmatpush2.bf16.msra.mxu0 %v10000_v53 }
 0x456   : > { %7847 = vmatprep.subr.bf16.mxu0 %v9993_v57 }
 0x457   : > { %7887 = vmatpush2.bf16.msra.mxu1 %v10128_v54 }
 0x458   : > { %7888 = vmatprep.subr.bf16.mxu1 %v10121_v55 }
 0x459   : > { %7848 = vmatpush2.bf16.msra.mxu0 %v9992_v42 }
 0x45a   : > { %7849 = vmatprep.subr.bf16.mxu0 %v9985_v2 }
 0x45b   : > { %7889 = vmatpush2.bf16.msra.mxu1 %v10120_v39 }
 0x45c   : > { %7890 = vmatprep.subr.bf16.mxu1 %v10113_v4 }
 0x45d   : > { %7850 = vmatpush2.bf16.msra.mxu0 %v9984_v33 }
 0x45e   : > { %7851 = vmatprep.subr.bf16.mxu0 %v9977_v35 }
 0x45f   : > { %7891 = vmatpush2.bf16.msra.mxu1 %v10112_v16 }
 0x460   : > { %7892 = vmatprep.subr.bf16.mxu1 %v10105_v62 }
 0x461   : > { %7852 = vmatpush2.bf16.msra.mxu0 %v9976_v5 }
 0x462   : > { %7853 = vmatprep.subr.bf16.mxu0 %v9969_v19 }
 0x463   : > { %7893 = vmatpush2.bf16.msra.mxu1 %v10104_v21 }
 0x464   : > { %7894 = vmatprep.subr.bf16.mxu1 %v10097_v8  ;;  %v360_v8 = vld [vmem:[#allocation2 + $0x8] sm:$0xff] }
 0x465   : > { %7854 = vmatpush2.bf16.msra.mxu0 %v9968_v25 }
 0x466   : > { %7855 = vmatprep.subr.bf16.mxu0 %v9961_v26 }
 0x467   : > { %7895 = vmatpush2.bf16.msra.mxu1 %v10096_v24 }
 0x468   : > { %7896 = vmatprep.subr.bf16.mxu1 %v10089_v27 }
 0x469   : > { %7856 = vmatpush2.bf16.msra.mxu0 %v9960_v29 }
 0x46a   : > { %7857 = vmatprep.subr.bf16.mxu0 %v9953_v36 }
 0x46b   : > { %7897 = vmatpush2.bf16.msra.mxu1 %v10088_v31 }
 0x46c   : > { %7898 = vmatprep.subr.bf16.mxu1 %v10081_v63 }
 0x46d   : > { %7858 = vmatpush2.bf16.msra.mxu0 %v9952_v0 }
 0x46f   : > { %7899 = vmatpush2.bf16.msra.mxu1 %v10080_v38 }
 0x470   : > { %v7615_v60 = vpop.f32.mrf.mxu0  ;;  %7860 = vmatmul.mubr.bf16.vlgmr.msra.gmra.mxu0 %v11068_v34 }
 0x472   : > { %v7656_v41 = vpop.f32.mrf.mxu1  ;;  %7901 = vmatmul.mubr.bf16.vlgmr.msra.gmra.mxu1 %v11073_v37  ;;  %v7617_v40 = vpop.f32.mrf.mxu0 }
 0x473   : > { %v7657_v45 = vadd.f32 %v7656_v41, %v7615_v60 }
 0x474   : > { %v7658_v58 = vpop.f32.mrf.mxu1  ;;  %v7619_v50 = vpop.f32.mrf.mxu0 }
 0x475   : > { %v7659_v48 = vadd.f32 %v7658_v58, %v7617_v40 }
 0x476   : > { %v7660_v43 = vpop.f32.mrf.mxu1  ;;  %v7620_v9 = vpop.f32.mrf.mxu0 }
 0x478   : > { %v7661_v51 = vpop.f32.mrf.mxu1 }
 0x4b0   : > { %v7697_v52 = vpop.f32.mrf.mxu0 }
 0x4b1   : > { %v7698_v61 = vadd.f32 %v7697_v52, %v7657_v45 }
 0x4b2   : > { %v7738_v44 = vpop.f32.mrf.mxu1  ;;  %v7699_v6 = vpop.f32.mrf.mxu0 }
 0x4b3   : > { %v7739_v32 = vadd.f32 %v7738_v44, %v7698_v61  ;;  %v7700_v53 = vadd.f32 %v7699_v6, %v7659_v48 }
 0x4b4   : > { %v7740_v54 = vpop.f32.mrf.mxu1  ;;  %v7701_v57 = vpop.f32.mrf.mxu0 }
 0x4b5   : > { %v7741_v34 = vadd.f32 %v7740_v54, %v7700_v53 }
 0x4b6   : > { %v7742_v55 = vpop.f32.mrf.mxu1  ;;  %v7702_v47 = vpop.f32.mrf.mxu0 }
 0x4b8   : > { %v7743_v37 = vpop.f32.mrf.mxu1 }
 0x4f0   : > { %v7779_v13 = vpop.f32.mrf.mxu0 }
 0x4f1   : > { %v7780_v12 = vadd.f32 %v7779_v13, %v7739_v32 }
 0x4f2   : > { %v7820_v56 = vpop.f32.mrf.mxu1  ;;  %v7781_v49 = vpop.f32.mrf.mxu0 }
 0x4f3   : > { %v7782_v14 = vadd.f32 %v7781_v49, %v7741_v34  ;;  %v7821_v15 = vadd.f32 %v7820_v56, %v7780_v12 }
 0x4f4   : > { %v7822_v42 = vpop.f32.mrf.mxu1  ;;  %v7783_v39 = vpop.f32.mrf.mxu0 }
 0x4f5   : > { %v7823_v16 = vadd.f32 %v7822_v42, %v7782_v14 }
 0x4f6   : > { %v7824_v2 = vpop.f32.mrf.mxu1  ;;  %v7784_v4 = vpop.f32.mrf.mxu0 }
 0x4f8   : > { %v7825_v30 = vpop.f32.mrf.mxu1 }
 0x530   : > { %v7861_v33 = vpop.f32.mrf.mxu0 }
 0x531   : > { %v7862_v35 = vadd.f32 %v7861_v33, %v7821_v15 }
 0x532   : > { %v7902_v62 = vpop.f32.mrf.mxu1  ;;  %v7863_v17 = vpop.f32.mrf.mxu0 }
 0x533   : > { %v7864_v18 = vadd.f32 %v7863_v17, %v7823_v16  ;;  %v7903_v5 = vadd.f32 %v7902_v62, %v7862_v35 }
 0x534   : > { %v7904_v20 = vpop.f32.mrf.mxu1  ;;  %v7865_v11 = vpop.f32.mrf.mxu0 }
 0x535   : > { %v7905_v21 = vadd.f32 %v7904_v20, %v7864_v18 }
 0x536   : > { %v7906_v19 = vpop.f32.mrf.mxu1  ;;  %v7866_v22 = vpop.f32.mrf.mxu0 }
 0x537   : > { %v7920_v10 = vcombine.low %v7903_v5, %v7905_v21  ;;  %7936 = sbr.rel (%p10138_p2) target bundleno = 1704 (0x6a8), region = 72 }
 0x538   : > { %v7907_v3 = vpop.f32.mrf.mxu1 }
 0x539   : > { %v7928_v1 = vadd.f32 %v7920_v10, %v360_v8 }
 0x53b   : > { %7932 = vst [vmem:[#allocation2 + $0x8] sm:$0xff] %v7928_v1 }
 0x53c   : > { %v10374_v25 = vld [vmem:[%s12375_s5 + $0x78] sm:$0xff]   ;;  %v10378_v23 = vld [vmem:[%s12375_s5 + $0x70] sm:$0xff]   ;;  %v10382_v29 = vld [vmem:[%s12375_s5 + $0x68] sm:$0xff]   ;;  %v12119_v32 = vsub.s32 0, %v10830_v46  ;;  %v12125_v54 = vsub.s32 1, %v10830_v46  ;;  %v12131_v34 = vsub.s32 2, %v10830_v46 }
 0x53d   : > { %v10375_v24 = vld [vmem:[%s12375_s5 + $0xf8] sm:$0xff]   ;;  %10208 = vmatprep.subr.bf16.mxu0 %v10374_v25  ;;  %v10379_v59 = vld [vmem:[%s12375_s5 + $0xf0] sm:$0xff]   ;;  %v10383_v31 = vld [vmem:[%s12375_s5 + $0xe8] sm:$0xff]   ;;  %v12137_v47 = vsub.s32 3, %v10830_v46  ;;  %vm7999_vm0 = vcmask 1043456   ;;  %v12165_v11 = vsub.s32 4, %v10830_v46 }
 0x53e   : > { %v10376_v26 = vld [vmem:[%s12375_s5 + $0x38] sm:$0xff]   ;;  %10230 = vmatprep.subr.bf16.mxu1 %v10375_v24  ;;  %v10380_v7 = vld [vmem:[%s12375_s5 + $0x30] sm:$0xff]   ;;  %v10384_v36 = vld [vmem:[%s12375_s5 + $0x28] sm:$0xff]   ;;  %v12171_v22 = vsub.s32 5, %v10830_v46  ;;  %v12176_v24 = vsub.s32 6, %v10830_v46  ;;  %vm9014_vm5 = vcmask 3072  }
 0x53f   : > { %v10377_v27 = vld [vmem:[%s12375_s5 + $0xb8] sm:$0xff]   ;;  %10209 = vmatpush3.bf16.msra.mxu0 %v10376_v26  ;;  %v10381_v28 = vld [vmem:[%s12375_s5 + $0xb0] sm:$0xff]   ;;  %v10385_v63 = vld [vmem:[%s12375_s5 + $0xa8] sm:$0xff]  }
 0x540   : > { %10231 = vmatpush3.bf16.msra.mxu1 %v10377_v27  ;;  %10210 = vmatprep.subr.bf16.mxu0 %v10378_v23  ;;  %v10386_v0 = vld [vmem:[%s12375_s5 + $0x60] sm:$0xff]   ;;  %v10390_v45 = vld [vmem:[%s12375_s5 + $0x58] sm:$0xff]   ;;  %v10394_v50 = vld [vmem:[%s12375_s5 + $0x50] sm:$0xff]  }
 0x541   : > { %10232 = vmatprep.subr.bf16.mxu1 %v10379_v59  ;;  %v10387_v38 = vld [vmem:[%s12375_s5 + $0xe0] sm:$0xff]   ;;  %v10391_v40 = vld [vmem:[%s12375_s5 + $0xd8] sm:$0xff]   ;;  %v10395_v43 = vld [vmem:[%s12375_s5 + $0xd0] sm:$0xff]  }
 0x542   : > { %v10388_v60 = vld [vmem:[%s12375_s5 + $0x20] sm:$0xff]   ;;  %v10392_v58 = vld [vmem:[%s12375_s5 + $0x18] sm:$0xff]   ;;  %v10396_v9 = vld [vmem:[%s12375_s5 + $0x10] sm:$0xff]  }
 0x543   : > { %10211 = vmatpush3.bf16.msra.mxu0 %v10380_v7  ;;  %v10389_v41 = vld [vmem:[%s12375_s5 + $0xa0] sm:$0xff]   ;;  %v10393_v48 = vld [vmem:[%s12375_s5 + $0x98] sm:$0xff]   ;;  %v10397_v51 = vld [vmem:[%s12375_s5 + $0x90] sm:$0xff]  }
 0x544   : > { %10233 = vmatpush3.bf16.msra.mxu1 %v10381_v28  ;;  %10212 = vmatprep.subr.bf16.mxu0 %v10382_v29  ;;  %v10398_v52 = vld [vmem:[%s12375_s5 + $0x48] sm:$0xff]   ;;  %v10402_v53 = vld [vmem:[%s12375_s5 + $0x40] sm:$0xff]   ;;  %v7937_v13 = vld [vmem:[#allocation2 + $0x10] sm:$0xff] }
 0x545   : > { %10234 = vmatprep.subr.bf16.mxu1 %v10383_v31  ;;  %v10399_v61 = vld [vmem:[%s12375_s5 + $0xc8] sm:$0xff]   ;;  %v10403_v57 = vld [vmem:[%s12375_s5 + $0xc0] sm:$0xff]   ;;  %v8247_v39 = vld [vmem:[#allocation9] sm:$0xff] }
 0x546   : > { %v10400_v44 = vld [vmem:[%s12375_s5 + $0x8] sm:$0xff]   ;;  %v10404_v55 = vld [vmem:[%s12375_s5] sm:$0xff]   ;;  %v8252_v4 = vrot.slane %v8247_v39, %v12119_v32  ;;  %v8256_v30 = vrot.slane %v8247_v39, %v12125_v54  ;;  %v10406_v15 = vld [vmem:[%s12375_s5 + $0x178] sm:$0xff]   ;;  %v8260_v17 = vrot.slane %v8247_v39, %v12131_v34  ;;  %v8264_v18 = vrot.slane %v8247_v39, %v12137_v47 }
 0x547   : > { %10213 = vmatpush3.bf16.msra.mxu0 %v10384_v36  ;;  %v10401_v6 = vld [vmem:[%s12375_s5 + $0x88] sm:$0xff]   ;;  %v10405_v37 = vld [vmem:[%s12375_s5 + $0x80] sm:$0xff]   ;;  %v10407_v16 = vld [vmem:[%s12375_s5 + $0x1f8] sm:$0xff]   ;;  %v8268_v10 = vrot.slane %v8247_v39, %v12165_v11  ;;  %v8272_v23 = vrot.slane %v8247_v39, %v12171_v22 }
 0x548   : > { %10235 = vmatpush3.bf16.msra.mxu1 %v10385_v63  ;;  %10214 = vmatprep.subr.bf16.mxu0 %v10386_v0  ;;  %v12142_v56 = vld [vmem:[#allocation6] sm:$0xff]  ;;  %v12160_v35 = vcombine.low %v8252_v4, %v8256_v30  ;;  %v12167_v21 = vcombine.low %v8260_v17, %v8264_v18  ;;  %v12184_v63 = vsub.s32 7, %v10830_v46 }
 0x549   : > { %10236 = vmatprep.subr.bf16.mxu1 %v10387_v38  ;;  %v7946_v49 = vrot.slane %v12142_v56, %v12119_v32  ;;  %v7950_v42 = vrot.slane %v12142_v56, %v12125_v54  ;;  %v7938_v2 = vld [vmem:[#allocation2] sm:$0xff]  ;;  %v7954_v12 = vrot.slane %v12142_v56, %v12131_v34  ;;  %v7958_v14 = vrot.slane %v12142_v56, %v12137_v47 }
 0x54a   : > { %v12181_v36 = vcombine.low %v8268_v10, %v8272_v23 }
 0x54b   : > { %10215 = vmatpush3.bf16.msra.mxu0 %v10388_v60  ;;  %v7975_v33 = vcombine.low %v7946_v49, %v7950_v42  ;;  %v7976_v62 = vcombine.low %v7954_v12, %v7958_v14  ;;  %v7962_v14 = vrot.slane %v12142_v56, %v12165_v11 }
 0x54c   : > { %10237 = vmatpush3.bf16.msra.mxu1 %v10389_v41  ;;  %10216 = vmatprep.subr.bf16.mxu0 %v10390_v45  ;;  %v8276_v45 = vrot.slane %v8247_v39, %v12176_v24 }
 0x54d   : > { %10238 = vmatprep.subr.bf16.mxu1 %v10391_v40  ;;  %v7983_v20 = vadd.f32 %v7975_v33, %v7937_v13  ;;  %v7984_v5 = vadd.f32 %v7976_v62, %v7938_v2  ;;  %v8280_v40 = vrot.slane %v8247_v39, %v12184_v63  ;;  %v7974_v62 = vrot.slane %v12142_v56, %v12184_v63 }
 0x54f   : > { %10217 = vmatpush3.bf16.msra.mxu0 %v10392_v58  ;;  %v7991_v19 = vcombine.high %v7983_v20, %v7983_v20  ;;  %v8000_v8 = vsel %vm7999_vm0, %v7983_v20, 0.0  ;;  %v7992_v1 = vcombine.high %v7984_v5, %v7984_v5  ;;  %v8014_v25 = vsel %vm7999_vm0, %v7984_v5, 0.0 }
 0x550   : > { %10239 = vmatpush3.bf16.msra.mxu1 %v10393_v48  ;;  %10218 = vmatprep.subr.bf16.mxu0 %v10394_v50  ;;  %v8001_v3 = vrot.slane %v8000_v8, 4  ;;  %v8015_v27 = vrot.slane %v8014_v25, 4 }
 0x551   : > { %10240 = vmatprep.subr.bf16.mxu1 %v10395_v43  ;;  %v8007_v26 = vsel %vm7999_vm0, %v7991_v19, 0.0  ;;  %v8021_v28 = vsel %vm7999_vm0, %v7992_v1, 0.0 }
 0x552   : > { %v8002_v59 = vadd.f32 %v8001_v3, %v8000_v8  ;;  %v8008_v7 = vrot.slane %v8007_v26, 4  ;;  %v8016_v29 = vadd.f32 %v8015_v27, %v8014_v25  ;;  %v8022_v31 = vrot.slane %v8021_v28, 4 }
 0x553   : > { %10219 = vmatpush3.bf16.msra.mxu0 %v10396_v9  ;;  %v12188_v9 = vcombine.low %v8276_v45, %v8280_v40 }
 0x554   : > { %10241 = vmatpush3.bf16.msra.mxu1 %v10397_v51  ;;  %10220 = vmatprep.subr.bf16.mxu0 %v10398_v52  ;;  %v8003_v0 = vrot.slane %v8002_v59, 2  ;;  %v8009_v38 = vadd.f32 %v8008_v7, %v8007_v26  ;;  %v8017_v60 = vrot.slane %v8016_v29, 2  ;;  %v8023_v41 = vadd.f32 %v8022_v31, %v8021_v28  ;;  %v7939_v7 = vld [vmem:[#allocation2 + $0x18] sm:$0xff] }
 0x555   : > { %10242 = vmatprep.subr.bf16.mxu1 %v10399_v61 }
 0x556   : > { %v8004_v58 = vadd.f32 %v8003_v0, %v8002_v59  ;;  %v8010_v48 = vrot.slane %v8009_v38, 2  ;;  %v8018_v50 = vadd.f32 %v8017_v60, %v8016_v29  ;;  %v8024_v43 = vrot.slane %v8023_v41, 2  ;;  %v7940_v0 = vld [vmem:[#allocation2 + $0x8] sm:$0xff] }
 0x557   : > { %10221 = vmatpush3.bf16.msra.mxu0 %v10400_v44 }
 0x558   : > { %10243 = vmatpush3.bf16.msra.mxu1 %v10401_v6  ;;  %10222 = vmatprep.subr.bf16.mxu0 %v10402_v53  ;;  %v8005_v51 = vrot.slane %v8004_v58, 1  ;;  %v8011_v52 = vadd.f32 %v8010_v48, %v8009_v38  ;;  %v8019_v61 = vrot.slane %v8018_v50, 1  ;;  %v8025_v44 = vadd.f32 %v8024_v43, %v8023_v41 }
 0x559   : > { %10244 = vmatprep.subr.bf16.mxu1 %v10403_v57 }
 0x55a   : > { %v8006_v46 = vadd.f32 %v8005_v51, %v8004_v58  ;;  %v8012_v6 = vrot.slane %v8011_v52, 1  ;;  %v8020_v53 = vadd.f32 %v8019_v61, %v8018_v50  ;;  %v8026_v57 = vrot.slane %v8025_v44, 1 }
 0x55b   : > { %10223 = vmatpush3.bf16.msra.mxu0 %v10404_v55 }
 0x55c   : > { %10245 = vmatpush3.bf16.msra.mxu1 %v10405_v37  ;;  %10252 = vmatprep.subr.bf16.mxu0 %v10406_v15  ;;  %v8013_v55 = vadd.f32 %v8012_v6, %v8011_v52  ;;  %v8057_v37 = vmul.f32 0.25, %v8006_v46  ;;  %v8027_v13 = vadd.f32 %v8026_v57, %v8025_v44  ;;  %v8059_v49 = vmul.f32 0.25, %v8020_v53 }
 0x55d   : > { %10274 = vmatprep.subr.bf16.mxu1 %v10407_v16  ;;  %v7966_v15 = vrot.slane %v12142_v56, %v12171_v22  ;;  %v7970_v16 = vrot.slane %v12142_v56, %v12176_v24 }
 0x55e   : > { %v8058_v42 = vmul.f32 0.25, %v8013_v55  ;;  %v8060_v39 = vmul.f32 0.25, %v8027_v13 }
 0x55f   : > { %v7977_v10 = vcombine.low %v7962_v14, %v7966_v15  ;;  %v7978_v25 = vcombine.low %v7970_v16, %v7974_v62 }
 0x560   : > { %v8073_v2 = vcombine.low %v8057_v37, %v8058_v42  ;;  %v8074_v4 = vcombine.low %v8059_v49, %v8060_v39 }
 0x561   : > { %v12210_v31 = vadd.f32 %v7977_v10, %v7939_v7  ;;  %v12212_v41 = vadd.f32 %v7978_v25, %v7940_v0 }
 0x562   : > { %v12190_v30 = vsub.f32 %v7983_v20, %v8073_v2  ;;  %v12192_v12 = vsub.f32 %v7984_v5, %v8074_v4 }
 0x563   : > { %v7993_v58 = vcombine.high %v12210_v31, %v12210_v31  ;;  %v8028_v48 = vsel %vm7999_vm0, %v12210_v31, 0.0  ;;  %v7994_v52 = vcombine.high %v12212_v41, %v12212_v41  ;;  %v8042_v6 = vsel %vm7999_vm0, %v12212_v41, 0.0 }
 0x564   : > { %v8085_v33 = vmul.f32 %v12190_v30, %v12190_v30  ;;  %v8086_v17 = vmul.f32 %v12192_v12, %v12192_v12  ;;  %v8029_v51 = vrot.slane %v8028_v48, 4  ;;  %v8043_v42 = vrot.slane %v8042_v6, 4 }
 0x565   : > { %v8035_v46 = vsel %vm7999_vm0, %v7993_v58, 0.0  ;;  %v8049_v39 = vsel %vm7999_vm0, %v7994_v52, 0.0 }
 0x566   : > { %v8093_v18 = vcombine.high %v8085_v33, %v8085_v33  ;;  %v8101_v20 = vsel %vm7999_vm0, %v8085_v33, 0.0  ;;  %v8094_v19 = vcombine.high %v8086_v17, %v8086_v17  ;;  %v8115_v8 = vsel %vm7999_vm0, %v8086_v17, 0.0 }
 0x567   : > { %v8102_v5 = vrot.slane %v8101_v20, 4  ;;  %v8116_v1 = vrot.slane %v8115_v8, 4  ;;  %v8030_v55 = vadd.f32 %v8029_v51, %v8028_v48  ;;  %v8036_v37 = vrot.slane %v8035_v46, 4 }
 0x568   : > { %v8108_v3 = vsel %vm7999_vm0, %v8093_v18, 0.0  ;;  %v8122_v23 = vsel %vm7999_vm0, %v8094_v19, 0.0  ;;  %v8044_v62 = vadd.f32 %v8043_v42, %v8042_v6  ;;  %v8050_v17 = vrot.slane %v8049_v39, 4 }
 0x569   : > { %v8103_v26 = vadd.f32 %v8102_v5, %v8101_v20  ;;  %v8109_v27 = vrot.slane %v8108_v3, 4  ;;  %v8117_v56 = vadd.f32 %v8116_v1, %v8115_v8  ;;  %v8123_v59 = vrot.slane %v8122_v23, 4 }
 0x56a   : > { %v8031_v14 = vrot.slane %v8030_v55, 2  ;;  %v8037_v15 = vadd.f32 %v8036_v37, %v8035_v46  ;;  %v8051_v1 = vadd.f32 %v8050_v17, %v8049_v39 }
 0x56b   : > { %v8104_v28 = vrot.slane %v8103_v26, 2  ;;  %v8110_v29 = vadd.f32 %v8109_v27, %v8108_v3  ;;  %v8118_v38 = vrot.slane %v8117_v56, 2  ;;  %v8124_v60 = vadd.f32 %v8123_v59, %v8122_v23 }
 0x56c   : > { %v8032_v5 = vadd.f32 %v8031_v14, %v8030_v55  ;;  %v8038_v19 = vrot.slane %v8037_v15, 2  ;;  %v8045_v3 = vrot.slane %v8044_v62, 2  ;;  %v8052_v7 = vrot.slane %v8051_v1, 2 }
 0x56d   : > { %v8105_v45 = vadd.f32 %v8104_v28, %v8103_v26  ;;  %v8111_v40 = vrot.slane %v8110_v29, 2  ;;  %v8119_v50 = vadd.f32 %v8118_v38, %v8117_v56  ;;  %v8125_v43 = vrot.slane %v8124_v60, 2 }
 0x56e   : > { %v8033_v27 = vrot.slane %v8032_v5, 1  ;;  %v8039_v23 = vadd.f32 %v8038_v19, %v8037_v15  ;;  %v8046_v59 = vadd.f32 %v8045_v3, %v8044_v62 }
 0x56f   : > { %v8106_v61 = vrot.slane %v8105_v45, 1  ;;  %v8112_v44 = vadd.f32 %v8111_v40, %v8110_v29  ;;  %v8120_v53 = vrot.slane %v8119_v50, 1  ;;  %v8126_v57 = vadd.f32 %v8125_v43, %v8124_v60 }
 0x570   : > { %v8034_v29 = vadd.f32 %v8033_v27, %v8032_v5  ;;  %v8040_v0 = vrot.slane %v8039_v23, 1  ;;  %v8047_v38 = vrot.slane %v8046_v59, 1  ;;  %v8053_v60 = vadd.f32 %v8052_v7, %v8051_v1 }
 0x571   : > { %v8107_v13 = vadd.f32 %v8106_v61, %v8105_v45  ;;  %v8113_v49 = vrot.slane %v8112_v44, 1  ;;  %v8121_v2 = vadd.f32 %v8120_v53, %v8119_v50  ;;  %v8127_v4 = vrot.slane %v8126_v57, 1  ;;  %v12224_v61 = vld [vmem:[#allocation8] sm:$0xff] }
 0x572   : > { %v8041_v45 = vadd.f32 %v8040_v0, %v8039_v23  ;;  %v8061_v40 = vmul.f32 0.25, %v8034_v29  ;;  %v8048_v58 = vadd.f32 %v8047_v38, %v8046_v59  ;;  %v8054_v48 = vrot.slane %v8053_v60, 1 }
 0x573   : > { %v8114_v33 = vadd.f32 %v8113_v49, %v8112_v44  ;;  %v8157_v16 = vmul.f32 0.25, %v8107_v13  ;;  %v8128_v18 = vadd.f32 %v8127_v4, %v8126_v57  ;;  %v8159_v20 = vmul.f32 0.25, %v8121_v2 }
 0x574   : > { %v8062_v50 = vmul.f32 0.25, %v8041_v45  ;;  %v8055_v43 = vadd.f32 %v8054_v48, %v8053_v60  ;;  %v8063_v51 = vmul.f32 0.25, %v8048_v58  ;;  %v8206_v53 = vrot.slane %v12224_v61, %v12119_v32 }
 0x575   : > { %v8158_v8 = vmul.f32 0.25, %v8114_v33  ;;  %v8165_v10 = vadd.f32 1e-05, %v8157_v16  ;;  %v8160_v25 = vmul.f32 0.25, %v8128_v18  ;;  %v8167_v26 = vadd.f32 1e-05, %v8159_v20 }
 0x576   : > { %v8075_v52 = vcombine.low %v8061_v40, %v8062_v50  ;;  %v8064_v44 = vmul.f32 0.25, %v8055_v43  ;;  %v8210_v57 = vrot.slane %v12224_v61, %v12125_v54  ;;  %v8214_v49 = vrot.slane %v12224_v61, %v12131_v34 }
 0x577   : > { %v8166_v56 = vadd.f32 1e-05, %v8158_v8  ;;  %10438 = vrsqrt.f32 %v8165_v10  ;;  %v8168_v28 = vadd.f32 1e-05, %v8160_v25 }
 0x578   : > { %10440 = vrsqrt.f32 %v8167_v26  ;;  %v12227_v46 = vsub.f32 %v12210_v31, %v8075_v52  ;;  %v8076_v6 = vcombine.low %v8063_v51, %v8064_v44  ;;  %v8218_v31 = vrot.slane %v12224_v61, %v12137_v47 }
 0x579   : > { %10442 = vrsqrt.f32 %v8166_v56  ;;  %v8235_v14 = vcombine.low %v8206_v53, %v8210_v57 }
 0x57a   : > { %10444 = vrsqrt.f32 %v8168_v28  ;;  %v8087_v55 = vmul.f32 %v12227_v46, %v12227_v46  ;;  %v12236_v37 = vsub.f32 %v12212_v41, %v8076_v6  ;;  %v8236_v18 = vcombine.low %v8214_v49, %v8218_v31 }
 0x57c   : > { %v8095_v42 = vcombine.high %v8087_v55, %v8087_v55  ;;  %v8129_v39 = vsel %vm7999_vm0, %v8087_v55, 0.0  ;;  %v8088_v54 = vmul.f32 %v12236_v37, %v12236_v37 }
 0x57d   : > { %v8130_v2 = vrot.slane %v8129_v39, 4 }
 0x57e   : > { %v8136_v41 = vsel %vm7999_vm0, %v8095_v42, 0.0  ;;  %v8096_v34 = vcombine.high %v8088_v54, %v8088_v54  ;;  %v8143_v47 = vsel %vm7999_vm0, %v8088_v54, 0.0  ;;  %v10411_v54 = vld [vmem:[%s12375_s5 + $0x1f0] sm:$0xff]  }
 0x57f   : > { %v8131_v16 = vadd.f32 %v8130_v2, %v8129_v39  ;;  %v8137_v62 = vrot.slane %v8136_v41, 4  ;;  %v8144_v8 = vrot.slane %v8143_v47, 4  ;;  %v10409_v39 = vld [vmem:[%s12375_s5 + $0x1b8] sm:$0xff]  }
 0x580   : > { %v8150_v3 = vsel %vm7999_vm0, %v8096_v34, 0.0  ;;  %v10415_v34 = vld [vmem:[%s12375_s5 + $0x1e8] sm:$0xff]  }
 0x581   : > { %v8132_v5 = vrot.slane %v8131_v16, 2  ;;  %v8138_v19 = vadd.f32 %v8137_v62, %v8136_v41  ;;  %v8145_v27 = vadd.f32 %v8144_v8, %v8143_v47  ;;  %v8151_v56 = vrot.slane %v8150_v3, 4  ;;  %v10412_v41 = vld [vmem:[%s12375_s5 + $0x130] sm:$0xff]   ;;  %v10414_v62 = vld [vmem:[%s12375_s5 + $0x168] sm:$0xff]   ;;  %v10420_v8 = vld [vmem:[%s12375_s5 + $0x120] sm:$0xff]  }
 0x583   : > { %v8133_v25 = vadd.f32 %v8132_v5, %v8131_v16  ;;  %v8139_v26 = vrot.slane %v8138_v19, 2  ;;  %v8146_v29 = vrot.slane %v8145_v27, 2  ;;  %v8152_v0 = vadd.f32 %v8151_v56, %v8150_v3  ;;  %v10413_v16 = vld [vmem:[%s12375_s5 + $0x1b0] sm:$0xff]   ;;  %v10418_v5 = vld [vmem:[%s12375_s5 + $0x160] sm:$0xff]   ;;  %v10422_v3 = vld [vmem:[%s12375_s5 + $0x158] sm:$0xff]  }
 0x584   : > { %v10439_v13 = vpop.eup %10438  ;;  %v10424_v56 = vld [vmem:[%s12375_s5 + $0x118] sm:$0xff]  }
 0x585   : > { %v10441_v32 = vpop.eup %10440  ;;  %v8134_v7 = vrot.slane %v8133_v25, 1  ;;  %v8140_v28 = vadd.f32 %v8139_v26, %v8138_v19  ;;  %v8147_v40 = vadd.f32 %v8146_v29, %v8145_v27  ;;  %v8153_v58 = vrot.slane %v8152_v0, 2  ;;  %v10419_v19 = vld [vmem:[%s12375_s5 + $0x1e0] sm:$0xff]   ;;  %v10423_v27 = vld [vmem:[%s12375_s5 + $0x1d8] sm:$0xff]  }
 0x586   : > { %v10443_v4 = vpop.eup %10442 }
 0x587   : > { %v10445_v15 = vpop.eup %10444  ;;  %v8189_v33 = vcombine.low %v10439_v13, %v10443_v4  ;;  %v8135_v60 = vadd.f32 %v8134_v7, %v8133_v25  ;;  %v10408_v13 = vld [vmem:[%s12375_s5 + $0x138] sm:$0xff]   ;;  %v8154_v31 = vadd.f32 %v8153_v58, %v8152_v0  ;;  %v8226_v25 = vrot.slane %v12224_v61, %v12171_v22  ;;  %v10426_v22 = vld [vmem:[%s12375_s5 + $0x150] sm:$0xff]  }
 0x588   : > { %v8190_v17 = vcombine.low %v10441_v32, %v10445_v15  ;;  %v10410_v32 = vld [vmem:[%s12375_s5 + $0x170] sm:$0xff]   ;;  %v8230_v0 = vrot.slane %v12224_v61, %v12176_v24  ;;  %v10431_v24 = vld [vmem:[%s12375_s5 + $0x1c8] sm:$0xff]  }
 0x589   : > { %v8197_v20 = vmul.f32 %v8189_v33, %v12190_v30  ;;  %v8161_v43 = vmul.f32 0.25, %v8135_v60  ;;  %v8155_v4 = vrot.slane %v8154_v31, 1 }
 0x58a   : > { %v8198_v10 = vmul.f32 %v8190_v17, %v12192_v12  ;;  %v8141_v12 = vrot.slane %v8140_v28, 1 }
 0x58b   : > { %v8243_v1 = vmul.f32 %v8235_v14, %v8197_v20  ;;  %v8169_v57 = vadd.f32 1e-05, %v8161_v43  ;;  %v8156_v15 = vadd.f32 %v8155_v4, %v8154_v31  ;;  %v10417_v20 = vld [vmem:[%s12375_s5 + $0x1a8] sm:$0xff]   ;;  %v10434_v43 = vld [vmem:[%s12375_s5 + $0x140] sm:$0xff]  }
 0x58c   : > { %v8244_v23 = vmul.f32 %v8236_v18, %v8198_v10  ;;  %v8142_v50 = vadd.f32 %v8141_v12, %v8140_v28  ;;  %v10416_v18 = vld [vmem:[%s12375_s5 + $0x128] sm:$0xff]   ;;  %v10421_v10 = vld [vmem:[%s12375_s5 + $0x1a0] sm:$0xff]   ;;  %v10427_v28 = vld [vmem:[%s12375_s5 + $0x1d0] sm:$0xff]  }
 0x58d   : > { %v8289_v59 = vadd.f32 %v12160_v35, %v8243_v1  ;;  %v8148_v35 = vrot.slane %v8147_v40, 1  ;;  %10446 = vrsqrt.f32 %v8169_v57  ;;  %v8164_v17 = vmul.f32 0.25, %v8156_v15  ;;  %v10429_v12 = vld [vmem:[%s12375_s5 + $0x190] sm:$0xff]   ;;  %v10437_v57 = vld [vmem:[%s12375_s5 + $0x180] sm:$0xff]  }
 0x58e   : > { %v8290_v30 = vadd.f32 %v12167_v21, %v8244_v23  ;;  %v8162_v53 = vmul.f32 0.25, %v8142_v50  ;;  %v8222_v1 = vrot.slane %v12224_v61, %v12165_v11  ;;  %v10425_v11 = vld [vmem:[%s12375_s5 + $0x198] sm:$0xff]   ;;  %v10433_v50 = vld [vmem:[%s12375_s5 + $0x188] sm:$0xff]  }
 0x58f   : > { %vm8293_vm1 = vcmp.ge.f32.partialorder %v8289_v59, 0.0  ;;  %v8297_v38 = vmul.f32 0.2, %v8289_v59  ;;  %v8149_v49 = vadd.f32 %v8148_v35, %v8147_v40  ;;  %v8172_v47 = vadd.f32 1e-05, %v8164_v17 }
 0x590   : > { %vm8294_vm2 = vcmp.ge.f32.partialorder %v8290_v30, 0.0  ;;  %v8298_v45 = vmul.f32 0.2, %v8290_v30  ;;  %v8170_v2 = vadd.f32 1e-05, %v8162_v53  ;;  %v8237_v7 = vcombine.low %v8222_v1, %v8226_v25 }
 0x591   : > { %v8301_v48 = vsel %vm8293_vm1, %v8289_v59, %v8297_v38  ;;  %v8163_v14 = vmul.f32 0.25, %v8149_v49  ;;  %v8234_v38 = vrot.slane %v12224_v61, %v12184_v63  ;;  %v10432_v61 = vld [vmem:[%s12375_s5 + $0x108] sm:$0xff]  }
 0x592   : > { %v8309_v51 = vcombine.high %v8301_v48, %v8301_v48  ;;  %v8302_v52 = vsel %vm8294_vm2, %v8290_v30, %v8298_v45  ;;  %v8317_v44 = vpack.c.bf16 %v8301_v48, %v8301_v48  ;;  %10448 = vrsqrt.f32 %v8170_v2  ;;  %v10428_v30 = vld [vmem:[%s12375_s5 + $0x110] sm:$0xff]  }
 0x593   : > { %v8310_v6 = vcombine.high %v8302_v52, %v8302_v52  ;;  %v8319_v55 = vpack.c.bf16 %v8302_v52, %v8302_v52  ;;  %v8171_v33 = vadd.f32 1e-05, %v8163_v14  ;;  %v8238_v48 = vcombine.low %v8230_v0, %v8234_v38 }
 0x594   : > { %v8318_v21 = vpack.c.bf16 %v8309_v51, %v8309_v51 }
 0x595   : > { %v8320_v42 = vpack.c.bf16 %v8310_v6, %v8310_v6  ;;  %10450 = vrsqrt.f32 %v8171_v33 }
 0x596   : > { %8876 = vmatprep.mubr.bf16.mxu0 %v8318_v21  ;;  %10452 = vrsqrt.f32 %v8172_v47 }
 0x597   : > { %8916 = vmatprep.mubr.bf16.mxu1 %v8320_v42  ;;  %8877 = vmatmul.mubr.bf16.vlgmr.msra.gmra.mxu0 %v8317_v44  ;;  %v10436_v44 = vld [vmem:[%s12375_s5 + $0x100] sm:$0xff]  }
 0x598   : > { %8917 = vmatmul.mubr.bf16.vlgmr.msra.gmra.mxu1 %v8319_v55  ;;  %10253 = vmatpush3.bf16.msra.mxu0 %v10408_v13 }
 0x599   : > { %10275 = vmatpush3.bf16.msra.mxu1 %v10409_v39  ;;  %10254 = vmatprep.subr.bf16.mxu0 %v10410_v32 }
 0x59a   : > { %10276 = vmatprep.subr.bf16.mxu1 %v10411_v54  ;;  %v10447_v26 = vpop.eup %10446 }
 0x59c   : > { %10255 = vmatpush3.bf16.msra.mxu0 %v10412_v41 }
 0x59d   : > { %10277 = vmatpush3.bf16.msra.mxu1 %v10413_v16  ;;  %10256 = vmatprep.subr.bf16.mxu0 %v10414_v62  ;;  %v10139_v16 = vld [vmem:[#allocation3] ss:$0 sm:$0xff] }
 0x59e   : > { %10278 = vmatprep.subr.bf16.mxu1 %v10415_v34 }
 0x59f   : > { %v10449_v23 = vpop.eup %10448 }
 0x5a0   : > { %10257 = vmatpush3.bf16.msra.mxu0 %v10416_v18  ;;  %v8191_v59 = vcombine.low %v10447_v26, %v10449_v23 }
 0x5a1   : > { %10279 = vmatpush3.bf16.msra.mxu1 %v10417_v20  ;;  %10258 = vmatprep.subr.bf16.mxu0 %v10418_v5 }
 0x5a2   : > { %10280 = vmatprep.subr.bf16.mxu1 %v10419_v19  ;;  %v8199_v29 = vmul.f32 %v8191_v59, %v12227_v46  ;;  %v10451_v60 = vpop.eup %10450  ;;  %v10430_v46 = vld [vmem:[%s12375_s5 + $0x148] sm:$0xff]  }
 0x5a3   : > { %v10453_v40 = vpop.eup %10452 }
 0x5a4   : > { %10259 = vmatpush3.bf16.msra.mxu0 %v10420_v8  ;;  %v8245_v45 = vmul.f32 %v8237_v7, %v8199_v29  ;;  %v8192_v58 = vcombine.low %v10451_v60, %v10453_v40 }
 0x5a5   : > { %10281 = vmatpush3.bf16.msra.mxu1 %v10421_v10  ;;  %10260 = vmatprep.subr.bf16.mxu0 %v10422_v3 }
 0x5a6   : > { %10282 = vmatprep.subr.bf16.mxu1 %v10423_v27  ;;  %v8291_v63 = vadd.f32 %v12181_v36, %v8245_v45  ;;  %v10435_v36 = vld [vmem:[%s12375_s5 + $0x1c0] sm:$0xff]   ;;  %v8200_v52 = vmul.f32 %v8192_v58, %v12236_v37 }
 0x5a8   : > { %10261 = vmatpush3.bf16.msra.mxu0 %v10424_v56  ;;  %vm8295_vm3 = vcmp.ge.f32.partialorder %v8291_v63, 0.0  ;;  %v8299_v51 = vmul.f32 0.2, %v8291_v63  ;;  %v8246_v53 = vmul.f32 %v8238_v48, %v8200_v52 }
 0x5a9   : > { %10283 = vmatpush3.bf16.msra.mxu1 %v10425_v11  ;;  %10262 = vmatprep.subr.bf16.mxu0 %v10426_v22 }
 0x5aa   : > { %10284 = vmatprep.subr.bf16.mxu1 %v10427_v28  ;;  %v8303_v35 = vsel %vm8295_vm3, %v8291_v63, %v8299_v51  ;;  %v8292_v55 = vadd.f32 %v12188_v9, %v8246_v53 }
 0x5ab   : > { %v8311_v6 = vcombine.high %v8303_v35, %v8303_v35  ;;  %v8321_v13 = vpack.c.bf16 %v8303_v35, %v8303_v35 }
 0x5ac   : > { %10263 = vmatpush3.bf16.msra.mxu0 %v10428_v30  ;;  %vm8296_vm4 = vcmp.ge.f32.partialorder %v8292_v55, 0.0  ;;  %v8300_v37 = vmul.f32 0.2, %v8292_v55 }
 0x5ad   : > { %10285 = vmatpush3.bf16.msra.mxu1 %v10429_v12  ;;  %10264 = vmatprep.subr.bf16.mxu0 %v10430_v46  ;;  %v8322_v21 = vpack.c.bf16 %v8311_v6, %v8311_v6 }
 0x5ae   : > { %10286 = vmatprep.subr.bf16.mxu1 %v10431_v24  ;;  %v8304_v49 = vsel %vm8296_vm4, %v8292_v55, %v8300_v37 }
 0x5af   : > { %8956 = vmatprep.mubr.bf16.mxu0 %v8322_v21  ;;  %v8312_v31 = vcombine.high %v8304_v49, %v8304_v49  ;;  %v8323_v42 = vpack.c.bf16 %v8304_v49, %v8304_v49 }
 0x5b0   : > { %10265 = vmatpush3.bf16.msra.mxu0 %v10432_v61 }
 0x5b1   : > { %10287 = vmatpush3.bf16.msra.mxu1 %v10433_v50  ;;  %10266 = vmatprep.subr.bf16.mxu0 %v10434_v43  ;;  %v8324_v39 = vpack.c.bf16 %v8312_v31, %v8312_v31 }
 0x5b2   : > { %10288 = vmatprep.subr.bf16.mxu1 %v10435_v36 }
 0x5b3   : > { %8996 = vmatprep.mubr.bf16.mxu1 %v8324_v39 }
 0x5b4   : > { %10267 = vmatpush3.bf16.msra.mxu0 %v10436_v44 }
 0x5b5   : > { %10289 = vmatpush3.bf16.msra.mxu1 %v10437_v57 }
 0x5b7   : > { %8957 = vmatmul.mubr.bf16.vlgmr.msra.gmra.mxu0 %v8321_v13 }
 0x5b8   : > { %8997 = vmatmul.mubr.bf16.vlgmr.msra.gmra.mxu1 %v8323_v42 }
 0x657   : > { %v10224_v32 = vpop.f32.mrf.mxu0 }
 0x658   : > { %v10246_v2 = vpop.f32.mrf.mxu1 }
 0x659   : > { %v10225_v54 = vpop.f32.mrf.mxu0 }
 0x65a   : > { %v10247_v4 = vpop.f32.mrf.mxu1  ;;  %v10226_v33 = vadd.f32 %v10225_v54, %v10224_v32 }
 0x65b   : > { %v10227_v14 = vpop.f32.mrf.mxu0  ;;  %v10248_v17 = vadd.f32 %v10247_v4, %v10246_v2 }
 0x65c   : > { %v10249_v41 = vpop.f32.mrf.mxu1  ;;  %v8879_v62 = vadd.f32 %v10226_v33, %v10139_v16 }
 0x65d   : > { %v10228_v9 = vpop.f32.mrf.mxu0 }
 0x65e   : > { %v10250_v15 = vpop.f32.mrf.mxu1  ;;  %v8919_v20 = vadd.f32 %v10248_v17, %v8879_v62 }
 0x677   : > { %v10268_v34 = vpop.f32.mrf.mxu0 }
 0x678   : > { %v10290_v19 = vpop.f32.mrf.mxu1 }
 0x679   : > { %v10269_v18 = vpop.f32.mrf.mxu0 }
 0x67a   : > { %v10270_v47 = vadd.f32 %v10269_v18, %v10268_v34  ;;  %v10291_v3 = vpop.f32.mrf.mxu1 }
 0x67b   : > { %v10271_v5 = vpop.f32.mrf.mxu0  ;;  %v10292_v1 = vadd.f32 %v10291_v3, %v10290_v19 }
 0x67c   : > { %v8959_v8 = vadd.f32 %v10270_v47, %v8919_v20  ;;  %v10293_v25 = vpop.f32.mrf.mxu1 }
 0x67d   : > { %v10272_v10 = vpop.f32.mrf.mxu0 }
 0x67e   : > { %v8999_v26 = vadd.f32 %v10292_v1, %v8959_v8  ;;  %v10294_v27 = vpop.f32.mrf.mxu1 }
 0x680   : > { %v9004_v23 = vand.u32 2147483647, %v8999_v26  ;;  %vm9008_vm6 = vcmp.ge.f32.partialorder %v8999_v26, 0.0 }
 0x682   : > { %v9005_v56 = vsub.f32 0.0, %v9004_v23 }
 0x684   : > { %v9006_v11 = vmul.f32 1.442695, %v9005_v56 }
 0x686   : > { %10454 = vpow2.f32 %v9006_v11 }
 0x693   : > { %v10455_v22 = vpop.eup %10454 }
 0x694   : > { %v9009_v59 = vadd.f32 1.0, %v10455_v22 }
 0x696   : > { %10456 = vrcp.f32 %v9009_v59 }
 0x6a3   : > { %v10457_v7 = vpop.eup %10456 }
 0x6a4   : > { %v9012_v28 = vmul.f32 %v10457_v7, %v10455_v22 }
 0x6a6   : > { %v9013_v29 = vsel %vm9008_vm6, %v10457_v7, %v9012_v28 }
 0x6a7   : > { %9015 = vst.msk [vmem:[%s12377_s7] sm:$0xf] %vm9014_vm5, %v9013_v29 }
 0x6a8 PF: > { %p21_p3 = scmp.ge.s32.totalorder %s10737_s25, 6   ;;  %s12392_s26 = smov %s10598_s27 }
 0x6a9   : > { %s12393_s27 = smov %s10602_s28  ;;  %s12394_s28 = smov %s10747_s10 }
 0x6aa   : > { %s12395_s29 = smov %s10737_s25  ;;  %23 = sbr.rel (!%p21_p3) target bundleno = 8 (0x8), region = 107 }
 0x6af   :  { %9027 = vsyncpa [#allocation5], 1 }
 0x6b0   :  { %9029 = vsyncpa [#allocation5 + $0x1], 1 }
 0x6b1   :  { %9030 = vsyncpa [#allocation7], 1 }
 0x6b2   :  { %9031 = vsyncpa [#allocation10], 1 }

</bundles_post_ra>
